<compile_context>
chip_gen: v5e
topology: v5e:2x2
jax: 0.10.0
libtpu: 0.0.40
codegen_flags: <defaults>
</compile_context>

<pallas_src>
import functools

import numpy as np
import jax
import jax.numpy as jnp
from jax.experimental import pallas as pl
from jax.experimental.pallas import tpu as pltpu

# ---- scaled-down DenseNet config (densenet201: blocks (6,12,48,32), growth 32, init 64) ----
BLOCK_CONFIG = (2, 2, 2, 2)
GROWTH = 8
BN_SIZE = 4
INIT_FEATURES = 16
CLASSES = 4  # Plant Pathology 2020 has 4 classes

_PAR = pltpu.CompilerParams(dimension_semantics=("parallel",))


def _pick_m_tile(M, cap=512):
    """Largest row tile <= cap that divides M (full-array block when M is small)."""
    if M <= cap:
        return M, 1
    for t in range(cap, 7, -8):          # multiples of 8 only
        if M % t == 0:
            return t, M // t
    return M, 1                           # no aligned divisor -> single block


# ------------------------- fused affine/ReLU matmul kernel -------------------------

def _fused_matmul_kernel(x_ref, ps_ref, pb_ref, w_ref, qs_ref, qb_ref, o_ref,
                         *, pre_relu, post_relu):
    # prologue: folded BatchNorm (+ReLU) on the input tile, in f32
    a = x_ref[...].astype(jnp.float32) * ps_ref[...] + pb_ref[...]
    if pre_relu:
        a = jnp.maximum(a, 0.0)
    # MXU matmul in bf16 with f32 accumulation
    acc = jnp.dot(a.astype(jnp.bfloat16), w_ref[...], preferred_element_type=jnp.float32)
    # epilogue: folded BatchNorm / bias (+ReLU) on the output tile, in f32
    acc = acc * qs_ref[...] + qb_ref[...]
    if post_relu:
        acc = jnp.maximum(acc, 0.0)
    o_ref[...] = acc.astype(o_ref.dtype)


def fused_affine_matmul(x2d, pre_scale, pre_shift, w, post_scale, post_shift,
                        *, pre_relu=True, post_relu=False, out_dtype=jnp.float32):
    """epilogue( relu(x*ps+pb) @ w ) in one pallas_call, tiled over rows."""
    M, K = x2d.shape
    Kw, N = w.shape
    assert K == Kw
    tm, gm = _pick_m_tile(M)
    f32 = jnp.float32
    out_bytes = M * N * np.dtype(out_dtype).itemsize
    return pl.pallas_call(
        functools.partial(_fused_matmul_kernel, pre_relu=pre_relu, post_relu=post_relu),
        out_shape=jax.ShapeDtypeStruct((M, N), out_dtype),
        grid=(gm,),
        in_specs=[
            pl.BlockSpec((tm, K), lambda i: (i, 0)),
            pl.BlockSpec((1, K), lambda i: (0, 0)),
            pl.BlockSpec((1, K), lambda i: (0, 0)),
            pl.BlockSpec((K, N), lambda i: (0, 0)),
            pl.BlockSpec((1, N), lambda i: (0, 0)),
            pl.BlockSpec((1, N), lambda i: (0, 0)),
        ],
        out_specs=pl.BlockSpec((tm, N), lambda i: (i, 0)),
        compiler_params=_PAR,
        cost_estimate=pl.CostEstimate(
            flops=2 * M * K * N, transcendentals=0,
            bytes_accessed=int(M * K * x2d.dtype.itemsize + K * N * 2 + out_bytes)),
    )(x2d, pre_scale.reshape(1, K).astype(f32), pre_shift.reshape(1, K).astype(f32),
      w.astype(jnp.bfloat16), post_scale.reshape(1, N).astype(f32),
      post_shift.reshape(1, N).astype(f32))


# ---------------- stride-1 KxK conv as a sum of shifted-window matmuls ----------------
#
# The spatially padded image is flattened to (Hp*Wp, Cin); for tap (di, dj) the rows
# needed for every output position form a single contiguous slice at offset di*Wp+dj,
# so the conv is sum_taps slice @ w[tap], accumulated in VMEM with one read of the
# activation (the few wrap-around columns land at output columns >= Wo and are sliced off).

def _tap_conv_kernel(x_ref, w_ref, qs_ref, qb_ref, o_ref, *, taps, Wp, post_relu):
    Lo = o_ref.shape[1]
    acc = None
    for t, (di, dj) in enumerate(taps):
        off = di * Wp + dj
        a = x_ref[0, off:off + Lo, :].astype(jnp.bfloat16)
        d = jnp.dot(a, w_ref[t], preferred_element_type=jnp.float32)
        acc = d if acc is None else acc + d
    acc = acc * qs_ref[...] + qb_ref[...]
    if post_relu:
        acc = jnp.maximum(acc, 0.0)
    o_ref[0] = acc.astype(o_ref.dtype)


def conv2d_taps(x, w, post_scale, post_shift, *, pad, post_relu, out_dtype=jnp.float32):
    """Stride-1 conv (zero padding `pad`) with fused affine(+ReLU) epilogue.
       x: NHWC, w: (KH, KW, Cin, Cout)."""
    N, H, W, Cin = x.shape
    KH, KW, _, Cout = w.shape
    Ho = H + 2 * pad - KH + 1
    Wo = W + 2 * pad - KW + 1
    Wp = W + 2 * pad
    Hp = H + 2 * pad + 1                    # one extra zero row keeps every tap slice in range
    Lo = Ho * Wp
    xp = jnp.pad(x, ((0, 0), (pad, pad + 1), (pad, pad), (0, 0)))
    xf = xp.reshape(N, Hp * Wp, Cin)        # free reshape
    wt = w.reshape(KH * KW, Cin, Cout).astype(jnp.bfloat16)
    taps = tuple((di, dj) for di in range(KH) for dj in range(KW))
    f32 = jnp.float32
    out_wide = pl.pallas_call(
        functools.partial(_tap_conv_kernel, taps=taps, Wp=Wp, post_relu=post_relu),
        out_shape=jax.ShapeDtypeStruct((N, Lo, Cout), out_dtype),
        grid=(N,),
        in_specs=[
            pl.BlockSpec((1, Hp * Wp, Cin), lambda n: (n, 0, 0)),
            pl.BlockSpec((KH * KW, Cin, Cout), lambda n: (0, 0, 0)),
            pl.BlockSpec((1, Cout), lambda n: (0, 0)),
            pl.BlockSpec((1, Cout), lambda n: (0, 0)),
        ],
        out_specs=pl.BlockSpec((1, Lo, Cout), lambda n: (n, 0, 0)),
        compiler_params=_PAR,
        cost_estimate=pl.CostEstimate(
            flops=2 * N * Lo * Cin * Cout * len(taps), transcendentals=0,
            bytes_accessed=int(N * Hp * Wp * Cin * xf.dtype.itemsize
                               + KH * KW * Cin * Cout * 2
                               + N * Lo * Cout * np.dtype(out_dtype).itemsize)),
    )(xf, wt, post_scale.reshape(1, Cout).astype(f32),
      post_shift.reshape(1, Cout).astype(f32))
    # drop the "wide" junk columns (and padded rows) produced by the flattened-shift trick
    return out_wide.reshape(N, Ho, Wp, Cout)[:, :, :Wo, :]


# --------------------------- 3x3/2 max pool (stem) ---------------------------
# stride-2 taps are decomposed into the 4 even/odd phase slabs of the (-inf)-padded input
# (1x traffic); the kernel is a running VPU max over 9 static slab windows.

def _maxpool9_kernel(pee_ref, peo_ref, poe_ref, poo_ref, o_ref):
    Ho, Wo = o_ref.shape[1], o_ref.shape[2]
    refs = {(0, 0): pee_ref, (0, 1): peo_ref, (1, 0): poe_ref, (1, 1): poo_ref}
    acc = None
    for dh, ph in ((0, 0), (0, 1), (1, 0)):
        for dw, pw in ((0, 0), (0, 1), (1, 0)):
            slab = refs[(ph, pw)][0, dh:dh + Ho, dw:dw + Wo, :]
            acc = slab if acc is None else jnp.maximum(acc, slab)
    o_ref[0] = acc


def maxpool3x3s2(x):
    N, H, W, C = x.shape
    assert H % 2 == 0 and W % 2 == 0
    Ho, Wo = H // 2, W // 2
    xp = jnp.pad(x, ((0, 0), (1, 1), (1, 1), (0, 0)), constant_values=-1e30)
    phases = [xp[:, ph::2, pw::2, :] for ph in (0, 1) for pw in (0, 1)]  # (N, Ho+1, Wo+1, C)
    spec = pl.BlockSpec((1, Ho + 1, Wo + 1, C), lambda n: (n, 0, 0, 0))
    return pl.pallas_call(
        _maxpool9_kernel,
        out_shape=jax.ShapeDtypeStruct((N, Ho, Wo, C), x.dtype),
        grid=(N,),
        in_specs=[spec] * 4,
        out_specs=pl.BlockSpec((1, Ho, Wo, C), lambda n: (n, 0, 0, 0)),
        compiler_params=_PAR,
    )(*phases)


# --------------------------- 2x2/2 average pool (transitions) ---------------------------
# non-overlapping 2x2 windows == 4 disjoint phase slabs (exactly 1x the input);
# the kernel is a tiled elementwise mean over rows.

def _avg4_kernel(a_ref, b_ref, c_ref, d_ref, o_ref):
    o_ref[...] = 0.25 * (a_ref[...] + b_ref[...] + c_ref[...] + d_ref[...])


def avgpool2x2(x):
    N, H, W, C = x.shape
    assert H % 2 == 0 and W % 2 == 0
    Ho, Wo = H // 2, W // 2
    M = N * Ho * Wo
    phases = [x[:, ph::2, pw::2, :].reshape(M, C) for ph in (0, 1) for pw in (0, 1)]
    tm, gm = _pick_m_tile(M)
    spec = pl.BlockSpec((tm, C), lambda i: (i, 0))
    out = pl.pallas_call(
        _avg4_kernel,
        out_shape=jax.ShapeDtypeStruct((M, C), jnp.float32),
        grid=(gm,),
        in_specs=[spec] * 4,
        out_specs=spec,
        compiler_params=_PAR,
    )(*phases)
    return out.reshape(N, Ho, Wo, C)


# ----------------- classifier head: final BN + ReLU + global avg pool + Linear -----------------

def _head_kernel(x_ref, s_ref, b_ref, w_ref, bias_ref, o_ref):
    a = jnp.maximum(x_ref[...].astype(jnp.float32) * s_ref[...] + b_ref[...], 0.0)
    pooled = jnp.mean(a, axis=1)                              # global average pool -> (N, C)
    logits = jnp.dot(pooled.astype(jnp.bfloat16), w_ref[...],
                     preferred_element_type=jnp.float32)
    o_ref[...] = logits + bias_ref[...]


def classifier_head(x, scale, shift, fc_w, fc_b):
    N, H, W, C = x.shape
    classes = fc_w.shape[1]
    f32 = jnp.float32
    return pl.pallas_call(
        _head_kernel,
        out_shape=jax.ShapeDtypeStruct((N, classes), jnp.float32),
        grid=(1,),
        in_specs=[
            pl.BlockSpec((N, H * W, C), lambda i: (0, 0, 0)),
            pl.BlockSpec((1, 1, C), lambda i: (0, 0, 0)),
            pl.BlockSpec((1, 1, C), lambda i: (0, 0, 0)),
            pl.BlockSpec((C, classes), lambda i: (0, 0)),
            pl.BlockSpec((1, classes), lambda i: (0, 0)),
        ],
        out_specs=pl.BlockSpec((N, classes), lambda i: (0, 0)),
        compiler_params=_PAR,
    )(x.reshape(N, H * W, C), scale.reshape(1, 1, C).astype(f32),
      shift.reshape(1, 1, C).astype(f32), fc_w.astype(jnp.bfloat16),
      fc_b.reshape(1, classes).astype(f32))


# ----------------- stem 7x7/2 conv rewritten via space-to-depth as a 4x4/1 conv -----------------

def _space_to_depth2(x):
    N, H, W, C = x.shape
    assert H % 2 == 0 and W % 2 == 0
    x = x.reshape(N, H // 2, 2, W // 2, 2, C)
    x = jnp.transpose(x, (0, 1, 3, 2, 4, 5))
    return x.reshape(N, H // 2, W // 2, 4 * C)


def _stem_weight_s2d(w7):
    """(7,7,Cin,Cout) stride-2 weights -> (4,4,4*Cin,Cout) stride-1 weights on the s2d image."""
    KH, KW, Cin, Cout = w7.shape
    w4 = jnp.zeros((KH // 2 + 1, KW // 2 + 1, 2, 2, Cin, Cout), w7.dtype)
    for i in range(KH):
        for j in range(KW):
            w4 = w4.at[i // 2, j // 2, i % 2, j % 2].set(w7[i, j])
    return w4.reshape(KH // 2 + 1, KW // 2 + 1, 4 * Cin, Cout)


# -------------------------- parameters (deterministic synthetic) --------------------------

def _bn_params(key, c):
    k1, k2, k3, k4 = jax.random.split(key, 4)
    gamma = 1.0 + 0.1 * jax.random.normal(k1, (c,), jnp.float32)
    beta = 0.1 * jax.random.normal(k2, (c,), jnp.float32)
    mean = 0.1 * jax.random.normal(k3, (c,), jnp.float32)
    var = 1.0 + 0.1 * jax.random.uniform(k4, (c,), jnp.float32)
    scale = gamma / jnp.sqrt(var + 1e-5)
    shift = beta - mean * scale
    return {"scale": scale, "shift": shift}


def _conv_w(key, kh, kw, cin, cout):
    return jax.random.normal(key, (kh, kw, cin, cout), jnp.float32) / jnp.sqrt(kh * kw * cin)


def _conv_w1x1(key, cin, cout):
    return jax.random.normal(key, (cin, cout), jnp.float32) / jnp.sqrt(cin)


def init_params(key):
    keys = iter(jax.random.split(key, 512))
    params = {
        "conv0": _conv_w(next(keys), 7, 7, 3, INIT_FEATURES),
        "bn0": _bn_params(next(keys), INIT_FEATURES),
    }
    c = INIT_FEATURES
    for bi, nlayers in enumerate(BLOCK_CONFIG):
        for li in range(nlayers):
            inter = BN_SIZE * GROWTH
            params[f"b{bi}l{li}"] = {
                "bn1": _bn_params(next(keys), c),
                "conv1": _conv_w1x1(next(keys), c, inter),
                "bn2": _bn_params(next(keys), inter),
                "conv2": _conv_w(next(keys), 3, 3, inter, GROWTH),
            }
            c += GROWTH
        if bi != len(BLOCK_CONFIG) - 1:
            cout = c // 2
            params[f"t{bi}"] = {
                "bn": _bn_params(next(keys), c),
                "conv": _conv_w1x1(next(keys), c, cout),
            }
            c = cout
    params["bn_final"] = _bn_params(next(keys), c)
    params["fc_w"] = jax.random.normal(next(keys), (c, CLASSES), jnp.float32) / jnp.sqrt(c)
    params["fc_b"] = 0.01 * jax.random.normal(next(keys), (CLASSES,), jnp.float32)
    return params


# -------------------------------- forward --------------------------------

def densenet_forward(image_nchw, params):
    x = jnp.transpose(image_nchw, (0, 2, 3, 1)).astype(jnp.float32)  # NCHW -> NHWC
    _, H, W, _ = x.shape
    assert H % 2 == 0 and W % 2 == 0

    # stem: conv0 7x7/2 (space-to-depth -> 4x4/1 tap conv) fused with BN0+ReLU, then 3x3/2 maxpool
    xp = jnp.pad(x, ((0, 0), (3, 3), (3, 3), (0, 0)))
    xs2d = _space_to_depth2(xp)
    w4 = _stem_weight_s2d(params["conv0"])
    x = conv2d_taps(xs2d, w4, params["bn0"]["scale"], params["bn0"]["shift"],
                    pad=0, post_relu=True)
    x = maxpool3x3s2(x)

    ones_g = jnp.ones((GROWTH,), jnp.float32)
    zeros_g = jnp.zeros((GROWTH,), jnp.float32)

    # dense blocks + transitions
    for bi, nlayers in enumerate(BLOCK_CONFIG):
        for li in range(nlayers):
            p = params[f"b{bi}l{li}"]
            n_, h_, w_, c = x.shape
            inter = p["conv1"].shape[1]
            # BN1+ReLU -> 1x1 conv -> BN2+ReLU fused into one matmul kernel (bf16 bottleneck out)
            y = fused_affine_matmul(x.reshape(-1, c),
                                    p["bn1"]["scale"], p["bn1"]["shift"], p["conv1"],
                                    p["bn2"]["scale"], p["bn2"]["shift"],
                                    pre_relu=True, post_relu=True, out_dtype=jnp.bfloat16)
            y = y.reshape(n_, h_, w_, inter)
            # 3x3 conv as shifted-window matmuls (no im2col), identity epilogue
            g = conv2d_taps(y, p["conv2"], ones_g, zeros_g, pad=1, post_relu=False)
            # TODO(synk): per feedback, a preallocated 128-padded channel slab written via
            #             input_output_aliases would remove this O(L^2) concat copy.
            x = jnp.concatenate([x, g], axis=-1)
        if bi != len(BLOCK_CONFIG) - 1:
            t = params[f"t{bi}"]
            n_, h_, w_, c = x.shape
            cout = t["conv"].shape[1]
            # transition: BN+ReLU -> 1x1 conv (fused), then 2x2/2 average pool
            y = fused_affine_matmul(x.reshape(-1, c),
                                    t["bn"]["scale"], t["bn"]["shift"], t["conv"],
                                    jnp.ones((cout,), jnp.float32),
                                    jnp.zeros((cout,), jnp.float32),
                                    pre_relu=True, post_relu=False)
            x = avgpool2x2(y.reshape(n_, h_, w_, cout))

    # classifier head: norm5 -> relu -> adaptive_avg_pool -> flatten -> Linear(num_ftrs, classes)
    return classifier_head(x, params["bn_final"]["scale"], params["bn_final"]["shift"],
                           params["fc_w"], params["fc_b"])


if __name__ == "__main__":
    key = jax.random.PRNGKey(0)
    kp, kx = jax.random.split(key)
    params = init_params(kp)
    image = jax.random.normal(kx, (2, 3, 32, 32), jnp.float32)  # NCHW, like PyTorch

    logits = jax.jit(densenet_forward)(image, params)
    logits = jax.block_until_ready(logits)

    assert logits.shape == (2, CLASSES), logits.shape
    assert bool(jnp.all(jnp.isfinite(logits)))
    print("KERNEL_OK")
</pallas_src>

<mosaic_0001>
module attributes {stable_mosaic.version = 11 : i64} {
  func.func @_tap_conv_kernel(%arg0: i32, %arg1: memref<1x380x12xf32, #tpu.memory_space<vmem>>, %arg2: memref<16x12x16xbf16, #tpu.memory_space<vmem>>, %arg3: memref<1x16xf32, #tpu.memory_space<vmem>>, %arg4: memref<1x16xf32, #tpu.memory_space<vmem>>, %arg5: memref<1x304x16xf32, #tpu.memory_space<vmem>>) attributes {dimension_semantics = [#tpu.dimension_semantics<parallel>], iteration_bounds = array<i64: 2>, scalar_prefetch = 0 : i64, scratch_operands = 0 : i64, tpu.core_type = #tpu.core_type<tc>, window_params = [{transform_indices = @transform_0, window_bounds = array<i64: 1, 380, 12>}, {pipeline_mode = #tpu.pipeline_mode<synchronous>, transform_indices = @transform_1, window_bounds = array<i64: 16, 12, 16>}, {pipeline_mode = #tpu.pipeline_mode<synchronous>, transform_indices = @transform_2, window_bounds = array<i64: 1, 16>}, {pipeline_mode = #tpu.pipeline_mode<synchronous>, transform_indices = @transform_3, window_bounds = array<i64: 1, 16>}, {transform_indices = @transform_4, window_bounds = array<i64: 1, 304, 16>}]} {
    %c0 = arith.constant 0 : index
    %c0_0 = arith.constant 0 : index
    %c0_1 = arith.constant 0 : index
    %0 = vector.load %arg1[%c0, %c0_0, %c0_1] : memref<1x380x12xf32, #tpu.memory_space<vmem>>, vector<1x304x12xf32>
    %1 = vector.shape_cast %0 : vector<1x304x12xf32> to vector<304x12xf32>
    %2 = arith.truncf %1 : vector<304x12xf32> to vector<304x12xbf16>
    %c0_2 = arith.constant 0 : index
    %c0_3 = arith.constant 0 : index
    %c0_4 = arith.constant 0 : index
    %3 = vector.load %arg2[%c0_2, %c0_3, %c0_4] : memref<16x12x16xbf16, #tpu.memory_space<vmem>>, vector<1x12x16xbf16>
    %4 = vector.shape_cast %3 : vector<1x12x16xbf16> to vector<12x16xbf16>
    %cst = arith.constant dense<0.000000e+00> : vector<304x16xf32>
    %5 = tpu.matmul %2, %4, %cst {dimension_numbers = #tpu.dot_dimension_numbers<[1], [0], [0], [1], [0, 0, 1, 1], [], []>} : vector<304x12xbf16>, vector<12x16xbf16>, vector<304x16xf32> -> vector<304x16xf32>
    %c0_5 = arith.constant 0 : index
    %c1 = arith.constant 1 : index
    %c0_6 = arith.constant 0 : index
    %6 = vector.load %arg1[%c0_5, %c1, %c0_6] : memref<1x380x12xf32, #tpu.memory_space<vmem>>, vector<1x304x12xf32>
    %7 = vector.shape_cast %6 : vector<1x304x12xf32> to vector<304x12xf32>
    %8 = arith.truncf %7 : vector<304x12xf32> to vector<304x12xbf16>
    %c1_7 = arith.constant 1 : index
    %c0_8 = arith.constant 0 : index
    %c0_9 = arith.constant 0 : index
    %9 = vector.load %arg2[%c1_7, %c0_8, %c0_9] : memref<16x12x16xbf16, #tpu.memory_space<vmem>>, vector<1x12x16xbf16>
    %10 = vector.shape_cast %9 : vector<1x12x16xbf16> to vector<12x16xbf16>
    %cst_10 = arith.constant dense<0.000000e+00> : vector<304x16xf32>
    %11 = tpu.matmul %8, %10, %cst_10 {dimension_numbers = #tpu.dot_dimension_numbers<[1], [0], [0], [1], [0, 0, 1, 1], [], []>} : vector<304x12xbf16>, vector<12x16xbf16>, vector<304x16xf32> -> vector<304x16xf32>
    %12 = arith.addf %5, %11 : vector<304x16xf32>
    %c0_11 = arith.constant 0 : index
    %c2 = arith.constant 2 : index
    %c0_12 = arith.constant 0 : index
    %13 = vector.load %arg1[%c0_11, %c2, %c0_12] : memref<1x380x12xf32, #tpu.memory_space<vmem>>, vector<1x304x12xf32>
    %14 = vector.shape_cast %13 : vector<1x304x12xf32> to vector<304x12xf32>
    %15 = arith.truncf %14 : vector<304x12xf32> to vector<304x12xbf16>
    %c2_13 = arith.constant 2 : index
    %c0_14 = arith.constant 0 : index
    %c0_15 = arith.constant 0 : index
    %16 = vector.load %arg2[%c2_13, %c0_14, %c0_15] : memref<16x12x16xbf16, #tpu.memory_space<vmem>>, vector<1x12x16xbf16>
    %17 = vector.shape_cast %16 : vector<1x12x16xbf16> to vector<12x16xbf16>
    %cst_16 = arith.constant dense<0.000000e+00> : vector<304x16xf32>
    %18 = tpu.matmul %15, %17, %cst_16 {dimension_numbers = #tpu.dot_dimension_numbers<[1], [0], [0], [1], [0, 0, 1, 1], [], []>} : vector<304x12xbf16>, vector<12x16xbf16>, vector<304x16xf32> -> vector<304x16xf32>
    %19 = arith.addf %12, %18 : vector<304x16xf32>
    %c0_17 = arith.constant 0 : index
    %c3 = arith.constant 3 : index
    %c0_18 = arith.constant 0 : index
    %20 = vector.load %arg1[%c0_17, %c3, %c0_18] : memref<1x380x12xf32, #tpu.memory_space<vmem>>, vector<1x304x12xf32>
    %21 = vector.shape_cast %20 : vector<1x304x12xf32> to vector<304x12xf32>
    %22 = arith.truncf %21 : vector<304x12xf32> to vector<304x12xbf16>
    %c3_19 = arith.constant 3 : index
    %c0_20 = arith.constant 0 : index
    %c0_21 = arith.constant 0 : index
    %23 = vector.load %arg2[%c3_19, %c0_20, %c0_21] : memref<16x12x16xbf16, #tpu.memory_space<vmem>>, vector<1x12x16xbf16>
    %24 = vector.shape_cast %23 : vector<1x12x16xbf16> to vector<12x16xbf16>
    %cst_22 = arith.constant dense<0.000000e+00> : vector<304x16xf32>
    %25 = tpu.matmul %22, %24, %cst_22 {dimension_numbers = #tpu.dot_dimension_numbers<[1], [0], [0], [1], [0, 0, 1, 1], [], []>} : vector<304x12xbf16>, vector<12x16xbf16>, vector<304x16xf32> -> vector<304x16xf32>
    %26 = arith.addf %19, %25 : vector<304x16xf32>
    %c0_23 = arith.constant 0 : index
    %c19 = arith.constant 19 : index
    %c0_24 = arith.constant 0 : index
    %27 = vector.load %arg1[%c0_23, %c19, %c0_24] : memref<1x380x12xf32, #tpu.memory_space<vmem>>, vector<1x304x12xf32>
    %28 = vector.shape_cast %27 : vector<1x304x12xf32> to vector<304x12xf32>
    %29 = arith.truncf %28 : vector<304x12xf32> to vector<304x12xbf16>
    %c4 = arith.constant 4 : index
    %c0_25 = arith.constant 0 : index
    %c0_26 = arith.constant 0 : index
    %30 = vector.load %arg2[%c4, %c0_25, %c0_26] : memref<16x12x16xbf16, #tpu.memory_space<vmem>>, vector<1x12x16xbf16>
    %31 = vector.shape_cast %30 : vector<1x12x16xbf16> to vector<12x16xbf16>
    %cst_27 = arith.constant dense<0.000000e+00> : vector<304x16xf32>
    %32 = tpu.matmul %29, %31, %cst_27 {dimension_numbers = #tpu.dot_dimension_numbers<[1], [0], [0], [1], [0, 0, 1, 1], [], []>} : vector<304x12xbf16>, vector<12x16xbf16>, vector<304x16xf32> -> vector<304x16xf32>
    %33 = arith.addf %26, %32 : vector<304x16xf32>
    %c0_28 = arith.constant 0 : index
    %c20 = arith.constant 20 : index
    %c0_29 = arith.constant 0 : index
    %34 = vector.load %arg1[%c0_28, %c20, %c0_29] : memref<1x380x12xf32, #tpu.memory_space<vmem>>, vector<1x304x12xf32>
    %35 = vector.shape_cast %34 : vector<1x304x12xf32> to vector<304x12xf32>
    %36 = arith.truncf %35 : vector<304x12xf32> to vector<304x12xbf16>
    %c5 = arith.constant 5 : index
    %c0_30 = arith.constant 0 : index
    %c0_31 = arith.constant 0 : index
    %37 = vector.load %arg2[%c5, %c0_30, %c0_31] : memref<16x12x16xbf16, #tpu.memory_space<vmem>>, vector<1x12x16xbf16>
    %38 = vector.shape_cast %37 : vector<1x12x16xbf16> to vector<12x16xbf16>
    %cst_32 = arith.constant dense<0.000000e+00> : vector<304x16xf32>
    %39 = tpu.matmul %36, %38, %cst_32 {dimension_numbers = #tpu.dot_dimension_numbers<[1], [0], [0], [1], [0, 0, 1, 1], [], []>} : vector<304x12xbf16>, vector<12x16xbf16>, vector<304x16xf32> -> vector<304x16xf32>
    %40 = arith.addf %33, %39 : vector<304x16xf32>
    %c0_33 = arith.constant 0 : index
    %c21 = arith.constant 21 : index
    %c0_34 = arith.constant 0 : index
    %41 = vector.load %arg1[%c0_33, %c21, %c0_34] : memref<1x380x12xf32, #tpu.memory_space<vmem>>, vector<1x304x12xf32>
    %42 = vector.shape_cast %41 : vector<1x304x12xf32> to vector<304x12xf32>
    %43 = arith.truncf %42 : vector<304x12xf32> to vector<304x12xbf16>
    %c6 = arith.constant 6 : index
    %c0_35 = arith.constant 0 : index
    %c0_36 = arith.constant 0 : index
    %44 = vector.load %arg2[%c6, %c0_35, %c0_36] : memref<16x12x16xbf16, #tpu.memory_space<vmem>>, vector<1x12x16xbf16>
    %45 = vector.shape_cast %44 : vector<1x12x16xbf16> to vector<12x16xbf16>
    %cst_37 = arith.constant dense<0.000000e+00> : vector<304x16xf32>
    %46 = tpu.matmul %43, %45, %cst_37 {dimension_numbers = #tpu.dot_dimension_numbers<[1], [0], [0], [1], [0, 0, 1, 1], [], []>} : vector<304x12xbf16>, vector<12x16xbf16>, vector<304x16xf32> -> vector<304x16xf32>
    %47 = arith.addf %40, %46 : vector<304x16xf32>
    %c0_38 = arith.constant 0 : index
    %c22 = arith.constant 22 : index
    %c0_39 = arith.constant 0 : index
    %48 = vector.load %arg1[%c0_38, %c22, %c0_39] : memref<1x380x12xf32, #tpu.memory_space<vmem>>, vector<1x304x12xf32>
    %49 = vector.shape_cast %48 : vector<1x304x12xf32> to vector<304x12xf32>
    %50 = arith.truncf %49 : vector<304x12xf32> to vector<304x12xbf16>
    %c7 = arith.constant 7 : index
    %c0_40 = arith.constant 0 : index
    %c0_41 = arith.constant 0 : index
    %51 = vector.load %arg2[%c7, %c0_40, %c0_41] : memref<16x12x16xbf16, #tpu.memory_space<vmem>>, vector<1x12x16xbf16>
    %52 = vector.shape_cast %51 : vector<1x12x16xbf16> to vector<12x16xbf16>
    %cst_42 = arith.constant dense<0.000000e+00> : vector<304x16xf32>
    %53 = tpu.matmul %50, %52, %cst_42 {dimension_numbers = #tpu.dot_dimension_numbers<[1], [0], [0], [1], [0, 0, 1, 1], [], []>} : vector<304x12xbf16>, vector<12x16xbf16>, vector<304x16xf32> -> vector<304x16xf32>
    %54 = arith.addf %47, %53 : vector<304x16xf32>
    %c0_43 = arith.constant 0 : index
    %c38 = arith.constant 38 : index
    %c0_44 = arith.constant 0 : index
    %55 = vector.load %arg1[%c0_43, %c38, %c0_44] : memref<1x380x12xf32, #tpu.memory_space<vmem>>, vector<1x304x12xf32>
    %56 = vector.shape_cast %55 : vector<1x304x12xf32> to vector<304x12xf32>
    %57 = arith.truncf %56 : vector<304x12xf32> to vector<304x12xbf16>
    %c8 = arith.constant 8 : index
    %c0_45 = arith.constant 0 : index
    %c0_46 = arith.constant 0 : index
    %58 = vector.load %arg2[%c8, %c0_45, %c0_46] : memref<16x12x16xbf16, #tpu.memory_space<vmem>>, vector<1x12x16xbf16>
    %59 = vector.shape_cast %58 : vector<1x12x16xbf16> to vector<12x16xbf16>
    %cst_47 = arith.constant dense<0.000000e+00> : vector<304x16xf32>
    %60 = tpu.matmul %57, %59, %cst_47 {dimension_numbers = #tpu.dot_dimension_numbers<[1], [0], [0], [1], [0, 0, 1, 1], [], []>} : vector<304x12xbf16>, vector<12x16xbf16>, vector<304x16xf32> -> vector<304x16xf32>
    %61 = arith.addf %54, %60 : vector<304x16xf32>
    %c0_48 = arith.constant 0 : index
    %c39 = arith.constant 39 : index
    %c0_49 = arith.constant 0 : index
    %62 = vector.load %arg1[%c0_48, %c39, %c0_49] : memref<1x380x12xf32, #tpu.memory_space<vmem>>, vector<1x304x12xf32>
    %63 = vector.shape_cast %62 : vector<1x304x12xf32> to vector<304x12xf32>
    %64 = arith.truncf %63 : vector<304x12xf32> to vector<304x12xbf16>
    %c9 = arith.constant 9 : index
    %c0_50 = arith.constant 0 : index
    %c0_51 = arith.constant 0 : index
    %65 = vector.load %arg2[%c9, %c0_50, %c0_51] : memref<16x12x16xbf16, #tpu.memory_space<vmem>>, vector<1x12x16xbf16>
    %66 = vector.shape_cast %65 : vector<1x12x16xbf16> to vector<12x16xbf16>
    %cst_52 = arith.constant dense<0.000000e+00> : vector<304x16xf32>
    %67 = tpu.matmul %64, %66, %cst_52 {dimension_numbers = #tpu.dot_dimension_numbers<[1], [0], [0], [1], [0, 0, 1, 1], [], []>} : vector<304x12xbf16>, vector<12x16xbf16>, vector<304x16xf32> -> vector<304x16xf32>
    %68 = arith.addf %61, %67 : vector<304x16xf32>
    %c0_53 = arith.constant 0 : index
    %c40 = arith.constant 40 : index
    %c0_54 = arith.constant 0 : index
    %69 = vector.load %arg1[%c0_53, %c40, %c0_54] : memref<1x380x12xf32, #tpu.memory_space<vmem>>, vector<1x304x12xf32>
    %70 = vector.shape_cast %69 : vector<1x304x12xf32> to vector<304x12xf32>
    %71 = arith.truncf %70 : vector<304x12xf32> to vector<304x12xbf16>
    %c10 = arith.constant 10 : index
    %c0_55 = arith.constant 0 : index
    %c0_56 = arith.constant 0 : index
    %72 = vector.load %arg2[%c10, %c0_55, %c0_56] : memref<16x12x16xbf16, #tpu.memory_space<vmem>>, vector<1x12x16xbf16>
    %73 = vector.shape_cast %72 : vector<1x12x16xbf16> to vector<12x16xbf16>
    %cst_57 = arith.constant dense<0.000000e+00> : vector<304x16xf32>
    %74 = tpu.matmul %71, %73, %cst_57 {dimension_numbers = #tpu.dot_dimension_numbers<[1], [0], [0], [1], [0, 0, 1, 1], [], []>} : vector<304x12xbf16>, vector<12x16xbf16>, vector<304x16xf32> -> vector<304x16xf32>
    %75 = arith.addf %68, %74 : vector<304x16xf32>
    %c0_58 = arith.constant 0 : index
    %c41 = arith.constant 41 : index
    %c0_59 = arith.constant 0 : index
    %76 = vector.load %arg1[%c0_58, %c41, %c0_59] : memref<1x380x12xf32, #tpu.memory_space<vmem>>, vector<1x304x12xf32>
    %77 = vector.shape_cast %76 : vector<1x304x12xf32> to vector<304x12xf32>
    %78 = arith.truncf %77 : vector<304x12xf32> to vector<304x12xbf16>
    %c11 = arith.constant 11 : index
    %c0_60 = arith.constant 0 : index
    %c0_61 = arith.constant 0 : index
    %79 = vector.load %arg2[%c11, %c0_60, %c0_61] : memref<16x12x16xbf16, #tpu.memory_space<vmem>>, vector<1x12x16xbf16>
    %80 = vector.shape_cast %79 : vector<1x12x16xbf16> to vector<12x16xbf16>
    %cst_62 = arith.constant dense<0.000000e+00> : vector<304x16xf32>
    %81 = tpu.matmul %78, %80, %cst_62 {dimension_numbers = #tpu.dot_dimension_numbers<[1], [0], [0], [1], [0, 0, 1, 1], [], []>} : vector<304x12xbf16>, vector<12x16xbf16>, vector<304x16xf32> -> vector<304x16xf32>
    %82 = arith.addf %75, %81 : vector<304x16xf32>
    %c0_63 = arith.constant 0 : index
    %c57 = arith.constant 57 : index
    %c0_64 = arith.constant 0 : index
    %83 = vector.load %arg1[%c0_63, %c57, %c0_64] : memref<1x380x12xf32, #tpu.memory_space<vmem>>, vector<1x304x12xf32>
    %84 = vector.shape_cast %83 : vector<1x304x12xf32> to vector<304x12xf32>
    %85 = arith.truncf %84 : vector<304x12xf32> to vector<304x12xbf16>
    %c12 = arith.constant 12 : index
    %c0_65 = arith.constant 0 : index
    %c0_66 = arith.constant 0 : index
    %86 = vector.load %arg2[%c12, %c0_65, %c0_66] : memref<16x12x16xbf16, #tpu.memory_space<vmem>>, vector<1x12x16xbf16>
    %87 = vector.shape_cast %86 : vector<1x12x16xbf16> to vector<12x16xbf16>
    %cst_67 = arith.constant dense<0.000000e+00> : vector<304x16xf32>
    %88 = tpu.matmul %85, %87, %cst_67 {dimension_numbers = #tpu.dot_dimension_numbers<[1], [0], [0], [1], [0, 0, 1, 1], [], []>} : vector<304x12xbf16>, vector<12x16xbf16>, vector<304x16xf32> -> vector<304x16xf32>
    %89 = arith.addf %82, %88 : vector<304x16xf32>
    %c0_68 = arith.constant 0 : index
    %c58 = arith.constant 58 : index
    %c0_69 = arith.constant 0 : index
    %90 = vector.load %arg1[%c0_68, %c58, %c0_69] : memref<1x380x12xf32, #tpu.memory_space<vmem>>, vector<1x304x12xf32>
    %91 = vector.shape_cast %90 : vector<1x304x12xf32> to vector<304x12xf32>
    %92 = arith.truncf %91 : vector<304x12xf32> to vector<304x12xbf16>
    %c13 = arith.constant 13 : index
    %c0_70 = arith.constant 0 : index
    %c0_71 = arith.constant 0 : index
    %93 = vector.load %arg2[%c13, %c0_70, %c0_71] : memref<16x12x16xbf16, #tpu.memory_space<vmem>>, vector<1x12x16xbf16>
    %94 = vector.shape_cast %93 : vector<1x12x16xbf16> to vector<12x16xbf16>
    %cst_72 = arith.constant dense<0.000000e+00> : vector<304x16xf32>
    %95 = tpu.matmul %92, %94, %cst_72 {dimension_numbers = #tpu.dot_dimension_numbers<[1], [0], [0], [1], [0, 0, 1, 1], [], []>} : vector<304x12xbf16>, vector<12x16xbf16>, vector<304x16xf32> -> vector<304x16xf32>
    %96 = arith.addf %89, %95 : vector<304x16xf32>
    %c0_73 = arith.constant 0 : index
    %c59 = arith.constant 59 : index
    %c0_74 = arith.constant 0 : index
    %97 = vector.load %arg1[%c0_73, %c59, %c0_74] : memref<1x380x12xf32, #tpu.memory_space<vmem>>, vector<1x304x12xf32>
    %98 = vector.shape_cast %97 : vector<1x304x12xf32> to vector<304x12xf32>
    %99 = arith.truncf %98 : vector<304x12xf32> to vector<304x12xbf16>
    %c14 = arith.constant 14 : index
    %c0_75 = arith.constant 0 : index
    %c0_76 = arith.constant 0 : index
    %100 = vector.load %arg2[%c14, %c0_75, %c0_76] : memref<16x12x16xbf16, #tpu.memory_space<vmem>>, vector<1x12x16xbf16>
    %101 = vector.shape_cast %100 : vector<1x12x16xbf16> to vector<12x16xbf16>
    %cst_77 = arith.constant dense<0.000000e+00> : vector<304x16xf32>
    %102 = tpu.matmul %99, %101, %cst_77 {dimension_numbers = #tpu.dot_dimension_numbers<[1], [0], [0], [1], [0, 0, 1, 1], [], []>} : vector<304x12xbf16>, vector<12x16xbf16>, vector<304x16xf32> -> vector<304x16xf32>
    %103 = arith.addf %96, %102 : vector<304x16xf32>
    %c0_78 = arith.constant 0 : index
    %c60 = arith.constant 60 : index
    %c0_79 = arith.constant 0 : index
    %104 = vector.load %arg1[%c0_78, %c60, %c0_79] : memref<1x380x12xf32, #tpu.memory_space<vmem>>, vector<1x304x12xf32>
    %105 = vector.shape_cast %104 : vector<1x304x12xf32> to vector<304x12xf32>
    %106 = arith.truncf %105 : vector<304x12xf32> to vector<304x12xbf16>
    %c15 = arith.constant 15 : index
    %c0_80 = arith.constant 0 : index
    %c0_81 = arith.constant 0 : index
    %107 = vector.load %arg2[%c15, %c0_80, %c0_81] : memref<16x12x16xbf16, #tpu.memory_space<vmem>>, vector<1x12x16xbf16>
    %108 = vector.shape_cast %107 : vector<1x12x16xbf16> to vector<12x16xbf16>
    %cst_82 = arith.constant dense<0.000000e+00> : vector<304x16xf32>
    %109 = tpu.matmul %106, %108, %cst_82 {dimension_numbers = #tpu.dot_dimension_numbers<[1], [0], [0], [1], [0, 0, 1, 1], [], []>} : vector<304x12xbf16>, vector<12x16xbf16>, vector<304x16xf32> -> vector<304x16xf32>
    %110 = arith.addf %103, %109 : vector<304x16xf32>
    %c0_83 = arith.constant 0 : index
    %c0_84 = arith.constant 0 : index
    %111 = vector.load %arg3[%c0_83, %c0_84] : memref<1x16xf32, #tpu.memory_space<vmem>>, vector<1x16xf32>
    %112 = vector.broadcast %111 : vector<1x16xf32> to vector<304x16xf32>
    %113 = arith.mulf %110, %112 : vector<304x16xf32>
    %c0_85 = arith.constant 0 : index
    %c0_86 = arith.constant 0 : index
    %114 = vector.load %arg4[%c0_85, %c0_86] : memref<1x16xf32, #tpu.memory_space<vmem>>, vector<1x16xf32>
    %115 = vector.broadcast %114 : vector<1x16xf32> to vector<304x16xf32>
    %116 = arith.addf %113, %115 : vector<304x16xf32>
    %cst_87 = arith.constant 0.000000e+00 : f32
    %117 = vector.broadcast %cst_87 : f32 to vector<304x16xf32>
    %118 = arith.maximumf %116, %117 : vector<304x16xf32>
    %c0_88 = arith.constant 0 : index
    %c0_89 = arith.constant 0 : index
    %c0_90 = arith.constant 0 : index
    %119 = vector.load %arg5[%c0_88, %c0_89, %c0_90] : memref<1x304x16xf32, #tpu.memory_space<vmem>>, vector<1x304x16xf32>
    %120 = vector.shape_cast %119 : vector<1x304x16xf32> to vector<304x16xf32>
    %121 = vector.shape_cast %118 : vector<304x16xf32> to vector<1x304x16xf32>
    tpu.vector_store %arg5[%c0_88, %c0_89, %c0_90], %121 {strides = array<i32>} : memref<1x304x16xf32, #tpu.memory_space<vmem>>, vector<1x304x16xf32>,
    return
  }
  func.func @transform_0(%arg0: i32) -> (i32, i32, i32) {
    %c0_i32 = arith.constant 0 : i32
    %c0_i32_0 = arith.constant 0 : i32
    %c0_i32_1 = arith.constant 0 : i32
    return %arg0, %c0_i32, %c0_i32_0 : i32, i32, i32
  }
  func.func @transform_1(%arg0: i32) -> (i32, i32, i32) {
    %c0_i32 = arith.constant 0 : i32
    %c0_i32_0 = arith.constant 0 : i32
    %c0_i32_1 = arith.constant 0 : i32
    %c0_i32_2 = arith.constant 0 : i32
    return %c0_i32, %c0_i32_0, %c0_i32_1 : i32, i32, i32
  }
  func.func @transform_2(%arg0: i32) -> (i32, i32) {
    %c0_i32 = arith.constant 0 : i32
    %c0_i32_0 = arith.constant 0 : i32
    %c0_i32_1 = arith.constant 0 : i32
    return %c0_i32, %c0_i32_0 : i32, i32
  }
  func.func @transform_3(%arg0: i32) -> (i32, i32) {
    %c0_i32 = arith.constant 0 : i32
    %c0_i32_0 = arith.constant 0 : i32
    %c0_i32_1 = arith.constant 0 : i32
    return %c0_i32, %c0_i32_0 : i32, i32
  }
  func.func @transform_4(%arg0: i32) -> (i32, i32, i32) {
    %c0_i32 = arith.constant 0 : i32
    %c0_i32_0 = arith.constant 0 : i32
    %c0_i32_1 = arith.constant 0 : i32
    return %arg0, %c0_i32, %c0_i32_0 : i32, i32, i32
  }
}

module attributes {stable_mosaic.version = 11 : i64} {
  func.func @_maxpool9_kernel(%arg0: i32, %arg1: memref<1x9x9x16xf32, #tpu.memory_space<vmem>>, %arg2: memref<1x9x9x16xf32, #tpu.memory_space<vmem>>, %arg3: memref<1x9x9x16xf32, #tpu.memory_space<vmem>>, %arg4: memref<1x9x9x16xf32, #tpu.memory_space<vmem>>, %arg5: memref<1x8x8x16xf32, #tpu.memory_space<vmem>>) attributes {dimension_semantics = [#tpu.dimension_semantics<parallel>], iteration_bounds = array<i64: 2>, scalar_prefetch = 0 : i64, scratch_operands = 0 : i64, tpu.core_type = #tpu.core_type<tc>, window_params = [{transform_indices = @transform_0, window_bounds = array<i64: 1, 9, 9, 16>}, {transform_indices = @transform_1, window_bounds = array<i64: 1, 9, 9, 16>}, {transform_indices = @transform_2, window_bounds = array<i64: 1, 9, 9, 16>}, {transform_indices = @transform_3, window_bounds = array<i64: 1, 9, 9, 16>}, {transform_indices = @transform_4, window_bounds = array<i64: 1, 8, 8, 16>}]} {
    %c0 = arith.constant 0 : index
    %c0_0 = arith.constant 0 : index
    %c0_1 = arith.constant 0 : index
    %c0_2 = arith.constant 0 : index
    %0 = vector.load %arg1[%c0, %c0_0, %c0_1, %c0_2] : memref<1x9x9x16xf32, #tpu.memory_space<vmem>>, vector<1x8x8x16xf32>
    %1 = vector.shape_cast %0 : vector<1x8x8x16xf32> to vector<8x8x16xf32>
    %c0_3 = arith.constant 0 : index
    %c0_4 = arith.constant 0 : index
    %c0_5 = arith.constant 0 : index
    %c0_6 = arith.constant 0 : index
    %2 = vector.load %arg2[%c0_3, %c0_4, %c0_5, %c0_6] : memref<1x9x9x16xf32, #tpu.memory_space<vmem>>, vector<1x8x8x16xf32>
    %3 = vector.shape_cast %2 : vector<1x8x8x16xf32> to vector<8x8x16xf32>
    %4 = arith.maximumf %1, %3 : vector<8x8x16xf32>
    %c0_7 = arith.constant 0 : index
    %c0_8 = arith.constant 0 : index
    %c1 = arith.constant 1 : index
    %c0_9 = arith.constant 0 : index
    %5 = vector.load %arg1[%c0_7, %c0_8, %c1, %c0_9] : memref<1x9x9x16xf32, #tpu.memory_space<vmem>>, vector<1x8x8x16xf32>
    %6 = vector.shape_cast %5 : vector<1x8x8x16xf32> to vector<8x8x16xf32>
    %7 = arith.maximumf %4, %6 : vector<8x8x16xf32>
    %c0_10 = arith.constant 0 : index
    %c0_11 = arith.constant 0 : index
    %c0_12 = arith.constant 0 : index
    %c0_13 = arith.constant 0 : index
    %8 = vector.load %arg3[%c0_10, %c0_11, %c0_12, %c0_13] : memref<1x9x9x16xf32, #tpu.memory_space<vmem>>, vector<1x8x8x16xf32>
    %9 = vector.shape_cast %8 : vector<1x8x8x16xf32> to vector<8x8x16xf32>
    %10 = arith.maximumf %7, %9 : vector<8x8x16xf32>
    %c0_14 = arith.constant 0 : index
    %c0_15 = arith.constant 0 : index
    %c0_16 = arith.constant 0 : index
    %c0_17 = arith.constant 0 : index
    %11 = vector.load %arg4[%c0_14, %c0_15, %c0_16, %c0_17] : memref<1x9x9x16xf32, #tpu.memory_space<vmem>>, vector<1x8x8x16xf32>
    %12 = vector.shape_cast %11 : vector<1x8x8x16xf32> to vector<8x8x16xf32>
    %13 = arith.maximumf %10, %12 : vector<8x8x16xf32>
    %c0_18 = arith.constant 0 : index
    %c0_19 = arith.constant 0 : index
    %c1_20 = arith.constant 1 : index
    %c0_21 = arith.constant 0 : index
    %14 = vector.load %arg3[%c0_18, %c0_19, %c1_20, %c0_21] : memref<1x9x9x16xf32, #tpu.memory_space<vmem>>, vector<1x8x8x16xf32>
    %15 = vector.shape_cast %14 : vector<1x8x8x16xf32> to vector<8x8x16xf32>
    %16 = arith.maximumf %13, %15 : vector<8x8x16xf32>
    %c0_22 = arith.constant 0 : index
    %c1_23 = arith.constant 1 : index
    %c0_24 = arith.constant 0 : index
    %c0_25 = arith.constant 0 : index
    %17 = vector.load %arg1[%c0_22, %c1_23, %c0_24, %c0_25] : memref<1x9x9x16xf32, #tpu.memory_space<vmem>>, vector<1x8x8x16xf32>
    %18 = vector.shape_cast %17 : vector<1x8x8x16xf32> to vector<8x8x16xf32>
    %19 = arith.maximumf %16, %18 : vector<8x8x16xf32>
    %c0_26 = arith.constant 0 : index
    %c1_27 = arith.constant 1 : index
    %c0_28 = arith.constant 0 : index
    %c0_29 = arith.constant 0 : index
    %20 = vector.load %arg2[%c0_26, %c1_27, %c0_28, %c0_29] : memref<1x9x9x16xf32, #tpu.memory_space<vmem>>, vector<1x8x8x16xf32>
    %21 = vector.shape_cast %20 : vector<1x8x8x16xf32> to vector<8x8x16xf32>
    %22 = arith.maximumf %19, %21 : vector<8x8x16xf32>
    %c0_30 = arith.constant 0 : index
    %c1_31 = arith.constant 1 : index
    %c1_32 = arith.constant 1 : index
    %c0_33 = arith.constant 0 : index
    %23 = vector.load %arg1[%c0_30, %c1_31, %c1_32, %c0_33] : memref<1x9x9x16xf32, #tpu.memory_space<vmem>>, vector<1x8x8x16xf32>
    %24 = vector.shape_cast %23 : vector<1x8x8x16xf32> to vector<8x8x16xf32>
    %25 = arith.maximumf %22, %24 : vector<8x8x16xf32>
    %c0_34 = arith.constant 0 : index
    %c0_35 = arith.constant 0 : index
    %c0_36 = arith.constant 0 : index
    %c0_37 = arith.constant 0 : index
    %26 = vector.load %arg5[%c0_34, %c0_35, %c0_36, %c0_37] : memref<1x8x8x16xf32, #tpu.memory_space<vmem>>, vector<1x8x8x16xf32>
    %27 = vector.shape_cast %26 : vector<1x8x8x16xf32> to vector<8x8x16xf32>
    %28 = vector.shape_cast %25 : vector<8x8x16xf32> to vector<1x8x8x16xf32>
    tpu.vector_store %arg5[%c0_34, %c0_35, %c0_36, %c0_37], %28 {strides = array<i32>} : memref<1x8x8x16xf32, #tpu.memory_space<vmem>>, vector<1x8x8x16xf32>,
    return
  }
  func.func @transform_0(%arg0: i32) -> (i32, i32, i32, i32) {
    %c0_i32 = arith.constant 0 : i32
    %c0_i32_0 = arith.constant 0 : i32
    %c0_i32_1 = arith.constant 0 : i32
    %c0_i32_2 = arith.constant 0 : i32
    return %arg0, %c0_i32, %c0_i32_0, %c0_i32_1 : i32, i32, i32, i32
  }
  func.func @transform_1(%arg0: i32) -> (i32, i32, i32, i32) {
    %c0_i32 = arith.constant 0 : i32
    %c0_i32_0 = arith.constant 0 : i32
    %c0_i32_1 = arith.constant 0 : i32
    %c0_i32_2 = arith.constant 0 : i32
    return %arg0, %c0_i32, %c0_i32_0, %c0_i32_1 : i32, i32, i32, i32
  }
  func.func @transform_2(%arg0: i32) -> (i32, i32, i32, i32) {
    %c0_i32 = arith.constant 0 : i32
    %c0_i32_0 = arith.constant 0 : i32
    %c0_i32_1 = arith.constant 0 : i32
    %c0_i32_2 = arith.constant 0 : i32
    return %arg0, %c0_i32, %c0_i32_0, %c0_i32_1 : i32, i32, i32, i32
  }
  func.func @transform_3(%arg0: i32) -> (i32, i32, i32, i32) {
    %c0_i32 = arith.constant 0 : i32
    %c0_i32_0 = arith.constant 0 : i32
    %c0_i32_1 = arith.constant 0 : i32
    %c0_i32_2 = arith.constant 0 : i32
    return %arg0, %c0_i32, %c0_i32_0, %c0_i32_1 : i32, i32, i32, i32
  }
  func.func @transform_4(%arg0: i32) -> (i32, i32, i32, i32) {
    %c0_i32 = arith.constant 0 : i32
    %c0_i32_0 = arith.constant 0 : i32
    %c0_i32_1 = arith.constant 0 : i32
    %c0_i32_2 = arith.constant 0 : i32
    return %arg0, %c0_i32, %c0_i32_0, %c0_i32_1 : i32, i32, i32, i32
  }
}

module attributes {stable_mosaic.version = 11 : i64} {
  func.func @_fused_matmul_kernel(%arg0: i32, %arg1: memref<128x16xf32, #tpu.memory_space<vmem>>, %arg2: memref<1x16xf32, #tpu.memory_space<vmem>>, %arg3: memref<1x16xf32, #tpu.memory_space<vmem>>, %arg4: memref<16x32xbf16, #tpu.memory_space<vmem>>, %arg5: memref<1x32xf32, #tpu.memory_space<vmem>>, %arg6: memref<1x32xf32, #tpu.memory_space<vmem>>, %arg7: memref<128x32xbf16, #tpu.memory_space<vmem>>) attributes {dimension_semantics = [#tpu.dimension_semantics<parallel>], iteration_bounds = array<i64: 1>, scalar_prefetch = 0 : i64, scratch_operands = 0 : i64, tpu.core_type = #tpu.core_type<tc>, window_params = [{transform_indices = @transform_0, window_bounds = array<i64: 128, 16>}, {pipeline_mode = #tpu.pipeline_mode<synchronous>, transform_indices = @transform_1, window_bounds = array<i64: 1, 16>}, {pipeline_mode = #tpu.pipeline_mode<synchronous>, transform_indices = @transform_2, window_bounds = array<i64: 1, 16>}, {pipeline_mode = #tpu.pipeline_mode<synchronous>, transform_indices = @transform_3, window_bounds = array<i64: 16, 32>}, {pipeline_mode = #tpu.pipeline_mode<synchronous>, transform_indices = @transform_4, window_bounds = array<i64: 1, 32>}, {pipeline_mode = #tpu.pipeline_mode<synchronous>, transform_indices = @transform_5, window_bounds = array<i64: 1, 32>}, {transform_indices = @transform_6, window_bounds = array<i64: 128, 32>}]} {
    %c0 = arith.constant 0 : index
    %c0_0 = arith.constant 0 : index
    %0 = vector.load %arg1[%c0, %c0_0] : memref<128x16xf32, #tpu.memory_space<vmem>>, vector<128x16xf32>
    %c0_1 = arith.constant 0 : index
    %c0_2 = arith.constant 0 : index
    %1 = vector.load %arg2[%c0_1, %c0_2] : memref<1x16xf32, #tpu.memory_space<vmem>>, vector<1x16xf32>
    %2 = vector.broadcast %1 : vector<1x16xf32> to vector<128x16xf32>
    %3 = arith.mulf %0, %2 : vector<128x16xf32>
    %c0_3 = arith.constant 0 : index
    %c0_4 = arith.constant 0 : index
    %4 = vector.load %arg3[%c0_3, %c0_4] : memref<1x16xf32, #tpu.memory_space<vmem>>, vector<1x16xf32>
    %5 = vector.broadcast %4 : vector<1x16xf32> to vector<128x16xf32>
    %6 = arith.addf %3, %5 : vector<128x16xf32>
    %cst = arith.constant 0.000000e+00 : f32
    %7 = vector.broadcast %cst : f32 to vector<128x16xf32>
    %8 = arith.maximumf %6, %7 : vector<128x16xf32>
    %9 = arith.truncf %8 : vector<128x16xf32> to vector<128x16xbf16>
    %c0_5 = arith.constant 0 : index
    %c0_6 = arith.constant 0 : index
    %10 = vector.load %arg4[%c0_5, %c0_6] : memref<16x32xbf16, #tpu.memory_space<vmem>>, vector<16x32xbf16>
    %cst_7 = arith.constant dense<0.000000e+00> : vector<128x32xf32>
    %11 = tpu.matmul %9, %10, %cst_7 {dimension_numbers = #tpu.dot_dimension_numbers<[1], [0], [0], [1], [0, 0, 1, 1], [], []>} : vector<128x16xbf16>, vector<16x32xbf16>, vector<128x32xf32> -> vector<128x32xf32>
    %c0_8 = arith.constant 0 : index
    %c0_9 = arith.constant 0 : index
    %12 = vector.load %arg5[%c0_8, %c0_9] : memref<1x32xf32, #tpu.memory_space<vmem>>, vector<1x32xf32>
    %13 = vector.broadcast %12 : vector<1x32xf32> to vector<128x32xf32>
    %14 = arith.mulf %11, %13 : vector<128x32xf32>
    %c0_10 = arith.constant 0 : index
    %c0_11 = arith.constant 0 : index
    %15 = vector.load %arg6[%c0_10, %c0_11] : memref<1x32xf32, #tpu.memory_space<vmem>>, vector<1x32xf32>
    %16 = vector.broadcast %15 : vector<1x32xf32> to vector<128x32xf32>
    %17 = arith.addf %14, %16 : vector<128x32xf32>
    %cst_12 = arith.constant 0.000000e+00 : f32
    %18 = vector.broadcast %cst_12 : f32 to vector<128x32xf32>
    %19 = arith.maximumf %17, %18 : vector<128x32xf32>
    %20 = arith.truncf %19 : vector<128x32xf32> to vector<128x32xbf16>
    %c0_13 = arith.constant 0 : index
    %c0_14 = arith.constant 0 : index
    %21 = vector.load %arg7[%c0_13, %c0_14] : memref<128x32xbf16, #tpu.memory_space<vmem>>, vector<128x32xbf16>
    tpu.vector_store %arg7[%c0_13, %c0_14], %20 {strides = array<i32>} : memref<128x32xbf16, #tpu.memory_space<vmem>>, vector<128x32xbf16>,
    return
  }
  func.func @transform_0(%arg0: i32) -> (i32, i32) {
    %c0_i32 = arith.constant 0 : i32
    %c0_i32_0 = arith.constant 0 : i32
    return %arg0, %c0_i32 : i32, i32
  }
  func.func @transform_1(%arg0: i32) -> (i32, i32) {
    %c0_i32 = arith.constant 0 : i32
    %c0_i32_0 = arith.constant 0 : i32
    %c0_i32_1 = arith.constant 0 : i32
    return %c0_i32, %c0_i32_0 : i32, i32
  }
  func.func @transform_2(%arg0: i32) -> (i32, i32) {
    %c0_i32 = arith.constant 0 : i32
    %c0_i32_0 = arith.constant 0 : i32
    %c0_i32_1 = arith.constant 0 : i32
    return %c0_i32, %c0_i32_0 : i32, i32
  }
  func.func @transform_3(%arg0: i32) -> (i32, i32) {
    %c0_i32 = arith.constant 0 : i32
    %c0_i32_0 = arith.constant 0 : i32
    %c0_i32_1 = arith.constant 0 : i32
    return %c0_i32, %c0_i32_0 : i32, i32
  }
  func.func @transform_4(%arg0: i32) -> (i32, i32) {
    %c0_i32 = arith.constant 0 : i32
    %c0_i32_0 = arith.constant 0 : i32
    %c0_i32_1 = arith.constant 0 : i32
    return %c0_i32, %c0_i32_0 : i32, i32
  }
  func.func @transform_5(%arg0: i32) -> (i32, i32) {
    %c0_i32 = arith.constant 0 : i32
    %c0_i32_0 = arith.constant 0 : i32
    %c0_i32_1 = arith.constant 0 : i32
    return %c0_i32, %c0_i32_0 : i32, i32
  }
  func.func @transform_6(%arg0: i32) -> (i32, i32) {
    %c0_i32 = arith.constant 0 : i32
    %c0_i32_0 = arith.constant 0 : i32
    return %arg0, %c0_i32 : i32, i32
  }
}

module attributes {stable_mosaic.version = 11 : i64} {
  func.func @_tap_conv_kernel(%arg0: i32, %arg1: memref<1x110x32xbf16, #tpu.memory_space<vmem>>, %arg2: memref<9x32x8xbf16, #tpu.memory_space<vmem>>, %arg3: memref<1x8xf32, #tpu.memory_space<vmem>>, %arg4: memref<1x8xf32, #tpu.memory_space<vmem>>, %arg5: memref<1x80x8xf32, #tpu.memory_space<vmem>>) attributes {dimension_semantics = [#tpu.dimension_semantics<parallel>], iteration_bounds = array<i64: 2>, scalar_prefetch = 0 : i64, scratch_operands = 0 : i64, tpu.core_type = #tpu.core_type<tc>, window_params = [{transform_indices = @transform_0, window_bounds = array<i64: 1, 110, 32>}, {pipeline_mode = #tpu.pipeline_mode<synchronous>, transform_indices = @transform_1, window_bounds = array<i64: 9, 32, 8>}, {pipeline_mode = #tpu.pipeline_mode<synchronous>, transform_indices = @transform_2, window_bounds = array<i64: 1, 8>}, {pipeline_mode = #tpu.pipeline_mode<synchronous>, transform_indices = @transform_3, window_bounds = array<i64: 1, 8>}, {transform_indices = @transform_4, window_bounds = array<i64: 1, 80, 8>}]} {
    %c0 = arith.constant 0 : index
    %c0_0 = arith.constant 0 : index
    %c0_1 = arith.constant 0 : index
    %0 = vector.load %arg1[%c0, %c0_0, %c0_1] : memref<1x110x32xbf16, #tpu.memory_space<vmem>>, vector<1x80x32xbf16>
    %1 = vector.shape_cast %0 : vector<1x80x32xbf16> to vector<80x32xbf16>
    %c0_2 = arith.constant 0 : index
    %c0_3 = arith.constant 0 : index
    %c0_4 = arith.constant 0 : index
    %2 = vector.load %arg2[%c0_2, %c0_3, %c0_4] : memref<9x32x8xbf16, #tpu.memory_space<vmem>>, vector<1x32x8xbf16>
    %3 = vector.shape_cast %2 : vector<1x32x8xbf16> to vector<32x8xbf16>
    %cst = arith.constant dense<0.000000e+00> : vector<80x8xf32>
    %4 = tpu.matmul %1, %3, %cst {dimension_numbers = #tpu.dot_dimension_numbers<[1], [0], [0], [1], [0, 0, 1, 1], [], []>} : vector<80x32xbf16>, vector<32x8xbf16>, vector<80x8xf32> -> vector<80x8xf32>
    %c0_5 = arith.constant 0 : index
    %c1 = arith.constant 1 : index
    %c0_6 = arith.constant 0 : index
    %5 = vector.load %arg1[%c0_5, %c1, %c0_6] : memref<1x110x32xbf16, #tpu.memory_space<vmem>>, vector<1x80x32xbf16>
    %6 = vector.shape_cast %5 : vector<1x80x32xbf16> to vector<80x32xbf16>
    %c1_7 = arith.constant 1 : index
    %c0_8 = arith.constant 0 : index
    %c0_9 = arith.constant 0 : index
    %7 = vector.load %arg2[%c1_7, %c0_8, %c0_9] : memref<9x32x8xbf16, #tpu.memory_space<vmem>>, vector<1x32x8xbf16>
    %8 = vector.shape_cast %7 : vector<1x32x8xbf16> to vector<32x8xbf16>
    %cst_10 = arith.constant dense<0.000000e+00> : vector<80x8xf32>
    %9 = tpu.matmul %6, %8, %cst_10 {dimension_numbers = #tpu.dot_dimension_numbers<[1], [0], [0], [1], [0, 0, 1, 1], [], []>} : vector<80x32xbf16>, vector<32x8xbf16>, vector<80x8xf32> -> vector<80x8xf32>
    %10 = arith.addf %4, %9 : vector<80x8xf32>
    %c0_11 = arith.constant 0 : index
    %c2 = arith.constant 2 : index
    %c0_12 = arith.constant 0 : index
    %11 = vector.load %arg1[%c0_11, %c2, %c0_12] : memref<1x110x32xbf16, #tpu.memory_space<vmem>>, vector<1x80x32xbf16>
    %12 = vector.shape_cast %11 : vector<1x80x32xbf16> to vector<80x32xbf16>
    %c2_13 = arith.constant 2 : index
    %c0_14 = arith.constant 0 : index
    %c0_15 = arith.constant 0 : index
    %13 = vector.load %arg2[%c2_13, %c0_14, %c0_15] : memref<9x32x8xbf16, #tpu.memory_space<vmem>>, vector<1x32x8xbf16>
    %14 = vector.shape_cast %13 : vector<1x32x8xbf16> to vector<32x8xbf16>
    %cst_16 = arith.constant dense<0.000000e+00> : vector<80x8xf32>
    %15 = tpu.matmul %12, %14, %cst_16 {dimension_numbers = #tpu.dot_dimension_numbers<[1], [0], [0], [1], [0, 0, 1, 1], [], []>} : vector<80x32xbf16>, vector<32x8xbf16>, vector<80x8xf32> -> vector<80x8xf32>
    %16 = arith.addf %10, %15 : vector<80x8xf32>
    %c0_17 = arith.constant 0 : index
    %c10 = arith.constant 10 : index
    %c0_18 = arith.constant 0 : index
    %17 = vector.load %arg1[%c0_17, %c10, %c0_18] : memref<1x110x32xbf16, #tpu.memory_space<vmem>>, vector<1x80x32xbf16>
    %18 = vector.shape_cast %17 : vector<1x80x32xbf16> to vector<80x32xbf16>
    %c3 = arith.constant 3 : index
    %c0_19 = arith.constant 0 : index
    %c0_20 = arith.constant 0 : index
    %19 = vector.load %arg2[%c3, %c0_19, %c0_20] : memref<9x32x8xbf16, #tpu.memory_space<vmem>>, vector<1x32x8xbf16>
    %20 = vector.shape_cast %19 : vector<1x32x8xbf16> to vector<32x8xbf16>
    %cst_21 = arith.constant dense<0.000000e+00> : vector<80x8xf32>
    %21 = tpu.matmul %18, %20, %cst_21 {dimension_numbers = #tpu.dot_dimension_numbers<[1], [0], [0], [1], [0, 0, 1, 1], [], []>} : vector<80x32xbf16>, vector<32x8xbf16>, vector<80x8xf32> -> vector<80x8xf32>
    %22 = arith.addf %16, %21 : vector<80x8xf32>
    %c0_22 = arith.constant 0 : index
    %c11 = arith.constant 11 : index
    %c0_23 = arith.constant 0 : index
    %23 = vector.load %arg1[%c0_22, %c11, %c0_23] : memref<1x110x32xbf16, #tpu.memory_space<vmem>>, vector<1x80x32xbf16>
    %24 = vector.shape_cast %23 : vector<1x80x32xbf16> to vector<80x32xbf16>
    %c4 = arith.constant 4 : index
    %c0_24 = arith.constant 0 : index
    %c0_25 = arith.constant 0 : index
    %25 = vector.load %arg2[%c4, %c0_24, %c0_25] : memref<9x32x8xbf16, #tpu.memory_space<vmem>>, vector<1x32x8xbf16>
    %26 = vector.shape_cast %25 : vector<1x32x8xbf16> to vector<32x8xbf16>
    %cst_26 = arith.constant dense<0.000000e+00> : vector<80x8xf32>
    %27 = tpu.matmul %24, %26, %cst_26 {dimension_numbers = #tpu.dot_dimension_numbers<[1], [0], [0], [1], [0, 0, 1, 1], [], []>} : vector<80x32xbf16>, vector<32x8xbf16>, vector<80x8xf32> -> vector<80x8xf32>
    %28 = arith.addf %22, %27 : vector<80x8xf32>
    %c0_27 = arith.constant 0 : index
    %c12 = arith.constant 12 : index
    %c0_28 = arith.constant 0 : index
    %29 = vector.load %arg1[%c0_27, %c12, %c0_28] : memref<1x110x32xbf16, #tpu.memory_space<vmem>>, vector<1x80x32xbf16>
    %30 = vector.shape_cast %29 : vector<1x80x32xbf16> to vector<80x32xbf16>
    %c5 = arith.constant 5 : index
    %c0_29 = arith.constant 0 : index
    %c0_30 = arith.constant 0 : index
    %31 = vector.load %arg2[%c5, %c0_29, %c0_30] : memref<9x32x8xbf16, #tpu.memory_space<vmem>>, vector<1x32x8xbf16>
    %32 = vector.shape_cast %31 : vector<1x32x8xbf16> to vector<32x8xbf16>
    %cst_31 = arith.constant dense<0.000000e+00> : vector<80x8xf32>
    %33 = tpu.matmul %30, %32, %cst_31 {dimension_numbers = #tpu.dot_dimension_numbers<[1], [0], [0], [1], [0, 0, 1, 1], [], []>} : vector<80x32xbf16>, vector<32x8xbf16>, vector<80x8xf32> -> vector<80x8xf32>
    %34 = arith.addf %28, %33 : vector<80x8xf32>
    %c0_32 = arith.constant 0 : index
    %c20 = arith.constant 20 : index
    %c0_33 = arith.constant 0 : index
    %35 = vector.load %arg1[%c0_32, %c20, %c0_33] : memref<1x110x32xbf16, #tpu.memory_space<vmem>>, vector<1x80x32xbf16>
    %36 = vector.shape_cast %35 : vector<1x80x32xbf16> to vector<80x32xbf16>
    %c6 = arith.constant 6 : index
    %c0_34 = arith.constant 0 : index
    %c0_35 = arith.constant 0 : index
    %37 = vector.load %arg2[%c6, %c0_34, %c0_35] : memref<9x32x8xbf16, #tpu.memory_space<vmem>>, vector<1x32x8xbf16>
    %38 = vector.shape_cast %37 : vector<1x32x8xbf16> to vector<32x8xbf16>
    %cst_36 = arith.constant dense<0.000000e+00> : vector<80x8xf32>
    %39 = tpu.matmul %36, %38, %cst_36 {dimension_numbers = #tpu.dot_dimension_numbers<[1], [0], [0], [1], [0, 0, 1, 1], [], []>} : vector<80x32xbf16>, vector<32x8xbf16>, vector<80x8xf32> -> vector<80x8xf32>
    %40 = arith.addf %34, %39 : vector<80x8xf32>
    %c0_37 = arith.constant 0 : index
    %c21 = arith.constant 21 : index
    %c0_38 = arith.constant 0 : index
    %41 = vector.load %arg1[%c0_37, %c21, %c0_38] : memref<1x110x32xbf16, #tpu.memory_space<vmem>>, vector<1x80x32xbf16>
    %42 = vector.shape_cast %41 : vector<1x80x32xbf16> to vector<80x32xbf16>
    %c7 = arith.constant 7 : index
    %c0_39 = arith.constant 0 : index
    %c0_40 = arith.constant 0 : index
    %43 = vector.load %arg2[%c7, %c0_39, %c0_40] : memref<9x32x8xbf16, #tpu.memory_space<vmem>>, vector<1x32x8xbf16>
    %44 = vector.shape_cast %43 : vector<1x32x8xbf16> to vector<32x8xbf16>
    %cst_41 = arith.constant dense<0.000000e+00> : vector<80x8xf32>
    %45 = tpu.matmul %42, %44, %cst_41 {dimension_numbers = #tpu.dot_dimension_numbers<[1], [0], [0], [1], [0, 0, 1, 1], [], []>} : vector<80x32xbf16>, vector<32x8xbf16>, vector<80x8xf32> -> vector<80x8xf32>
    %46 = arith.addf %40, %45 : vector<80x8xf32>
    %c0_42 = arith.constant 0 : index
    %c22 = arith.constant 22 : index
    %c0_43 = arith.constant 0 : index
    %47 = vector.load %arg1[%c0_42, %c22, %c0_43] : memref<1x110x32xbf16, #tpu.memory_space<vmem>>, vector<1x80x32xbf16>
    %48 = vector.shape_cast %47 : vector<1x80x32xbf16> to vector<80x32xbf16>
    %c8 = arith.constant 8 : index
    %c0_44 = arith.constant 0 : index
    %c0_45 = arith.constant 0 : index
    %49 = vector.load %arg2[%c8, %c0_44, %c0_45] : memref<9x32x8xbf16, #tpu.memory_space<vmem>>, vector<1x32x8xbf16>
    %50 = vector.shape_cast %49 : vector<1x32x8xbf16> to vector<32x8xbf16>
    %cst_46 = arith.constant dense<0.000000e+00> : vector<80x8xf32>
    %51 = tpu.matmul %48, %50, %cst_46 {dimension_numbers = #tpu.dot_dimension_numbers<[1], [0], [0], [1], [0, 0, 1, 1], [], []>} : vector<80x32xbf16>, vector<32x8xbf16>, vector<80x8xf32> -> vector<80x8xf32>
    %52 = arith.addf %46, %51 : vector<80x8xf32>
    %c0_47 = arith.constant 0 : index
    %c0_48 = arith.constant 0 : index
    %53 = vector.load %arg3[%c0_47, %c0_48] : memref<1x8xf32, #tpu.memory_space<vmem>>, vector<1x8xf32>
    %54 = vector.broadcast %53 : vector<1x8xf32> to vector<80x8xf32>
    %55 = arith.mulf %52, %54 : vector<80x8xf32>
    %c0_49 = arith.constant 0 : index
    %c0_50 = arith.constant 0 : index
    %56 = vector.load %arg4[%c0_49, %c0_50] : memref<1x8xf32, #tpu.memory_space<vmem>>, vector<1x8xf32>
    %57 = vector.broadcast %56 : vector<1x8xf32> to vector<80x8xf32>
    %58 = arith.addf %55, %57 : vector<80x8xf32>
    %c0_51 = arith.constant 0 : index
    %c0_52 = arith.constant 0 : index
    %c0_53 = arith.constant 0 : index
    %59 = vector.load %arg5[%c0_51, %c0_52, %c0_53] : memref<1x80x8xf32, #tpu.memory_space<vmem>>, vector<1x80x8xf32>
    %60 = vector.shape_cast %59 : vector<1x80x8xf32> to vector<80x8xf32>
    %61 = vector.shape_cast %58 : vector<80x8xf32> to vector<1x80x8xf32>
    tpu.vector_store %arg5[%c0_51, %c0_52, %c0_53], %61 {strides = array<i32>} : memref<1x80x8xf32, #tpu.memory_space<vmem>>, vector<1x80x8xf32>,
    return
  }
  func.func @transform_0(%arg0: i32) -> (i32, i32, i32) {
    %c0_i32 = arith.constant 0 : i32
    %c0_i32_0 = arith.constant 0 : i32
    %c0_i32_1 = arith.constant 0 : i32
    return %arg0, %c0_i32, %c0_i32_0 : i32, i32, i32
  }
  func.func @transform_1(%arg0: i32) -> (i32, i32, i32) {
    %c0_i32 = arith.constant 0 : i32
    %c0_i32_0 = arith.constant 0 : i32
    %c0_i32_1 = arith.constant 0 : i32
    %c0_i32_2 = arith.constant 0 : i32
    return %c0_i32, %c0_i32_0, %c0_i32_1 : i32, i32, i32
  }
  func.func @transform_2(%arg0: i32) -> (i32, i32) {
    %c0_i32 = arith.constant 0 : i32
    %c0_i32_0 = arith.constant 0 : i32
    %c0_i32_1 = arith.constant 0 : i32
    return %c0_i32, %c0_i32_0 : i32, i32
  }
  func.func @transform_3(%arg0: i32) -> (i32, i32) {
    %c0_i32 = arith.constant 0 : i32
    %c0_i32_0 = arith.constant 0 : i32
    %c0_i32_1 = arith.constant 0 : i32
    return %c0_i32, %c0_i32_0 : i32, i32
  }
  func.func @transform_4(%arg0: i32) -> (i32, i32, i32) {
    %c0_i32 = arith.constant 0 : i32
    %c0_i32_0 = arith.constant 0 : i32
    %c0_i32_1 = arith.constant 0 : i32
    return %arg0, %c0_i32, %c0_i32_0 : i32, i32, i32
  }
}

module attributes {stable_mosaic.version = 11 : i64} {
  func.func @_fused_matmul_kernel(%arg0: i32, %arg1: memref<128x24xf32, #tpu.memory_space<vmem>>, %arg2: memref<1x24xf32, #tpu.memory_space<vmem>>, %arg3: memref<1x24xf32, #tpu.memory_space<vmem>>, %arg4: memref<24x32xbf16, #tpu.memory_space<vmem>>, %arg5: memref<1x32xf32, #tpu.memory_space<vmem>>, %arg6: memref<1x32xf32, #tpu.memory_space<vmem>>, %arg7: memref<128x32xbf16, #tpu.memory_space<vmem>>) attributes {dimension_semantics = [#tpu.dimension_semantics<parallel>], iteration_bounds = array<i64: 1>, scalar_prefetch = 0 : i64, scratch_operands = 0 : i64, tpu.core_type = #tpu.core_type<tc>, window_params = [{transform_indices = @transform_0, window_bounds = array<i64: 128, 24>}, {pipeline_mode = #tpu.pipeline_mode<synchronous>, transform_indices = @transform_1, window_bounds = array<i64: 1, 24>}, {pipeline_mode = #tpu.pipeline_mode<synchronous>, transform_indices = @transform_2, window_bounds = array<i64: 1, 24>}, {pipeline_mode = #tpu.pipeline_mode<synchronous>, transform_indices = @transform_3, window_bounds = array<i64: 24, 32>}, {pipeline_mode = #tpu.pipeline_mode<synchronous>, transform_indices = @transform_4, window_bounds = array<i64: 1, 32>}, {pipeline_mode = #tpu.pipeline_mode<synchronous>, transform_indices = @transform_5, window_bounds = array<i64: 1, 32>}, {transform_indices = @transform_6, window_bounds = array<i64: 128, 32>}]} {
    %c0 = arith.constant 0 : index
    %c0_0 = arith.constant 0 : index
    %0 = vector.load %arg1[%c0, %c0_0] : memref<128x24xf32, #tpu.memory_space<vmem>>, vector<128x24xf32>
    %c0_1 = arith.constant 0 : index
    %c0_2 = arith.constant 0 : index
    %1 = vector.load %arg2[%c0_1, %c0_2] : memref<1x24xf32, #tpu.memory_space<vmem>>, vector<1x24xf32>
    %2 = vector.broadcast %1 : vector<1x24xf32> to vector<128x24xf32>
    %3 = arith.mulf %0, %2 : vector<128x24xf32>
    %c0_3 = arith.constant 0 : index
    %c0_4 = arith.constant 0 : index
    %4 = vector.load %arg3[%c0_3, %c0_4] : memref<1x24xf32, #tpu.memory_space<vmem>>, vector<1x24xf32>
    %5 = vector.broadcast %4 : vector<1x24xf32> to vector<128x24xf32>
    %6 = arith.addf %3, %5 : vector<128x24xf32>
    %cst = arith.constant 0.000000e+00 : f32
    %7 = vector.broadcast %cst : f32 to vector<128x24xf32>
    %8 = arith.maximumf %6, %7 : vector<128x24xf32>
    %9 = arith.truncf %8 : vector<128x24xf32> to vector<128x24xbf16>
    %c0_5 = arith.constant 0 : index
    %c0_6 = arith.constant 0 : index
    %10 = vector.load %arg4[%c0_5, %c0_6] : memref<24x32xbf16, #tpu.memory_space<vmem>>, vector<24x32xbf16>
    %cst_7 = arith.constant dense<0.000000e+00> : vector<128x32xf32>
    %11 = tpu.matmul %9, %10, %cst_7 {dimension_numbers = #tpu.dot_dimension_numbers<[1], [0], [0], [1], [0, 0, 1, 1], [], []>} : vector<128x24xbf16>, vector<24x32xbf16>, vector<128x32xf32> -> vector<128x32xf32>
    %c0_8 = arith.constant 0 : index
    %c0_9 = arith.constant 0 : index
    %12 = vector.load %arg5[%c0_8, %c0_9] : memref<1x32xf32, #tpu.memory_space<vmem>>, vector<1x32xf32>
    %13 = vector.broadcast %12 : vector<1x32xf32> to vector<128x32xf32>
    %14 = arith.mulf %11, %13 : vector<128x32xf32>
    %c0_10 = arith.constant 0 : index
    %c0_11 = arith.constant 0 : index
    %15 = vector.load %arg6[%c0_10, %c0_11] : memref<1x32xf32, #tpu.memory_space<vmem>>, vector<1x32xf32>
    %16 = vector.broadcast %15 : vector<1x32xf32> to vector<128x32xf32>
    %17 = arith.addf %14, %16 : vector<128x32xf32>
    %cst_12 = arith.constant 0.000000e+00 : f32
    %18 = vector.broadcast %cst_12 : f32 to vector<128x32xf32>
    %19 = arith.maximumf %17, %18 : vector<128x32xf32>
    %20 = arith.truncf %19 : vector<128x32xf32> to vector<128x32xbf16>
    %c0_13 = arith.constant 0 : index
    %c0_14 = arith.constant 0 : index
    %21 = vector.load %arg7[%c0_13, %c0_14] : memref<128x32xbf16, #tpu.memory_space<vmem>>, vector<128x32xbf16>
    tpu.vector_store %arg7[%c0_13, %c0_14], %20 {strides = array<i32>} : memref<128x32xbf16, #tpu.memory_space<vmem>>, vector<128x32xbf16>,
    return
  }
  func.func @transform_0(%arg0: i32) -> (i32, i32) {
    %c0_i32 = arith.constant 0 : i32
    %c0_i32_0 = arith.constant 0 : i32
    return %arg0, %c0_i32 : i32, i32
  }
  func.func @transform_1(%arg0: i32) -> (i32, i32) {
    %c0_i32 = arith.constant 0 : i32
    %c0_i32_0 = arith.constant 0 : i32
    %c0_i32_1 = arith.constant 0 : i32
    return %c0_i32, %c0_i32_0 : i32, i32
  }
  func.func @transform_2(%arg0: i32) -> (i32, i32) {
    %c0_i32 = arith.constant 0 : i32
    %c0_i32_0 = arith.constant 0 : i32
    %c0_i32_1 = arith.constant 0 : i32
    return %c0_i32, %c0_i32_0 : i32, i32
  }
  func.func @transform_3(%arg0: i32) -> (i32, i32) {
    %c0_i32 = arith.constant 0 : i32
    %c0_i32_0 = arith.constant 0 : i32
    %c0_i32_1 = arith.constant 0 : i32
    return %c0_i32, %c0_i32_0 : i32, i32
  }
  func.func @transform_4(%arg0: i32) -> (i32, i32) {
    %c0_i32 = arith.constant 0 : i32
    %c0_i32_0 = arith.constant 0 : i32
    %c0_i32_1 = arith.constant 0 : i32
    return %c0_i32, %c0_i32_0 : i32, i32
  }
  func.func @transform_5(%arg0: i32) -> (i32, i32) {
    %c0_i32 = arith.constant 0 : i32
    %c0_i32_0 = arith.constant 0 : i32
    %c0_i32_1 = arith.constant 0 : i32
    return %c0_i32, %c0_i32_0 : i32, i32
  }
  func.func @transform_6(%arg0: i32) -> (i32, i32) {
    %c0_i32 = arith.constant 0 : i32
    %c0_i32_0 = arith.constant 0 : i32
    return %arg0, %c0_i32 : i32, i32
  }
}

module attributes {stable_mosaic.version = 11 : i64} {
  func.func @_fused_matmul_kernel(%arg0: i32, %arg1: memref<128x32xf32, #tpu.memory_space<vmem>>, %arg2: memref<1x32xf32, #tpu.memory_space<vmem>>, %arg3: memref<1x32xf32, #tpu.memory_space<vmem>>, %arg4: memref<32x16xbf16, #tpu.memory_space<vmem>>, %arg5: memref<1x16xf32, #tpu.memory_space<vmem>>, %arg6: memref<1x16xf32, #tpu.memory_space<vmem>>, %arg7: memref<128x16xf32, #tpu.memory_space<vmem>>) attributes {dimension_semantics = [#tpu.dimension_semantics<parallel>], iteration_bounds = array<i64: 1>, scalar_prefetch = 0 : i64, scratch_operands = 0 : i64, tpu.core_type = #tpu.core_type<tc>, window_params = [{transform_indices = @transform_0, window_bounds = array<i64: 128, 32>}, {pipeline_mode = #tpu.pipeline_mode<synchronous>, transform_indices = @transform_1, window_bounds = array<i64: 1, 32>}, {pipeline_mode = #tpu.pipeline_mode<synchronous>, transform_indices = @transform_2, window_bounds = array<i64: 1, 32>}, {pipeline_mode = #tpu.pipeline_mode<synchronous>, transform_indices = @transform_3, window_bounds = array<i64: 32, 16>}, {pipeline_mode = #tpu.pipeline_mode<synchronous>, transform_indices = @transform_4, window_bounds = array<i64: 1, 16>}, {pipeline_mode = #tpu.pipeline_mode<synchronous>, transform_indices = @transform_5, window_bounds = array<i64: 1, 16>}, {transform_indices = @transform_6, window_bounds = array<i64: 128, 16>}]} {
    %c0 = arith.constant 0 : index
    %c0_0 = arith.constant 0 : index
    %0 = vector.load %arg1[%c0, %c0_0] : memref<128x32xf32, #tpu.memory_space<vmem>>, vector<128x32xf32>
    %c0_1 = arith.constant 0 : index
    %c0_2 = arith.constant 0 : index
    %1 = vector.load %arg2[%c0_1, %c0_2] : memref<1x32xf32, #tpu.memory_space<vmem>>, vector<1x32xf32>
    %2 = vector.broadcast %1 : vector<1x32xf32> to vector<128x32xf32>
    %3 = arith.mulf %0, %2 : vector<128x32xf32>
    %c0_3 = arith.constant 0 : index
    %c0_4 = arith.constant 0 : index
    %4 = vector.load %arg3[%c0_3, %c0_4] : memref<1x32xf32, #tpu.memory_space<vmem>>, vector<1x32xf32>
    %5 = vector.broadcast %4 : vector<1x32xf32> to vector<128x32xf32>
    %6 = arith.addf %3, %5 : vector<128x32xf32>
    %cst = arith.constant 0.000000e+00 : f32
    %7 = vector.broadcast %cst : f32 to vector<128x32xf32>
    %8 = arith.maximumf %6, %7 : vector<128x32xf32>
    %9 = arith.truncf %8 : vector<128x32xf32> to vector<128x32xbf16>
    %c0_5 = arith.constant 0 : index
    %c0_6 = arith.constant 0 : index
    %10 = vector.load %arg4[%c0_5, %c0_6] : memref<32x16xbf16, #tpu.memory_space<vmem>>, vector<32x16xbf16>
    %cst_7 = arith.constant dense<0.000000e+00> : vector<128x16xf32>
    %11 = tpu.matmul %9, %10, %cst_7 {dimension_numbers = #tpu.dot_dimension_numbers<[1], [0], [0], [1], [0, 0, 1, 1], [], []>} : vector<128x32xbf16>, vector<32x16xbf16>, vector<128x16xf32> -> vector<128x16xf32>
    %c0_8 = arith.constant 0 : index
    %c0_9 = arith.constant 0 : index
    %12 = vector.load %arg5[%c0_8, %c0_9] : memref<1x16xf32, #tpu.memory_space<vmem>>, vector<1x16xf32>
    %13 = vector.broadcast %12 : vector<1x16xf32> to vector<128x16xf32>
    %14 = arith.mulf %11, %13 : vector<128x16xf32>
    %c0_10 = arith.constant 0 : index
    %c0_11 = arith.constant 0 : index
    %15 = vector.load %arg6[%c0_10, %c0_11] : memref<1x16xf32, #tpu.memory_space<vmem>>, vector<1x16xf32>
    %16 = vector.broadcast %15 : vector<1x16xf32> to vector<128x16xf32>
    %17 = arith.addf %14, %16 : vector<128x16xf32>
    %c0_12 = arith.constant 0 : index
    %c0_13 = arith.constant 0 : index
    %18 = vector.load %arg7[%c0_12, %c0_13] : memref<128x16xf32, #tpu.memory_space<vmem>>, vector<128x16xf32>
    tpu.vector_store %arg7[%c0_12, %c0_13], %17 {strides = array<i32>} : memref<128x16xf32, #tpu.memory_space<vmem>>, vector<128x16xf32>,
    return
  }
  func.func @transform_0(%arg0: i32) -> (i32, i32) {
    %c0_i32 = arith.constant 0 : i32
    %c0_i32_0 = arith.constant 0 : i32
    return %arg0, %c0_i32 : i32, i32
  }
  func.func @transform_1(%arg0: i32) -> (i32, i32) {
    %c0_i32 = arith.constant 0 : i32
    %c0_i32_0 = arith.constant 0 : i32
    %c0_i32_1 = arith.constant 0 : i32
    return %c0_i32, %c0_i32_0 : i32, i32
  }
  func.func @transform_2(%arg0: i32) -> (i32, i32) {
    %c0_i32 = arith.constant 0 : i32
    %c0_i32_0 = arith.constant 0 : i32
    %c0_i32_1 = arith.constant 0 : i32
    return %c0_i32, %c0_i32_0 : i32, i32
  }
  func.func @transform_3(%arg0: i32) -> (i32, i32) {
    %c0_i32 = arith.constant 0 : i32
    %c0_i32_0 = arith.constant 0 : i32
    %c0_i32_1 = arith.constant 0 : i32
    return %c0_i32, %c0_i32_0 : i32, i32
  }
  func.func @transform_4(%arg0: i32) -> (i32, i32) {
    %c0_i32 = arith.constant 0 : i32
    %c0_i32_0 = arith.constant 0 : i32
    %c0_i32_1 = arith.constant 0 : i32
    return %c0_i32, %c0_i32_0 : i32, i32
  }
  func.func @transform_5(%arg0: i32) -> (i32, i32) {
    %c0_i32 = arith.constant 0 : i32
    %c0_i32_0 = arith.constant 0 : i32
    %c0_i32_1 = arith.constant 0 : i32
    return %c0_i32, %c0_i32_0 : i32, i32
  }
  func.func @transform_6(%arg0: i32) -> (i32, i32) {
    %c0_i32 = arith.constant 0 : i32
    %c0_i32_0 = arith.constant 0 : i32
    return %arg0, %c0_i32 : i32, i32
  }
}

module attributes {stable_mosaic.version = 11 : i64} {
  func.func @_fused_matmul_kernel(%arg0: i32, %arg1: memref<32x16xf32, #tpu.memory_space<vmem>>, %arg2: memref<1x16xf32, #tpu.memory_space<vmem>>, %arg3: memref<1x16xf32, #tpu.memory_space<vmem>>, %arg4: memref<16x32xbf16, #tpu.memory_space<vmem>>, %arg5: memref<1x32xf32, #tpu.memory_space<vmem>>, %arg6: memref<1x32xf32, #tpu.memory_space<vmem>>, %arg7: memref<32x32xbf16, #tpu.memory_space<vmem>>) attributes {dimension_semantics = [#tpu.dimension_semantics<parallel>], iteration_bounds = array<i64: 1>, scalar_prefetch = 0 : i64, scratch_operands = 0 : i64, tpu.core_type = #tpu.core_type<tc>, window_params = [{transform_indices = @transform_0, window_bounds = array<i64: 32, 16>}, {pipeline_mode = #tpu.pipeline_mode<synchronous>, transform_indices = @transform_1, window_bounds = array<i64: 1, 16>}, {pipeline_mode = #tpu.pipeline_mode<synchronous>, transform_indices = @transform_2, window_bounds = array<i64: 1, 16>}, {pipeline_mode = #tpu.pipeline_mode<synchronous>, transform_indices = @transform_3, window_bounds = array<i64: 16, 32>}, {pipeline_mode = #tpu.pipeline_mode<synchronous>, transform_indices = @transform_4, window_bounds = array<i64: 1, 32>}, {pipeline_mode = #tpu.pipeline_mode<synchronous>, transform_indices = @transform_5, window_bounds = array<i64: 1, 32>}, {transform_indices = @transform_6, window_bounds = array<i64: 32, 32>}]} {
    %c0 = arith.constant 0 : index
    %c0_0 = arith.constant 0 : index
    %0 = vector.load %arg1[%c0, %c0_0] : memref<32x16xf32, #tpu.memory_space<vmem>>, vector<32x16xf32>
    %c0_1 = arith.constant 0 : index
    %c0_2 = arith.constant 0 : index
    %1 = vector.load %arg2[%c0_1, %c0_2] : memref<1x16xf32, #tpu.memory_space<vmem>>, vector<1x16xf32>
    %2 = vector.broadcast %1 : vector<1x16xf32> to vector<32x16xf32>
    %3 = arith.mulf %0, %2 : vector<32x16xf32>
    %c0_3 = arith.constant 0 : index
    %c0_4 = arith.constant 0 : index
    %4 = vector.load %arg3[%c0_3, %c0_4] : memref<1x16xf32, #tpu.memory_space<vmem>>, vector<1x16xf32>
    %5 = vector.broadcast %4 : vector<1x16xf32> to vector<32x16xf32>
    %6 = arith.addf %3, %5 : vector<32x16xf32>
    %cst = arith.constant 0.000000e+00 : f32
    %7 = vector.broadcast %cst : f32 to vector<32x16xf32>
    %8 = arith.maximumf %6, %7 : vector<32x16xf32>
    %9 = arith.truncf %8 : vector<32x16xf32> to vector<32x16xbf16>
    %c0_5 = arith.constant 0 : index
    %c0_6 = arith.constant 0 : index
    %10 = vector.load %arg4[%c0_5, %c0_6] : memref<16x32xbf16, #tpu.memory_space<vmem>>, vector<16x32xbf16>
    %cst_7 = arith.constant dense<0.000000e+00> : vector<32x32xf32>
    %11 = tpu.matmul %9, %10, %cst_7 {dimension_numbers = #tpu.dot_dimension_numbers<[1], [0], [0], [1], [0, 0, 1, 1], [], []>} : vector<32x16xbf16>, vector<16x32xbf16>, vector<32x32xf32> -> vector<32x32xf32>
    %c0_8 = arith.constant 0 : index
    %c0_9 = arith.constant 0 : index
    %12 = vector.load %arg5[%c0_8, %c0_9] : memref<1x32xf32, #tpu.memory_space<vmem>>, vector<1x32xf32>
    %13 = vector.broadcast %12 : vector<1x32xf32> to vector<32x32xf32>
    %14 = arith.mulf %11, %13 : vector<32x32xf32>
    %c0_10 = arith.constant 0 : index
    %c0_11 = arith.constant 0 : index
    %15 = vector.load %arg6[%c0_10, %c0_11] : memref<1x32xf32, #tpu.memory_space<vmem>>, vector<1x32xf32>
    %16 = vector.broadcast %15 : vector<1x32xf32> to vector<32x32xf32>
    %17 = arith.addf %14, %16 : vector<32x32xf32>
    %cst_12 = arith.constant 0.000000e+00 : f32
    %18 = vector.broadcast %cst_12 : f32 to vector<32x32xf32>
    %19 = arith.maximumf %17, %18 : vector<32x32xf32>
    %20 = arith.truncf %19 : vector<32x32xf32> to vector<32x32xbf16>
    %c0_13 = arith.constant 0 : index
    %c0_14 = arith.constant 0 : index
    %21 = vector.load %arg7[%c0_13, %c0_14] : memref<32x32xbf16, #tpu.memory_space<vmem>>, vector<32x32xbf16>
    tpu.vector_store %arg7[%c0_13, %c0_14], %20 {strides = array<i32>} : memref<32x32xbf16, #tpu.memory_space<vmem>>, vector<32x32xbf16>,
    return
  }
  func.func @transform_0(%arg0: i32) -> (i32, i32) {
    %c0_i32 = arith.constant 0 : i32
    %c0_i32_0 = arith.constant 0 : i32
    return %arg0, %c0_i32 : i32, i32
  }
  func.func @transform_1(%arg0: i32) -> (i32, i32) {
    %c0_i32 = arith.constant 0 : i32
    %c0_i32_0 = arith.constant 0 : i32
    %c0_i32_1 = arith.constant 0 : i32
    return %c0_i32, %c0_i32_0 : i32, i32
  }
  func.func @transform_2(%arg0: i32) -> (i32, i32) {
    %c0_i32 = arith.constant 0 : i32
    %c0_i32_0 = arith.constant 0 : i32
    %c0_i32_1 = arith.constant 0 : i32
    return %c0_i32, %c0_i32_0 : i32, i32
  }
  func.func @transform_3(%arg0: i32) -> (i32, i32) {
    %c0_i32 = arith.constant 0 : i32
    %c0_i32_0 = arith.constant 0 : i32
    %c0_i32_1 = arith.constant 0 : i32
    return %c0_i32, %c0_i32_0 : i32, i32
  }
  func.func @transform_4(%arg0: i32) -> (i32, i32) {
    %c0_i32 = arith.constant 0 : i32
    %c0_i32_0 = arith.constant 0 : i32
    %c0_i32_1 = arith.constant 0 : i32
    return %c0_i32, %c0_i32_0 : i32, i32
  }
  func.func @transform_5(%arg0: i32) -> (i32, i32) {
    %c0_i32 = arith.constant 0 : i32
    %c0_i32_0 = arith.constant 0 : i32
    %c0_i32_1 = arith.constant 0 : i32
    return %c0_i32, %c0_i32_0 : i32, i32
  }
  func.func @transform_6(%arg0: i32) -> (i32, i32) {
    %c0_i32 = arith.constant 0 : i32
    %c0_i32_0 = arith.constant 0 : i32
    return %arg0, %c0_i32 : i32, i32
  }
}

module attributes {stable_mosaic.version = 11 : i64} {
  func.func @_avg4_kernel(%arg0: i32, %arg1: memref<32x16xf32, #tpu.memory_space<vmem>>, %arg2: memref<32x16xf32, #tpu.memory_space<vmem>>, %arg3: memref<32x16xf32, #tpu.memory_space<vmem>>, %arg4: memref<32x16xf32, #tpu.memory_space<vmem>>, %arg5: memref<32x16xf32, #tpu.memory_space<vmem>>) attributes {dimension_semantics = [#tpu.dimension_semantics<parallel>], iteration_bounds = array<i64: 1>, scalar_prefetch = 0 : i64, scratch_operands = 0 : i64, tpu.core_type = #tpu.core_type<tc>, window_params = [{transform_indices = @transform_0, window_bounds = array<i64: 32, 16>}, {transform_indices = @transform_1, window_bounds = array<i64: 32, 16>}, {transform_indices = @transform_2, window_bounds = array<i64: 32, 16>}, {transform_indices = @transform_3, window_bounds = array<i64: 32, 16>}, {transform_indices = @transform_4, window_bounds = array<i64: 32, 16>}]} {
    %c0 = arith.constant 0 : index
    %c0_0 = arith.constant 0 : index
    %0 = vector.load %arg1[%c0, %c0_0] : memref<32x16xf32, #tpu.memory_space<vmem>>, vector<32x16xf32>
    %c0_1 = arith.constant 0 : index
    %c0_2 = arith.constant 0 : index
    %1 = vector.load %arg2[%c0_1, %c0_2] : memref<32x16xf32, #tpu.memory_space<vmem>>, vector<32x16xf32>
    %2 = arith.addf %0, %1 : vector<32x16xf32>
    %c0_3 = arith.constant 0 : index
    %c0_4 = arith.constant 0 : index
    %3 = vector.load %arg3[%c0_3, %c0_4] : memref<32x16xf32, #tpu.memory_space<vmem>>, vector<32x16xf32>
    %4 = arith.addf %2, %3 : vector<32x16xf32>
    %c0_5 = arith.constant 0 : index
    %c0_6 = arith.constant 0 : index
    %5 = vector.load %arg4[%c0_5, %c0_6] : memref<32x16xf32, #tpu.memory_space<vmem>>, vector<32x16xf32>
    %6 = arith.addf %4, %5 : vector<32x16xf32>
    %cst = arith.constant 2.500000e-01 : f32
    %7 = vector.broadcast %cst : f32 to vector<32x16xf32>
    %8 = arith.mulf %7, %6 : vector<32x16xf32>
    %c0_7 = arith.constant 0 : index
    %c0_8 = arith.constant 0 : index
    %9 = vector.load %arg5[%c0_7, %c0_8] : memref<32x16xf32, #tpu.memory_space<vmem>>, vector<32x16xf32>
    tpu.vector_store %arg5[%c0_7, %c0_8], %8 {strides = array<i32>} : memref<32x16xf32, #tpu.memory_space<vmem>>, vector<32x16xf32>,
    return
  }
  func.func @transform_0(%arg0: i32) -> (i32, i32) {
    %c0_i32 = arith.constant 0 : i32
    %c0_i32_0 = arith.constant 0 : i32
    return %arg0, %c0_i32 : i32, i32
  }
  func.func @transform_1(%arg0: i32) -> (i32, i32) {
    %c0_i32 = arith.constant 0 : i32
    %c0_i32_0 = arith.constant 0 : i32
    return %arg0, %c0_i32 : i32, i32
  }
  func.func @transform_2(%arg0: i32) -> (i32, i32) {
    %c0_i32 = arith.constant 0 : i32
    %c0_i32_0 = arith.constant 0 : i32
    return %arg0, %c0_i32 : i32, i32
  }
  func.func @transform_3(%arg0: i32) -> (i32, i32) {
    %c0_i32 = arith.constant 0 : i32
    %c0_i32_0 = arith.constant 0 : i32
    return %arg0, %c0_i32 : i32, i32
  }
  func.func @transform_4(%arg0: i32) -> (i32, i32) {
    %c0_i32 = arith.constant 0 : i32
    %c0_i32_0 = arith.constant 0 : i32
    return %arg0, %c0_i32 : i32, i32
  }
}

module attributes {stable_mosaic.version = 11 : i64} {
  func.func @_tap_conv_kernel(%arg0: i32, %arg1: memref<1x42x32xbf16, #tpu.memory_space<vmem>>, %arg2: memref<9x32x8xbf16, #tpu.memory_space<vmem>>, %arg3: memref<1x8xf32, #tpu.memory_space<vmem>>, %arg4: memref<1x8xf32, #tpu.memory_space<vmem>>, %arg5: memref<1x24x8xf32, #tpu.memory_space<vmem>>) attributes {dimension_semantics = [#tpu.dimension_semantics<parallel>], iteration_bounds = array<i64: 2>, scalar_prefetch = 0 : i64, scratch_operands = 0 : i64, tpu.core_type = #tpu.core_type<tc>, window_params = [{transform_indices = @transform_0, window_bounds = array<i64: 1, 42, 32>}, {pipeline_mode = #tpu.pipeline_mode<synchronous>, transform_indices = @transform_1, window_bounds = array<i64: 9, 32, 8>}, {pipeline_mode = #tpu.pipeline_mode<synchronous>, transform_indices = @transform_2, window_bounds = array<i64: 1, 8>}, {pipeline_mode = #tpu.pipeline_mode<synchronous>, transform_indices = @transform_3, window_bounds = array<i64: 1, 8>}, {transform_indices = @transform_4, window_bounds = array<i64: 1, 24, 8>}]} {
    %c0 = arith.constant 0 : index
    %c0_0 = arith.constant 0 : index
    %c0_1 = arith.constant 0 : index
    %0 = vector.load %arg1[%c0, %c0_0, %c0_1] : memref<1x42x32xbf16, #tpu.memory_space<vmem>>, vector<1x24x32xbf16>
    %1 = vector.shape_cast %0 : vector<1x24x32xbf16> to vector<24x32xbf16>
    %c0_2 = arith.constant 0 : index
    %c0_3 = arith.constant 0 : index
    %c0_4 = arith.constant 0 : index
    %2 = vector.load %arg2[%c0_2, %c0_3, %c0_4] : memref<9x32x8xbf16, #tpu.memory_space<vmem>>, vector<1x32x8xbf16>
    %3 = vector.shape_cast %2 : vector<1x32x8xbf16> to vector<32x8xbf16>
    %cst = arith.constant dense<0.000000e+00> : vector<24x8xf32>
    %4 = tpu.matmul %1, %3, %cst {dimension_numbers = #tpu.dot_dimension_numbers<[1], [0], [0], [1], [0, 0, 1, 1], [], []>} : vector<24x32xbf16>, vector<32x8xbf16>, vector<24x8xf32> -> vector<24x8xf32>
    %c0_5 = arith.constant 0 : index
    %c1 = arith.constant 1 : index
    %c0_6 = arith.constant 0 : index
    %5 = vector.load %arg1[%c0_5, %c1, %c0_6] : memref<1x42x32xbf16, #tpu.memory_space<vmem>>, vector<1x24x32xbf16>
    %6 = vector.shape_cast %5 : vector<1x24x32xbf16> to vector<24x32xbf16>
    %c1_7 = arith.constant 1 : index
    %c0_8 = arith.constant 0 : index
    %c0_9 = arith.constant 0 : index
    %7 = vector.load %arg2[%c1_7, %c0_8, %c0_9] : memref<9x32x8xbf16, #tpu.memory_space<vmem>>, vector<1x32x8xbf16>
    %8 = vector.shape_cast %7 : vector<1x32x8xbf16> to vector<32x8xbf16>
    %cst_10 = arith.constant dense<0.000000e+00> : vector<24x8xf32>
    %9 = tpu.matmul %6, %8, %cst_10 {dimension_numbers = #tpu.dot_dimension_numbers<[1], [0], [0], [1], [0, 0, 1, 1], [], []>} : vector<24x32xbf16>, vector<32x8xbf16>, vector<24x8xf32> -> vector<24x8xf32>
    %10 = arith.addf %4, %9 : vector<24x8xf32>
    %c0_11 = arith.constant 0 : index
    %c2 = arith.constant 2 : index
    %c0_12 = arith.constant 0 : index
    %11 = vector.load %arg1[%c0_11, %c2, %c0_12] : memref<1x42x32xbf16, #tpu.memory_space<vmem>>, vector<1x24x32xbf16>
    %12 = vector.shape_cast %11 : vector<1x24x32xbf16> to vector<24x32xbf16>
    %c2_13 = arith.constant 2 : index
    %c0_14 = arith.constant 0 : index
    %c0_15 = arith.constant 0 : index
    %13 = vector.load %arg2[%c2_13, %c0_14, %c0_15] : memref<9x32x8xbf16, #tpu.memory_space<vmem>>, vector<1x32x8xbf16>
    %14 = vector.shape_cast %13 : vector<1x32x8xbf16> to vector<32x8xbf16>
    %cst_16 = arith.constant dense<0.000000e+00> : vector<24x8xf32>
    %15 = tpu.matmul %12, %14, %cst_16 {dimension_numbers = #tpu.dot_dimension_numbers<[1], [0], [0], [1], [0, 0, 1, 1], [], []>} : vector<24x32xbf16>, vector<32x8xbf16>, vector<24x8xf32> -> vector<24x8xf32>
    %16 = arith.addf %10, %15 : vector<24x8xf32>
    %c0_17 = arith.constant 0 : index
    %c6 = arith.constant 6 : index
    %c0_18 = arith.constant 0 : index
    %17 = vector.load %arg1[%c0_17, %c6, %c0_18] : memref<1x42x32xbf16, #tpu.memory_space<vmem>>, vector<1x24x32xbf16>
    %18 = vector.shape_cast %17 : vector<1x24x32xbf16> to vector<24x32xbf16>
    %c3 = arith.constant 3 : index
    %c0_19 = arith.constant 0 : index
    %c0_20 = arith.constant 0 : index
    %19 = vector.load %arg2[%c3, %c0_19, %c0_20] : memref<9x32x8xbf16, #tpu.memory_space<vmem>>, vector<1x32x8xbf16>
    %20 = vector.shape_cast %19 : vector<1x32x8xbf16> to vector<32x8xbf16>
    %cst_21 = arith.constant dense<0.000000e+00> : vector<24x8xf32>
    %21 = tpu.matmul %18, %20, %cst_21 {dimension_numbers = #tpu.dot_dimension_numbers<[1], [0], [0], [1], [0, 0, 1, 1], [], []>} : vector<24x32xbf16>, vector<32x8xbf16>, vector<24x8xf32> -> vector<24x8xf32>
    %22 = arith.addf %16, %21 : vector<24x8xf32>
    %c0_22 = arith.constant 0 : index
    %c7 = arith.constant 7 : index
    %c0_23 = arith.constant 0 : index
    %23 = vector.load %arg1[%c0_22, %c7, %c0_23] : memref<1x42x32xbf16, #tpu.memory_space<vmem>>, vector<1x24x32xbf16>
    %24 = vector.shape_cast %23 : vector<1x24x32xbf16> to vector<24x32xbf16>
    %c4 = arith.constant 4 : index
    %c0_24 = arith.constant 0 : index
    %c0_25 = arith.constant 0 : index
    %25 = vector.load %arg2[%c4, %c0_24, %c0_25] : memref<9x32x8xbf16, #tpu.memory_space<vmem>>, vector<1x32x8xbf16>
    %26 = vector.shape_cast %25 : vector<1x32x8xbf16> to vector<32x8xbf16>
    %cst_26 = arith.constant dense<0.000000e+00> : vector<24x8xf32>
    %27 = tpu.matmul %24, %26, %cst_26 {dimension_numbers = #tpu.dot_dimension_numbers<[1], [0], [0], [1], [0, 0, 1, 1], [], []>} : vector<24x32xbf16>, vector<32x8xbf16>, vector<24x8xf32> -> vector<24x8xf32>
    %28 = arith.addf %22, %27 : vector<24x8xf32>
    %c0_27 = arith.constant 0 : index
    %c8 = arith.constant 8 : index
    %c0_28 = arith.constant 0 : index
    %29 = vector.load %arg1[%c0_27, %c8, %c0_28] : memref<1x42x32xbf16, #tpu.memory_space<vmem>>, vector<1x24x32xbf16>
    %30 = vector.shape_cast %29 : vector<1x24x32xbf16> to vector<24x32xbf16>
    %c5 = arith.constant 5 : index
    %c0_29 = arith.constant 0 : index
    %c0_30 = arith.constant 0 : index
    %31 = vector.load %arg2[%c5, %c0_29, %c0_30] : memref<9x32x8xbf16, #tpu.memory_space<vmem>>, vector<1x32x8xbf16>
    %32 = vector.shape_cast %31 : vector<1x32x8xbf16> to vector<32x8xbf16>
    %cst_31 = arith.constant dense<0.000000e+00> : vector<24x8xf32>
    %33 = tpu.matmul %30, %32, %cst_31 {dimension_numbers = #tpu.dot_dimension_numbers<[1], [0], [0], [1], [0, 0, 1, 1], [], []>} : vector<24x32xbf16>, vector<32x8xbf16>, vector<24x8xf32> -> vector<24x8xf32>
    %34 = arith.addf %28, %33 : vector<24x8xf32>
    %c0_32 = arith.constant 0 : index
    %c12 = arith.constant 12 : index
    %c0_33 = arith.constant 0 : index
    %35 = vector.load %arg1[%c0_32, %c12, %c0_33] : memref<1x42x32xbf16, #tpu.memory_space<vmem>>, vector<1x24x32xbf16>
    %36 = vector.shape_cast %35 : vector<1x24x32xbf16> to vector<24x32xbf16>
    %c6_34 = arith.constant 6 : index
    %c0_35 = arith.constant 0 : index
    %c0_36 = arith.constant 0 : index
    %37 = vector.load %arg2[%c6_34, %c0_35, %c0_36] : memref<9x32x8xbf16, #tpu.memory_space<vmem>>, vector<1x32x8xbf16>
    %38 = vector.shape_cast %37 : vector<1x32x8xbf16> to vector<32x8xbf16>
    %cst_37 = arith.constant dense<0.000000e+00> : vector<24x8xf32>
    %39 = tpu.matmul %36, %38, %cst_37 {dimension_numbers = #tpu.dot_dimension_numbers<[1], [0], [0], [1], [0, 0, 1, 1], [], []>} : vector<24x32xbf16>, vector<32x8xbf16>, vector<24x8xf32> -> vector<24x8xf32>
    %40 = arith.addf %34, %39 : vector<24x8xf32>
    %c0_38 = arith.constant 0 : index
    %c13 = arith.constant 13 : index
    %c0_39 = arith.constant 0 : index
    %41 = vector.load %arg1[%c0_38, %c13, %c0_39] : memref<1x42x32xbf16, #tpu.memory_space<vmem>>, vector<1x24x32xbf16>
    %42 = vector.shape_cast %41 : vector<1x24x32xbf16> to vector<24x32xbf16>
    %c7_40 = arith.constant 7 : index
    %c0_41 = arith.constant 0 : index
    %c0_42 = arith.constant 0 : index
    %43 = vector.load %arg2[%c7_40, %c0_41, %c0_42] : memref<9x32x8xbf16, #tpu.memory_space<vmem>>, vector<1x32x8xbf16>
    %44 = vector.shape_cast %43 : vector<1x32x8xbf16> to vector<32x8xbf16>
    %cst_43 = arith.constant dense<0.000000e+00> : vector<24x8xf32>
    %45 = tpu.matmul %42, %44, %cst_43 {dimension_numbers = #tpu.dot_dimension_numbers<[1], [0], [0], [1], [0, 0, 1, 1], [], []>} : vector<24x32xbf16>, vector<32x8xbf16>, vector<24x8xf32> -> vector<24x8xf32>
    %46 = arith.addf %40, %45 : vector<24x8xf32>
    %c0_44 = arith.constant 0 : index
    %c14 = arith.constant 14 : index
    %c0_45 = arith.constant 0 : index
    %47 = vector.load %arg1[%c0_44, %c14, %c0_45] : memref<1x42x32xbf16, #tpu.memory_space<vmem>>, vector<1x24x32xbf16>
    %48 = vector.shape_cast %47 : vector<1x24x32xbf16> to vector<24x32xbf16>
    %c8_46 = arith.constant 8 : index
    %c0_47 = arith.constant 0 : index
    %c0_48 = arith.constant 0 : index
    %49 = vector.load %arg2[%c8_46, %c0_47, %c0_48] : memref<9x32x8xbf16, #tpu.memory_space<vmem>>, vector<1x32x8xbf16>
    %50 = vector.shape_cast %49 : vector<1x32x8xbf16> to vector<32x8xbf16>
    %cst_49 = arith.constant dense<0.000000e+00> : vector<24x8xf32>
    %51 = tpu.matmul %48, %50, %cst_49 {dimension_numbers = #tpu.dot_dimension_numbers<[1], [0], [0], [1], [0, 0, 1, 1], [], []>} : vector<24x32xbf16>, vector<32x8xbf16>, vector<24x8xf32> -> vector<24x8xf32>
    %52 = arith.addf %46, %51 : vector<24x8xf32>
    %c0_50 = arith.constant 0 : index
    %c0_51 = arith.constant 0 : index
    %53 = vector.load %arg3[%c0_50, %c0_51] : memref<1x8xf32, #tpu.memory_space<vmem>>, vector<1x8xf32>
    %54 = vector.broadcast %53 : vector<1x8xf32> to vector<24x8xf32>
    %55 = arith.mulf %52, %54 : vector<24x8xf32>
    %c0_52 = arith.constant 0 : index
    %c0_53 = arith.constant 0 : index
    %56 = vector.load %arg4[%c0_52, %c0_53] : memref<1x8xf32, #tpu.memory_space<vmem>>, vector<1x8xf32>
    %57 = vector.broadcast %56 : vector<1x8xf32> to vector<24x8xf32>
    %58 = arith.addf %55, %57 : vector<24x8xf32>
    %c0_54 = arith.constant 0 : index
    %c0_55 = arith.constant 0 : index
    %c0_56 = arith.constant 0 : index
    %59 = vector.load %arg5[%c0_54, %c0_55, %c0_56] : memref<1x24x8xf32, #tpu.memory_space<vmem>>, vector<1x24x8xf32>
    %60 = vector.shape_cast %59 : vector<1x24x8xf32> to vector<24x8xf32>
    %61 = vector.shape_cast %58 : vector<24x8xf32> to vector<1x24x8xf32>
    tpu.vector_store %arg5[%c0_54, %c0_55, %c0_56], %61 {strides = array<i32>} : memref<1x24x8xf32, #tpu.memory_space<vmem>>, vector<1x24x8xf32>,
    return
  }
  func.func @transform_0(%arg0: i32) -> (i32, i32, i32) {
    %c0_i32 = arith.constant 0 : i32
    %c0_i32_0 = arith.constant 0 : i32
    %c0_i32_1 = arith.constant 0 : i32
    return %arg0, %c0_i32, %c0_i32_0 : i32, i32, i32
  }
  func.func @transform_1(%arg0: i32) -> (i32, i32, i32) {
    %c0_i32 = arith.constant 0 : i32
    %c0_i32_0 = arith.constant 0 : i32
    %c0_i32_1 = arith.constant 0 : i32
    %c0_i32_2 = arith.constant 0 : i32
    return %c0_i32, %c0_i32_0, %c0_i32_1 : i32, i32, i32
  }
  func.func @transform_2(%arg0: i32) -> (i32, i32) {
    %c0_i32 = arith.constant 0 : i32
    %c0_i32_0 = arith.constant 0 : i32
    %c0_i32_1 = arith.constant 0 : i32
    return %c0_i32, %c0_i32_0 : i32, i32
  }
  func.func @transform_3(%arg0: i32) -> (i32, i32) {
    %c0_i32 = arith.constant 0 : i32
    %c0_i32_0 = arith.constant 0 : i32
    %c0_i32_1 = arith.constant 0 : i32
    return %c0_i32, %c0_i32_0 : i32, i32
  }
  func.func @transform_4(%arg0: i32) -> (i32, i32, i32) {
    %c0_i32 = arith.constant 0 : i32
    %c0_i32_0 = arith.constant 0 : i32
    %c0_i32_1 = arith.constant 0 : i32
    return %arg0, %c0_i32, %c0_i32_0 : i32, i32, i32
  }
}

module attributes {stable_mosaic.version = 11 : i64} {
  func.func @_fused_matmul_kernel(%arg0: i32, %arg1: memref<32x24xf32, #tpu.memory_space<vmem>>, %arg2: memref<1x24xf32, #tpu.memory_space<vmem>>, %arg3: memref<1x24xf32, #tpu.memory_space<vmem>>, %arg4: memref<24x32xbf16, #tpu.memory_space<vmem>>, %arg5: memref<1x32xf32, #tpu.memory_space<vmem>>, %arg6: memref<1x32xf32, #tpu.memory_space<vmem>>, %arg7: memref<32x32xbf16, #tpu.memory_space<vmem>>) attributes {dimension_semantics = [#tpu.dimension_semantics<parallel>], iteration_bounds = array<i64: 1>, scalar_prefetch = 0 : i64, scratch_operands = 0 : i64, tpu.core_type = #tpu.core_type<tc>, window_params = [{transform_indices = @transform_0, window_bounds = array<i64: 32, 24>}, {pipeline_mode = #tpu.pipeline_mode<synchronous>, transform_indices = @transform_1, window_bounds = array<i64: 1, 24>}, {pipeline_mode = #tpu.pipeline_mode<synchronous>, transform_indices = @transform_2, window_bounds = array<i64: 1, 24>}, {pipeline_mode = #tpu.pipeline_mode<synchronous>, transform_indices = @transform_3, window_bounds = array<i64: 24, 32>}, {pipeline_mode = #tpu.pipeline_mode<synchronous>, transform_indices = @transform_4, window_bounds = array<i64: 1, 32>}, {pipeline_mode = #tpu.pipeline_mode<synchronous>, transform_indices = @transform_5, window_bounds = array<i64: 1, 32>}, {transform_indices = @transform_6, window_bounds = array<i64: 32, 32>}]} {
    %c0 = arith.constant 0 : index
    %c0_0 = arith.constant 0 : index
    %0 = vector.load %arg1[%c0, %c0_0] : memref<32x24xf32, #tpu.memory_space<vmem>>, vector<32x24xf32>
    %c0_1 = arith.constant 0 : index
    %c0_2 = arith.constant 0 : index
    %1 = vector.load %arg2[%c0_1, %c0_2] : memref<1x24xf32, #tpu.memory_space<vmem>>, vector<1x24xf32>
    %2 = vector.broadcast %1 : vector<1x24xf32> to vector<32x24xf32>
    %3 = arith.mulf %0, %2 : vector<32x24xf32>
    %c0_3 = arith.constant 0 : index
    %c0_4 = arith.constant 0 : index
    %4 = vector.load %arg3[%c0_3, %c0_4] : memref<1x24xf32, #tpu.memory_space<vmem>>, vector<1x24xf32>
    %5 = vector.broadcast %4 : vector<1x24xf32> to vector<32x24xf32>
    %6 = arith.addf %3, %5 : vector<32x24xf32>
    %cst = arith.constant 0.000000e+00 : f32
    %7 = vector.broadcast %cst : f32 to vector<32x24xf32>
    %8 = arith.maximumf %6, %7 : vector<32x24xf32>
    %9 = arith.truncf %8 : vector<32x24xf32> to vector<32x24xbf16>
    %c0_5 = arith.constant 0 : index
    %c0_6 = arith.constant 0 : index
    %10 = vector.load %arg4[%c0_5, %c0_6] : memref<24x32xbf16, #tpu.memory_space<vmem>>, vector<24x32xbf16>
    %cst_7 = arith.constant dense<0.000000e+00> : vector<32x32xf32>
    %11 = tpu.matmul %9, %10, %cst_7 {dimension_numbers = #tpu.dot_dimension_numbers<[1], [0], [0], [1], [0, 0, 1, 1], [], []>} : vector<32x24xbf16>, vector<24x32xbf16>, vector<32x32xf32> -> vector<32x32xf32>
    %c0_8 = arith.constant 0 : index
    %c0_9 = arith.constant 0 : index
    %12 = vector.load %arg5[%c0_8, %c0_9] : memref<1x32xf32, #tpu.memory_space<vmem>>, vector<1x32xf32>
    %13 = vector.broadcast %12 : vector<1x32xf32> to vector<32x32xf32>
    %14 = arith.mulf %11, %13 : vector<32x32xf32>
    %c0_10 = arith.constant 0 : index
    %c0_11 = arith.constant 0 : index
    %15 = vector.load %arg6[%c0_10, %c0_11] : memref<1x32xf32, #tpu.memory_space<vmem>>, vector<1x32xf32>
    %16 = vector.broadcast %15 : vector<1x32xf32> to vector<32x32xf32>
    %17 = arith.addf %14, %16 : vector<32x32xf32>
    %cst_12 = arith.constant 0.000000e+00 : f32
    %18 = vector.broadcast %cst_12 : f32 to vector<32x32xf32>
    %19 = arith.maximumf %17, %18 : vector<32x32xf32>
    %20 = arith.truncf %19 : vector<32x32xf32> to vector<32x32xbf16>
    %c0_13 = arith.constant 0 : index
    %c0_14 = arith.constant 0 : index
    %21 = vector.load %arg7[%c0_13, %c0_14] : memref<32x32xbf16, #tpu.memory_space<vmem>>, vector<32x32xbf16>
    tpu.vector_store %arg7[%c0_13, %c0_14], %20 {strides = array<i32>} : memref<32x32xbf16, #tpu.memory_space<vmem>>, vector<32x32xbf16>,
    return
  }
  func.func @transform_0(%arg0: i32) -> (i32, i32) {
    %c0_i32 = arith.constant 0 : i32
    %c0_i32_0 = arith.constant 0 : i32
    return %arg0, %c0_i32 : i32, i32
  }
  func.func @transform_1(%arg0: i32) -> (i32, i32) {
    %c0_i32 = arith.constant 0 : i32
    %c0_i32_0 = arith.constant 0 : i32
    %c0_i32_1 = arith.constant 0 : i32
    return %c0_i32, %c0_i32_0 : i32, i32
  }
  func.func @transform_2(%arg0: i32) -> (i32, i32) {
    %c0_i32 = arith.constant 0 : i32
    %c0_i32_0 = arith.constant 0 : i32
    %c0_i32_1 = arith.constant 0 : i32
    return %c0_i32, %c0_i32_0 : i32, i32
  }
  func.func @transform_3(%arg0: i32) -> (i32, i32) {
    %c0_i32 = arith.constant 0 : i32
    %c0_i32_0 = arith.constant 0 : i32
    %c0_i32_1 = arith.constant 0 : i32
    return %c0_i32, %c0_i32_0 : i32, i32
  }
  func.func @transform_4(%arg0: i32) -> (i32, i32) {
    %c0_i32 = arith.constant 0 : i32
    %c0_i32_0 = arith.constant 0 : i32
    %c0_i32_1 = arith.constant 0 : i32
    return %c0_i32, %c0_i32_0 : i32, i32
  }
  func.func @transform_5(%arg0: i32) -> (i32, i32) {
    %c0_i32 = arith.constant 0 : i32
    %c0_i32_0 = arith.constant 0 : i32
    %c0_i32_1 = arith.constant 0 : i32
    return %c0_i32, %c0_i32_0 : i32, i32
  }
  func.func @transform_6(%arg0: i32) -> (i32, i32) {
    %c0_i32 = arith.constant 0 : i32
    %c0_i32_0 = arith.constant 0 : i32
    return %arg0, %c0_i32 : i32, i32
  }
}

module attributes {stable_mosaic.version = 11 : i64} {
  func.func @_fused_matmul_kernel(%arg0: i32, %arg1: memref<32x32xf32, #tpu.memory_space<vmem>>, %arg2: memref<1x32xf32, #tpu.memory_space<vmem>>, %arg3: memref<1x32xf32, #tpu.memory_space<vmem>>, %arg4: memref<32x16xbf16, #tpu.memory_space<vmem>>, %arg5: memref<1x16xf32, #tpu.memory_space<vmem>>, %arg6: memref<1x16xf32, #tpu.memory_space<vmem>>, %arg7: memref<32x16xf32, #tpu.memory_space<vmem>>) attributes {dimension_semantics = [#tpu.dimension_semantics<parallel>], iteration_bounds = array<i64: 1>, scalar_prefetch = 0 : i64, scratch_operands = 0 : i64, tpu.core_type = #tpu.core_type<tc>, window_params = [{transform_indices = @transform_0, window_bounds = array<i64: 32, 32>}, {pipeline_mode = #tpu.pipeline_mode<synchronous>, transform_indices = @transform_1, window_bounds = array<i64: 1, 32>}, {pipeline_mode = #tpu.pipeline_mode<synchronous>, transform_indices = @transform_2, window_bounds = array<i64: 1, 32>}, {pipeline_mode = #tpu.pipeline_mode<synchronous>, transform_indices = @transform_3, window_bounds = array<i64: 32, 16>}, {pipeline_mode = #tpu.pipeline_mode<synchronous>, transform_indices = @transform_4, window_bounds = array<i64: 1, 16>}, {pipeline_mode = #tpu.pipeline_mode<synchronous>, transform_indices = @transform_5, window_bounds = array<i64: 1, 16>}, {transform_indices = @transform_6, window_bounds = array<i64: 32, 16>}]} {
    %c0 = arith.constant 0 : index
    %c0_0 = arith.constant 0 : index
    %0 = vector.load %arg1[%c0, %c0_0] : memref<32x32xf32, #tpu.memory_space<vmem>>, vector<32x32xf32>
    %c0_1 = arith.constant 0 : index
    %c0_2 = arith.constant 0 : index
    %1 = vector.load %arg2[%c0_1, %c0_2] : memref<1x32xf32, #tpu.memory_space<vmem>>, vector<1x32xf32>
    %2 = vector.broadcast %1 : vector<1x32xf32> to vector<32x32xf32>
    %3 = arith.mulf %0, %2 : vector<32x32xf32>
    %c0_3 = arith.constant 0 : index
    %c0_4 = arith.constant 0 : index
    %4 = vector.load %arg3[%c0_3, %c0_4] : memref<1x32xf32, #tpu.memory_space<vmem>>, vector<1x32xf32>
    %5 = vector.broadcast %4 : vector<1x32xf32> to vector<32x32xf32>
    %6 = arith.addf %3, %5 : vector<32x32xf32>
    %cst = arith.constant 0.000000e+00 : f32
    %7 = vector.broadcast %cst : f32 to vector<32x32xf32>
    %8 = arith.maximumf %6, %7 : vector<32x32xf32>
    %9 = arith.truncf %8 : vector<32x32xf32> to vector<32x32xbf16>
    %c0_5 = arith.constant 0 : index
    %c0_6 = arith.constant 0 : index
    %10 = vector.load %arg4[%c0_5, %c0_6] : memref<32x16xbf16, #tpu.memory_space<vmem>>, vector<32x16xbf16>
    %cst_7 = arith.constant dense<0.000000e+00> : vector<32x16xf32>
    %11 = tpu.matmul %9, %10, %cst_7 {dimension_numbers = #tpu.dot_dimension_numbers<[1], [0], [0], [1], [0, 0, 1, 1], [], []>} : vector<32x32xbf16>, vector<32x16xbf16>, vector<32x16xf32> -> vector<32x16xf32>
    %c0_8 = arith.constant 0 : index
    %c0_9 = arith.constant 0 : index
    %12 = vector.load %arg5[%c0_8, %c0_9] : memref<1x16xf32, #tpu.memory_space<vmem>>, vector<1x16xf32>
    %13 = vector.broadcast %12 : vector<1x16xf32> to vector<32x16xf32>
    %14 = arith.mulf %11, %13 : vector<32x16xf32>
    %c0_10 = arith.constant 0 : index
    %c0_11 = arith.constant 0 : index
    %15 = vector.load %arg6[%c0_10, %c0_11] : memref<1x16xf32, #tpu.memory_space<vmem>>, vector<1x16xf32>
    %16 = vector.broadcast %15 : vector<1x16xf32> to vector<32x16xf32>
    %17 = arith.addf %14, %16 : vector<32x16xf32>
    %c0_12 = arith.constant 0 : index
    %c0_13 = arith.constant 0 : index
    %18 = vector.load %arg7[%c0_12, %c0_13] : memref<32x16xf32, #tpu.memory_space<vmem>>, vector<32x16xf32>
    tpu.vector_store %arg7[%c0_12, %c0_13], %17 {strides = array<i32>} : memref<32x16xf32, #tpu.memory_space<vmem>>, vector<32x16xf32>,
    return
  }
  func.func @transform_0(%arg0: i32) -> (i32, i32) {
    %c0_i32 = arith.constant 0 : i32
    %c0_i32_0 = arith.constant 0 : i32
    return %arg0, %c0_i32 : i32, i32
  }
  func.func @transform_1(%arg0: i32) -> (i32, i32) {
    %c0_i32 = arith.constant 0 : i32
    %c0_i32_0 = arith.constant 0 : i32
    %c0_i32_1 = arith.constant 0 : i32
    return %c0_i32, %c0_i32_0 : i32, i32
  }
  func.func @transform_2(%arg0: i32) -> (i32, i32) {
    %c0_i32 = arith.constant 0 : i32
    %c0_i32_0 = arith.constant 0 : i32
    %c0_i32_1 = arith.constant 0 : i32
    return %c0_i32, %c0_i32_0 : i32, i32
  }
  func.func @transform_3(%arg0: i32) -> (i32, i32) {
    %c0_i32 = arith.constant 0 : i32
    %c0_i32_0 = arith.constant 0 : i32
    %c0_i32_1 = arith.constant 0 : i32
    return %c0_i32, %c0_i32_0 : i32, i32
  }
  func.func @transform_4(%arg0: i32) -> (i32, i32) {
    %c0_i32 = arith.constant 0 : i32
    %c0_i32_0 = arith.constant 0 : i32
    %c0_i32_1 = arith.constant 0 : i32
    return %c0_i32, %c0_i32_0 : i32, i32
  }
  func.func @transform_5(%arg0: i32) -> (i32, i32) {
    %c0_i32 = arith.constant 0 : i32
    %c0_i32_0 = arith.constant 0 : i32
    %c0_i32_1 = arith.constant 0 : i32
    return %c0_i32, %c0_i32_0 : i32, i32
  }
  func.func @transform_6(%arg0: i32) -> (i32, i32) {
    %c0_i32 = arith.constant 0 : i32
    %c0_i32_0 = arith.constant 0 : i32
    return %arg0, %c0_i32 : i32, i32
  }
}

module attributes {stable_mosaic.version = 11 : i64} {
  func.func @_avg4_kernel(%arg0: i32, %arg1: memref<8x16xf32, #tpu.memory_space<vmem>>, %arg2: memref<8x16xf32, #tpu.memory_space<vmem>>, %arg3: memref<8x16xf32, #tpu.memory_space<vmem>>, %arg4: memref<8x16xf32, #tpu.memory_space<vmem>>, %arg5: memref<8x16xf32, #tpu.memory_space<vmem>>) attributes {dimension_semantics = [#tpu.dimension_semantics<parallel>], iteration_bounds = array<i64: 1>, scalar_prefetch = 0 : i64, scratch_operands = 0 : i64, tpu.core_type = #tpu.core_type<tc>, window_params = [{transform_indices = @transform_0, window_bounds = array<i64: 8, 16>}, {transform_indices = @transform_1, window_bounds = array<i64: 8, 16>}, {transform_indices = @transform_2, window_bounds = array<i64: 8, 16>}, {transform_indices = @transform_3, window_bounds = array<i64: 8, 16>}, {transform_indices = @transform_4, window_bounds = array<i64: 8, 16>}]} {
    %c0 = arith.constant 0 : index
    %c0_0 = arith.constant 0 : index
    %0 = vector.load %arg1[%c0, %c0_0] : memref<8x16xf32, #tpu.memory_space<vmem>>, vector<8x16xf32>
    %c0_1 = arith.constant 0 : index
    %c0_2 = arith.constant 0 : index
    %1 = vector.load %arg2[%c0_1, %c0_2] : memref<8x16xf32, #tpu.memory_space<vmem>>, vector<8x16xf32>
    %2 = arith.addf %0, %1 : vector<8x16xf32>
    %c0_3 = arith.constant 0 : index
    %c0_4 = arith.constant 0 : index
    %3 = vector.load %arg3[%c0_3, %c0_4] : memref<8x16xf32, #tpu.memory_space<vmem>>, vector<8x16xf32>
    %4 = arith.addf %2, %3 : vector<8x16xf32>
    %c0_5 = arith.constant 0 : index
    %c0_6 = arith.constant 0 : index
    %5 = vector.load %arg4[%c0_5, %c0_6] : memref<8x16xf32, #tpu.memory_space<vmem>>, vector<8x16xf32>
    %6 = arith.addf %4, %5 : vector<8x16xf32>
    %cst = arith.constant 2.500000e-01 : f32
    %7 = vector.broadcast %cst : f32 to vector<8x16xf32>
    %8 = arith.mulf %7, %6 : vector<8x16xf32>
    %c0_7 = arith.constant 0 : index
    %c0_8 = arith.constant 0 : index
    %9 = vector.load %arg5[%c0_7, %c0_8] : memref<8x16xf32, #tpu.memory_space<vmem>>, vector<8x16xf32>
    tpu.vector_store %arg5[%c0_7, %c0_8], %8 {strides = array<i32>} : memref<8x16xf32, #tpu.memory_space<vmem>>, vector<8x16xf32>,
    return
  }
  func.func @transform_0(%arg0: i32) -> (i32, i32) {
    %c0_i32 = arith.constant 0 : i32
    %c0_i32_0 = arith.constant 0 : i32
    return %arg0, %c0_i32 : i32, i32
  }
  func.func @transform_1(%arg0: i32) -> (i32, i32) {
    %c0_i32 = arith.constant 0 : i32
    %c0_i32_0 = arith.constant 0 : i32
    return %arg0, %c0_i32 : i32, i32
  }
  func.func @transform_2(%arg0: i32) -> (i32, i32) {
    %c0_i32 = arith.constant 0 : i32
    %c0_i32_0 = arith.constant 0 : i32
    return %arg0, %c0_i32 : i32, i32
  }
  func.func @transform_3(%arg0: i32) -> (i32, i32) {
    %c0_i32 = arith.constant 0 : i32
    %c0_i32_0 = arith.constant 0 : i32
    return %arg0, %c0_i32 : i32, i32
  }
  func.func @transform_4(%arg0: i32) -> (i32, i32) {
    %c0_i32 = arith.constant 0 : i32
    %c0_i32_0 = arith.constant 0 : i32
    return %arg0, %c0_i32 : i32, i32
  }
}

module attributes {stable_mosaic.version = 11 : i64} {
  func.func @_fused_matmul_kernel(%arg0: i32, %arg1: memref<8x16xf32, #tpu.memory_space<vmem>>, %arg2: memref<1x16xf32, #tpu.memory_space<vmem>>, %arg3: memref<1x16xf32, #tpu.memory_space<vmem>>, %arg4: memref<16x32xbf16, #tpu.memory_space<vmem>>, %arg5: memref<1x32xf32, #tpu.memory_space<vmem>>, %arg6: memref<1x32xf32, #tpu.memory_space<vmem>>, %arg7: memref<8x32xbf16, #tpu.memory_space<vmem>>) attributes {dimension_semantics = [#tpu.dimension_semantics<parallel>], iteration_bounds = array<i64: 1>, scalar_prefetch = 0 : i64, scratch_operands = 0 : i64, tpu.core_type = #tpu.core_type<tc>, window_params = [{transform_indices = @transform_0, window_bounds = array<i64: 8, 16>}, {pipeline_mode = #tpu.pipeline_mode<synchronous>, transform_indices = @transform_1, window_bounds = array<i64: 1, 16>}, {pipeline_mode = #tpu.pipeline_mode<synchronous>, transform_indices = @transform_2, window_bounds = array<i64: 1, 16>}, {pipeline_mode = #tpu.pipeline_mode<synchronous>, transform_indices = @transform_3, window_bounds = array<i64: 16, 32>}, {pipeline_mode = #tpu.pipeline_mode<synchronous>, transform_indices = @transform_4, window_bounds = array<i64: 1, 32>}, {pipeline_mode = #tpu.pipeline_mode<synchronous>, transform_indices = @transform_5, window_bounds = array<i64: 1, 32>}, {transform_indices = @transform_6, window_bounds = array<i64: 8, 32>}]} {
    %c0 = arith.constant 0 : index
    %c0_0 = arith.constant 0 : index
    %0 = vector.load %arg1[%c0, %c0_0] : memref<8x16xf32, #tpu.memory_space<vmem>>, vector<8x16xf32>
    %c0_1 = arith.constant 0 : index
    %c0_2 = arith.constant 0 : index
    %1 = vector.load %arg2[%c0_1, %c0_2] : memref<1x16xf32, #tpu.memory_space<vmem>>, vector<1x16xf32>
    %2 = vector.broadcast %1 : vector<1x16xf32> to vector<8x16xf32>
    %3 = arith.mulf %0, %2 : vector<8x16xf32>
    %c0_3 = arith.constant 0 : index
    %c0_4 = arith.constant 0 : index
    %4 = vector.load %arg3[%c0_3, %c0_4] : memref<1x16xf32, #tpu.memory_space<vmem>>, vector<1x16xf32>
    %5 = vector.broadcast %4 : vector<1x16xf32> to vector<8x16xf32>
    %6 = arith.addf %3, %5 : vector<8x16xf32>
    %cst = arith.constant 0.000000e+00 : f32
    %7 = vector.broadcast %cst : f32 to vector<8x16xf32>
    %8 = arith.maximumf %6, %7 : vector<8x16xf32>
    %9 = arith.truncf %8 : vector<8x16xf32> to vector<8x16xbf16>
    %c0_5 = arith.constant 0 : index
    %c0_6 = arith.constant 0 : index
    %10 = vector.load %arg4[%c0_5, %c0_6] : memref<16x32xbf16, #tpu.memory_space<vmem>>, vector<16x32xbf16>
    %cst_7 = arith.constant dense<0.000000e+00> : vector<8x32xf32>
    %11 = tpu.matmul %9, %10, %cst_7 {dimension_numbers = #tpu.dot_dimension_numbers<[1], [0], [0], [1], [0, 0, 1, 1], [], []>} : vector<8x16xbf16>, vector<16x32xbf16>, vector<8x32xf32> -> vector<8x32xf32>
    %c0_8 = arith.constant 0 : index
    %c0_9 = arith.constant 0 : index
    %12 = vector.load %arg5[%c0_8, %c0_9] : memref<1x32xf32, #tpu.memory_space<vmem>>, vector<1x32xf32>
    %13 = vector.broadcast %12 : vector<1x32xf32> to vector<8x32xf32>
    %14 = arith.mulf %11, %13 : vector<8x32xf32>
    %c0_10 = arith.constant 0 : index
    %c0_11 = arith.constant 0 : index
    %15 = vector.load %arg6[%c0_10, %c0_11] : memref<1x32xf32, #tpu.memory_space<vmem>>, vector<1x32xf32>
    %16 = vector.broadcast %15 : vector<1x32xf32> to vector<8x32xf32>
    %17 = arith.addf %14, %16 : vector<8x32xf32>
    %cst_12 = arith.constant 0.000000e+00 : f32
    %18 = vector.broadcast %cst_12 : f32 to vector<8x32xf32>
    %19 = arith.maximumf %17, %18 : vector<8x32xf32>
    %20 = arith.truncf %19 : vector<8x32xf32> to vector<8x32xbf16>
    %c0_13 = arith.constant 0 : index
    %c0_14 = arith.constant 0 : index
    %21 = vector.load %arg7[%c0_13, %c0_14] : memref<8x32xbf16, #tpu.memory_space<vmem>>, vector<8x32xbf16>
    tpu.vector_store %arg7[%c0_13, %c0_14], %20 {strides = array<i32>} : memref<8x32xbf16, #tpu.memory_space<vmem>>, vector<8x32xbf16>,
    return
  }
  func.func @transform_0(%arg0: i32) -> (i32, i32) {
    %c0_i32 = arith.constant 0 : i32
    %c0_i32_0 = arith.constant 0 : i32
    return %arg0, %c0_i32 : i32, i32
  }
  func.func @transform_1(%arg0: i32) -> (i32, i32) {
    %c0_i32 = arith.constant 0 : i32
    %c0_i32_0 = arith.constant 0 : i32
    %c0_i32_1 = arith.constant 0 : i32
    return %c0_i32, %c0_i32_0 : i32, i32
  }
  func.func @transform_2(%arg0: i32) -> (i32, i32) {
    %c0_i32 = arith.constant 0 : i32
    %c0_i32_0 = arith.constant 0 : i32
    %c0_i32_1 = arith.constant 0 : i32
    return %c0_i32, %c0_i32_0 : i32, i32
  }
  func.func @transform_3(%arg0: i32) -> (i32, i32) {
    %c0_i32 = arith.constant 0 : i32
    %c0_i32_0 = arith.constant 0 : i32
    %c0_i32_1 = arith.constant 0 : i32
    return %c0_i32, %c0_i32_0 : i32, i32
  }
  func.func @transform_4(%arg0: i32) -> (i32, i32) {
    %c0_i32 = arith.constant 0 : i32
    %c0_i32_0 = arith.constant 0 : i32
    %c0_i32_1 = arith.constant 0 : i32
    return %c0_i32, %c0_i32_0 : i32, i32
  }
  func.func @transform_5(%arg0: i32) -> (i32, i32) {
    %c0_i32 = arith.constant 0 : i32
    %c0_i32_0 = arith.constant 0 : i32
    %c0_i32_1 = arith.constant 0 : i32
    return %c0_i32, %c0_i32_0 : i32, i32
  }
  func.func @transform_6(%arg0: i32) -> (i32, i32) {
    %c0_i32 = arith.constant 0 : i32
    %c0_i32_0 = arith.constant 0 : i32
    return %arg0, %c0_i32 : i32, i32
  }
}

module attributes {stable_mosaic.version = 11 : i64} {
  func.func @_fused_matmul_kernel(%arg0: i32, %arg1: memref<8x24xf32, #tpu.memory_space<vmem>>, %arg2: memref<1x24xf32, #tpu.memory_space<vmem>>, %arg3: memref<1x24xf32, #tpu.memory_space<vmem>>, %arg4: memref<24x32xbf16, #tpu.memory_space<vmem>>, %arg5: memref<1x32xf32, #tpu.memory_space<vmem>>, %arg6: memref<1x32xf32, #tpu.memory_space<vmem>>, %arg7: memref<8x32xbf16, #tpu.memory_space<vmem>>) attributes {dimension_semantics = [#tpu.dimension_semantics<parallel>], iteration_bounds = array<i64: 1>, scalar_prefetch = 0 : i64, scratch_operands = 0 : i64, tpu.core_type = #tpu.core_type<tc>, window_params = [{transform_indices = @transform_0, window_bounds = array<i64: 8, 24>}, {pipeline_mode = #tpu.pipeline_mode<synchronous>, transform_indices = @transform_1, window_bounds = array<i64: 1, 24>}, {pipeline_mode = #tpu.pipeline_mode<synchronous>, transform_indices = @transform_2, window_bounds = array<i64: 1, 24>}, {pipeline_mode = #tpu.pipeline_mode<synchronous>, transform_indices = @transform_3, window_bounds = array<i64: 24, 32>}, {pipeline_mode = #tpu.pipeline_mode<synchronous>, transform_indices = @transform_4, window_bounds = array<i64: 1, 32>}, {pipeline_mode = #tpu.pipeline_mode<synchronous>, transform_indices = @transform_5, window_bounds = array<i64: 1, 32>}, {transform_indices = @transform_6, window_bounds = array<i64: 8, 32>}]} {
    %c0 = arith.constant 0 : index
    %c0_0 = arith.constant 0 : index
    %0 = vector.load %arg1[%c0, %c0_0] : memref<8x24xf32, #tpu.memory_space<vmem>>, vector<8x24xf32>
    %c0_1 = arith.constant 0 : index
    %c0_2 = arith.constant 0 : index
    %1 = vector.load %arg2[%c0_1, %c0_2] : memref<1x24xf32, #tpu.memory_space<vmem>>, vector<1x24xf32>
    %2 = vector.broadcast %1 : vector<1x24xf32> to vector<8x24xf32>
    %3 = arith.mulf %0, %2 : vector<8x24xf32>
    %c0_3 = arith.constant 0 : index
    %c0_4 = arith.constant 0 : index
    %4 = vector.load %arg3[%c0_3, %c0_4] : memref<1x24xf32, #tpu.memory_space<vmem>>, vector<1x24xf32>
    %5 = vector.broadcast %4 : vector<1x24xf32> to vector<8x24xf32>
    %6 = arith.addf %3, %5 : vector<8x24xf32>
    %cst = arith.constant 0.000000e+00 : f32
    %7 = vector.broadcast %cst : f32 to vector<8x24xf32>
    %8 = arith.maximumf %6, %7 : vector<8x24xf32>
    %9 = arith.truncf %8 : vector<8x24xf32> to vector<8x24xbf16>
    %c0_5 = arith.constant 0 : index
    %c0_6 = arith.constant 0 : index
    %10 = vector.load %arg4[%c0_5, %c0_6] : memref<24x32xbf16, #tpu.memory_space<vmem>>, vector<24x32xbf16>
    %cst_7 = arith.constant dense<0.000000e+00> : vector<8x32xf32>
    %11 = tpu.matmul %9, %10, %cst_7 {dimension_numbers = #tpu.dot_dimension_numbers<[1], [0], [0], [1], [0, 0, 1, 1], [], []>} : vector<8x24xbf16>, vector<24x32xbf16>, vector<8x32xf32> -> vector<8x32xf32>
    %c0_8 = arith.constant 0 : index
    %c0_9 = arith.constant 0 : index
    %12 = vector.load %arg5[%c0_8, %c0_9] : memref<1x32xf32, #tpu.memory_space<vmem>>, vector<1x32xf32>
    %13 = vector.broadcast %12 : vector<1x32xf32> to vector<8x32xf32>
    %14 = arith.mulf %11, %13 : vector<8x32xf32>
    %c0_10 = arith.constant 0 : index
    %c0_11 = arith.constant 0 : index
    %15 = vector.load %arg6[%c0_10, %c0_11] : memref<1x32xf32, #tpu.memory_space<vmem>>, vector<1x32xf32>
    %16 = vector.broadcast %15 : vector<1x32xf32> to vector<8x32xf32>
    %17 = arith.addf %14, %16 : vector<8x32xf32>
    %cst_12 = arith.constant 0.000000e+00 : f32
    %18 = vector.broadcast %cst_12 : f32 to vector<8x32xf32>
    %19 = arith.maximumf %17, %18 : vector<8x32xf32>
    %20 = arith.truncf %19 : vector<8x32xf32> to vector<8x32xbf16>
    %c0_13 = arith.constant 0 : index
    %c0_14 = arith.constant 0 : index
    %21 = vector.load %arg7[%c0_13, %c0_14] : memref<8x32xbf16, #tpu.memory_space<vmem>>, vector<8x32xbf16>
    tpu.vector_store %arg7[%c0_13, %c0_14], %20 {strides = array<i32>} : memref<8x32xbf16, #tpu.memory_space<vmem>>, vector<8x32xbf16>,
    return
  }
  func.func @transform_0(%arg0: i32) -> (i32, i32) {
    %c0_i32 = arith.constant 0 : i32
    %c0_i32_0 = arith.constant 0 : i32
    return %arg0, %c0_i32 : i32, i32
  }
  func.func @transform_1(%arg0: i32) -> (i32, i32) {
    %c0_i32 = arith.constant 0 : i32
    %c0_i32_0 = arith.constant 0 : i32
    %c0_i32_1 = arith.constant 0 : i32
    return %c0_i32, %c0_i32_0 : i32, i32
  }
  func.func @transform_2(%arg0: i32) -> (i32, i32) {
    %c0_i32 = arith.constant 0 : i32
    %c0_i32_0 = arith.constant 0 : i32
    %c0_i32_1 = arith.constant 0 : i32
    return %c0_i32, %c0_i32_0 : i32, i32
  }
  func.func @transform_3(%arg0: i32) -> (i32, i32) {
    %c0_i32 = arith.constant 0 : i32
    %c0_i32_0 = arith.constant 0 : i32
    %c0_i32_1 = arith.constant 0 : i32
    return %c0_i32, %c0_i32_0 : i32, i32
  }
  func.func @transform_4(%arg0: i32) -> (i32, i32) {
    %c0_i32 = arith.constant 0 : i32
    %c0_i32_0 = arith.constant 0 : i32
    %c0_i32_1 = arith.constant 0 : i32
    return %c0_i32, %c0_i32_0 : i32, i32
  }
  func.func @transform_5(%arg0: i32) -> (i32, i32) {
    %c0_i32 = arith.constant 0 : i32
    %c0_i32_0 = arith.constant 0 : i32
    %c0_i32_1 = arith.constant 0 : i32
    return %c0_i32, %c0_i32_0 : i32, i32
  }
  func.func @transform_6(%arg0: i32) -> (i32, i32) {
    %c0_i32 = arith.constant 0 : i32
    %c0_i32_0 = arith.constant 0 : i32
    return %arg0, %c0_i32 : i32, i32
  }
}

module attributes {stable_mosaic.version = 11 : i64} {
  func.func @_tap_conv_kernel(%arg0: i32, %arg1: memref<1x20x32xbf16, #tpu.memory_space<vmem>>, %arg2: memref<9x32x8xbf16, #tpu.memory_space<vmem>>, %arg3: memref<1x8xf32, #tpu.memory_space<vmem>>, %arg4: memref<1x8xf32, #tpu.memory_space<vmem>>, %arg5: memref<1x8x8xf32, #tpu.memory_space<vmem>>) attributes {dimension_semantics = [#tpu.dimension_semantics<parallel>], iteration_bounds = array<i64: 2>, scalar_prefetch = 0 : i64, scratch_operands = 0 : i64, tpu.core_type = #tpu.core_type<tc>, window_params = [{transform_indices = @transform_0, window_bounds = array<i64: 1, 20, 32>}, {pipeline_mode = #tpu.pipeline_mode<synchronous>, transform_indices = @transform_1, window_bounds = array<i64: 9, 32, 8>}, {pipeline_mode = #tpu.pipeline_mode<synchronous>, transform_indices = @transform_2, window_bounds = array<i64: 1, 8>}, {pipeline_mode = #tpu.pipeline_mode<synchronous>, transform_indices = @transform_3, window_bounds = array<i64: 1, 8>}, {transform_indices = @transform_4, window_bounds = array<i64: 1, 8, 8>}]} {
    %c0 = arith.constant 0 : index
    %c0_0 = arith.constant 0 : index
    %c0_1 = arith.constant 0 : index
    %0 = vector.load %arg1[%c0, %c0_0, %c0_1] : memref<1x20x32xbf16, #tpu.memory_space<vmem>>, vector<1x8x32xbf16>
    %1 = vector.shape_cast %0 : vector<1x8x32xbf16> to vector<8x32xbf16>
    %c0_2 = arith.constant 0 : index
    %c0_3 = arith.constant 0 : index
    %c0_4 = arith.constant 0 : index
    %2 = vector.load %arg2[%c0_2, %c0_3, %c0_4] : memref<9x32x8xbf16, #tpu.memory_space<vmem>>, vector<1x32x8xbf16>
    %3 = vector.shape_cast %2 : vector<1x32x8xbf16> to vector<32x8xbf16>
    %cst = arith.constant dense<0.000000e+00> : vector<8x8xf32>
    %4 = tpu.matmul %1, %3, %cst {dimension_numbers = #tpu.dot_dimension_numbers<[1], [0], [0], [1], [0, 0, 1, 1], [], []>} : vector<8x32xbf16>, vector<32x8xbf16>, vector<8x8xf32> -> vector<8x8xf32>
    %c0_5 = arith.constant 0 : index
    %c1 = arith.constant 1 : index
    %c0_6 = arith.constant 0 : index
    %5 = vector.load %arg1[%c0_5, %c1, %c0_6] : memref<1x20x32xbf16, #tpu.memory_space<vmem>>, vector<1x8x32xbf16>
    %6 = vector.shape_cast %5 : vector<1x8x32xbf16> to vector<8x32xbf16>
    %c1_7 = arith.constant 1 : index
    %c0_8 = arith.constant 0 : index
    %c0_9 = arith.constant 0 : index
    %7 = vector.load %arg2[%c1_7, %c0_8, %c0_9] : memref<9x32x8xbf16, #tpu.memory_space<vmem>>, vector<1x32x8xbf16>
    %8 = vector.shape_cast %7 : vector<1x32x8xbf16> to vector<32x8xbf16>
    %cst_10 = arith.constant dense<0.000000e+00> : vector<8x8xf32>
    %9 = tpu.matmul %6, %8, %cst_10 {dimension_numbers = #tpu.dot_dimension_numbers<[1], [0], [0], [1], [0, 0, 1, 1], [], []>} : vector<8x32xbf16>, vector<32x8xbf16>, vector<8x8xf32> -> vector<8x8xf32>
    %10 = arith.addf %4, %9 : vector<8x8xf32>
    %c0_11 = arith.constant 0 : index
    %c2 = arith.constant 2 : index
    %c0_12 = arith.constant 0 : index
    %11 = vector.load %arg1[%c0_11, %c2, %c0_12] : memref<1x20x32xbf16, #tpu.memory_space<vmem>>, vector<1x8x32xbf16>
    %12 = vector.shape_cast %11 : vector<1x8x32xbf16> to vector<8x32xbf16>
    %c2_13 = arith.constant 2 : index
    %c0_14 = arith.constant 0 : index
    %c0_15 = arith.constant 0 : index
    %13 = vector.load %arg2[%c2_13, %c0_14, %c0_15] : memref<9x32x8xbf16, #tpu.memory_space<vmem>>, vector<1x32x8xbf16>
    %14 = vector.shape_cast %13 : vector<1x32x8xbf16> to vector<32x8xbf16>
    %cst_16 = arith.constant dense<0.000000e+00> : vector<8x8xf32>
    %15 = tpu.matmul %12, %14, %cst_16 {dimension_numbers = #tpu.dot_dimension_numbers<[1], [0], [0], [1], [0, 0, 1, 1], [], []>} : vector<8x32xbf16>, vector<32x8xbf16>, vector<8x8xf32> -> vector<8x8xf32>
    %16 = arith.addf %10, %15 : vector<8x8xf32>
    %c0_17 = arith.constant 0 : index
    %c4 = arith.constant 4 : index
    %c0_18 = arith.constant 0 : index
    %17 = vector.load %arg1[%c0_17, %c4, %c0_18] : memref<1x20x32xbf16, #tpu.memory_space<vmem>>, vector<1x8x32xbf16>
    %18 = vector.shape_cast %17 : vector<1x8x32xbf16> to vector<8x32xbf16>
    %c3 = arith.constant 3 : index
    %c0_19 = arith.constant 0 : index
    %c0_20 = arith.constant 0 : index
    %19 = vector.load %arg2[%c3, %c0_19, %c0_20] : memref<9x32x8xbf16, #tpu.memory_space<vmem>>, vector<1x32x8xbf16>
    %20 = vector.shape_cast %19 : vector<1x32x8xbf16> to vector<32x8xbf16>
    %cst_21 = arith.constant dense<0.000000e+00> : vector<8x8xf32>
    %21 = tpu.matmul %18, %20, %cst_21 {dimension_numbers = #tpu.dot_dimension_numbers<[1], [0], [0], [1], [0, 0, 1, 1], [], []>} : vector<8x32xbf16>, vector<32x8xbf16>, vector<8x8xf32> -> vector<8x8xf32>
    %22 = arith.addf %16, %21 : vector<8x8xf32>
    %c0_22 = arith.constant 0 : index
    %c5 = arith.constant 5 : index
    %c0_23 = arith.constant 0 : index
    %23 = vector.load %arg1[%c0_22, %c5, %c0_23] : memref<1x20x32xbf16, #tpu.memory_space<vmem>>, vector<1x8x32xbf16>
    %24 = vector.shape_cast %23 : vector<1x8x32xbf16> to vector<8x32xbf16>
    %c4_24 = arith.constant 4 : index
    %c0_25 = arith.constant 0 : index
    %c0_26 = arith.constant 0 : index
    %25 = vector.load %arg2[%c4_24, %c0_25, %c0_26] : memref<9x32x8xbf16, #tpu.memory_space<vmem>>, vector<1x32x8xbf16>
    %26 = vector.shape_cast %25 : vector<1x32x8xbf16> to vector<32x8xbf16>
    %cst_27 = arith.constant dense<0.000000e+00> : vector<8x8xf32>
    %27 = tpu.matmul %24, %26, %cst_27 {dimension_numbers = #tpu.dot_dimension_numbers<[1], [0], [0], [1], [0, 0, 1, 1], [], []>} : vector<8x32xbf16>, vector<32x8xbf16>, vector<8x8xf32> -> vector<8x8xf32>
    %28 = arith.addf %22, %27 : vector<8x8xf32>
    %c0_28 = arith.constant 0 : index
    %c6 = arith.constant 6 : index
    %c0_29 = arith.constant 0 : index
    %29 = vector.load %arg1[%c0_28, %c6, %c0_29] : memref<1x20x32xbf16, #tpu.memory_space<vmem>>, vector<1x8x32xbf16>
    %30 = vector.shape_cast %29 : vector<1x8x32xbf16> to vector<8x32xbf16>
    %c5_30 = arith.constant 5 : index
    %c0_31 = arith.constant 0 : index
    %c0_32 = arith.constant 0 : index
    %31 = vector.load %arg2[%c5_30, %c0_31, %c0_32] : memref<9x32x8xbf16, #tpu.memory_space<vmem>>, vector<1x32x8xbf16>
    %32 = vector.shape_cast %31 : vector<1x32x8xbf16> to vector<32x8xbf16>
    %cst_33 = arith.constant dense<0.000000e+00> : vector<8x8xf32>
    %33 = tpu.matmul %30, %32, %cst_33 {dimension_numbers = #tpu.dot_dimension_numbers<[1], [0], [0], [1], [0, 0, 1, 1], [], []>} : vector<8x32xbf16>, vector<32x8xbf16>, vector<8x8xf32> -> vector<8x8xf32>
    %34 = arith.addf %28, %33 : vector<8x8xf32>
    %c0_34 = arith.constant 0 : index
    %c8 = arith.constant 8 : index
    %c0_35 = arith.constant 0 : index
    %35 = vector.load %arg1[%c0_34, %c8, %c0_35] : memref<1x20x32xbf16, #tpu.memory_space<vmem>>, vector<1x8x32xbf16>
    %36 = vector.shape_cast %35 : vector<1x8x32xbf16> to vector<8x32xbf16>
    %c6_36 = arith.constant 6 : index
    %c0_37 = arith.constant 0 : index
    %c0_38 = arith.constant 0 : index
    %37 = vector.load %arg2[%c6_36, %c0_37, %c0_38] : memref<9x32x8xbf16, #tpu.memory_space<vmem>>, vector<1x32x8xbf16>
    %38 = vector.shape_cast %37 : vector<1x32x8xbf16> to vector<32x8xbf16>
    %cst_39 = arith.constant dense<0.000000e+00> : vector<8x8xf32>
    %39 = tpu.matmul %36, %38, %cst_39 {dimension_numbers = #tpu.dot_dimension_numbers<[1], [0], [0], [1], [0, 0, 1, 1], [], []>} : vector<8x32xbf16>, vector<32x8xbf16>, vector<8x8xf32> -> vector<8x8xf32>
    %40 = arith.addf %34, %39 : vector<8x8xf32>
    %c0_40 = arith.constant 0 : index
    %c9 = arith.constant 9 : index
    %c0_41 = arith.constant 0 : index
    %41 = vector.load %arg1[%c0_40, %c9, %c0_41] : memref<1x20x32xbf16, #tpu.memory_space<vmem>>, vector<1x8x32xbf16>
    %42 = vector.shape_cast %41 : vector<1x8x32xbf16> to vector<8x32xbf16>
    %c7 = arith.constant 7 : index
    %c0_42 = arith.constant 0 : index
    %c0_43 = arith.constant 0 : index
    %43 = vector.load %arg2[%c7, %c0_42, %c0_43] : memref<9x32x8xbf16, #tpu.memory_space<vmem>>, vector<1x32x8xbf16>
    %44 = vector.shape_cast %43 : vector<1x32x8xbf16> to vector<32x8xbf16>
    %cst_44 = arith.constant dense<0.000000e+00> : vector<8x8xf32>
    %45 = tpu.matmul %42, %44, %cst_44 {dimension_numbers = #tpu.dot_dimension_numbers<[1], [0], [0], [1], [0, 0, 1, 1], [], []>} : vector<8x32xbf16>, vector<32x8xbf16>, vector<8x8xf32> -> vector<8x8xf32>
    %46 = arith.addf %40, %45 : vector<8x8xf32>
    %c0_45 = arith.constant 0 : index
    %c10 = arith.constant 10 : index
    %c0_46 = arith.constant 0 : index
    %47 = vector.load %arg1[%c0_45, %c10, %c0_46] : memref<1x20x32xbf16, #tpu.memory_space<vmem>>, vector<1x8x32xbf16>
    %48 = vector.shape_cast %47 : vector<1x8x32xbf16> to vector<8x32xbf16>
    %c8_47 = arith.constant 8 : index
    %c0_48 = arith.constant 0 : index
    %c0_49 = arith.constant 0 : index
    %49 = vector.load %arg2[%c8_47, %c0_48, %c0_49] : memref<9x32x8xbf16, #tpu.memory_space<vmem>>, vector<1x32x8xbf16>
    %50 = vector.shape_cast %49 : vector<1x32x8xbf16> to vector<32x8xbf16>
    %cst_50 = arith.constant dense<0.000000e+00> : vector<8x8xf32>
    %51 = tpu.matmul %48, %50, %cst_50 {dimension_numbers = #tpu.dot_dimension_numbers<[1], [0], [0], [1], [0, 0, 1, 1], [], []>} : vector<8x32xbf16>, vector<32x8xbf16>, vector<8x8xf32> -> vector<8x8xf32>
    %52 = arith.addf %46, %51 : vector<8x8xf32>
    %c0_51 = arith.constant 0 : index
    %c0_52 = arith.constant 0 : index
    %53 = vector.load %arg3[%c0_51, %c0_52] : memref<1x8xf32, #tpu.memory_space<vmem>>, vector<1x8xf32>
    %54 = vector.broadcast %53 : vector<1x8xf32> to vector<8x8xf32>
    %55 = arith.mulf %52, %54 : vector<8x8xf32>
    %c0_53 = arith.constant 0 : index
    %c0_54 = arith.constant 0 : index
    %56 = vector.load %arg4[%c0_53, %c0_54] : memref<1x8xf32, #tpu.memory_space<vmem>>, vector<1x8xf32>
    %57 = vector.broadcast %56 : vector<1x8xf32> to vector<8x8xf32>
    %58 = arith.addf %55, %57 : vector<8x8xf32>
    %c0_55 = arith.constant 0 : index
    %c0_56 = arith.constant 0 : index
    %c0_57 = arith.constant 0 : index
    %59 = vector.load %arg5[%c0_55, %c0_56, %c0_57] : memref<1x8x8xf32, #tpu.memory_space<vmem>>, vector<1x8x8xf32>
    %60 = vector.shape_cast %59 : vector<1x8x8xf32> to vector<8x8xf32>
    %61 = vector.shape_cast %58 : vector<8x8xf32> to vector<1x8x8xf32>
    tpu.vector_store %arg5[%c0_55, %c0_56, %c0_57], %61 {strides = array<i32>} : memref<1x8x8xf32, #tpu.memory_space<vmem>>, vector<1x8x8xf32>,
    return
  }
  func.func @transform_0(%arg0: i32) -> (i32, i32, i32) {
    %c0_i32 = arith.constant 0 : i32
    %c0_i32_0 = arith.constant 0 : i32
    %c0_i32_1 = arith.constant 0 : i32
    return %arg0, %c0_i32, %c0_i32_0 : i32, i32, i32
  }
  func.func @transform_1(%arg0: i32) -> (i32, i32, i32) {
    %c0_i32 = arith.constant 0 : i32
    %c0_i32_0 = arith.constant 0 : i32
    %c0_i32_1 = arith.constant 0 : i32
    %c0_i32_2 = arith.constant 0 : i32
    return %c0_i32, %c0_i32_0, %c0_i32_1 : i32, i32, i32
  }
  func.func @transform_2(%arg0: i32) -> (i32, i32) {
    %c0_i32 = arith.constant 0 : i32
    %c0_i32_0 = arith.constant 0 : i32
    %c0_i32_1 = arith.constant 0 : i32
    return %c0_i32, %c0_i32_0 : i32, i32
  }
  func.func @transform_3(%arg0: i32) -> (i32, i32) {
    %c0_i32 = arith.constant 0 : i32
    %c0_i32_0 = arith.constant 0 : i32
    %c0_i32_1 = arith.constant 0 : i32
    return %c0_i32, %c0_i32_0 : i32, i32
  }
  func.func @transform_4(%arg0: i32) -> (i32, i32, i32) {
    %c0_i32 = arith.constant 0 : i32
    %c0_i32_0 = arith.constant 0 : i32
    %c0_i32_1 = arith.constant 0 : i32
    return %arg0, %c0_i32, %c0_i32_0 : i32, i32, i32
  }
}

module attributes {stable_mosaic.version = 11 : i64} {
  func.func @_fused_matmul_kernel(%arg0: i32, %arg1: memref<8x32xf32, #tpu.memory_space<vmem>>, %arg2: memref<1x32xf32, #tpu.memory_space<vmem>>, %arg3: memref<1x32xf32, #tpu.memory_space<vmem>>, %arg4: memref<32x16xbf16, #tpu.memory_space<vmem>>, %arg5: memref<1x16xf32, #tpu.memory_space<vmem>>, %arg6: memref<1x16xf32, #tpu.memory_space<vmem>>, %arg7: memref<8x16xf32, #tpu.memory_space<vmem>>) attributes {dimension_semantics = [#tpu.dimension_semantics<parallel>], iteration_bounds = array<i64: 1>, scalar_prefetch = 0 : i64, scratch_operands = 0 : i64, tpu.core_type = #tpu.core_type<tc>, window_params = [{transform_indices = @transform_0, window_bounds = array<i64: 8, 32>}, {pipeline_mode = #tpu.pipeline_mode<synchronous>, transform_indices = @transform_1, window_bounds = array<i64: 1, 32>}, {pipeline_mode = #tpu.pipeline_mode<synchronous>, transform_indices = @transform_2, window_bounds = array<i64: 1, 32>}, {pipeline_mode = #tpu.pipeline_mode<synchronous>, transform_indices = @transform_3, window_bounds = array<i64: 32, 16>}, {pipeline_mode = #tpu.pipeline_mode<synchronous>, transform_indices = @transform_4, window_bounds = array<i64: 1, 16>}, {pipeline_mode = #tpu.pipeline_mode<synchronous>, transform_indices = @transform_5, window_bounds = array<i64: 1, 16>}, {transform_indices = @transform_6, window_bounds = array<i64: 8, 16>}]} {
    %c0 = arith.constant 0 : index
    %c0_0 = arith.constant 0 : index
    %0 = vector.load %arg1[%c0, %c0_0] : memref<8x32xf32, #tpu.memory_space<vmem>>, vector<8x32xf32>
    %c0_1 = arith.constant 0 : index
    %c0_2 = arith.constant 0 : index
    %1 = vector.load %arg2[%c0_1, %c0_2] : memref<1x32xf32, #tpu.memory_space<vmem>>, vector<1x32xf32>
    %2 = vector.broadcast %1 : vector<1x32xf32> to vector<8x32xf32>
    %3 = arith.mulf %0, %2 : vector<8x32xf32>
    %c0_3 = arith.constant 0 : index
    %c0_4 = arith.constant 0 : index
    %4 = vector.load %arg3[%c0_3, %c0_4] : memref<1x32xf32, #tpu.memory_space<vmem>>, vector<1x32xf32>
    %5 = vector.broadcast %4 : vector<1x32xf32> to vector<8x32xf32>
    %6 = arith.addf %3, %5 : vector<8x32xf32>
    %cst = arith.constant 0.000000e+00 : f32
    %7 = vector.broadcast %cst : f32 to vector<8x32xf32>
    %8 = arith.maximumf %6, %7 : vector<8x32xf32>
    %9 = arith.truncf %8 : vector<8x32xf32> to vector<8x32xbf16>
    %c0_5 = arith.constant 0 : index
    %c0_6 = arith.constant 0 : index
    %10 = vector.load %arg4[%c0_5, %c0_6] : memref<32x16xbf16, #tpu.memory_space<vmem>>, vector<32x16xbf16>
    %cst_7 = arith.constant dense<0.000000e+00> : vector<8x16xf32>
    %11 = tpu.matmul %9, %10, %cst_7 {dimension_numbers = #tpu.dot_dimension_numbers<[1], [0], [0], [1], [0, 0, 1, 1], [], []>} : vector<8x32xbf16>, vector<32x16xbf16>, vector<8x16xf32> -> vector<8x16xf32>
    %c0_8 = arith.constant 0 : index
    %c0_9 = arith.constant 0 : index
    %12 = vector.load %arg5[%c0_8, %c0_9] : memref<1x16xf32, #tpu.memory_space<vmem>>, vector<1x16xf32>
    %13 = vector.broadcast %12 : vector<1x16xf32> to vector<8x16xf32>
    %14 = arith.mulf %11, %13 : vector<8x16xf32>
    %c0_10 = arith.constant 0 : index
    %c0_11 = arith.constant 0 : index
    %15 = vector.load %arg6[%c0_10, %c0_11] : memref<1x16xf32, #tpu.memory_space<vmem>>, vector<1x16xf32>
    %16 = vector.broadcast %15 : vector<1x16xf32> to vector<8x16xf32>
    %17 = arith.addf %14, %16 : vector<8x16xf32>
    %c0_12 = arith.constant 0 : index
    %c0_13 = arith.constant 0 : index
    %18 = vector.load %arg7[%c0_12, %c0_13] : memref<8x16xf32, #tpu.memory_space<vmem>>, vector<8x16xf32>
    tpu.vector_store %arg7[%c0_12, %c0_13], %17 {strides = array<i32>} : memref<8x16xf32, #tpu.memory_space<vmem>>, vector<8x16xf32>,
    return
  }
  func.func @transform_0(%arg0: i32) -> (i32, i32) {
    %c0_i32 = arith.constant 0 : i32
    %c0_i32_0 = arith.constant 0 : i32
    return %arg0, %c0_i32 : i32, i32
  }
  func.func @transform_1(%arg0: i32) -> (i32, i32) {
    %c0_i32 = arith.constant 0 : i32
    %c0_i32_0 = arith.constant 0 : i32
    %c0_i32_1 = arith.constant 0 : i32
    return %c0_i32, %c0_i32_0 : i32, i32
  }
  func.func @transform_2(%arg0: i32) -> (i32, i32) {
    %c0_i32 = arith.constant 0 : i32
    %c0_i32_0 = arith.constant 0 : i32
    %c0_i32_1 = arith.constant 0 : i32
    return %c0_i32, %c0_i32_0 : i32, i32
  }
  func.func @transform_3(%arg0: i32) -> (i32, i32) {
    %c0_i32 = arith.constant 0 : i32
    %c0_i32_0 = arith.constant 0 : i32
    %c0_i32_1 = arith.constant 0 : i32
    return %c0_i32, %c0_i32_0 : i32, i32
  }
  func.func @transform_4(%arg0: i32) -> (i32, i32) {
    %c0_i32 = arith.constant 0 : i32
    %c0_i32_0 = arith.constant 0 : i32
    %c0_i32_1 = arith.constant 0 : i32
    return %c0_i32, %c0_i32_0 : i32, i32
  }
  func.func @transform_5(%arg0: i32) -> (i32, i32) {
    %c0_i32 = arith.constant 0 : i32
    %c0_i32_0 = arith.constant 0 : i32
    %c0_i32_1 = arith.constant 0 : i32
    return %c0_i32, %c0_i32_0 : i32, i32
  }
  func.func @transform_6(%arg0: i32) -> (i32, i32) {
    %c0_i32 = arith.constant 0 : i32
    %c0_i32_0 = arith.constant 0 : i32
    return %arg0, %c0_i32 : i32, i32
  }
}

module attributes {stable_mosaic.version = 11 : i64} {
  func.func @_avg4_kernel(%arg0: i32, %arg1: memref<2x16xf32, #tpu.memory_space<vmem>>, %arg2: memref<2x16xf32, #tpu.memory_space<vmem>>, %arg3: memref<2x16xf32, #tpu.memory_space<vmem>>, %arg4: memref<2x16xf32, #tpu.memory_space<vmem>>, %arg5: memref<2x16xf32, #tpu.memory_space<vmem>>) attributes {dimension_semantics = [#tpu.dimension_semantics<parallel>], iteration_bounds = array<i64: 1>, scalar_prefetch = 0 : i64, scratch_operands = 0 : i64, tpu.core_type = #tpu.core_type<tc>, window_params = [{transform_indices = @transform_0, window_bounds = array<i64: 2, 16>}, {transform_indices = @transform_1, window_bounds = array<i64: 2, 16>}, {transform_indices = @transform_2, window_bounds = array<i64: 2, 16>}, {transform_indices = @transform_3, window_bounds = array<i64: 2, 16>}, {transform_indices = @transform_4, window_bounds = array<i64: 2, 16>}]} {
    %c0 = arith.constant 0 : index
    %c0_0 = arith.constant 0 : index
    %0 = vector.load %arg1[%c0, %c0_0] : memref<2x16xf32, #tpu.memory_space<vmem>>, vector<2x16xf32>
    %c0_1 = arith.constant 0 : index
    %c0_2 = arith.constant 0 : index
    %1 = vector.load %arg2[%c0_1, %c0_2] : memref<2x16xf32, #tpu.memory_space<vmem>>, vector<2x16xf32>
    %2 = arith.addf %0, %1 : vector<2x16xf32>
    %c0_3 = arith.constant 0 : index
    %c0_4 = arith.constant 0 : index
    %3 = vector.load %arg3[%c0_3, %c0_4] : memref<2x16xf32, #tpu.memory_space<vmem>>, vector<2x16xf32>
    %4 = arith.addf %2, %3 : vector<2x16xf32>
    %c0_5 = arith.constant 0 : index
    %c0_6 = arith.constant 0 : index
    %5 = vector.load %arg4[%c0_5, %c0_6] : memref<2x16xf32, #tpu.memory_space<vmem>>, vector<2x16xf32>
    %6 = arith.addf %4, %5 : vector<2x16xf32>
    %cst = arith.constant 2.500000e-01 : f32
    %7 = vector.broadcast %cst : f32 to vector<2x16xf32>
    %8 = arith.mulf %7, %6 : vector<2x16xf32>
    %c0_7 = arith.constant 0 : index
    %c0_8 = arith.constant 0 : index
    %9 = vector.load %arg5[%c0_7, %c0_8] : memref<2x16xf32, #tpu.memory_space<vmem>>, vector<2x16xf32>
    tpu.vector_store %arg5[%c0_7, %c0_8], %8 {strides = array<i32>} : memref<2x16xf32, #tpu.memory_space<vmem>>, vector<2x16xf32>,
    return
  }
  func.func @transform_0(%arg0: i32) -> (i32, i32) {
    %c0_i32 = arith.constant 0 : i32
    %c0_i32_0 = arith.constant 0 : i32
    return %arg0, %c0_i32 : i32, i32
  }
  func.func @transform_1(%arg0: i32) -> (i32, i32) {
    %c0_i32 = arith.constant 0 : i32
    %c0_i32_0 = arith.constant 0 : i32
    return %arg0, %c0_i32 : i32, i32
  }
  func.func @transform_2(%arg0: i32) -> (i32, i32) {
    %c0_i32 = arith.constant 0 : i32
    %c0_i32_0 = arith.constant 0 : i32
    return %arg0, %c0_i32 : i32, i32
  }
  func.func @transform_3(%arg0: i32) -> (i32, i32) {
    %c0_i32 = arith.constant 0 : i32
    %c0_i32_0 = arith.constant 0 : i32
    return %arg0, %c0_i32 : i32, i32
  }
  func.func @transform_4(%arg0: i32) -> (i32, i32) {
    %c0_i32 = arith.constant 0 : i32
    %c0_i32_0 = arith.constant 0 : i32
    return %arg0, %c0_i32 : i32, i32
  }
}

module attributes {stable_mosaic.version = 11 : i64} {
  func.func @_fused_matmul_kernel(%arg0: i32, %arg1: memref<2x16xf32, #tpu.memory_space<vmem>>, %arg2: memref<1x16xf32, #tpu.memory_space<vmem>>, %arg3: memref<1x16xf32, #tpu.memory_space<vmem>>, %arg4: memref<16x32xbf16, #tpu.memory_space<vmem>>, %arg5: memref<1x32xf32, #tpu.memory_space<vmem>>, %arg6: memref<1x32xf32, #tpu.memory_space<vmem>>, %arg7: memref<2x32xbf16, #tpu.memory_space<vmem>>) attributes {dimension_semantics = [#tpu.dimension_semantics<parallel>], iteration_bounds = array<i64: 1>, scalar_prefetch = 0 : i64, scratch_operands = 0 : i64, tpu.core_type = #tpu.core_type<tc>, window_params = [{transform_indices = @transform_0, window_bounds = array<i64: 2, 16>}, {pipeline_mode = #tpu.pipeline_mode<synchronous>, transform_indices = @transform_1, window_bounds = array<i64: 1, 16>}, {pipeline_mode = #tpu.pipeline_mode<synchronous>, transform_indices = @transform_2, window_bounds = array<i64: 1, 16>}, {pipeline_mode = #tpu.pipeline_mode<synchronous>, transform_indices = @transform_3, window_bounds = array<i64: 16, 32>}, {pipeline_mode = #tpu.pipeline_mode<synchronous>, transform_indices = @transform_4, window_bounds = array<i64: 1, 32>}, {pipeline_mode = #tpu.pipeline_mode<synchronous>, transform_indices = @transform_5, window_bounds = array<i64: 1, 32>}, {transform_indices = @transform_6, window_bounds = array<i64: 2, 32>}]} {
    %c0 = arith.constant 0 : index
    %c0_0 = arith.constant 0 : index
    %0 = vector.load %arg1[%c0, %c0_0] : memref<2x16xf32, #tpu.memory_space<vmem>>, vector<2x16xf32>
    %c0_1 = arith.constant 0 : index
    %c0_2 = arith.constant 0 : index
    %1 = vector.load %arg2[%c0_1, %c0_2] : memref<1x16xf32, #tpu.memory_space<vmem>>, vector<1x16xf32>
    %2 = vector.broadcast %1 : vector<1x16xf32> to vector<2x16xf32>
    %3 = arith.mulf %0, %2 : vector<2x16xf32>
    %c0_3 = arith.constant 0 : index
    %c0_4 = arith.constant 0 : index
    %4 = vector.load %arg3[%c0_3, %c0_4] : memref<1x16xf32, #tpu.memory_space<vmem>>, vector<1x16xf32>
    %5 = vector.broadcast %4 : vector<1x16xf32> to vector<2x16xf32>
    %6 = arith.addf %3, %5 : vector<2x16xf32>
    %cst = arith.constant 0.000000e+00 : f32
    %7 = vector.broadcast %cst : f32 to vector<2x16xf32>
    %8 = arith.maximumf %6, %7 : vector<2x16xf32>
    %9 = arith.truncf %8 : vector<2x16xf32> to vector<2x16xbf16>
    %c0_5 = arith.constant 0 : index
    %c0_6 = arith.constant 0 : index
    %10 = vector.load %arg4[%c0_5, %c0_6] : memref<16x32xbf16, #tpu.memory_space<vmem>>, vector<16x32xbf16>
    %cst_7 = arith.constant dense<0.000000e+00> : vector<2x32xf32>
    %11 = tpu.matmul %9, %10, %cst_7 {dimension_numbers = #tpu.dot_dimension_numbers<[1], [0], [0], [1], [0, 0, 1, 1], [], []>} : vector<2x16xbf16>, vector<16x32xbf16>, vector<2x32xf32> -> vector<2x32xf32>
    %c0_8 = arith.constant 0 : index
    %c0_9 = arith.constant 0 : index
    %12 = vector.load %arg5[%c0_8, %c0_9] : memref<1x32xf32, #tpu.memory_space<vmem>>, vector<1x32xf32>
    %13 = vector.broadcast %12 : vector<1x32xf32> to vector<2x32xf32>
    %14 = arith.mulf %11, %13 : vector<2x32xf32>
    %c0_10 = arith.constant 0 : index
    %c0_11 = arith.constant 0 : index
    %15 = vector.load %arg6[%c0_10, %c0_11] : memref<1x32xf32, #tpu.memory_space<vmem>>, vector<1x32xf32>
    %16 = vector.broadcast %15 : vector<1x32xf32> to vector<2x32xf32>
    %17 = arith.addf %14, %16 : vector<2x32xf32>
    %cst_12 = arith.constant 0.000000e+00 : f32
    %18 = vector.broadcast %cst_12 : f32 to vector<2x32xf32>
    %19 = arith.maximumf %17, %18 : vector<2x32xf32>
    %20 = arith.truncf %19 : vector<2x32xf32> to vector<2x32xbf16>
    %c0_13 = arith.constant 0 : index
    %c0_14 = arith.constant 0 : index
    %21 = vector.load %arg7[%c0_13, %c0_14] : memref<2x32xbf16, #tpu.memory_space<vmem>>, vector<2x32xbf16>
    tpu.vector_store %arg7[%c0_13, %c0_14], %20 {strides = array<i32>} : memref<2x32xbf16, #tpu.memory_space<vmem>>, vector<2x32xbf16>,
    return
  }
  func.func @transform_0(%arg0: i32) -> (i32, i32) {
    %c0_i32 = arith.constant 0 : i32
    %c0_i32_0 = arith.constant 0 : i32
    return %arg0, %c0_i32 : i32, i32
  }
  func.func @transform_1(%arg0: i32) -> (i32, i32) {
    %c0_i32 = arith.constant 0 : i32
    %c0_i32_0 = arith.constant 0 : i32
    %c0_i32_1 = arith.constant 0 : i32
    return %c0_i32, %c0_i32_0 : i32, i32
  }
  func.func @transform_2(%arg0: i32) -> (i32, i32) {
    %c0_i32 = arith.constant 0 : i32
    %c0_i32_0 = arith.constant 0 : i32
    %c0_i32_1 = arith.constant 0 : i32
    return %c0_i32, %c0_i32_0 : i32, i32
  }
  func.func @transform_3(%arg0: i32) -> (i32, i32) {
    %c0_i32 = arith.constant 0 : i32
    %c0_i32_0 = arith.constant 0 : i32
    %c0_i32_1 = arith.constant 0 : i32
    return %c0_i32, %c0_i32_0 : i32, i32
  }
  func.func @transform_4(%arg0: i32) -> (i32, i32) {
    %c0_i32 = arith.constant 0 : i32
    %c0_i32_0 = arith.constant 0 : i32
    %c0_i32_1 = arith.constant 0 : i32
    return %c0_i32, %c0_i32_0 : i32, i32
  }
  func.func @transform_5(%arg0: i32) -> (i32, i32) {
    %c0_i32 = arith.constant 0 : i32
    %c0_i32_0 = arith.constant 0 : i32
    %c0_i32_1 = arith.constant 0 : i32
    return %c0_i32, %c0_i32_0 : i32, i32
  }
  func.func @transform_6(%arg0: i32) -> (i32, i32) {
    %c0_i32 = arith.constant 0 : i32
    %c0_i32_0 = arith.constant 0 : i32
    return %arg0, %c0_i32 : i32, i32
  }
}

module attributes {stable_mosaic.version = 11 : i64} {
  func.func @_tap_conv_kernel(%arg0: i32, %arg1: memref<1x12x32xbf16, #tpu.memory_space<vmem>>, %arg2: memref<9x32x8xbf16, #tpu.memory_space<vmem>>, %arg3: memref<1x8xf32, #tpu.memory_space<vmem>>, %arg4: memref<1x8xf32, #tpu.memory_space<vmem>>, %arg5: memref<1x3x8xf32, #tpu.memory_space<vmem>>) attributes {dimension_semantics = [#tpu.dimension_semantics<parallel>], iteration_bounds = array<i64: 2>, scalar_prefetch = 0 : i64, scratch_operands = 0 : i64, tpu.core_type = #tpu.core_type<tc>, window_params = [{transform_indices = @transform_0, window_bounds = array<i64: 1, 12, 32>}, {pipeline_mode = #tpu.pipeline_mode<synchronous>, transform_indices = @transform_1, window_bounds = array<i64: 9, 32, 8>}, {pipeline_mode = #tpu.pipeline_mode<synchronous>, transform_indices = @transform_2, window_bounds = array<i64: 1, 8>}, {pipeline_mode = #tpu.pipeline_mode<synchronous>, transform_indices = @transform_3, window_bounds = array<i64: 1, 8>}, {transform_indices = @transform_4, window_bounds = array<i64: 1, 3, 8>}]} {
    %c0 = arith.constant 0 : index
    %c0_0 = arith.constant 0 : index
    %c0_1 = arith.constant 0 : index
    %0 = vector.load %arg1[%c0, %c0_0, %c0_1] : memref<1x12x32xbf16, #tpu.memory_space<vmem>>, vector<1x3x32xbf16>
    %1 = vector.shape_cast %0 : vector<1x3x32xbf16> to vector<3x32xbf16>
    %c0_2 = arith.constant 0 : index
    %c0_3 = arith.constant 0 : index
    %c0_4 = arith.constant 0 : index
    %2 = vector.load %arg2[%c0_2, %c0_3, %c0_4] : memref<9x32x8xbf16, #tpu.memory_space<vmem>>, vector<1x32x8xbf16>
    %3 = vector.shape_cast %2 : vector<1x32x8xbf16> to vector<32x8xbf16>
    %cst = arith.constant dense<0.000000e+00> : vector<3x8xf32>
    %4 = tpu.matmul %1, %3, %cst {dimension_numbers = #tpu.dot_dimension_numbers<[1], [0], [0], [1], [0, 0, 1, 1], [], []>} : vector<3x32xbf16>, vector<32x8xbf16>, vector<3x8xf32> -> vector<3x8xf32>
    %c0_5 = arith.constant 0 : index
    %c1 = arith.constant 1 : index
    %c0_6 = arith.constant 0 : index
    %5 = vector.load %arg1[%c0_5, %c1, %c0_6] : memref<1x12x32xbf16, #tpu.memory_space<vmem>>, vector<1x3x32xbf16>
    %6 = vector.shape_cast %5 : vector<1x3x32xbf16> to vector<3x32xbf16>
    %c1_7 = arith.constant 1 : index
    %c0_8 = arith.constant 0 : index
    %c0_9 = arith.constant 0 : index
    %7 = vector.load %arg2[%c1_7, %c0_8, %c0_9] : memref<9x32x8xbf16, #tpu.memory_space<vmem>>, vector<1x32x8xbf16>
    %8 = vector.shape_cast %7 : vector<1x32x8xbf16> to vector<32x8xbf16>
    %cst_10 = arith.constant dense<0.000000e+00> : vector<3x8xf32>
    %9 = tpu.matmul %6, %8, %cst_10 {dimension_numbers = #tpu.dot_dimension_numbers<[1], [0], [0], [1], [0, 0, 1, 1], [], []>} : vector<3x32xbf16>, vector<32x8xbf16>, vector<3x8xf32> -> vector<3x8xf32>
    %10 = arith.addf %4, %9 : vector<3x8xf32>
    %c0_11 = arith.constant 0 : index
    %c2 = arith.constant 2 : index
    %c0_12 = arith.constant 0 : index
    %11 = vector.load %arg1[%c0_11, %c2, %c0_12] : memref<1x12x32xbf16, #tpu.memory_space<vmem>>, vector<1x3x32xbf16>
    %12 = vector.shape_cast %11 : vector<1x3x32xbf16> to vector<3x32xbf16>
    %c2_13 = arith.constant 2 : index
    %c0_14 = arith.constant 0 : index
    %c0_15 = arith.constant 0 : index
    %13 = vector.load %arg2[%c2_13, %c0_14, %c0_15] : memref<9x32x8xbf16, #tpu.memory_space<vmem>>, vector<1x32x8xbf16>
    %14 = vector.shape_cast %13 : vector<1x32x8xbf16> to vector<32x8xbf16>
    %cst_16 = arith.constant dense<0.000000e+00> : vector<3x8xf32>
    %15 = tpu.matmul %12, %14, %cst_16 {dimension_numbers = #tpu.dot_dimension_numbers<[1], [0], [0], [1], [0, 0, 1, 1], [], []>} : vector<3x32xbf16>, vector<32x8xbf16>, vector<3x8xf32> -> vector<3x8xf32>
    %16 = arith.addf %10, %15 : vector<3x8xf32>
    %c0_17 = arith.constant 0 : index
    %c3 = arith.constant 3 : index
    %c0_18 = arith.constant 0 : index
    %17 = vector.load %arg1[%c0_17, %c3, %c0_18] : memref<1x12x32xbf16, #tpu.memory_space<vmem>>, vector<1x3x32xbf16>
    %18 = vector.shape_cast %17 : vector<1x3x32xbf16> to vector<3x32xbf16>
    %c3_19 = arith.constant 3 : index
    %c0_20 = arith.constant 0 : index
    %c0_21 = arith.constant 0 : index
    %19 = vector.load %arg2[%c3_19, %c0_20, %c0_21] : memref<9x32x8xbf16, #tpu.memory_space<vmem>>, vector<1x32x8xbf16>
    %20 = vector.shape_cast %19 : vector<1x32x8xbf16> to vector<32x8xbf16>
    %cst_22 = arith.constant dense<0.000000e+00> : vector<3x8xf32>
    %21 = tpu.matmul %18, %20, %cst_22 {dimension_numbers = #tpu.dot_dimension_numbers<[1], [0], [0], [1], [0, 0, 1, 1], [], []>} : vector<3x32xbf16>, vector<32x8xbf16>, vector<3x8xf32> -> vector<3x8xf32>
    %22 = arith.addf %16, %21 : vector<3x8xf32>
    %c0_23 = arith.constant 0 : index
    %c4 = arith.constant 4 : index
    %c0_24 = arith.constant 0 : index
    %23 = vector.load %arg1[%c0_23, %c4, %c0_24] : memref<1x12x32xbf16, #tpu.memory_space<vmem>>, vector<1x3x32xbf16>
    %24 = vector.shape_cast %23 : vector<1x3x32xbf16> to vector<3x32xbf16>
    %c4_25 = arith.constant 4 : index
    %c0_26 = arith.constant 0 : index
    %c0_27 = arith.constant 0 : index
    %25 = vector.load %arg2[%c4_25, %c0_26, %c0_27] : memref<9x32x8xbf16, #tpu.memory_space<vmem>>, vector<1x32x8xbf16>
    %26 = vector.shape_cast %25 : vector<1x32x8xbf16> to vector<32x8xbf16>
    %cst_28 = arith.constant dense<0.000000e+00> : vector<3x8xf32>
    %27 = tpu.matmul %24, %26, %cst_28 {dimension_numbers = #tpu.dot_dimension_numbers<[1], [0], [0], [1], [0, 0, 1, 1], [], []>} : vector<3x32xbf16>, vector<32x8xbf16>, vector<3x8xf32> -> vector<3x8xf32>
    %28 = arith.addf %22, %27 : vector<3x8xf32>
    %c0_29 = arith.constant 0 : index
    %c5 = arith.constant 5 : index
    %c0_30 = arith.constant 0 : index
    %29 = vector.load %arg1[%c0_29, %c5, %c0_30] : memref<1x12x32xbf16, #tpu.memory_space<vmem>>, vector<1x3x32xbf16>
    %30 = vector.shape_cast %29 : vector<1x3x32xbf16> to vector<3x32xbf16>
    %c5_31 = arith.constant 5 : index
    %c0_32 = arith.constant 0 : index
    %c0_33 = arith.constant 0 : index
    %31 = vector.load %arg2[%c5_31, %c0_32, %c0_33] : memref<9x32x8xbf16, #tpu.memory_space<vmem>>, vector<1x32x8xbf16>
    %32 = vector.shape_cast %31 : vector<1x32x8xbf16> to vector<32x8xbf16>
    %cst_34 = arith.constant dense<0.000000e+00> : vector<3x8xf32>
    %33 = tpu.matmul %30, %32, %cst_34 {dimension_numbers = #tpu.dot_dimension_numbers<[1], [0], [0], [1], [0, 0, 1, 1], [], []>} : vector<3x32xbf16>, vector<32x8xbf16>, vector<3x8xf32> -> vector<3x8xf32>
    %34 = arith.addf %28, %33 : vector<3x8xf32>
    %c0_35 = arith.constant 0 : index
    %c6 = arith.constant 6 : index
    %c0_36 = arith.constant 0 : index
    %35 = vector.load %arg1[%c0_35, %c6, %c0_36] : memref<1x12x32xbf16, #tpu.memory_space<vmem>>, vector<1x3x32xbf16>
    %36 = vector.shape_cast %35 : vector<1x3x32xbf16> to vector<3x32xbf16>
    %c6_37 = arith.constant 6 : index
    %c0_38 = arith.constant 0 : index
    %c0_39 = arith.constant 0 : index
    %37 = vector.load %arg2[%c6_37, %c0_38, %c0_39] : memref<9x32x8xbf16, #tpu.memory_space<vmem>>, vector<1x32x8xbf16>
    %38 = vector.shape_cast %37 : vector<1x32x8xbf16> to vector<32x8xbf16>
    %cst_40 = arith.constant dense<0.000000e+00> : vector<3x8xf32>
    %39 = tpu.matmul %36, %38, %cst_40 {dimension_numbers = #tpu.dot_dimension_numbers<[1], [0], [0], [1], [0, 0, 1, 1], [], []>} : vector<3x32xbf16>, vector<32x8xbf16>, vector<3x8xf32> -> vector<3x8xf32>
    %40 = arith.addf %34, %39 : vector<3x8xf32>
    %c0_41 = arith.constant 0 : index
    %c7 = arith.constant 7 : index
    %c0_42 = arith.constant 0 : index
    %41 = vector.load %arg1[%c0_41, %c7, %c0_42] : memref<1x12x32xbf16, #tpu.memory_space<vmem>>, vector<1x3x32xbf16>
    %42 = vector.shape_cast %41 : vector<1x3x32xbf16> to vector<3x32xbf16>
    %c7_43 = arith.constant 7 : index
    %c0_44 = arith.constant 0 : index
    %c0_45 = arith.constant 0 : index
    %43 = vector.load %arg2[%c7_43, %c0_44, %c0_45] : memref<9x32x8xbf16, #tpu.memory_space<vmem>>, vector<1x32x8xbf16>
    %44 = vector.shape_cast %43 : vector<1x32x8xbf16> to vector<32x8xbf16>
    %cst_46 = arith.constant dense<0.000000e+00> : vector<3x8xf32>
    %45 = tpu.matmul %42, %44, %cst_46 {dimension_numbers = #tpu.dot_dimension_numbers<[1], [0], [0], [1], [0, 0, 1, 1], [], []>} : vector<3x32xbf16>, vector<32x8xbf16>, vector<3x8xf32> -> vector<3x8xf32>
    %46 = arith.addf %40, %45 : vector<3x8xf32>
    %c0_47 = arith.constant 0 : index
    %c8 = arith.constant 8 : index
    %c0_48 = arith.constant 0 : index
    %47 = vector.load %arg1[%c0_47, %c8, %c0_48] : memref<1x12x32xbf16, #tpu.memory_space<vmem>>, vector<1x3x32xbf16>
    %48 = vector.shape_cast %47 : vector<1x3x32xbf16> to vector<3x32xbf16>
    %c8_49 = arith.constant 8 : index
    %c0_50 = arith.constant 0 : index
    %c0_51 = arith.constant 0 : index
    %49 = vector.load %arg2[%c8_49, %c0_50, %c0_51] : memref<9x32x8xbf16, #tpu.memory_space<vmem>>, vector<1x32x8xbf16>
    %50 = vector.shape_cast %49 : vector<1x32x8xbf16> to vector<32x8xbf16>
    %cst_52 = arith.constant dense<0.000000e+00> : vector<3x8xf32>
    %51 = tpu.matmul %48, %50, %cst_52 {dimension_numbers = #tpu.dot_dimension_numbers<[1], [0], [0], [1], [0, 0, 1, 1], [], []>} : vector<3x32xbf16>, vector<32x8xbf16>, vector<3x8xf32> -> vector<3x8xf32>
    %52 = arith.addf %46, %51 : vector<3x8xf32>
    %c0_53 = arith.constant 0 : index
    %c0_54 = arith.constant 0 : index
    %53 = vector.load %arg3[%c0_53, %c0_54] : memref<1x8xf32, #tpu.memory_space<vmem>>, vector<1x8xf32>
    %54 = vector.broadcast %53 : vector<1x8xf32> to vector<3x8xf32>
    %55 = arith.mulf %52, %54 : vector<3x8xf32>
    %c0_55 = arith.constant 0 : index
    %c0_56 = arith.constant 0 : index
    %56 = vector.load %arg4[%c0_55, %c0_56] : memref<1x8xf32, #tpu.memory_space<vmem>>, vector<1x8xf32>
    %57 = vector.broadcast %56 : vector<1x8xf32> to vector<3x8xf32>
    %58 = arith.addf %55, %57 : vector<3x8xf32>
    %c0_57 = arith.constant 0 : index
    %c0_58 = arith.constant 0 : index
    %c0_59 = arith.constant 0 : index
    %59 = vector.load %arg5[%c0_57, %c0_58, %c0_59] : memref<1x3x8xf32, #tpu.memory_space<vmem>>, vector<1x3x8xf32>
    %60 = vector.shape_cast %59 : vector<1x3x8xf32> to vector<3x8xf32>
    %61 = vector.shape_cast %58 : vector<3x8xf32> to vector<1x3x8xf32>
    tpu.vector_store %arg5[%c0_57, %c0_58, %c0_59], %61 {strides = array<i32>} : memref<1x3x8xf32, #tpu.memory_space<vmem>>, vector<1x3x8xf32>,
    return
  }
  func.func @transform_0(%arg0: i32) -> (i32, i32, i32) {
    %c0_i32 = arith.constant 0 : i32
    %c0_i32_0 = arith.constant 0 : i32
    %c0_i32_1 = arith.constant 0 : i32
    return %arg0, %c0_i32, %c0_i32_0 : i32, i32, i32
  }
  func.func @transform_1(%arg0: i32) -> (i32, i32, i32) {
    %c0_i32 = arith.constant 0 : i32
    %c0_i32_0 = arith.constant 0 : i32
    %c0_i32_1 = arith.constant 0 : i32
    %c0_i32_2 = arith.constant 0 : i32
    return %c0_i32, %c0_i32_0, %c0_i32_1 : i32, i32, i32
  }
  func.func @transform_2(%arg0: i32) -> (i32, i32) {
    %c0_i32 = arith.constant 0 : i32
    %c0_i32_0 = arith.constant 0 : i32
    %c0_i32_1 = arith.constant 0 : i32
    return %c0_i32, %c0_i32_0 : i32, i32
  }
  func.func @transform_3(%arg0: i32) -> (i32, i32) {
    %c0_i32 = arith.constant 0 : i32
    %c0_i32_0 = arith.constant 0 : i32
    %c0_i32_1 = arith.constant 0 : i32
    return %c0_i32, %c0_i32_0 : i32, i32
  }
  func.func @transform_4(%arg0: i32) -> (i32, i32, i32) {
    %c0_i32 = arith.constant 0 : i32
    %c0_i32_0 = arith.constant 0 : i32
    %c0_i32_1 = arith.constant 0 : i32
    return %arg0, %c0_i32, %c0_i32_0 : i32, i32, i32
  }
}

module attributes {stable_mosaic.version = 11 : i64} {
  func.func @_fused_matmul_kernel(%arg0: i32, %arg1: memref<2x24xf32, #tpu.memory_space<vmem>>, %arg2: memref<1x24xf32, #tpu.memory_space<vmem>>, %arg3: memref<1x24xf32, #tpu.memory_space<vmem>>, %arg4: memref<24x32xbf16, #tpu.memory_space<vmem>>, %arg5: memref<1x32xf32, #tpu.memory_space<vmem>>, %arg6: memref<1x32xf32, #tpu.memory_space<vmem>>, %arg7: memref<2x32xbf16, #tpu.memory_space<vmem>>) attributes {dimension_semantics = [#tpu.dimension_semantics<parallel>], iteration_bounds = array<i64: 1>, scalar_prefetch = 0 : i64, scratch_operands = 0 : i64, tpu.core_type = #tpu.core_type<tc>, window_params = [{transform_indices = @transform_0, window_bounds = array<i64: 2, 24>}, {pipeline_mode = #tpu.pipeline_mode<synchronous>, transform_indices = @transform_1, window_bounds = array<i64: 1, 24>}, {pipeline_mode = #tpu.pipeline_mode<synchronous>, transform_indices = @transform_2, window_bounds = array<i64: 1, 24>}, {pipeline_mode = #tpu.pipeline_mode<synchronous>, transform_indices = @transform_3, window_bounds = array<i64: 24, 32>}, {pipeline_mode = #tpu.pipeline_mode<synchronous>, transform_indices = @transform_4, window_bounds = array<i64: 1, 32>}, {pipeline_mode = #tpu.pipeline_mode<synchronous>, transform_indices = @transform_5, window_bounds = array<i64: 1, 32>}, {transform_indices = @transform_6, window_bounds = array<i64: 2, 32>}]} {
    %c0 = arith.constant 0 : index
    %c0_0 = arith.constant 0 : index
    %0 = vector.load %arg1[%c0, %c0_0] : memref<2x24xf32, #tpu.memory_space<vmem>>, vector<2x24xf32>
    %c0_1 = arith.constant 0 : index
    %c0_2 = arith.constant 0 : index
    %1 = vector.load %arg2[%c0_1, %c0_2] : memref<1x24xf32, #tpu.memory_space<vmem>>, vector<1x24xf32>
    %2 = vector.broadcast %1 : vector<1x24xf32> to vector<2x24xf32>
    %3 = arith.mulf %0, %2 : vector<2x24xf32>
    %c0_3 = arith.constant 0 : index
    %c0_4 = arith.constant 0 : index
    %4 = vector.load %arg3[%c0_3, %c0_4] : memref<1x24xf32, #tpu.memory_space<vmem>>, vector<1x24xf32>
    %5 = vector.broadcast %4 : vector<1x24xf32> to vector<2x24xf32>
    %6 = arith.addf %3, %5 : vector<2x24xf32>
    %cst = arith.constant 0.000000e+00 : f32
    %7 = vector.broadcast %cst : f32 to vector<2x24xf32>
    %8 = arith.maximumf %6, %7 : vector<2x24xf32>
    %9 = arith.truncf %8 : vector<2x24xf32> to vector<2x24xbf16>
    %c0_5 = arith.constant 0 : index
    %c0_6 = arith.constant 0 : index
    %10 = vector.load %arg4[%c0_5, %c0_6] : memref<24x32xbf16, #tpu.memory_space<vmem>>, vector<24x32xbf16>
    %cst_7 = arith.constant dense<0.000000e+00> : vector<2x32xf32>
    %11 = tpu.matmul %9, %10, %cst_7 {dimension_numbers = #tpu.dot_dimension_numbers<[1], [0], [0], [1], [0, 0, 1, 1], [], []>} : vector<2x24xbf16>, vector<24x32xbf16>, vector<2x32xf32> -> vector<2x32xf32>
    %c0_8 = arith.constant 0 : index
    %c0_9 = arith.constant 0 : index
    %12 = vector.load %arg5[%c0_8, %c0_9] : memref<1x32xf32, #tpu.memory_space<vmem>>, vector<1x32xf32>
    %13 = vector.broadcast %12 : vector<1x32xf32> to vector<2x32xf32>
    %14 = arith.mulf %11, %13 : vector<2x32xf32>
    %c0_10 = arith.constant 0 : index
    %c0_11 = arith.constant 0 : index
    %15 = vector.load %arg6[%c0_10, %c0_11] : memref<1x32xf32, #tpu.memory_space<vmem>>, vector<1x32xf32>
    %16 = vector.broadcast %15 : vector<1x32xf32> to vector<2x32xf32>
    %17 = arith.addf %14, %16 : vector<2x32xf32>
    %cst_12 = arith.constant 0.000000e+00 : f32
    %18 = vector.broadcast %cst_12 : f32 to vector<2x32xf32>
    %19 = arith.maximumf %17, %18 : vector<2x32xf32>
    %20 = arith.truncf %19 : vector<2x32xf32> to vector<2x32xbf16>
    %c0_13 = arith.constant 0 : index
    %c0_14 = arith.constant 0 : index
    %21 = vector.load %arg7[%c0_13, %c0_14] : memref<2x32xbf16, #tpu.memory_space<vmem>>, vector<2x32xbf16>
    tpu.vector_store %arg7[%c0_13, %c0_14], %20 {strides = array<i32>} : memref<2x32xbf16, #tpu.memory_space<vmem>>, vector<2x32xbf16>,
    return
  }
  func.func @transform_0(%arg0: i32) -> (i32, i32) {
    %c0_i32 = arith.constant 0 : i32
    %c0_i32_0 = arith.constant 0 : i32
    return %arg0, %c0_i32 : i32, i32
  }
  func.func @transform_1(%arg0: i32) -> (i32, i32) {
    %c0_i32 = arith.constant 0 : i32
    %c0_i32_0 = arith.constant 0 : i32
    %c0_i32_1 = arith.constant 0 : i32
    return %c0_i32, %c0_i32_0 : i32, i32
  }
  func.func @transform_2(%arg0: i32) -> (i32, i32) {
    %c0_i32 = arith.constant 0 : i32
    %c0_i32_0 = arith.constant 0 : i32
    %c0_i32_1 = arith.constant 0 : i32
    return %c0_i32, %c0_i32_0 : i32, i32
  }
  func.func @transform_3(%arg0: i32) -> (i32, i32) {
    %c0_i32 = arith.constant 0 : i32
    %c0_i32_0 = arith.constant 0 : i32
    %c0_i32_1 = arith.constant 0 : i32
    return %c0_i32, %c0_i32_0 : i32, i32
  }
  func.func @transform_4(%arg0: i32) -> (i32, i32) {
    %c0_i32 = arith.constant 0 : i32
    %c0_i32_0 = arith.constant 0 : i32
    %c0_i32_1 = arith.constant 0 : i32
    return %c0_i32, %c0_i32_0 : i32, i32
  }
  func.func @transform_5(%arg0: i32) -> (i32, i32) {
    %c0_i32 = arith.constant 0 : i32
    %c0_i32_0 = arith.constant 0 : i32
    %c0_i32_1 = arith.constant 0 : i32
    return %c0_i32, %c0_i32_0 : i32, i32
  }
  func.func @transform_6(%arg0: i32) -> (i32, i32) {
    %c0_i32 = arith.constant 0 : i32
    %c0_i32_0 = arith.constant 0 : i32
    return %arg0, %c0_i32 : i32, i32
  }
}

module attributes {stable_mosaic.version = 11 : i64} {
  func.func @_head_kernel(%arg0: i32, %arg1: memref<2x1x32xf32, #tpu.memory_space<vmem>>, %arg2: memref<1x1x32xf32, #tpu.memory_space<vmem>>, %arg3: memref<1x1x32xf32, #tpu.memory_space<vmem>>, %arg4: memref<32x4xbf16, #tpu.memory_space<vmem>>, %arg5: memref<1x4xf32, #tpu.memory_space<vmem>>, %arg6: memref<2x4xf32, #tpu.memory_space<vmem>>) attributes {dimension_semantics = [#tpu.dimension_semantics<parallel>], iteration_bounds = array<i64: 1>, scalar_prefetch = 0 : i64, scratch_operands = 0 : i64, tpu.core_type = #tpu.core_type<tc>, window_params = [{pipeline_mode = #tpu.pipeline_mode<synchronous>, transform_indices = @transform_0, window_bounds = array<i64: 2, 1, 32>}, {pipeline_mode = #tpu.pipeline_mode<synchronous>, transform_indices = @transform_1, window_bounds = array<i64: 1, 1, 32>}, {pipeline_mode = #tpu.pipeline_mode<synchronous>, transform_indices = @transform_2, window_bounds = array<i64: 1, 1, 32>}, {pipeline_mode = #tpu.pipeline_mode<synchronous>, transform_indices = @transform_3, window_bounds = array<i64: 32, 4>}, {pipeline_mode = #tpu.pipeline_mode<synchronous>, transform_indices = @transform_4, window_bounds = array<i64: 1, 4>}, {pipeline_mode = #tpu.pipeline_mode<synchronous>, transform_indices = @transform_5, window_bounds = array<i64: 2, 4>}]} {
    %c0 = arith.constant 0 : index
    %c0_0 = arith.constant 0 : index
    %c0_1 = arith.constant 0 : index
    %0 = vector.load %arg1[%c0, %c0_0, %c0_1] : memref<2x1x32xf32, #tpu.memory_space<vmem>>, vector<2x1x32xf32>
    %c0_2 = arith.constant 0 : index
    %c0_3 = arith.constant 0 : index
    %c0_4 = arith.constant 0 : index
    %1 = vector.load %arg2[%c0_2, %c0_3, %c0_4] : memref<1x1x32xf32, #tpu.memory_space<vmem>>, vector<1x1x32xf32>
    %2 = vector.broadcast %1 : vector<1x1x32xf32> to vector<2x1x32xf32>
    %3 = arith.mulf %0, %2 : vector<2x1x32xf32>
    %c0_5 = arith.constant 0 : index
    %c0_6 = arith.constant 0 : index
    %c0_7 = arith.constant 0 : index
    %4 = vector.load %arg3[%c0_5, %c0_6, %c0_7] : memref<1x1x32xf32, #tpu.memory_space<vmem>>, vector<1x1x32xf32>
    %5 = vector.broadcast %4 : vector<1x1x32xf32> to vector<2x1x32xf32>
    %6 = arith.addf %3, %5 : vector<2x1x32xf32>
    %cst = arith.constant 0.000000e+00 : f32
    %7 = vector.broadcast %cst : f32 to vector<2x1x32xf32>
    %8 = arith.maximumf %6, %7 : vector<2x1x32xf32>
    %cst_8 = arith.constant dense<0.000000e+00> : vector<2x32xf32>
    %9 = vector.multi_reduction <add>, %8, %cst_8 [1] : vector<2x1x32xf32> to vector<2x32xf32>
    %cst_9 = arith.constant 1.000000e+00 : f32
    %10 = vector.broadcast %cst_9 : f32 to vector<2x32xf32>
    %11 = arith.divf %9, %10 : vector<2x32xf32>
    %12 = arith.truncf %11 : vector<2x32xf32> to vector<2x32xbf16>
    %c0_10 = arith.constant 0 : index
    %c0_11 = arith.constant 0 : index
    %13 = vector.load %arg4[%c0_10, %c0_11] : memref<32x4xbf16, #tpu.memory_space<vmem>>, vector<32x4xbf16>
    %cst_12 = arith.constant dense<0.000000e+00> : vector<2x4xf32>
    %14 = tpu.matmul %12, %13, %cst_12 {dimension_numbers = #tpu.dot_dimension_numbers<[1], [0], [0], [1], [0, 0, 1, 1], [], []>} : vector<2x32xbf16>, vector<32x4xbf16>, vector<2x4xf32> -> vector<2x4xf32>
    %c0_13 = arith.constant 0 : index
    %c0_14 = arith.constant 0 : index
    %15 = vector.load %arg5[%c0_13, %c0_14] : memref<1x4xf32, #tpu.memory_space<vmem>>, vector<1x4xf32>
    %16 = vector.broadcast %15 : vector<1x4xf32> to vector<2x4xf32>
    %17 = arith.addf %14, %16 : vector<2x4xf32>
    %c0_15 = arith.constant 0 : index
    %c0_16 = arith.constant 0 : index
    %18 = vector.load %arg6[%c0_15, %c0_16] : memref<2x4xf32, #tpu.memory_space<vmem>>, vector<2x4xf32>
    tpu.vector_store %arg6[%c0_15, %c0_16], %17 {strides = array<i32>} : memref<2x4xf32, #tpu.memory_space<vmem>>, vector<2x4xf32>,
    return
  }
  func.func @transform_0(%arg0: i32) -> (i32, i32, i32) {
    %c0_i32 = arith.constant 0 : i32
    %c0_i32_0 = arith.constant 0 : i32
    %c0_i32_1 = arith.constant 0 : i32
    %c0_i32_2 = arith.constant 0 : i32
    return %c0_i32, %c0_i32_0, %c0_i32_1 : i32, i32, i32
  }
  func.func @transform_1(%arg0: i32) -> (i32, i32, i32) {
    %c0_i32 = arith.constant 0 : i32
    %c0_i32_0 = arith.constant 0 : i32
    %c0_i32_1 = arith.constant 0 : i32
    %c0_i32_2 = arith.constant 0 : i32
    return %c0_i32, %c0_i32_0, %c0_i32_1 : i32, i32, i32
  }
  func.func @transform_2(%arg0: i32) -> (i32, i32, i32) {
    %c0_i32 = arith.constant 0 : i32
    %c0_i32_0 = arith.constant 0 : i32
    %c0_i32_1 = arith.constant 0 : i32
    %c0_i32_2 = arith.constant 0 : i32
    return %c0_i32, %c0_i32_0, %c0_i32_1 : i32, i32, i32
  }
  func.func @transform_3(%arg0: i32) -> (i32, i32) {
    %c0_i32 = arith.constant 0 : i32
    %c0_i32_0 = arith.constant 0 : i32
    %c0_i32_1 = arith.constant 0 : i32
    return %c0_i32, %c0_i32_0 : i32, i32
  }
  func.func @transform_4(%arg0: i32) -> (i32, i32) {
    %c0_i32 = arith.constant 0 : i32
    %c0_i32_0 = arith.constant 0 : i32
    %c0_i32_1 = arith.constant 0 : i32
    return %c0_i32, %c0_i32_0 : i32, i32
  }
  func.func @transform_5(%arg0: i32) -> (i32, i32) {
    %c0_i32 = arith.constant 0 : i32
    %c0_i32_0 = arith.constant 0 : i32
    %c0_i32_1 = arith.constant 0 : i32
    return %c0_i32, %c0_i32_0 : i32, i32
  }
}

</mosaic_0001>

<bundles_post_ra>
// kernel: densenet_forward.26
= control target key start
LH: loop header
LB: loop body
LE: loop exit
PB: predicated region body
PF: predicated region fallthrough
CT: control target
= control target key end

     0   :  { %s576_s15 = smov 0   ;;  %s723_s0 = inlined_call_operand.vmem [shape: f32[2,9,9,16], index: 0, kind: input, shape index: {}]   ;;  %s724_s1 = inlined_call_operand.vmem [shape: f32[2,9,9,16], index: 1, kind: input, shape index: {}]   ;;  %s725_s2 = inlined_call_operand.vmem [shape: f32[2,9,9,16], index: 2, kind: input, shape index: {}]   ;;  %s726_s3 = inlined_call_operand.vmem [shape: f32[2,9,9,16], index: 3, kind: input, shape index: {}]   ;;  %s727_s4 = inlined_call_operand.vmem [shape: f32[2,8,8,16], index: 4, kind: output, shape index: {}]  }
   0x1 LB: > { %s496_s16 = sadd.s32 4294967295, %s549_s15   ;;  %p500_p0 = scmp.ge.s32.totalorder %s549_s15, 1  ;;  %s549_s15 = sphi %s576_s15, %s14_s15  }
   0x2   : > { %p192_p1 = scmp.lt.s32.totalorder %s549_s15, 3 }
   0x4   : > { %p193_p2 = pnand %p500_p0, %p192_p1 }
   0x5   : > { %p233_p3 = scmp.lt.s32.totalorder (!%p193_p2), %s496_s16, 1 }
   0x6   : > { %196 = sbr.rel (%p193_p2) target bundleno = 51 (0x33), region = 36 }
   0xb   : > { %s729_s16 = smov (!%p233_p3, %s496_s16), 1  ;;  %vm396_vm0 = vcmask 130048  }
   0xc   : > { %s534_s17 = smul.u32 144, %s729_s16  ;;  %s533_s30 = sshll.u32 %s729_s16, 6 }
   0xd   : > { %s677_s7 = scalar_lea.vmem %s727_s4, %s533_s30 }
   0xe   : > { %s590_s20 = scalar_lea.vmem %s723_s0, %s534_s17  ;;  %s595_s23 = scalar_lea.vmem %s724_s1, %s534_s17 }
   0xf   : > { %s600_s26 = scalar_lea.vmem %s725_s2, %s534_s17  ;;  %s605_s29 = scalar_lea.vmem %s726_s3, %s534_s17  ;;  %v258_v0 = vld [vmem:[%s590_s20] sm:$0xff]  ;;  %v507_v5 = vld [vmem:[%s590_s20 + $0x10] sm:$0xff] }
  0x10   : > { %v266_v1 = vld [vmem:[%s595_s23] sm:$0xff]  ;;  %v613_v6 = vld [vmem:[%s595_s23 + $0x10] sm:$0xff] }
  0x11   : > { %v282_v2 = vld [vmem:[%s590_s20 + $0x1] sm:$0xff]  ;;  %v274_v3 = vmax.f32 %v258_v0, %v266_v1  ;;  %v616_v7 = vld [vmem:[%s590_s20 + $0x11] sm:$0xff]  ;;  %v275_v10 = vmax.f32 %v507_v5, %v613_v6 }
  0x12   : > { %v298_v4 = vld [vmem:[%s600_s26] sm:$0xff]  ;;  %v299_v11 = vld [vmem:[%s600_s26 + $0x10] sm:$0xff] }
  0x13   : > { %v290_v8 = vmax.f32 %v274_v3, %v282_v2  ;;  %v314_v9 = vld [vmem:[%s605_s29] sm:$0xff]  ;;  %v291_v17 = vmax.f32 %v275_v10, %v616_v7  ;;  %v315_v18 = vld [vmem:[%s605_s29 + $0x10] sm:$0xff] }
  0x14   : > { %v508_v12 = vld [vmem:[%s590_s20 + $0x20] sm:$0xff]  ;;  %v509_v21 = vld [vmem:[%s590_s20 + $0x30] sm:$0xff] }
  0x15   : > { %v623_v13 = vld [vmem:[%s595_s23 + $0x20] sm:$0xff]  ;;  %v306_v15 = vmax.f32 %v290_v8, %v298_v4  ;;  %v635_v22 = vld [vmem:[%s595_s23 + $0x30] sm:$0xff]  ;;  %v307_v25 = vmax.f32 %v291_v17, %v299_v11 }
  0x16   : > { %v626_v14 = vld [vmem:[%s590_s20 + $0x21] sm:$0xff]  ;;  %v276_v19 = vmax.f32 %v508_v12, %v623_v13  ;;  %v638_v23 = vld [vmem:[%s590_s20 + $0x31] sm:$0xff]  ;;  %v277_v29 = vmax.f32 %v509_v21, %v635_v22 }
  0x17   : > { %v330_v16 = vld [vmem:[%s600_s26 + $0x1] sm:$0xff]  ;;  %v322_v24 = vmax.f32 %v306_v15, %v314_v9  ;;  %v331_v26 = vld [vmem:[%s600_s26 + $0x11] sm:$0xff]  ;;  %v323_v34 = vmax.f32 %v307_v25, %v315_v18 }
  0x18   : > { %v300_v20 = vld [vmem:[%s600_s26 + $0x20] sm:$0xff]  ;;  %v292_v27 = vmax.f32 %v276_v19, %v626_v14  ;;  %v301_v30 = vld [vmem:[%s600_s26 + $0x30] sm:$0xff]  ;;  %v293_v37 = vmax.f32 %v277_v29, %v638_v23 }
  0x19   : > { %v316_v28 = vld [vmem:[%s605_s29 + $0x20] sm:$0xff]  ;;  %v338_v33 = vmax.f32 %v322_v24, %v330_v16  ;;  %v317_v39 = vld [vmem:[%s605_s29 + $0x30] sm:$0xff]  ;;  %v339_v44 = vmax.f32 %v323_v34, %v331_v26 }
  0x1a   : > { %v510_v31 = vld [vmem:[%s590_s20 + $0x40] sm:$0xff]  ;;  %v308_v35 = vmax.f32 %v292_v27, %v300_v20  ;;  %v511_v41 = vld [vmem:[%s590_s20 + $0x50] sm:$0xff]  ;;  %v309_v46 = vmax.f32 %v293_v37, %v301_v30 }
  0x1b   : > { %v647_v32 = vld [vmem:[%s595_s23 + $0x40] sm:$0xff]  ;;  %v658_v42 = vld [vmem:[%s595_s23 + $0x50] sm:$0xff]  ;;  %v355_v43 = vmax.f32 %v338_v33, %v507_v5  ;;  %v356_v55 = vmax.f32 %v339_v44, %v508_v12 }
  0x1c   : > { %v332_v36 = vld [vmem:[%s600_s26 + $0x21] sm:$0xff]  ;;  %v278_v40 = vmax.f32 %v510_v31, %v647_v32  ;;  %v324_v45 = vmax.f32 %v308_v35, %v316_v28  ;;  %v527_v48 = vld [vmem:[%s590_s20 + $0x51] sm:$0xff]  ;;  %v279_v51 = vmax.f32 %v511_v41, %v658_v42  ;;  %v325_v57 = vmax.f32 %v309_v46, %v317_v39 }
  0x1d   : > { %v652_v38 = vld [vmem:[%s590_s20 + $0x41] sm:$0xff]  ;;  %v333_v49 = vld [vmem:[%s600_s26 + $0x31] sm:$0xff]  ;;  %v372_v54 = vmax.f32 %v355_v43, %v613_v6  ;;  %v373_v4 = vmax.f32 %v356_v55, %v623_v13 }
  0x1e   : > { %v302_v47 = vld [vmem:[%s600_s26 + $0x40] sm:$0xff]  ;;  %v294_v50 = vmax.f32 %v278_v40, %v652_v38  ;;  %v340_v56 = vmax.f32 %v324_v45, %v332_v36  ;;  %v303_v59 = vld [vmem:[%s600_s26 + $0x50] sm:$0xff]  ;;  %v295_v63 = vmax.f32 %v279_v51, %v527_v48  ;;  %v341_v6 = vmax.f32 %v325_v57, %v333_v49 }
  0x1f   : > { %v512_v52 = vld [vmem:[%s590_s20 + $0x60] sm:$0xff]  ;;  %v513_v1 = vld [vmem:[%s590_s20 + $0x70] sm:$0xff]  ;;  %v388_v3 = vmax.f32 %v372_v54, %v616_v7  ;;  %v389_v7 = vmax.f32 %v373_v4, %v626_v14 }
  0x20   : > { %v668_v53 = vld [vmem:[%s595_s23 + $0x60] sm:$0xff]  ;;  %v310_v61 = vmax.f32 %v294_v50, %v302_v47  ;;  %v521_v2 = vld [vmem:[%s595_s23 + $0x70] sm:$0xff]  ;;  %v357_v5 = vmax.f32 %v340_v56, %v509_v21  ;;  %v311_v12 = vmax.f32 %v295_v63, %v303_v59  ;;  %v358_v13 = vmax.f32 %v341_v6, %v510_v31 }
  0x21   : > { %v318_v58 = vld [vmem:[%s605_s29 + $0x40] sm:$0xff]  ;;  %v280_v0 = vmax.f32 %v512_v52, %v668_v53  ;;  %v319_v8 = vld [vmem:[%s605_s29 + $0x50] sm:$0xff]  ;;  %v281_v16 = vmax.f32 %v513_v1, %v521_v2  ;;  %397 = vst.msk [vmem:[%s677_s7] sm:$0xff] %vm396_vm0, %v388_v3 }
  0x22   : > { %v528_v60 = vld [vmem:[%s590_s20 + $0x61] sm:$0xff]  ;;  %v529_v10 = vld [vmem:[%s590_s20 + $0x71] sm:$0xff]  ;;  %v326_v11 = vmax.f32 %v310_v61, %v318_v58  ;;  %v374_v17 = vmax.f32 %v357_v5, %v635_v22  ;;  %v327_v24 = vmax.f32 %v311_v12, %v319_v8  ;;  %398 = vst.msk [vmem:[%s677_s7 + $0x8] sm:$0xff] %vm396_vm0, %v389_v7  ;;  %v375_v14 = vmax.f32 %v358_v13, %v647_v32 }
  0x23   : > { %v334_v62 = vld [vmem:[%s600_s26 + $0x41] sm:$0xff]  ;;  %v296_v15 = vmax.f32 %v280_v0, %v528_v60  ;;  %v335_v18 = vld [vmem:[%s600_s26 + $0x51] sm:$0xff]  ;;  %v297_v26 = vmax.f32 %v281_v16, %v529_v10 }
  0x24   : > { %v304_v9 = vld [vmem:[%s600_s26 + $0x60] sm:$0xff]  ;;  %v305_v20 = vld [vmem:[%s600_s26 + $0x70] sm:$0xff]  ;;  %v342_v21 = vmax.f32 %v326_v11, %v334_v62  ;;  %v390_v27 = vmax.f32 %v374_v17, %v638_v23  ;;  %v343_v30 = vmax.f32 %v327_v24, %v335_v18  ;;  %v391_v34 = vmax.f32 %v375_v14, %v652_v38 }
  0x25   : > { %v320_v19 = vld [vmem:[%s605_s29 + $0x60] sm:$0xff]  ;;  %v312_v25 = vmax.f32 %v296_v15, %v304_v9  ;;  %v321_v22 = vld [vmem:[%s605_s29 + $0x70] sm:$0xff]  ;;  %v313_v33 = vmax.f32 %v297_v26, %v305_v20 }
  0x26   : > { %v336_v28 = vld [vmem:[%s600_s26 + $0x61] sm:$0xff]  ;;  %v359_v29 = vmax.f32 %v342_v21, %v511_v41  ;;  %399 = vst.msk [vmem:[%s677_s7 + $0x10] sm:$0xff] %vm396_vm0, %v390_v27  ;;  %v337_v35 = vld [vmem:[%s600_s26 + $0x71] sm:$0xff]  ;;  %v360_v23 = vmax.f32 %v343_v30, %v512_v52 }
  0x27   : > { %v328_v31 = vmax.f32 %v312_v25, %v320_v19  ;;  %v329_v32 = vmax.f32 %v313_v33, %v321_v22  ;;  %400 = vst.msk [vmem:[%s677_s7 + $0x18] sm:$0xff] %vm396_vm0, %v391_v34  ;;  %v514_v39 = vld [vmem:[%s590_s20 + $0x80] sm:$0xff] }
  0x28   : > { %v376_v36 = vmax.f32 %v359_v29, %v658_v42  ;;  %v377_v41 = vmax.f32 %v360_v23, %v668_v53  ;;  %v522_v45 = vld [vmem:[%s595_s23 + $0x80] sm:$0xff] }
  0x29   : > { %v344_v37 = vmax.f32 %v328_v31, %v336_v28  ;;  %v345_v44 = vmax.f32 %v329_v32, %v337_v35  ;;  %v530_v47 = vld [vmem:[%s590_s20 + $0x81] sm:$0xff] }
  0x2a   : > { %v392_v40 = vmax.f32 %v376_v36, %v527_v48  ;;  %v393_v38 = vmax.f32 %v377_v41, %v528_v60 }
  0x2b   : > { %v361_v43 = vmax.f32 %v344_v37, %v513_v1  ;;  %v362_v42 = vmax.f32 %v345_v44, %v514_v39 }
  0x2c   : > { %401 = vst.msk [vmem:[%s677_s7 + $0x20] sm:$0xff] %vm396_vm0, %v392_v40 }
  0x2d   : > { %v378_v46 = vmax.f32 %v361_v43, %v521_v2  ;;  %402 = vst.msk [vmem:[%s677_s7 + $0x28] sm:$0xff] %vm396_vm0, %v393_v38  ;;  %v379_v50 = vmax.f32 %v362_v42, %v522_v45 }
  0x2f   : > { %v394_v49 = vmax.f32 %v378_v46, %v529_v10  ;;  %v395_v51 = vmax.f32 %v379_v50, %v530_v47 }
  0x31   : > { %403 = vst.msk [vmem:[%s677_s7 + $0x30] sm:$0xff] %vm396_vm0, %v394_v49 }
  0x32   : > { %404 = vst.msk [vmem:[%s677_s7 + $0x38] sm:$0xff] %vm396_vm0, %v395_v51 }
  0x33 PF: > { %s14_s15 = sadd.s32 1, %s549_s15  }
  0x34   : > { %p11_p4 = scmp.ge.s32.totalorder %s14_s15, 4  }
  0x36   :  { %13 = sbr.rel (!%p11_p4) target bundleno = 1 (0x1), region = 77 }

// kernel: densenet_forward.27
= control target key start
LH: loop header
LB: loop body
LE: loop exit
PB: predicated region body
PF: predicated region fallthrough
CT: control target
= control target key end

     0   :  { %11 = vsyncpa [#allocation3], 0  ;;  %s691_s0 = inlined_call_operand.vmem [shape: f32[128,16], index: 0, kind: input, shape index: {}]   ;;  %s692_s1 = inlined_call_operand.hbm [shape: f32[1,16], index: 1, kind: input, shape index: {}]   ;;  %s693_s2 = inlined_call_operand.hbm [shape: f32[1,16], index: 2, kind: input, shape index: {}]   ;;  %s694_s3 = inlined_call_operand.vmem [shape: bf16[16,32], index: 3, kind: input, shape index: {}]   ;;  %s695_s4 = inlined_call_operand.hbm [shape: f32[1,32], index: 4, kind: input, shape index: {}]   ;;  %s696_s5 = inlined_call_operand.hbm [shape: f32[1,32], index: 5, kind: input, shape index: {}]   ;;  %s697_s6 = inlined_call_operand.vmem [shape: bf16[128,32], index: 6, kind: output, shape index: {}]  }
   0x1   :  { %12 = vsyncpa [#allocation5], 0  ;;  %s32_s23 = sshll.u32 %s693_s2, 4  ;;  %s33_s23 = int_to_ptr.hbm [resolvable:$true] %s32_s23 }
   0x2   :  { %13 = vsyncpa [#allocation8], 0  ;;  %s463_s24 = smov [#allocation4]   ;;  %s21_s28 = sshll.u32 %s692_s1, 4  ;;  %s22_s28 = int_to_ptr.hbm [resolvable:$true] %s21_s28 }
   0x3   :  { %s34_s25 = sshll.u32 %s463_s24, 4  ;;  %s464_s29 = smov [#allocation2]   ;;  %s35_s25 = int_to_ptr.vmem [resolvable:$true] %s34_s25 }
   0x4   :  { %37 = dma.hbm_to_vmem [thread:$0]  %s33_s23, 16, %s35_s25, [#allocation5]  }
   0x5   :  { %s23_s30 = sshll.u32 %s464_s29, 4  ;;  %s45_s9 = sshll.u32 %s695_s4, 4  ;;  %s24_s30 = int_to_ptr.vmem [resolvable:$true] %s23_s30  ;;  %s46_s9 = int_to_ptr.hbm [resolvable:$true] %s45_s9 }
   0x6   :  { %26 = dma.hbm_to_vmem [thread:$0]  %s22_s28, 16, %s24_s30, [#allocation3]  }
   0x7   :  { %s56_s11 = sshll.u32 %s696_s5, 4  ;;  %s465_s12 = smov [#allocation6]   ;;  %s57_s11 = int_to_ptr.hbm [resolvable:$true] %s56_s11 }
   0x8   :  { %s47_s13 = sshll.u32 %s465_s12, 4  ;;  %s466_s1 = smov [#allocation7]   ;;  %s48_s13 = int_to_ptr.vmem [resolvable:$true] %s47_s13 }
   0x9   :  { %50 = dma.hbm_to_vmem [thread:$0]  %s46_s9, 16, %s48_s13, [#allocation5]  }
   0xa   :  { %s58_s14 = sshll.u32 %s466_s1, 4  ;;  %s59_s14 = int_to_ptr.vmem [resolvable:$true] %s58_s14 }
   0xb   :  { %61 = dma.hbm_to_vmem [thread:$0]  %s57_s11, 16, %s59_s14, [#allocation8]  }
   0xc   :  { %457 = dma.done.wait [#allocation3], 16  }
   0xd   :  { %458 = vsyncadd [#allocation3], 4294967280 }
   0xe   :  { %459 = dma.done.wait [#allocation5], 32  }
   0xf   :  { %460 = vsyncadd [#allocation5], 4294967264 }
  0x10   :  { %461 = dma.done.wait [#allocation8], 16  }
  0x11   :  { %462 = vsyncadd [#allocation8], 4294967280  ;;  %v349_v0 = vld [vmem:[%s694_s3] sm:$0xff]  ;;  %v80_v2 = vld [vmem:[%s691_s0 + $0x8] sm:$0xff]  ;;  %vm167_vm0 = vcmask 130048   ;;  %vm313_vm1 = vcmask 257024  }
  0x12   :  { %v79_v1 = vld [vmem:[%s691_s0] sm:$0xff]  ;;  %199 = vmatpush.bf16.msra.mxu0 %v349_v0  ;;  %350 = vmatpush.bf16.msra.mxu1 %v349_v0  ;;  %v84_v6 = vld [vmem:[%s691_s0 + $0x28] sm:$0xff]  ;;  %v81_v26 = vld [vmem:[%s691_s0 + $0x10] sm:$0xff] }
  0x13   :  { %v357_v3 = vld [vmem:[#allocation2] ss:$0 sm:$0xff]  ;;  %v523_v4 = vld [vmem:[#allocation4] ss:$0 sm:$0xff]  ;;  %351 = vmatpush.bf16.msra.mxu2 %v349_v0  ;;  %352 = vmatpush.bf16.msra.mxu3 %v349_v0  ;;  %v88_v11 = vld [vmem:[%s691_s0 + $0x48] sm:$0xff] }
  0x14   :  { %v83_v5 = vld [vmem:[%s691_s0 + $0x20] sm:$0xff]  ;;  %v99_v7 = vmul.f32 %v357_v3, %v79_v1  ;;  %v100_v8 = vmul.f32 %v357_v3, %v80_v2  ;;  %v104_v13 = vmul.f32 %v357_v3, %v84_v6  ;;  %v108_v15 = vmul.f32 %v357_v3, %v88_v11  ;;  %v92_v16 = vld [vmem:[%s691_s0 + $0x68] sm:$0xff]  ;;  %v82_v27 = vld [vmem:[%s691_s0 + $0x18] sm:$0xff] }
  0x15   :  { %v103_v9 = vmul.f32 %v357_v3, %v83_v5  ;;  %v87_v10 = vld [vmem:[%s691_s0 + $0x40] sm:$0xff]  ;;  %v112_v21 = vmul.f32 %v357_v3, %v92_v16  ;;  %v85_v32 = vld [vmem:[%s691_s0 + $0x30] sm:$0xff]  ;;  %v86_v39 = vld [vmem:[%s691_s0 + $0x38] sm:$0xff]  ;;  %v101_v46 = vmul.f32 %v357_v3, %v81_v26  ;;  %v102_v47 = vmul.f32 %v357_v3, %v82_v27 }
  0x16   :  { %v91_v12 = vld [vmem:[%s691_s0 + $0x60] sm:$0xff]  ;;  %v107_v14 = vmul.f32 %v357_v3, %v87_v10  ;;  %v119_v18 = vadd.f32 %v523_v4, %v99_v7  ;;  %v120_v19 = vadd.f32 %v523_v4, %v100_v8  ;;  %v124_v22 = vadd.f32 %v523_v4, %v104_v13  ;;  %v89_v40 = vld [vmem:[%s691_s0 + $0x50] sm:$0xff]  ;;  %v90_v41 = vld [vmem:[%s691_s0 + $0x58] sm:$0xff] }
  0x17   :  { %v111_v17 = vmul.f32 %v357_v3, %v91_v12  ;;  %v123_v20 = vadd.f32 %v523_v4, %v103_v9  ;;  %v128_v24 = vadd.f32 %v523_v4, %v108_v15  ;;  %v132_v31 = vadd.f32 %v523_v4, %v112_v21  ;;  %v93_v44 = vld [vmem:[%s691_s0 + $0x70] sm:$0xff]  ;;  %v94_v49 = vld [vmem:[%s691_s0 + $0x78] sm:$0xff]  ;;  %v593_v12 = vld [vmem:[#allocation7] ss:$0 sm:$0xff] }
  0x18   :  { %v127_v23 = vadd.f32 %v523_v4, %v107_v14  ;;  %v135_v28 = vmax.f32 %v119_v18, 0.0  ;;  %v136_v29 = vmax.f32 %v120_v19, 0.0  ;;  %v140_v33 = vmax.f32 %v124_v22, 0.0 }
  0x19   :  { %v131_v25 = vadd.f32 %v523_v4, %v111_v17  ;;  %v139_v30 = vmax.f32 %v123_v20, 0.0  ;;  %v144_v35 = vmax.f32 %v128_v24, 0.0  ;;  %v148_v38 = vmax.f32 %v132_v31, 0.0 }
  0x1a   :  { %v143_v34 = vmax.f32 %v127_v23, 0.0  ;;  %v151_v37 = vpack.c.bf16 %v136_v29, %v135_v28  ;;  %v105_v48 = vmul.f32 %v357_v3, %v85_v32  ;;  %v106_v50 = vmul.f32 %v357_v3, %v86_v39 }
  0x1b   :  { %v147_v36 = vmax.f32 %v131_v25, 0.0  ;;  %v153_v42 = vpack.c.bf16 %v140_v33, %v139_v30  ;;  %v109_v51 = vmul.f32 %v357_v3, %v89_v40  ;;  %v110_v52 = vmul.f32 %v357_v3, %v90_v41 }
  0x1c   :  { %v155_v43 = vpack.c.bf16 %v144_v35, %v143_v34  ;;  %341 = vmatmul.msk.bf16.vlgmr.msra.gmra.mxu0 %vm167_vm0, %v151_v37  ;;  %v113_v53 = vmul.f32 %v357_v3, %v93_v44  ;;  %v114_v54 = vmul.f32 %v357_v3, %v94_v49  ;;  %v121_v55 = vadd.f32 %v523_v4, %v101_v46 }
  0x1d   :  { %v157_v45 = vpack.c.bf16 %v148_v38, %v147_v36  ;;  %343 = vmatmul.msk.bf16.vlgmr.msra.gmra.mxu1 %vm167_vm0, %v153_v42  ;;  %v122_v56 = vadd.f32 %v523_v4, %v102_v47  ;;  %v125_v57 = vadd.f32 %v523_v4, %v105_v48  ;;  %v126_v58 = vadd.f32 %v523_v4, %v106_v50 }
  0x1e   :  { %345 = vmatmul.msk.bf16.vlgmr.msra.gmra.mxu2 %vm167_vm0, %v155_v43  ;;  %v129_v59 = vadd.f32 %v523_v4, %v109_v51  ;;  %v130_v60 = vadd.f32 %v523_v4, %v110_v52  ;;  %v133_v61 = vadd.f32 %v523_v4, %v113_v53  ;;  %v134_v62 = vadd.f32 %v523_v4, %v114_v54  ;;  %v591_v4 = vld [vmem:[#allocation6] ss:$0 sm:$0xff] }
  0x1f   :  { %347 = vmatmul.msk.bf16.vlgmr.msra.gmra.mxu3 %vm167_vm0, %v157_v45  ;;  %v137_v63 = vmax.f32 %v121_v55, 0.0  ;;  %v138_v0 = vmax.f32 %v122_v56, 0.0  ;;  %v141_v1 = vmax.f32 %v125_v57, 0.0  ;;  %v142_v2 = vmax.f32 %v126_v58, 0.0 }
  0x20   :  { %v145_v3 = vmax.f32 %v129_v59, 0.0  ;;  %v146_v5 = vmax.f32 %v130_v60, 0.0  ;;  %v149_v6 = vmax.f32 %v133_v61, 0.0  ;;  %v150_v7 = vmax.f32 %v134_v62, 0.0 }
  0x21   :  { %v152_v8 = vpack.c.bf16 %v138_v0, %v137_v63  ;;  %v154_v9 = vpack.c.bf16 %v142_v2, %v141_v1 }
  0x22   :  { %v156_v10 = vpack.c.bf16 %v146_v5, %v145_v3  ;;  %v158_v11 = vpack.c.bf16 %v150_v7, %v149_v6 }
  0x2c   :  { %342 = vmatmul.msk.bf16.gmra.mxu0 %vm167_vm0, %v152_v8 }
  0x2d   :  { %344 = vmatmul.msk.bf16.gmra.mxu1 %vm167_vm0, %v154_v9 }
  0x2e   :  { %346 = vmatmul.msk.bf16.gmra.mxu2 %vm167_vm0, %v156_v10 }
  0x2f   :  { %348 = vmatmul.msk.bf16.gmra.mxu3 %vm167_vm0, %v158_v11 }
  0x99   :  { %v201_v13 = vpop.f32.mrf.mxu0 }
  0x9a   :  { %v245_v14 = vmul.f32 %v591_v4, %v201_v13  ;;  %v211_v15 = vpop.f32.mrf.mxu1 }
  0x9b   :  { %v249_v16 = vmul.f32 %v591_v4, %v211_v15 }
  0x9c   :  { %v265_v17 = vadd.f32 %v593_v12, %v245_v14 }
  0x9d   :  { %v269_v18 = vadd.f32 %v593_v12, %v249_v16 }
  0x9e   :  { %v281_v19 = vmax.f32 %v265_v17, 0.0 }
  0x9f   :  { %v285_v20 = vmax.f32 %v269_v18, 0.0 }
  0xa0   :  { %v297_v21 = vpack.c.bf16 %v281_v19, %v281_v19 }
  0xa1   :  { %v221_v22 = vpop.f32.mrf.mxu2  ;;  %v301_v23 = vpack.c.bf16 %v285_v20, %v285_v20  ;;  %v203_v26 = vpop.f32.mrf.mxu0 }
  0xa2   :  { %v253_v24 = vmul.f32 %v591_v4, %v221_v22  ;;  %v231_v25 = vpop.f32.mrf.mxu3  ;;  %314 = vst.msk [vmem:[%s697_s6] sm:$0xf] %vm313_vm1, %v297_v21  ;;  %v246_v28 = vmul.f32 %v591_v4, %v203_v26  ;;  %v213_v29 = vpop.f32.mrf.mxu1 }
  0xa3   :  { %v257_v27 = vmul.f32 %v591_v4, %v231_v25  ;;  %318 = vst.msk [vmem:[%s697_s6 + $0x10] sm:$0xf] %vm313_vm1, %v301_v23  ;;  %v250_v31 = vmul.f32 %v591_v4, %v213_v29 }
  0xa4   :  { %v273_v30 = vadd.f32 %v593_v12, %v253_v24  ;;  %v266_v33 = vadd.f32 %v593_v12, %v246_v28 }
  0xa5   :  { %v277_v32 = vadd.f32 %v593_v12, %v257_v27  ;;  %v270_v35 = vadd.f32 %v593_v12, %v250_v31 }
  0xa6   :  { %v289_v34 = vmax.f32 %v273_v30, 0.0  ;;  %v282_v37 = vmax.f32 %v266_v33, 0.0 }
  0xa7   :  { %v293_v36 = vmax.f32 %v277_v32, 0.0  ;;  %v286_v39 = vmax.f32 %v270_v35, 0.0 }
  0xa8   :  { %v305_v38 = vpack.c.bf16 %v289_v34, %v289_v34  ;;  %v298_v41 = vpack.c.bf16 %v282_v37, %v282_v37 }
  0xa9   :  { %v309_v40 = vpack.c.bf16 %v293_v36, %v293_v36  ;;  %v223_v42 = vpop.f32.mrf.mxu2  ;;  %v302_v43 = vpack.c.bf16 %v286_v39, %v286_v39  ;;  %v206_v46 = vpop.f32.mrf.mxu0 }
  0xaa   :  { %322 = vst.msk [vmem:[%s697_s6 + $0x20] sm:$0xf] %vm313_vm1, %v305_v38  ;;  %v254_v44 = vmul.f32 %v591_v4, %v223_v42  ;;  %v233_v45 = vpop.f32.mrf.mxu3  ;;  %v247_v48 = vmul.f32 %v591_v4, %v206_v46  ;;  %v216_v49 = vpop.f32.mrf.mxu1 }
  0xab   :  { %326 = vst.msk [vmem:[%s697_s6 + $0x30] sm:$0xf] %vm313_vm1, %v309_v40  ;;  %v258_v47 = vmul.f32 %v591_v4, %v233_v45  ;;  %v251_v51 = vmul.f32 %v591_v4, %v216_v49 }
  0xac   :  { %315 = vst.msk [vmem:[%s697_s6 + $0x4] sm:$0xf] %vm313_vm1, %v298_v41  ;;  %v274_v50 = vadd.f32 %v593_v12, %v254_v44  ;;  %v267_v53 = vadd.f32 %v593_v12, %v247_v48 }
  0xad   :  { %319 = vst.msk [vmem:[%s697_s6 + $0x14] sm:$0xf] %vm313_vm1, %v302_v43  ;;  %v278_v52 = vadd.f32 %v593_v12, %v258_v47  ;;  %v271_v55 = vadd.f32 %v593_v12, %v251_v51 }
  0xae   :  { %v290_v54 = vmax.f32 %v274_v50, 0.0  ;;  %v283_v57 = vmax.f32 %v267_v53, 0.0 }
  0xaf   :  { %v294_v56 = vmax.f32 %v278_v52, 0.0  ;;  %v287_v59 = vmax.f32 %v271_v55, 0.0 }
  0xb0   :  { %v306_v58 = vpack.c.bf16 %v290_v54, %v290_v54  ;;  %v299_v61 = vpack.c.bf16 %v283_v57, %v283_v57 }
  0xb1   :  { %v310_v60 = vpack.c.bf16 %v294_v56, %v294_v56  ;;  %v226_v62 = vpop.f32.mrf.mxu2  ;;  %v303_v63 = vpack.c.bf16 %v287_v59, %v287_v59  ;;  %v208_v2 = vpop.f32.mrf.mxu0 }
  0xb2   :  { %323 = vst.msk [vmem:[%s697_s6 + $0x24] sm:$0xf] %vm313_vm1, %v306_v58  ;;  %v255_v0 = vmul.f32 %v591_v4, %v226_v62  ;;  %v236_v1 = vpop.f32.mrf.mxu3  ;;  %v248_v5 = vmul.f32 %v591_v4, %v208_v2  ;;  %v218_v6 = vpop.f32.mrf.mxu1 }
  0xb3   :  { %327 = vst.msk [vmem:[%s697_s6 + $0x34] sm:$0xf] %vm313_vm1, %v310_v60  ;;  %v259_v3 = vmul.f32 %v591_v4, %v236_v1  ;;  %v252_v8 = vmul.f32 %v591_v4, %v218_v6 }
  0xb4   :  { %316 = vst.msk [vmem:[%s697_s6 + $0x8] sm:$0xf] %vm313_vm1, %v299_v61  ;;  %v275_v7 = vadd.f32 %v593_v12, %v255_v0  ;;  %v268_v10 = vadd.f32 %v593_v12, %v248_v5 }
  0xb5   :  { %320 = vst.msk [vmem:[%s697_s6 + $0x18] sm:$0xf] %vm313_vm1, %v303_v63  ;;  %v279_v9 = vadd.f32 %v593_v12, %v259_v3  ;;  %v272_v13 = vadd.f32 %v593_v12, %v252_v8 }
  0xb6   :  { %v291_v11 = vmax.f32 %v275_v7, 0.0  ;;  %v284_v15 = vmax.f32 %v268_v10, 0.0 }
  0xb7   :  { %v295_v14 = vmax.f32 %v279_v9, 0.0  ;;  %v288_v17 = vmax.f32 %v272_v13, 0.0 }
  0xb8   :  { %v307_v16 = vpack.c.bf16 %v291_v11, %v291_v11  ;;  %v300_v19 = vpack.c.bf16 %v284_v15, %v284_v15 }
  0xb9   :  { %v311_v18 = vpack.c.bf16 %v295_v14, %v295_v14  ;;  %v228_v20 = vpop.f32.mrf.mxu2  ;;  %v304_v21 = vpack.c.bf16 %v288_v17, %v288_v17 }
  0xba   :  { %324 = vst.msk [vmem:[%s697_s6 + $0x28] sm:$0xf] %vm313_vm1, %v307_v16  ;;  %v256_v22 = vmul.f32 %v591_v4, %v228_v20  ;;  %v238_v23 = vpop.f32.mrf.mxu3 }
  0xbb   :  { %328 = vst.msk [vmem:[%s697_s6 + $0x38] sm:$0xf] %vm313_vm1, %v311_v18  ;;  %v260_v24 = vmul.f32 %v591_v4, %v238_v23 }
  0xbc   :  { %317 = vst.msk [vmem:[%s697_s6 + $0xc] sm:$0xf] %vm313_vm1, %v300_v19  ;;  %v276_v25 = vadd.f32 %v593_v12, %v256_v22 }
  0xbd   :  { %321 = vst.msk [vmem:[%s697_s6 + $0x1c] sm:$0xf] %vm313_vm1, %v304_v21  ;;  %v280_v26 = vadd.f32 %v593_v12, %v260_v24 }
  0xbe   :  { %v292_v27 = vmax.f32 %v276_v25, 0.0 }
  0xbf   :  { %v296_v28 = vmax.f32 %v280_v26, 0.0 }
  0xc0   :  { %v308_v29 = vpack.c.bf16 %v292_v27, %v292_v27 }
  0xc1   :  { %v312_v30 = vpack.c.bf16 %v296_v28, %v296_v28 }
  0xc2   :  { %325 = vst.msk [vmem:[%s697_s6 + $0x2c] sm:$0xf] %vm313_vm1, %v308_v29 }
  0xc3   :  { %329 = vst.msk [vmem:[%s697_s6 + $0x3c] sm:$0xf] %vm313_vm1, %v312_v30 }
  0xc4   :  { %334 = vsyncpa [#allocation3], 1 }
  0xc5   :  { %335 = vsyncpa [#allocation5], 1 }
  0xc6   :  { %336 = vsyncpa [#allocation8], 1 }

// kernel: densenet_forward.28
= control target key start
LH: loop header
LB: loop body
LE: loop exit
PB: predicated region body
PF: predicated region fallthrough
CT: control target
= control target key end

     0   :  { %s1594_s15 = smov 0   ;;  %s1964_s0 = inlined_call_operand.vmem [shape: bf16[2,110,32], index: 0, kind: input, shape index: {}]   ;;  %s1965_s1 = inlined_call_operand.vmem [shape: bf16[9,32,8], index: 1, kind: input, shape index: {}]   ;;  %s1966_s2 = inlined_call_operand.vmem [shape: f32[1,8], index: 2, kind: input, shape index: {}]   ;;  %s1967_s3 = inlined_call_operand.vmem [shape: f32[1,8], index: 3, kind: input, shape index: {}]   ;;  %s1968_s4 = inlined_call_operand.vmem [shape: f32[2,80,8], index: 4, kind: output, shape index: {}]  }
   0x1 LB: > { %s1300_s16 = sadd.s32 4294967295, %s1567_s15   ;;  %p1304_p0 = scmp.ge.s32.totalorder %s1567_s15, 1  ;;  %s1567_s15 = sphi %s1594_s15, %s14_s15  }
   0x2   : > { %p162_p1 = scmp.lt.s32.totalorder %s1567_s15, 3 }
   0x4   : > { %p163_p2 = pnand %p1304_p0, %p162_p1 }
   0x5   : > { %p188_p3 = scmp.lt.s32.totalorder (!%p163_p2), %s1300_s16, 1 }
   0x6   : > { %166 = sbr.rel (%p163_p2) target bundleno = 350 (0x15e), region = 36 }
   0xb   : > { %v1513_v0 = vld [vmem:[%s1965_s1 + $0x18] sm:$0xff]  ;;  %v1512_v1 = vld [vmem:[%s1965_s1 + $0x10] sm:$0xff]  ;;  %s1970_s16 = smov (!%p188_p3, %s1300_s16), 1  ;;  %v1515_v2 = vld [vmem:[%s1965_s1 + $0x28] sm:$0xff]  ;;  %vm247_vm0 = vsmask.f32 7424 }
   0xc   : > { %1543 = vmatpush.bf16.msra.mxu1 %v1513_v0  ;;  %1544 = vmatpush.bf16.msra.mxu2 %v1513_v0  ;;  %s1549_s23 = smul.u32 56, %s1970_s16  ;;  %v1511_v3 = vld [vmem:[%s1965_s1 + $0x8] sm:$0xff]  ;;  %v1521_v4 = vld [vmem:[%s1965_s1 + $0x38] sm:$0xff]  ;;  %v1510_v6 = vld [vmem:[%s1965_s1] sm:$0xff]  ;;  %vm304_vm1 = vcmask 261120   ;;  %vm419_vm2 = vcmask 1046528  }
   0xd   : > { %1545 = vmatpush.bf16.msra.mxu3 %v1513_v0  ;;  %326 = vmatpush.bf16.msra.mxu0 %v1513_v0  ;;  %v1523_v5 = vld [vmem:[%s1965_s1 + $0x48] sm:$0xff]  ;;  %v1514_v7 = vld [vmem:[%s1965_s1 + $0x20] sm:$0xff]  ;;  %v1520_v13 = vld [vmem:[%s1965_s1 + $0x30] sm:$0xff]  ;;  %vm637_vm3 = vsmask.f32 6400  ;;  %vm771_vm4 = vcmask 1045504  }
   0xe   : > { %s1626_s6 = scalar_lea.vmem %s1964_s0, %s1549_s23  ;;  %v1522_v19 = vld [vmem:[%s1965_s1 + $0x40] sm:$0xff]  ;;  %v1531_v44 = vld [vmem:[%s1965_s1 + $0x68] sm:$0xff]  ;;  %v1533_v45 = vld [vmem:[%s1965_s1 + $0x78] sm:$0xff]  ;;  %vm989_vm5 = vsmask.f32 5376  ;;  %vm1123_vm6 = vcmask 1044480  }
   0xf   : > { %v1635_v8 = vld [vmem:[%s1626_s6 + $0x8] sm:$0xff]  ;;  %v1638_v9 = vld [vmem:[%s1626_s6 + $0x10] sm:$0xff]  ;;  %v1641_v10 = vld [vmem:[%s1626_s6 + $0x18] sm:$0xff]  ;;  %s1550_s9 = smul.u32 80, %s1970_s16  ;;  %vm1234_vm7 = vcmask 64512  }
  0x10   : > { %1546 = vmatpush.bf16.msra.mxu1 %v1512_v1  ;;  %1547 = vmatpush.bf16.msra.mxu2 %v1512_v1  ;;  %v1644_v11 = vld [vmem:[%s1626_s6 + $0x20] sm:$0xff]  ;;  %v213_v12 = vld [vmem:[%s1626_s6 + $0x28] sm:$0x1]  ;;  %v256_v14 = vshll.u32 %v1635_v8, 16  ;;  %v260_v15 = vshrl.u32 %v1635_v8, 16  ;;  %v264_v16 = vshll.u32 %v1638_v9, 16 }
  0x11   : > { %1548 = vmatpush.bf16.msra.mxu3 %v1512_v1  ;;  %327 = vmatpush.bf16.msra.mxu0 %v1512_v1  ;;  %v268_v17 = vshrl.u32 %v1638_v9, 16  ;;  %v1655_v18 = vld [vmem:[%s1626_s6] sm:$0xff]   ;;  %v272_v20 = vshll.u32 %v1641_v10, 16  ;;  %v240_v21 = vunpack.c.l.b16 %v213_v12  ;;  %v280_v22 = vshll.u32 %v1644_v11, 16  ;;  %v1666_v28 = vld [vmem:[%s1626_s6 + $0x8] sm:$0xff]   ;;  %v1525_v46 = vld [vmem:[%s1965_s1 + $0x58] sm:$0xff]  ;;  %s1912_s14 = scalar_lea.vmem %s1968_s4, %s1550_s9 }
  0x12   : > { %v284_v23 = vshrl.u32 %v1644_v11, 16  ;;  %v502_v24 = vld [vmem:[%s1626_s6 + $0x4] sm:$0xe]  ;;  %v258_v25 = vrot.slane %v256_v14, 1  ;;  %v266_v26 = vrot.slane %v264_v16, 1  ;;  %v249_v27 = vshrl.u32 %v1655_v18, 16 }
  0x13   : > { %v274_v29 = vrot.slane %v272_v20, 1  ;;  %v1668_v30 = vpack.c.b16 %v240_v21, %v240_v21  ;;  %v282_v31 = vrot.slane %v280_v22, 1  ;;  %v251_v32 = vshll.u32 %v1655_v18, 16  ;;  %v1689_v49 = vld [vmem:[%s1626_s6 + $0xc] sm:$0xff] }
  0x14   : > { %464 = vmatpush.bf16.msrb.mxu2 %v1515_v2  ;;  %382 = vmatpush.bf16.msrb.mxu1 %v1511_v3  ;;  %v262_v33 = vor.u32 %v260_v15, %v258_v25  ;;  %v270_v34 = vor.u32 %v268_v17, %v266_v26  ;;  %v529_v35 = vunpack.c.l.b16 %v502_v24  ;;  %v530_v39 = vunpack.c.l.b16 %v1666_v28  ;;  %v1535_v51 = vld [vmem:[%s1965_s1 + $0x88] sm:$0xff]  ;;  %v1530_v24 = vld [vmem:[%s1965_s1 + $0x60] sm:$0xff] }
  0x15   : > { %590 = vmatpush.bf16.msrb.mxu3 %v1521_v4  ;;  %724 = vmatpush.bf16.msrb.mxu0 %v1523_v5  ;;  %v286_v36 = vor.u32 %v284_v23, %v282_v31  ;;  %v288_v37 = vshll.u32 %v1668_v30, 16  ;;  %v253_v38 = vrot.slane %v251_v32, 1  ;;  %v647_v54 = vshrl.u32 %v1689_v49, 16  ;;  %v1540_v5 = vld [vmem:[%s1626_s6] sm:$0xf0] }
  0x16   : > { %v267_v40 = vsel %vm247_vm0, %v262_v33, %v266_v26  ;;  %v275_v41 = vsel %vm247_vm0, %v270_v34, %v274_v29  ;;  %v540_v50 = vpack.c.b16 %v530_v39, %v529_v35  ;;  %v650_v55 = vshll.u32 %v1689_v49, 16  ;;  %v1524_v26 = vld [vmem:[%s1965_s1 + $0x50] sm:$0xff] }
  0x17   : > { %1336 = vmatmul.msk.bf16.vlgmr.msra.gmra.mxu1 %vm304_vm1, %v267_v40  ;;  %1337 = vmatmul.msk.bf16.vlgmr.msra.gmra.mxu2 %vm304_vm1, %v275_v41  ;;  %v290_v42 = vrot.slane %v288_v37, 1  ;;  %v254_v43 = vor.u32 %v253_v38, %v249_v27  ;;  %v276_v56 = vshrl.u32 %v1641_v10, 16  ;;  %v649_v59 = vrot.slane %v647_v54, 1  ;;  %v1534_v40 = vld [vmem:[%s1965_s1 + $0x80] sm:$0xff] }
  0x18   : > { %465 = vmatpush.bf16.msrb.mxu2 %v1514_v7  ;;  %383 = vmatpush.bf16.msrb.mxu1 %v1510_v6  ;;  %v639_v52 = vshrl.u32 %v540_v50, 16  ;;  %v642_v53 = vshll.u32 %v540_v50, 16  ;;  %v652_v60 = vrot.slane %v650_v55, 2  ;;  %v546_v62 = vrot.slane %v540_v50, 1  ;;  %v1541_v6 = vld [vmem:[%s1626_s6] sm:$0xe] }
  0x19   : > { %591 = vmatpush.bf16.msrb.mxu3 %v1520_v13  ;;  %725 = vmatpush.bf16.msrb.mxu0 %v1522_v19  ;;  %v291_v47 = vsel %vm247_vm0, %v286_v36, %v290_v42  ;;  %v259_v48 = vsel %vm247_vm0, %v254_v43, %v258_v25  ;;  %v278_v61 = vor.u32 %v276_v56, %v274_v29  ;;  %v547_v63 = vrot.slane %v1689_v49, 1  ;;  %v1711_v7 = vld [vmem:[%s1626_s6 + $0x14] sm:$0xff]  ;;  %v1729_v25 = vld [vmem:[%s1626_s6 + $0x1c] sm:$0xff]  ;;  %v1753_v41 = vld [vmem:[%s1626_s6 + $0x24] sm:$0xff] }
  0x1a   : > { %1339 = vmatmul.msk.bf16.vlgmr.msra.gmra.mxu3 %vm304_vm1, %v291_v47  ;;  %1335 = vmatmul.msk.bf16.vlgmr.msra.gmra.mxu0 %vm304_vm1, %v259_v48  ;;  %v641_v57 = vrot.slane %v639_v52, 1  ;;  %v644_v58 = vrot.slane %v642_v53, 2  ;;  %v653_v1 = vor.u32 %v652_v60, %v649_v59  ;;  %v656_v12 = vshrl.u32 %v1711_v7, 16  ;;  %v762_v48 = vld [vmem:[%s1626_s6 + $0x4] sm:$0xc] }
  0x1b   : > { %v283_v2 = vsel %vm247_vm0, %v278_v61, %v282_v31  ;;  %v548_v3 = vsel %vm419_vm2, %v546_v62, %v547_v63  ;;  %v659_v13 = vshll.u32 %v1711_v7, 16  ;;  %v1542_v14 = vor.u32 %v1541_v6, %v1540_v5  ;;  %v628_v52 = vld [vmem:[%s1626_s6 + $0x2c] sm:$0x3]  ;;  %v854_v5 = vld [vmem:[%s1626_s6 + $0x8] sm:$0xc] }
  0x1c   : > { %942 = vmatpush.bf16.msra.mxu2 %v1531_v44  ;;  %816 = vmatpush.bf16.msra.mxu1 %v1525_v46  ;;  %v645_v0 = vor.u32 %v644_v58, %v641_v57  ;;  %v658_v15 = vrot.slane %v656_v12, 1  ;;  %v549_v19 = vrot.slane %v1711_v7, 1  ;;  %v665_v27 = vshrl.u32 %v1729_v25, 16  ;;  %v512_v62 = vld [vmem:[%s1626_s6 + $0x2c] sm:$0x1] }
  0x1d   : > { %1076 = vmatpush.bf16.msra.mxu3 %v1533_v45  ;;  %1168 = vmatpush.bf16.msra.mxu0 %v1535_v51  ;;  %v661_v16 = vrot.slane %v659_v13, 2  ;;  %v420_v17 = vrot.slane %v1542_v14, 1  ;;  %v668_v29 = vshll.u32 %v1729_v25, 16  ;;  %v423_v33 = vrot.slane %v1638_v9, 1 }
  0x1e   : > { %v654_v4 = vsel %vm637_vm3, %v645_v0, %v653_v1  ;;  %v550_v22 = vsel %vm419_vm2, %v547_v63, %v549_v19  ;;  %v667_v31 = vrot.slane %v665_v27, 1  ;;  %v551_v34 = vrot.slane %v1729_v25, 1 }
  0x1f   : > { %v662_v20 = vor.u32 %v661_v16, %v658_v15  ;;  %v670_v32 = vrot.slane %v668_v29, 2  ;;  %v429_v42 = vrot.slane %v1668_v30, 1  ;;  %v674_v43 = vshrl.u32 %v1753_v41, 16  ;;  %v1526_v16 = vld [vmem:[%s1626_s6 + $0x10] sm:$0xff] }
  0x20   : > { %943 = vmatpush.bf16.msra.mxu2 %v1530_v24  ;;  %817 = vmatpush.bf16.msra.mxu1 %v1524_v26  ;;  %v552_v37 = vsel %vm419_vm2, %v549_v19, %v551_v34  ;;  %v677_v44 = vshll.u32 %v1753_v41, 16  ;;  %v425_v50 = vrot.slane %v1641_v10, 1  ;;  %v769_v51 = vunpack.c.l.b16 %v762_v48 }
  0x21   : > { %v663_v23 = vsel %vm637_vm3, %v653_v1, %v662_v20  ;;  %v671_v35 = vor.u32 %v670_v32, %v667_v31  ;;  %1169 = vmatpush.bf16.msra.mxu0 %v1534_v40  ;;  %v676_v46 = vrot.slane %v674_v43, 1  ;;  %v553_v30 = vrot.slane %v1753_v41, 1 }
  0x22   : > { %v679_v47 = vrot.slane %v677_v44, 2  ;;  %v770_v53 = vpack.c.b16 %v530_v39, %v769_v51  ;;  %v635_v55 = vunpack.c.l.b16 %v628_v52  ;;  %v426_v56 = vsel %vm419_vm2, %v423_v33, %v425_v50  ;;  %v1815_v51 = vld [vmem:[%s1626_s6 + $0x20] sm:$0xff] }
  0x23   : > { %v672_v38 = vsel %vm637_vm3, %v662_v20, %v671_v35  ;;  %v773_v58 = vrot.slane %v1689_v49, 2  ;;  %v554_v39 = vsel %vm419_vm2, %v551_v34, %v553_v30  ;;  %v775_v49 = vrot.slane %v1711_v7, 2  ;;  %v1114_v20 = vld [vmem:[%s1626_s6 + $0x8] sm:$0x8] }
  0x24   : > { %v680_v54 = vor.u32 %v679_v47, %v676_v46  ;;  %v772_v57 = vrot.slane %v770_v53, 2  ;;  %v1778_v61 = vpack.c.b16 %v635_v55, %v635_v55  ;;  %v539_v63 = vunpack.c.l.b16 %v512_v62 }
  0x25   : > { %v776_v1 = vsel %vm771_vm4, %v773_v58, %v775_v49  ;;  %v881_v13 = vunpack.c.l.b16 %v854_v5  ;;  %v882_v14 = vunpack.c.h.b16 %v1666_v28  ;;  %v1121_v24 = vunpack.c.l.b16 %v1114_v20 }
  0x26   : > { %v774_v59 = vsel %vm771_vm4, %v772_v57, %v773_v58  ;;  %v681_v60 = vsel %vm637_vm3, %v671_v35, %v680_v54  ;;  %v686_v0 = vshll.u32 %v1778_v61, 16  ;;  %v1125_v34 = vrot.slane %v1526_v16, 3 }
  0x27   : > { %1338 = vmatmul.msk.bf16.gmra.mxu2 %vm304_vm1, %v283_v2  ;;  %1348 = vmatmul.msk.bf16.vlgmr.msrb.gmra.mxu1 %vm304_vm1, %v1655_v18  ;;  %v421_v18 = vrot.slane %v1635_v8, 1  ;;  %v545_v2 = vpack.c.b16 %v539_v63, %v539_v63  ;;  %v892_v19 = vpack.c.b16 %v882_v14, %v881_v13  ;;  %v1122_v29 = vpack.c.b16 %v882_v14, %v1121_v24  ;;  %v980_v13 = vld [vmem:[%s1626_s6 + $0x30] sm:$0x7] }
  0x28   : > { %v899_v44 = vrot.slane %v1526_v16, 2  ;;  %v1017_v52 = vshrl.u32 %v1815_v51, 16  ;;  %v1020_v53 = vshll.u32 %v1815_v51, 16  ;;  %v777_v55 = vrot.slane %v1729_v25, 2 }
  0x29   : > { %v422_v21 = vsel %vm419_vm2, %v420_v17, %v421_v18  ;;  %v424_v36 = vsel %vm419_vm2, %v421_v18, %v423_v33  ;;  %v555_v6 = vrot.slane %v545_v2, 1  ;;  %v991_v28 = vshrl.u32 %v892_v19, 16 }
  0x2a   : > { %1398 = vmatmul.msk.bf16.vlgmr.msrb.gmra.mxu3 %vm304_vm1, %v548_v3  ;;  %1415 = vmatmul.msk.bf16.vlgmr.msrb.gmra.mxu0 %vm304_vm1, %v654_v4  ;;  %v688_v4 = vrot.slane %v686_v0, 2  ;;  %v1124_v33 = vrot.slane %v1122_v29, 3  ;;  %v898_v43 = vrot.slane %v892_v19, 2  ;;  %v1129_v58 = vrot.slane %v1815_v51, 3 }
  0x2b   : > { %v556_v17 = vsel %vm419_vm2, %v553_v30, %v555_v6  ;;  %v1019_v30 = vrot.slane %v1017_v52, 2  ;;  %v779_v6 = vrot.slane %v1753_v41, 2 }
  0x2c   : > { %v900_v47 = vsel %vm771_vm4, %v898_v43, %v899_v44 }
  0x37   : > { %1349 = vmatmul.msk.bf16.gmra.mxu1 %vm304_vm1, %v1635_v8  ;;  %1365 = vmatmul.msk.bf16.vlgmr.msrb.gmra.mxu2 %vm304_vm1, %v422_v21  ;;  %v1532_v8 = vld [vmem:[%s1965_s1 + $0x70] sm:$0xff]  ;;  %v999_v21 = vshrl.u32 %v1526_v16, 16 }
  0x38   : > { %1077 = vmatpush.bf16.msra.mxu3 %v1532_v8 }
  0x39   : > { %v1001_v8 = vrot.slane %v999_v21, 2 }
  0x3a   : > { %1399 = vmatmul.msk.bf16.gmra.mxu3 %vm304_vm1, %v550_v22  ;;  %1416 = vmatmul.msk.bf16.gmra.mxu0 %vm304_vm1, %v663_v23  ;;  %v994_v22 = vshll.u32 %v892_v19, 16  ;;  %v1002_v23 = vshll.u32 %v1526_v16, 16  ;;  %v780_v19 = vsel %vm771_vm4, %v777_v55, %v779_v6 }
  0x3c   : > { %v996_v26 = vrot.slane %v994_v22, 3  ;;  %v1004_v27 = vrot.slane %v1002_v23, 3 }
  0x3e   : > { %v1005_v32 = vor.u32 %v1004_v27, %v1001_v8 }
  0x47   : > { %1350 = vmatmul.msk.bf16.gmra.mxu1 %vm304_vm1, %v1638_v9  ;;  %1366 = vmatmul.msk.bf16.gmra.mxu2 %vm304_vm1, %v424_v36  ;;  %v427_v9 = vrot.slane %v1644_v11, 1  ;;  %v1126_v36 = vsel %vm1123_vm6, %v1124_v33, %v1125_v34 }
  0x49   : > { %v1762_v45 = vsel %vm419_vm2, %v427_v9, %v429_v42  ;;  %v428_v15 = vsel %vm419_vm2, %v425_v50, %v427_v9 }
  0x4a   : > { %1400 = vmatmul.msk.bf16.gmra.mxu3 %vm304_vm1, %v552_v37  ;;  %1417 = vmatmul.msk.bf16.gmra.mxu0 %vm304_vm1, %v672_v38  ;;  %v1527_v37 = vld [vmem:[%s1626_s6 + $0x18] sm:$0xff] }
  0x4b   : > { %v1008_v38 = vshrl.u32 %v1527_v37, 16  ;;  %v1011_v40 = vshll.u32 %v1527_v37, 16 }
  0x4d   : > { %v1010_v9 = vrot.slane %v1008_v38, 2  ;;  %v1013_v42 = vrot.slane %v1011_v40, 3 }
  0x4f   : > { %v1014_v46 = vor.u32 %v1013_v42, %v1010_v9 }
  0x51   : > { %v1015_v48 = vsel %vm989_vm5, %v1005_v32, %v1014_v46 }
  0x57   : > { %1351 = vmatmul.msk.bf16.gmra.mxu1 %vm304_vm1, %v1641_v10  ;;  %1367 = vmatmul.msk.bf16.gmra.mxu2 %vm304_vm1, %v426_v56  ;;  %v683_v10 = vshrl.u32 %v1778_v61, 16  ;;  %v901_v56 = vrot.slane %v1527_v37, 2 }
  0x59   : > { %v685_v3 = vrot.slane %v683_v10, 1  ;;  %v1832_v10 = vld [vmem:[%s1626_s6 + $0x28] sm:$0xff] }
  0x5a   : > { %1401 = vmatmul.msk.bf16.gmra.mxu3 %vm304_vm1, %v554_v39  ;;  %1418 = vmatmul.msk.bf16.gmra.mxu0 %vm304_vm1, %v681_v60  ;;  %v778_v39 = vsel %vm771_vm4, %v775_v49, %v777_v55  ;;  %v902_v60 = vsel %vm771_vm4, %v899_v44, %v901_v56  ;;  %v1026_v7 = vshrl.u32 %v1832_v10, 16  ;;  %v1029_v49 = vshll.u32 %v1832_v10, 16 }
  0x5b   : > { %v689_v12 = vor.u32 %v688_v4, %v685_v3  ;;  %v1131_v16 = vrot.slane %v1832_v10, 3 }
  0x5c   : > { %v1028_v4 = vrot.slane %v1026_v7, 2  ;;  %v1031_v5 = vrot.slane %v1029_v49, 3 }
  0x5d   : > { %v690_v18 = vsel %vm637_vm3, %v680_v54, %v689_v12  ;;  %v1022_v54 = vrot.slane %v1020_v53, 3  ;;  %v903_v12 = vrot.slane %v1815_v51, 2  ;;  %v1132_v23 = vsel %vm1123_vm6, %v1129_v58, %v1131_v16 }
  0x5f   : > { %v1023_v57 = vor.u32 %v1022_v54, %v1019_v30  ;;  %v904_v20 = vsel %vm771_vm4, %v901_v56, %v903_v12 }
  0x61   : > { %v1024_v62 = vsel %vm989_vm5, %v1014_v46, %v1023_v57 }
  0x67   : > { %1352 = vmatmul.msk.bf16.gmra.mxu1 %vm304_vm1, %v1644_v11  ;;  %1368 = vmatmul.msk.bf16.gmra.mxu2 %vm304_vm1, %v428_v15  ;;  %v993_v11 = vrot.slane %v991_v28, 2  ;;  %v1032_v15 = vor.u32 %v1031_v5, %v1028_v4 }
  0x69   : > { %v997_v31 = vor.u32 %v996_v26, %v993_v11  ;;  %v1033_v41 = vsel %vm989_vm5, %v1023_v57, %v1032_v15 }
  0x6a   : > { %1402 = vmatmul.msk.bf16.gmra.mxu3 %vm304_vm1, %v556_v17  ;;  %1419 = vmatmul.msk.bf16.gmra.mxu0 %vm304_vm1, %v690_v18  ;;  %v987_v17 = vunpack.c.l.b16 %v980_v13 }
  0x6b   : > { %v1006_v35 = vsel %vm989_vm5, %v997_v31, %v1005_v32 }
  0x6c   : > { %v988_v24 = vpack.c.b16 %v987_v17, %v987_v17 }
  0x6e   : > { %v1035_v11 = vshrl.u32 %v988_v24, 16  ;;  %v1038_v26 = vshll.u32 %v988_v24, 16  ;;  %v1133_v40 = vrot.slane %v988_v24, 3 }
  0x70   : > { %v1037_v33 = vrot.slane %v1035_v11, 2 }
  0x77   : > { %1369 = vmatmul.msk.bf16.gmra.mxu2 %vm304_vm1, %v1762_v45  ;;  %1432 = vmatmul.msk.bf16.vlgmr.msra.gmra.mxu1 %vm304_vm1, %v774_v59  ;;  %v1127_v45 = vrot.slane %v1527_v37, 3 }
  0x79   : > { %v1128_v50 = vsel %vm1123_vm6, %v1125_v34, %v1127_v45  ;;  %v1130_v25 = vsel %vm1123_vm6, %v1127_v45, %v1129_v58  ;;  %v1040_v34 = vrot.slane %v1038_v26, 3  ;;  %v864_v45 = vld [vmem:[%s1626_s6 + $0x30] sm:$0x3] }
  0x7a   : > { %1482 = vmatmul.msk.bf16.vlgmr.msra.gmra.mxu3 %vm304_vm1, %v1006_v35  ;;  %1499 = vmatmul.msk.bf16.vlgmr.msra.gmra.mxu0 %vm304_vm1, %v1126_v36  ;;  %v781_v35 = vrot.slane %v1778_v61, 2  ;;  %v905_v36 = vrot.slane %v1832_v10, 2 }
  0x7b   : > { %v1041_v38 = vor.u32 %v1040_v34, %v1037_v33 }
  0x7c   : > { %v782_v42 = vsel %vm771_vm4, %v779_v6, %v781_v35  ;;  %v906_v43 = vsel %vm771_vm4, %v903_v12, %v905_v36 }
  0x87   : > { %1433 = vmatmul.msk.bf16.gmra.mxu1 %vm304_vm1, %v776_v1  ;;  %1465 = vmatmul.msk.bf16.vlgmr.msra.gmra.mxu2 %vm304_vm1, %v900_v47  ;;  %v1042_v47 = vsel %vm989_vm5, %v1032_v15, %v1041_v38 }
  0x8a   : > { %1483 = vmatmul.msk.bf16.gmra.mxu3 %vm304_vm1, %v1015_v48  ;;  %1500 = vmatmul.msk.bf16.gmra.mxu0 %vm304_vm1, %v1128_v50  ;;  %v1134_v48 = vsel %vm1123_vm6, %v1131_v16, %v1133_v40  ;;  %v891_v50 = vunpack.c.l.b16 %v864_v45 }
  0x8c   : > { %v897_v30 = vpack.c.b16 %v891_v50, %v891_v50 }
  0x94   : > { %v334_v59 = vpop.f32.mrf.mxu1 }
  0x97   : > { %1434 = vmatmul.msk.bf16.gmra.mxu1 %vm304_vm1, %v778_v39  ;;  %1466 = vmatmul.msk.bf16.gmra.mxu2 %vm304_vm1, %v902_v60  ;;  %v329_v63 = vpop.f32.mrf.mxu0 }
  0x9a   : > { %v1834_v0 = vpop.f32.mrf.mxu2  ;;  %1484 = vmatmul.msk.bf16.gmra.mxu3 %vm304_vm1, %v1024_v62  ;;  %1501 = vmatmul.msk.bf16.gmra.mxu0 %vm304_vm1, %v1130_v25 }
  0x9c   : > { %v336_v1 = vpop.f32.mrf.mxu1 }
  0x9d   : > { %v1840_v2 = vpop.f32.mrf.mxu3 }
  0x9f   : > { %v331_v3 = vpop.f32.mrf.mxu0 }
  0xa2   : > { %v1845_v14 = vpop.f32.mrf.mxu2 }
  0xa4   : > { %v385_v18 = vpop.f32.mrf.mxu1 }
  0xa5   : > { %v386_v21 = vadd.f32 %v385_v18, %v329_v63  ;;  %v1850_v28 = vpop.f32.mrf.mxu3 }
  0xa7   : > { %1435 = vmatmul.msk.bf16.gmra.mxu1 %vm304_vm1, %v780_v19  ;;  %1467 = vmatmul.msk.bf16.gmra.mxu2 %vm304_vm1, %v904_v20  ;;  %v727_v22 = vpop.f32.mrf.mxu0 }
  0xaa   : > { %v344_v8 = vpop.f32.mrf.mxu2  ;;  %1485 = vmatmul.msk.bf16.gmra.mxu3 %vm304_vm1, %v1033_v41  ;;  %1502 = vmatmul.msk.bf16.gmra.mxu0 %vm304_vm1, %v1132_v23 }
  0xac   : > { %v387_v27 = vpop.f32.mrf.mxu1 }
  0xad   : > { %v388_v29 = vadd.f32 %v387_v27, %v331_v3  ;;  %v593_v31 = vpop.f32.mrf.mxu3 }
  0xaf   : > { %v729_v32 = vpop.f32.mrf.mxu0 }
  0xb2   : > { %v346_v37 = vpop.f32.mrf.mxu2 }
  0xb4   : > { %v390_v9 = vpop.f32.mrf.mxu1 }
  0xb5   : > { %v391_v44 = vadd.f32 %v390_v9, %v334_v59  ;;  %v595_v46 = vpop.f32.mrf.mxu3  ;;  %v907_v59 = vrot.slane %v897_v30, 2 }
  0xb7   : > { %1436 = vmatmul.msk.bf16.gmra.mxu1 %vm304_vm1, %v782_v42  ;;  %1468 = vmatmul.msk.bf16.gmra.mxu2 %vm304_vm1, %v906_v43  ;;  %v732_v61 = vpop.f32.mrf.mxu0  ;;  %v908_v63 = vsel %vm771_vm4, %v905_v36, %v907_v59 }
  0xba   : > { %v467_v51 = vpop.f32.mrf.mxu2  ;;  %1486 = vmatmul.msk.bf16.gmra.mxu3 %vm304_vm1, %v1042_v47  ;;  %1503 = vmatmul.msk.bf16.gmra.mxu0 %vm304_vm1, %v1134_v48 }
  0xbb   : > { %v492_v52 = vadd.f32 %v467_v51, %v386_v21 }
  0xbc   : > { %v392_v53 = vpop.f32.mrf.mxu1 }
  0xbd   : > { %v618_v54 = vadd.f32 %v593_v31, %v492_v52  ;;  %v393_v55 = vadd.f32 %v392_v53, %v336_v1  ;;  %v598_v56 = vpop.f32.mrf.mxu3 }
  0xbf   : > { %v734_v57 = vpop.f32.mrf.mxu0  ;;  %v1869_v58 = vadd.f32 %v727_v22, %v618_v54 }
  0xc2   : > { %v469_v39 = vpop.f32.mrf.mxu2 }
  0xc3   : > { %v493_v60 = vadd.f32 %v469_v39, %v388_v29 }
  0xc4   : > { %v395_v62 = vpop.f32.mrf.mxu1 }
  0xc5   : > { %v619_v25 = vadd.f32 %v595_v46, %v493_v60  ;;  %v396_v10 = vadd.f32 %v395_v62, %v1834_v0  ;;  %v600_v7 = vpop.f32.mrf.mxu3 }
  0xc7   : > { %1469 = vmatmul.msk.bf16.gmra.mxu2 %vm304_vm1, %v908_v63  ;;  %v737_v49 = vpop.f32.mrf.mxu0  ;;  %v1874_v3 = vadd.f32 %v729_v32, %v619_v25 }
  0xca   : > { %v472_v1 = vpop.f32.mrf.mxu2 }
  0xcb   : > { %v494_v4 = vadd.f32 %v472_v1, %v391_v44 }
  0xcc   : > { %v397_v5 = vpop.f32.mrf.mxu1 }
  0xcd   : > { %v620_v6 = vadd.f32 %v598_v56, %v494_v4  ;;  %v398_v12 = vadd.f32 %v397_v5, %v1845_v14  ;;  %v603_v13 = vpop.f32.mrf.mxu3  ;;  %v1899_v5 = vld [vmem:[%s1966_s2] ss:$0 sm:$0xff] }
  0xcf   : > { %v739_v15 = vpop.f32.mrf.mxu0  ;;  %v1877_v16 = vadd.f32 %v732_v61, %v620_v6 }
  0xd2   : > { %v474_v17 = vpop.f32.mrf.mxu2 }
  0xd3   : > { %v495_v18 = vadd.f32 %v474_v17, %v393_v55 }
  0xd4   : > { %v400_v19 = vpop.f32.mrf.mxu1 }
  0xd5   : > { %v621_v0 = vadd.f32 %v600_v7, %v495_v18  ;;  %v401_v20 = vadd.f32 %v400_v19, %v344_v8  ;;  %v605_v21 = vpop.f32.mrf.mxu3 }
  0xd7   : > { %v742_v41 = vpop.f32.mrf.mxu0  ;;  %v1879_v22 = vadd.f32 %v734_v57, %v621_v0 }
  0xda   : > { %v477_v23 = vpop.f32.mrf.mxu2 }
  0xdb   : > { %v496_v24 = vadd.f32 %v477_v23, %v396_v10 }
  0xdc   : > { %v402_v11 = vpop.f32.mrf.mxu1 }
  0xdd   : > { %v622_v26 = vadd.f32 %v603_v13, %v496_v24  ;;  %v403_v27 = vadd.f32 %v402_v11, %v346_v37  ;;  %v608_v29 = vpop.f32.mrf.mxu3  ;;  %v1905_v13 = vld [vmem:[%s1967_s3] ss:$0 sm:$0xff] }
  0xdf   : > { %v744_v14 = vpop.f32.mrf.mxu0  ;;  %v1881_v31 = vadd.f32 %v737_v49, %v622_v26 }
  0xe2   : > { %v479_v32 = vpop.f32.mrf.mxu2 }
  0xe3   : > { %v497_v33 = vadd.f32 %v479_v32, %v398_v12 }
  0xe4   : > { %v405_v34 = vpop.f32.mrf.mxu1 }
  0xe5   : > { %v623_v35 = vadd.f32 %v605_v21, %v497_v33  ;;  %v406_v36 = vadd.f32 %v405_v34, %v1840_v2  ;;  %v610_v8 = vpop.f32.mrf.mxu3 }
  0xe7   : > { %v1884_v38 = vadd.f32 %v739_v15, %v623_v35  ;;  %v747_v40 = vpop.f32.mrf.mxu0 }
  0xea   : > { %v482_v9 = vpop.f32.mrf.mxu2 }
  0xeb   : > { %v498_v42 = vadd.f32 %v482_v9, %v401_v20 }
  0xec   : > { %v407_v43 = vpop.f32.mrf.mxu1 }
  0xed   : > { %v624_v44 = vadd.f32 %v608_v29, %v498_v42  ;;  %v408_v37 = vadd.f32 %v407_v43, %v1850_v28  ;;  %v613_v46 = vpop.f32.mrf.mxu3 }
  0xef   : > { %v1887_v45 = vadd.f32 %v742_v41, %v624_v44  ;;  %v749_v61 = vpop.f32.mrf.mxu0 }
  0xf2   : > { %v484_v47 = vpop.f32.mrf.mxu2 }
  0xf3   : > { %v499_v48 = vadd.f32 %v484_v47, %v403_v27 }
  0xf4   : > { %v819_v50 = vpop.f32.mrf.mxu1 }
  0xf5   : > { %v625_v51 = vadd.f32 %v610_v8, %v499_v48  ;;  %v615_v52 = vpop.f32.mrf.mxu3  ;;  %v844_v7 = vadd.f32 %v819_v50, %v1869_v58 }
  0xf7   : > { %v1889_v2 = vadd.f32 %v744_v14, %v625_v51  ;;  %v1171_v54 = vpop.f32.mrf.mxu0 }
  0xfa   : > { %v487_v53 = vpop.f32.mrf.mxu2 }
  0xfb   : > { %v500_v30 = vadd.f32 %v487_v53, %v406_v36 }
  0xfc   : > { %v821_v57 = vpop.f32.mrf.mxu1 }
  0xfd   : > { %v626_v55 = vadd.f32 %v613_v46, %v500_v30  ;;  %v1079_v56 = vpop.f32.mrf.mxu3  ;;  %v845_v17 = vadd.f32 %v821_v57, %v1874_v3 }
  0xff   : > { %v1891_v59 = vadd.f32 %v747_v40, %v626_v55  ;;  %v1173_v63 = vpop.f32.mrf.mxu0 }
 0x102   : > { %v489_v28 = vpop.f32.mrf.mxu2 }
 0x103   : > { %v501_v39 = vadd.f32 %v489_v28, %v408_v37 }
 0x104   : > { %v824_v10 = vpop.f32.mrf.mxu1 }
 0x105   : > { %v627_v60 = vadd.f32 %v615_v52, %v501_v39  ;;  %v1081_v62 = vpop.f32.mrf.mxu3  ;;  %v846_v23 = vadd.f32 %v824_v10, %v1877_v16 }
 0x107   : > { %v1893_v25 = vadd.f32 %v749_v61, %v627_v60  ;;  %v1176_v15 = vpop.f32.mrf.mxu0 }
 0x10a   : > { %v945_v49 = vpop.f32.mrf.mxu2 }
 0x10b   : > { %v970_v1 = vadd.f32 %v945_v49, %v844_v7 }
 0x10c   : > { %v826_v18 = vpop.f32.mrf.mxu1 }
 0x10d   : > { %v1104_v4 = vadd.f32 %v1079_v56, %v970_v1  ;;  %v1084_v6 = vpop.f32.mrf.mxu3  ;;  %v847_v34 = vadd.f32 %v826_v18, %v1879_v22 }
 0x10f   : > { %v1196_v12 = vadd.f32 %v1171_v54, %v1104_v4  ;;  %v1178_v26 = vpop.f32.mrf.mxu0 }
 0x111   : > { %v1210_v58 = vmul.f32 %v1899_v5, %v1196_v12 }
 0x112   : > { %v947_v19 = vpop.f32.mrf.mxu2 }
 0x113   : > { %v1224_v0 = vadd.f32 %v1905_v13, %v1210_v58  ;;  %v971_v20 = vadd.f32 %v947_v19, %v845_v17 }
 0x114   : > { %v829_v14 = vpop.f32.mrf.mxu1 }
 0x115   : > { %1235 = vst.msk [vmem:[%s1912_s14] sm:$0xff] %vm1234_vm7, %v1224_v0  ;;  %v1105_v21 = vadd.f32 %v1081_v62, %v971_v20  ;;  %v1086_v3 = vpop.f32.mrf.mxu3  ;;  %v848_v37 = vadd.f32 %v829_v14, %v1881_v31 }
 0x117   : > { %v1197_v41 = vadd.f32 %v1173_v63, %v1105_v21  ;;  %v1181_v9 = vpop.f32.mrf.mxu0 }
 0x119   : > { %v1211_v24 = vmul.f32 %v1899_v5, %v1197_v41 }
 0x11a   : > { %v950_v11 = vpop.f32.mrf.mxu2 }
 0x11b   : > { %v1225_v27 = vadd.f32 %v1905_v13, %v1211_v24  ;;  %v972_v29 = vadd.f32 %v950_v11, %v846_v23 }
 0x11c   : > { %v831_v43 = vpop.f32.mrf.mxu1 }
 0x11d   : > { %1236 = vst.msk [vmem:[%s1912_s14 + $0x8] sm:$0xff] %vm1234_vm7, %v1225_v27  ;;  %v1106_v32 = vadd.f32 %v1084_v6, %v972_v29  ;;  %v1089_v16 = vpop.f32.mrf.mxu3  ;;  %v849_v30 = vadd.f32 %v831_v43, %v1884_v38 }
 0x11f   : > { %v1198_v33 = vadd.f32 %v1176_v15, %v1106_v32  ;;  %v1183_v51 = vpop.f32.mrf.mxu0 }
 0x121   : > { %v1212_v35 = vmul.f32 %v1899_v5, %v1198_v33 }
 0x122   : > { %v952_v36 = vpop.f32.mrf.mxu2 }
 0x123   : > { %v1226_v8 = vadd.f32 %v1905_v13, %v1212_v35  ;;  %v973_v40 = vadd.f32 %v952_v36, %v847_v34 }
 0x124   : > { %v834_v53 = vpop.f32.mrf.mxu1 }
 0x125   : > { %1237 = vst.msk [vmem:[%s1912_s14 + $0x10] sm:$0xff] %vm1234_vm7, %v1226_v8  ;;  %v1107_v42 = vadd.f32 %v1086_v3, %v973_v40  ;;  %v1091_v48 = vpop.f32.mrf.mxu3  ;;  %v850_v62 = vadd.f32 %v834_v53, %v1887_v45 }
 0x127   : > { %v1199_v44 = vadd.f32 %v1178_v26, %v1107_v42  ;;  %v1186_v60 = vpop.f32.mrf.mxu0 }
 0x129   : > { %v1213_v46 = vmul.f32 %v1899_v5, %v1199_v44 }
 0x12a   : > { %v955_v22 = vpop.f32.mrf.mxu2 }
 0x12b   : > { %v1227_v47 = vadd.f32 %v1905_v13, %v1213_v46  ;;  %v974_v61 = vadd.f32 %v955_v22, %v848_v37 }
 0x12c   : > { %v836_v10 = vpop.f32.mrf.mxu1 }
 0x12d   : > { %1238 = vst.msk [vmem:[%s1912_s14 + $0x18] sm:$0xff] %vm1234_vm7, %v1227_v47  ;;  %v1108_v50 = vadd.f32 %v1089_v16, %v974_v61  ;;  %v1094_v28 = vpop.f32.mrf.mxu3  ;;  %v851_v12 = vadd.f32 %v836_v10, %v1889_v2 }
 0x12f   : > { %v1200_v52 = vadd.f32 %v1181_v9, %v1108_v50  ;;  %v1188_v17 = vpop.f32.mrf.mxu0 }
 0x131   : > { %v1214_v54 = vmul.f32 %v1899_v5, %v1200_v52 }
 0x132   : > { %v957_v31 = vpop.f32.mrf.mxu2 }
 0x133   : > { %v1228_v55 = vadd.f32 %v1905_v13, %v1214_v54  ;;  %v975_v56 = vadd.f32 %v957_v31, %v849_v30 }
 0x134   : > { %v839_v19 = vpop.f32.mrf.mxu1 }
 0x135   : > { %1239 = vst.msk [vmem:[%s1912_s14 + $0x20] sm:$0xff] %vm1234_vm7, %v1228_v55  ;;  %v1109_v57 = vadd.f32 %v1091_v48, %v975_v56  ;;  %v1096_v6 = vpop.f32.mrf.mxu3  ;;  %v852_v21 = vadd.f32 %v839_v19, %v1891_v59 }
 0x137   : > { %v1201_v39 = vadd.f32 %v1183_v51, %v1109_v57  ;;  %v1191_v11 = vpop.f32.mrf.mxu0 }
 0x139   : > { %v1215_v63 = vmul.f32 %v1899_v5, %v1201_v39 }
 0x13a   : > { %v960_v38 = vpop.f32.mrf.mxu2 }
 0x13b   : > { %v1229_v7 = vadd.f32 %v1905_v13, %v1215_v63  ;;  %v976_v49 = vadd.f32 %v960_v38, %v850_v62 }
 0x13c   : > { %v841_v27 = vpop.f32.mrf.mxu1 }
 0x13d   : > { %1240 = vst.msk [vmem:[%s1912_s14 + $0x28] sm:$0xff] %vm1234_vm7, %v1229_v7  ;;  %v1110_v1 = vadd.f32 %v1094_v28, %v976_v49  ;;  %v1099_v3 = vpop.f32.mrf.mxu3  ;;  %v853_v14 = vadd.f32 %v841_v27, %v1893_v25 }
 0x13f   : > { %v1202_v4 = vadd.f32 %v1186_v60, %v1110_v1  ;;  %v1193_v16 = vpop.f32.mrf.mxu0 }
 0x141   : > { %v1216_v15 = vmul.f32 %v1899_v5, %v1202_v4 }
 0x142   : > { %v962_v45 = vpop.f32.mrf.mxu2 }
 0x143   : > { %v1230_v58 = vadd.f32 %v1905_v13, %v1216_v15  ;;  %v977_v18 = vadd.f32 %v962_v45, %v851_v12 }
 0x145   : > { %1241 = vst.msk [vmem:[%s1912_s14 + $0x30] sm:$0xff] %vm1234_vm7, %v1230_v58  ;;  %v1111_v0 = vadd.f32 %v1096_v6, %v977_v18  ;;  %v1101_v35 = vpop.f32.mrf.mxu3 }
 0x147   : > { %v1203_v20 = vadd.f32 %v1188_v17, %v1111_v0 }
 0x149   : > { %v1217_v41 = vmul.f32 %v1899_v5, %v1203_v20 }
 0x14a   : > { %v965_v2 = vpop.f32.mrf.mxu2 }
 0x14b   : > { %v1231_v23 = vadd.f32 %v1905_v13, %v1217_v41  ;;  %v978_v24 = vadd.f32 %v965_v2, %v852_v21 }
 0x14d   : > { %1242 = vst.msk [vmem:[%s1912_s14 + $0x38] sm:$0xff] %vm1234_vm7, %v1231_v23  ;;  %v1112_v26 = vadd.f32 %v1099_v3, %v978_v24 }
 0x14f   : > { %v1204_v29 = vadd.f32 %v1191_v11, %v1112_v26 }
 0x151   : > { %v1218_v32 = vmul.f32 %v1899_v5, %v1204_v29 }
 0x152   : > { %v967_v59 = vpop.f32.mrf.mxu2 }
 0x153   : > { %v1232_v33 = vadd.f32 %v1905_v13, %v1218_v32  ;;  %v979_v34 = vadd.f32 %v967_v59, %v853_v14 }
 0x155   : > { %1243 = vst.msk [vmem:[%s1912_s14 + $0x40] sm:$0xff] %vm1234_vm7, %v1232_v33  ;;  %v1113_v36 = vadd.f32 %v1101_v35, %v979_v34 }
 0x157   : > { %v1205_v8 = vadd.f32 %v1193_v16, %v1113_v36 }
 0x159   : > { %v1219_v40 = vmul.f32 %v1899_v5, %v1205_v8 }
 0x15b   : > { %v1233_v9 = vadd.f32 %v1905_v13, %v1219_v40 }
 0x15d   : > { %1244 = vst.msk [vmem:[%s1912_s14 + $0x48] sm:$0xff] %vm1234_vm7, %v1233_v9 }
 0x15e PF: > { %s14_s15 = sadd.s32 1, %s1567_s15  }
 0x15f   : > { %p11_p4 = scmp.ge.s32.totalorder %s14_s15, 4  }
 0x161   :  { %13 = sbr.rel (!%p11_p4) target bundleno = 1 (0x1), region = 74 }

// kernel: densenet_forward.29
= control target key start
LH: loop header
LB: loop body
LE: loop exit
PB: predicated region body
PF: predicated region fallthrough
CT: control target
= control target key end

     0   :  { %11 = vsyncpa [#allocation3], 0  ;;  %s723_s0 = inlined_call_operand.vmem [shape: f32[128,24], index: 0, kind: input, shape index: {}]   ;;  %s724_s1 = inlined_call_operand.hbm [shape: f32[1,24], index: 1, kind: input, shape index: {}]   ;;  %s725_s2 = inlined_call_operand.hbm [shape: f32[1,24], index: 2, kind: input, shape index: {}]   ;;  %s726_s3 = inlined_call_operand.vmem [shape: bf16[24,32], index: 3, kind: input, shape index: {}]   ;;  %s727_s4 = inlined_call_operand.hbm [shape: f32[1,32], index: 4, kind: input, shape index: {}]   ;;  %s728_s5 = inlined_call_operand.hbm [shape: f32[1,32], index: 5, kind: input, shape index: {}]   ;;  %s729_s6 = inlined_call_operand.vmem [shape: bf16[128,32], index: 6, kind: output, shape index: {}]  }
   0x1   :  { %12 = vsyncpa [#allocation5], 0  ;;  %s32_s23 = sshll.u32 %s725_s2, 4  ;;  %s33_s23 = int_to_ptr.hbm [resolvable:$true] %s32_s23 }
   0x2   :  { %13 = vsyncpa [#allocation8], 0  ;;  %s474_s24 = smov [#allocation4]   ;;  %s21_s28 = sshll.u32 %s724_s1, 4  ;;  %s22_s28 = int_to_ptr.hbm [resolvable:$true] %s21_s28 }
   0x3   :  { %s34_s25 = sshll.u32 %s474_s24, 4  ;;  %s475_s29 = smov [#allocation2]   ;;  %s35_s25 = int_to_ptr.vmem [resolvable:$true] %s34_s25 }
   0x4   :  { %37 = dma.hbm_to_vmem [thread:$0]  %s33_s23, 16, %s35_s25, [#allocation5]  }
   0x5   :  { %s23_s30 = sshll.u32 %s475_s29, 4  ;;  %s45_s9 = sshll.u32 %s727_s4, 4  ;;  %s24_s30 = int_to_ptr.vmem [resolvable:$true] %s23_s30  ;;  %s46_s9 = int_to_ptr.hbm [resolvable:$true] %s45_s9 }
   0x6   :  { %26 = dma.hbm_to_vmem [thread:$0]  %s22_s28, 16, %s24_s30, [#allocation3]  }
   0x7   :  { %s56_s11 = sshll.u32 %s728_s5, 4  ;;  %s476_s12 = smov [#allocation6]   ;;  %s57_s11 = int_to_ptr.hbm [resolvable:$true] %s56_s11 }
   0x8   :  { %s47_s13 = sshll.u32 %s476_s12, 4  ;;  %s477_s1 = smov [#allocation7]   ;;  %s48_s13 = int_to_ptr.vmem [resolvable:$true] %s47_s13 }
   0x9   :  { %50 = dma.hbm_to_vmem [thread:$0]  %s46_s9, 16, %s48_s13, [#allocation5]  }
   0xa   :  { %s58_s14 = sshll.u32 %s477_s1, 4  ;;  %s59_s14 = int_to_ptr.vmem [resolvable:$true] %s58_s14 }
   0xb   :  { %61 = dma.hbm_to_vmem [thread:$0]  %s57_s11, 16, %s59_s14, [#allocation8]  }
   0xc   :  { %468 = dma.done.wait [#allocation3], 16  }
   0xd   :  { %469 = vsyncadd [#allocation3], 4294967280 }
   0xe   :  { %470 = dma.done.wait [#allocation5], 32  }
   0xf   :  { %471 = vsyncadd [#allocation5], 4294967264 }
  0x10   :  { %472 = dma.done.wait [#allocation8], 16  }
  0x11   :  { %473 = vsyncadd [#allocation8], 4294967280  ;;  %v161_v0 = vld [vmem:[%s726_s3 + $0x8] sm:$0xf]  ;;  %v79_v1 = vld [vmem:[%s723_s0] sm:$0xff]  ;;  %vm196_vm0 = vcmask 1043456  }
  0x12   :  { %v167_v2 = vunpack.c.l.b16 %v161_v0  ;;  %v80_v3 = vld [vmem:[%s723_s0 + $0x8] sm:$0xff]  ;;  %v534_v4 = vld [vmem:[#allocation2] ss:$0 sm:$0xff]  ;;  %v536_v5 = vld [vmem:[#allocation4] ss:$0 sm:$0xff]  ;;  %vm171_vm1 = vcmask 195584  }
  0x13   :  { %v83_v6 = vld [vmem:[%s723_s0 + $0x20] sm:$0xff]  ;;  %v99_v8 = vmul.f32 %v534_v4, %v79_v1  ;;  %v100_v9 = vmul.f32 %v534_v4, %v80_v3  ;;  %v84_v10 = vld [vmem:[%s723_s0 + $0x28] sm:$0xff]  ;;  %v81_v37 = vld [vmem:[%s723_s0 + $0x10] sm:$0xff]  ;;  %vm321_vm2 = vcmask 257024  }
  0x14   :  { %v169_v7 = vpack.c.b16 %v167_v2, %v167_v2  ;;  %v103_v11 = vmul.f32 %v534_v4, %v83_v6  ;;  %v87_v12 = vld [vmem:[%s723_s0 + $0x40] sm:$0xff]  ;;  %v88_v13 = vld [vmem:[%s723_s0 + $0x48] sm:$0xff]  ;;  %v104_v14 = vmul.f32 %v534_v4, %v84_v10  ;;  %v82_v41 = vld [vmem:[%s723_s0 + $0x18] sm:$0xff]  ;;  %v101_v48 = vmul.f32 %v534_v4, %v81_v37 }
  0x15   :  { %v107_v15 = vmul.f32 %v534_v4, %v87_v12  ;;  %v108_v16 = vmul.f32 %v534_v4, %v88_v13  ;;  %v91_v17 = vld [vmem:[%s723_s0 + $0x60] sm:$0xff]  ;;  %v119_v19 = vadd.f32 %v536_v5, %v99_v8  ;;  %v120_v20 = vadd.f32 %v536_v5, %v100_v9  ;;  %v92_v22 = vld [vmem:[%s723_s0 + $0x68] sm:$0xff]  ;;  %v85_v42 = vld [vmem:[%s723_s0 + $0x30] sm:$0xff] }
  0x16   :  { %v198_v18 = vsel %vm196_vm0, %v169_v7, 0  ;;  %v123_v21 = vadd.f32 %v536_v5, %v103_v11  ;;  %v357_v23 = vld [vmem:[%s726_s3] sm:$0xff]  ;;  %v124_v24 = vadd.f32 %v536_v5, %v104_v14  ;;  %v111_v30 = vmul.f32 %v534_v4, %v91_v17  ;;  %v86_v43 = vld [vmem:[%s723_s0 + $0x38] sm:$0xff]  ;;  %v89_v45 = vld [vmem:[%s723_s0 + $0x50] sm:$0xff] }
  0x17   :  { %206 = vmatpush.bf16.msra.mxu0 %v198_v18  ;;  %358 = vmatpush.bf16.msra.mxu1 %v198_v18  ;;  %v127_v25 = vadd.f32 %v536_v5, %v107_v15  ;;  %v128_v26 = vadd.f32 %v536_v5, %v108_v16  ;;  %v135_v27 = vmax.f32 %v119_v19, 0.0  ;;  %v136_v28 = vmax.f32 %v120_v20, 0.0  ;;  %v90_v46 = vld [vmem:[%s723_s0 + $0x58] sm:$0xff]  ;;  %v93_v52 = vld [vmem:[%s723_s0 + $0x70] sm:$0xff]  ;;  %v625_v16 = vld [vmem:[#allocation7] ss:$0 sm:$0xff] }
  0x18   :  { %359 = vmatpush.bf16.msra.mxu2 %v198_v18  ;;  %360 = vmatpush.bf16.msra.mxu3 %v198_v18  ;;  %v139_v29 = vmax.f32 %v123_v21, 0.0  ;;  %v140_v31 = vmax.f32 %v124_v24, 0.0  ;;  %v112_v34 = vmul.f32 %v534_v4, %v92_v22  ;;  %v131_v36 = vadd.f32 %v536_v5, %v111_v30  ;;  %v94_v53 = vld [vmem:[%s723_s0 + $0x78] sm:$0xff] }
  0x19   :  { %v143_v32 = vmax.f32 %v127_v25, 0.0  ;;  %v144_v33 = vmax.f32 %v128_v26, 0.0  ;;  %v151_v35 = vpack.c.bf16 %v136_v28, %v135_v27  ;;  %v102_v49 = vmul.f32 %v534_v4, %v82_v41 }
  0x1a   :  { %v153_v38 = vpack.c.bf16 %v140_v31, %v139_v29  ;;  %v132_v40 = vadd.f32 %v536_v5, %v112_v34  ;;  %v147_v44 = vmax.f32 %v131_v36, 0.0  ;;  %v105_v50 = vmul.f32 %v534_v4, %v85_v42 }
  0x1b   :  { %207 = vmatpush.bf16.msra.mxu0 %v357_v23  ;;  %361 = vmatpush.bf16.msra.mxu1 %v357_v23  ;;  %v155_v39 = vpack.c.bf16 %v144_v33, %v143_v32  ;;  %v106_v51 = vmul.f32 %v534_v4, %v86_v43  ;;  %v109_v55 = vmul.f32 %v534_v4, %v89_v45 }
  0x1c   :  { %362 = vmatpush.bf16.msra.mxu2 %v357_v23  ;;  %363 = vmatpush.bf16.msra.mxu3 %v357_v23  ;;  %v148_v47 = vmax.f32 %v132_v40, 0.0  ;;  %v110_v56 = vmul.f32 %v534_v4, %v90_v46  ;;  %v113_v57 = vmul.f32 %v534_v4, %v93_v52  ;;  %v114_v58 = vmul.f32 %v534_v4, %v94_v53 }
  0x1d   :  { %v121_v59 = vadd.f32 %v536_v5, %v101_v48  ;;  %v122_v60 = vadd.f32 %v536_v5, %v102_v49  ;;  %v125_v61 = vadd.f32 %v536_v5, %v105_v50  ;;  %v126_v62 = vadd.f32 %v536_v5, %v106_v51 }
  0x1e   :  { %349 = vmatmul.msk.bf16.vlgmr.msra.gmra.mxu0 %vm171_vm1, %v151_v35  ;;  %351 = vmatmul.msk.bf16.vlgmr.msra.gmra.mxu1 %vm171_vm1, %v153_v38  ;;  %v157_v54 = vpack.c.bf16 %v148_v47, %v147_v44  ;;  %v129_v63 = vadd.f32 %v536_v5, %v109_v55  ;;  %v130_v0 = vadd.f32 %v536_v5, %v110_v56 }
  0x1f   :  { %353 = vmatmul.msk.bf16.vlgmr.msra.gmra.mxu2 %vm171_vm1, %v155_v39  ;;  %v133_v1 = vadd.f32 %v536_v5, %v113_v57  ;;  %v134_v2 = vadd.f32 %v536_v5, %v114_v58  ;;  %v137_v3 = vmax.f32 %v121_v59, 0.0  ;;  %v138_v6 = vmax.f32 %v122_v60, 0.0  ;;  %v623_v5 = vld [vmem:[#allocation6] ss:$0 sm:$0xff] }
  0x20   :  { %355 = vmatmul.msk.bf16.vlgmr.msra.gmra.mxu3 %vm171_vm1, %v157_v54  ;;  %v141_v7 = vmax.f32 %v125_v61, 0.0  ;;  %v142_v4 = vmax.f32 %v126_v62, 0.0  ;;  %v145_v8 = vmax.f32 %v129_v63, 0.0  ;;  %v146_v9 = vmax.f32 %v130_v0, 0.0 }
  0x21   :  { %v149_v10 = vmax.f32 %v133_v1, 0.0  ;;  %v150_v11 = vmax.f32 %v134_v2, 0.0  ;;  %v152_v12 = vpack.c.bf16 %v138_v6, %v137_v3 }
  0x22   :  { %v154_v13 = vpack.c.bf16 %v142_v4, %v141_v7  ;;  %v156_v14 = vpack.c.bf16 %v146_v9, %v145_v8 }
  0x23   :  { %v158_v15 = vpack.c.bf16 %v150_v11, %v149_v10 }
  0x2e   :  { %350 = vmatmul.msk.bf16.gmra.mxu0 %vm171_vm1, %v152_v12  ;;  %352 = vmatmul.msk.bf16.gmra.mxu1 %vm171_vm1, %v154_v13 }
  0x2f   :  { %354 = vmatmul.msk.bf16.gmra.mxu2 %vm171_vm1, %v156_v14 }
  0x30   :  { %356 = vmatmul.msk.bf16.gmra.mxu3 %vm171_vm1, %v158_v15 }
  0x9b   :  { %v209_v17 = vpop.f32.mrf.mxu0  ;;  %v219_v18 = vpop.f32.mrf.mxu1 }
  0x9c   :  { %v253_v19 = vmul.f32 %v623_v5, %v209_v17  ;;  %v257_v20 = vmul.f32 %v623_v5, %v219_v18 }
  0x9e   :  { %v273_v21 = vadd.f32 %v625_v16, %v253_v19  ;;  %v277_v22 = vadd.f32 %v625_v16, %v257_v20 }
  0xa0   :  { %v289_v23 = vmax.f32 %v273_v21, 0.0  ;;  %v293_v24 = vmax.f32 %v277_v22, 0.0 }
  0xa2   :  { %v305_v25 = vpack.c.bf16 %v289_v23, %v289_v23  ;;  %v309_v26 = vpack.c.bf16 %v293_v24, %v293_v24  ;;  %v229_v27 = vpop.f32.mrf.mxu2 }
  0xa3   :  { %v261_v28 = vmul.f32 %v623_v5, %v229_v27  ;;  %v211_v29 = vpop.f32.mrf.mxu0  ;;  %v221_v30 = vpop.f32.mrf.mxu1 }
  0xa4   :  { %322 = vst.msk [vmem:[%s729_s6] sm:$0xf] %vm321_vm2, %v305_v25  ;;  %v239_v31 = vpop.f32.mrf.mxu3  ;;  %v254_v32 = vmul.f32 %v623_v5, %v211_v29  ;;  %v258_v33 = vmul.f32 %v623_v5, %v221_v30 }
  0xa5   :  { %326 = vst.msk [vmem:[%s729_s6 + $0x10] sm:$0xf] %vm321_vm2, %v309_v26  ;;  %v281_v34 = vadd.f32 %v625_v16, %v261_v28  ;;  %v265_v35 = vmul.f32 %v623_v5, %v239_v31 }
  0xa6   :  { %v274_v36 = vadd.f32 %v625_v16, %v254_v32  ;;  %v278_v37 = vadd.f32 %v625_v16, %v258_v33 }
  0xa7   :  { %v297_v38 = vmax.f32 %v281_v34, 0.0  ;;  %v285_v39 = vadd.f32 %v625_v16, %v265_v35 }
  0xa8   :  { %v290_v40 = vmax.f32 %v274_v36, 0.0  ;;  %v294_v41 = vmax.f32 %v278_v37, 0.0 }
  0xa9   :  { %v313_v42 = vpack.c.bf16 %v297_v38, %v297_v38  ;;  %v301_v43 = vmax.f32 %v285_v39, 0.0 }
  0xaa   :  { %v306_v44 = vpack.c.bf16 %v290_v40, %v290_v40  ;;  %v310_v45 = vpack.c.bf16 %v294_v41, %v294_v41  ;;  %v231_v46 = vpop.f32.mrf.mxu2 }
  0xab   :  { %330 = vst.msk [vmem:[%s729_s6 + $0x20] sm:$0xf] %vm321_vm2, %v313_v42  ;;  %v317_v47 = vpack.c.bf16 %v301_v43, %v301_v43  ;;  %v262_v48 = vmul.f32 %v623_v5, %v231_v46  ;;  %v214_v49 = vpop.f32.mrf.mxu0  ;;  %v224_v50 = vpop.f32.mrf.mxu1 }
  0xac   :  { %323 = vst.msk [vmem:[%s729_s6 + $0x4] sm:$0xf] %vm321_vm2, %v306_v44  ;;  %v241_v51 = vpop.f32.mrf.mxu3  ;;  %v255_v52 = vmul.f32 %v623_v5, %v214_v49  ;;  %v259_v53 = vmul.f32 %v623_v5, %v224_v50 }
  0xad   :  { %334 = vst.msk [vmem:[%s729_s6 + $0x30] sm:$0xf] %vm321_vm2, %v317_v47  ;;  %v282_v54 = vadd.f32 %v625_v16, %v262_v48  ;;  %v266_v55 = vmul.f32 %v623_v5, %v241_v51 }
  0xae   :  { %327 = vst.msk [vmem:[%s729_s6 + $0x14] sm:$0xf] %vm321_vm2, %v310_v45  ;;  %v275_v56 = vadd.f32 %v625_v16, %v255_v52  ;;  %v279_v57 = vadd.f32 %v625_v16, %v259_v53 }
  0xaf   :  { %v298_v58 = vmax.f32 %v282_v54, 0.0  ;;  %v286_v59 = vadd.f32 %v625_v16, %v266_v55 }
  0xb0   :  { %v291_v60 = vmax.f32 %v275_v56, 0.0  ;;  %v295_v61 = vmax.f32 %v279_v57, 0.0 }
  0xb1   :  { %v314_v62 = vpack.c.bf16 %v298_v58, %v298_v58  ;;  %v302_v63 = vmax.f32 %v286_v59, 0.0 }
  0xb2   :  { %v307_v0 = vpack.c.bf16 %v291_v60, %v291_v60  ;;  %v311_v1 = vpack.c.bf16 %v295_v61, %v295_v61  ;;  %v234_v2 = vpop.f32.mrf.mxu2 }
  0xb3   :  { %331 = vst.msk [vmem:[%s729_s6 + $0x24] sm:$0xf] %vm321_vm2, %v314_v62  ;;  %v318_v3 = vpack.c.bf16 %v302_v63, %v302_v63  ;;  %v263_v6 = vmul.f32 %v623_v5, %v234_v2  ;;  %v216_v7 = vpop.f32.mrf.mxu0  ;;  %v226_v4 = vpop.f32.mrf.mxu1 }
  0xb4   :  { %324 = vst.msk [vmem:[%s729_s6 + $0x8] sm:$0xf] %vm321_vm2, %v307_v0  ;;  %v244_v8 = vpop.f32.mrf.mxu3  ;;  %v256_v9 = vmul.f32 %v623_v5, %v216_v7  ;;  %v260_v10 = vmul.f32 %v623_v5, %v226_v4 }
  0xb5   :  { %335 = vst.msk [vmem:[%s729_s6 + $0x34] sm:$0xf] %vm321_vm2, %v318_v3  ;;  %v283_v11 = vadd.f32 %v625_v16, %v263_v6  ;;  %v267_v12 = vmul.f32 %v623_v5, %v244_v8 }
  0xb6   :  { %328 = vst.msk [vmem:[%s729_s6 + $0x18] sm:$0xf] %vm321_vm2, %v311_v1  ;;  %v276_v13 = vadd.f32 %v625_v16, %v256_v9  ;;  %v280_v14 = vadd.f32 %v625_v16, %v260_v10 }
  0xb7   :  { %v299_v15 = vmax.f32 %v283_v11, 0.0  ;;  %v287_v17 = vadd.f32 %v625_v16, %v267_v12 }
  0xb8   :  { %v292_v18 = vmax.f32 %v276_v13, 0.0  ;;  %v296_v19 = vmax.f32 %v280_v14, 0.0 }
  0xb9   :  { %v315_v20 = vpack.c.bf16 %v299_v15, %v299_v15  ;;  %v303_v21 = vmax.f32 %v287_v17, 0.0 }
  0xba   :  { %v308_v22 = vpack.c.bf16 %v292_v18, %v292_v18  ;;  %v312_v23 = vpack.c.bf16 %v296_v19, %v296_v19  ;;  %v236_v24 = vpop.f32.mrf.mxu2 }
  0xbb   :  { %332 = vst.msk [vmem:[%s729_s6 + $0x28] sm:$0xf] %vm321_vm2, %v315_v20  ;;  %v319_v25 = vpack.c.bf16 %v303_v21, %v303_v21  ;;  %v264_v26 = vmul.f32 %v623_v5, %v236_v24 }
  0xbc   :  { %325 = vst.msk [vmem:[%s729_s6 + $0xc] sm:$0xf] %vm321_vm2, %v308_v22  ;;  %v246_v27 = vpop.f32.mrf.mxu3 }
  0xbd   :  { %336 = vst.msk [vmem:[%s729_s6 + $0x38] sm:$0xf] %vm321_vm2, %v319_v25  ;;  %v284_v28 = vadd.f32 %v625_v16, %v264_v26  ;;  %v268_v29 = vmul.f32 %v623_v5, %v246_v27 }
  0xbe   :  { %329 = vst.msk [vmem:[%s729_s6 + $0x1c] sm:$0xf] %vm321_vm2, %v312_v23 }
  0xbf   :  { %v300_v30 = vmax.f32 %v284_v28, 0.0  ;;  %v288_v31 = vadd.f32 %v625_v16, %v268_v29 }
  0xc1   :  { %v316_v32 = vpack.c.bf16 %v300_v30, %v300_v30  ;;  %v304_v33 = vmax.f32 %v288_v31, 0.0 }
  0xc3   :  { %333 = vst.msk [vmem:[%s729_s6 + $0x2c] sm:$0xf] %vm321_vm2, %v316_v32  ;;  %v320_v34 = vpack.c.bf16 %v304_v33, %v304_v33 }
  0xc5   :  { %337 = vst.msk [vmem:[%s729_s6 + $0x3c] sm:$0xf] %vm321_vm2, %v320_v34 }
  0xc6   :  { %342 = vsyncpa [#allocation3], 1 }
  0xc7   :  { %343 = vsyncpa [#allocation5], 1 }
  0xc8   :  { %344 = vsyncpa [#allocation8], 1 }

// kernel: densenet_forward.31
= control target key start
LH: loop header
LB: loop body
LE: loop exit
PB: predicated region body
PF: predicated region fallthrough
CT: control target
= control target key end

     0   :  { %vm120_vm0 = vcmask 261120   ;;  %vm234_vm1 = vcmask 130048   ;;  %s528_s3 = inlined_call_operand.vmem [shape: bf16[32,16], index: 3, kind: input, shape index: {}]   ;;  %s529_s0 = inlined_call_operand.vmem [shape: f32[128,32], index: 0, kind: input, shape index: {}]   ;;  %s530_s1 = inlined_call_operand.vmem [shape: f32[1,32], index: 1, kind: input, shape index: {}]   ;;  %s531_s2 = inlined_call_operand.vmem [shape: f32[1,32], index: 2, kind: input, shape index: {}]   ;;  %s532_s4 = inlined_call_operand.vmem [shape: f32[1,16], index: 4, kind: input, shape index: {}]   ;;  %s533_s5 = inlined_call_operand.vmem [shape: f32[1,16], index: 5, kind: input, shape index: {}]   ;;  %s534_s6 = inlined_call_operand.vmem [shape: f32[128,16], index: 6, kind: output, shape index: {}]  }
   0x1   :  { %v272_v0 = vld [vmem:[%s528_s3 + $0x8] sm:$0xff]  ;;  %v271_v1 = vld [vmem:[%s528_s3] sm:$0xff]  ;;  %v26_v25 = vld [vmem:[%s529_s0 + $0x10] sm:$0xff] }
   0x2   :  { %v24_v2 = vld [vmem:[%s529_s0] sm:$0xff]  ;;  %v25_v3 = vld [vmem:[%s529_s0 + $0x8] sm:$0xff]  ;;  %151 = vmatpush.bf16.msra.mxu0 %v272_v0  ;;  %273 = vmatpush.bf16.msra.mxu1 %v272_v0  ;;  %v27_v30 = vld [vmem:[%s529_s0 + $0x18] sm:$0xff] }
   0x3   :  { %v333_v4 = vld [vmem:[%s530_s1] ss:$0 sm:$0xff]  ;;  %274 = vmatpush.bf16.msra.mxu2 %v272_v0  ;;  %275 = vmatpush.bf16.msra.mxu3 %v272_v0  ;;  %v29_v9 = vld [vmem:[%s529_s0 + $0x28] sm:$0xff]  ;;  %v30_v35 = vld [vmem:[%s529_s0 + $0x30] sm:$0xff] }
   0x4   :  { %v338_v5 = vld [vmem:[%s531_s2] ss:$0 sm:$0xff]  ;;  %v44_v7 = vmul.f32 %v333_v4, %v24_v2  ;;  %v45_v8 = vmul.f32 %v333_v4, %v25_v3  ;;  %v33_v12 = vld [vmem:[%s529_s0 + $0x48] sm:$0xff]  ;;  %v49_v13 = vmul.f32 %v333_v4, %v29_v9  ;;  %v31_v38 = vld [vmem:[%s529_s0 + $0x38] sm:$0xff]  ;;  %v46_v45 = vmul.f32 %v333_v4, %v26_v25 }
   0x5   :  { %v28_v6 = vld [vmem:[%s529_s0 + $0x20] sm:$0xff]  ;;  %v53_v15 = vmul.f32 %v333_v4, %v33_v12  ;;  %v37_v17 = vld [vmem:[%s529_s0 + $0x68] sm:$0xff]  ;;  %v34_v39 = vld [vmem:[%s529_s0 + $0x50] sm:$0xff]  ;;  %v47_v46 = vmul.f32 %v333_v4, %v27_v30  ;;  %v50_v47 = vmul.f32 %v333_v4, %v30_v35  ;;  %v51_v48 = vmul.f32 %v333_v4, %v31_v38 }
   0x6   :  { %v48_v10 = vmul.f32 %v333_v4, %v28_v6  ;;  %v32_v11 = vld [vmem:[%s529_s0 + $0x40] sm:$0xff]  ;;  %v64_v18 = vadd.f32 %v338_v5, %v44_v7  ;;  %v65_v19 = vadd.f32 %v338_v5, %v45_v8  ;;  %152 = vmatpush.bf16.msra.mxu0 %v271_v1  ;;  %276 = vmatpush.bf16.msra.mxu1 %v271_v1  ;;  %v35_v40 = vld [vmem:[%s529_s0 + $0x58] sm:$0xff]  ;;  %v38_v51 = vld [vmem:[%s529_s0 + $0x70] sm:$0xff] }
   0x7   :  { %v52_v14 = vmul.f32 %v333_v4, %v32_v11  ;;  %v36_v16 = vld [vmem:[%s529_s0 + $0x60] sm:$0xff]  ;;  %v69_v22 = vadd.f32 %v338_v5, %v49_v13  ;;  %v73_v24 = vadd.f32 %v338_v5, %v53_v15  ;;  %277 = vmatpush.bf16.msra.mxu2 %v271_v1  ;;  %278 = vmatpush.bf16.msra.mxu3 %v271_v1  ;;  %v39_v52 = vld [vmem:[%s529_s0 + $0x78] sm:$0xff] }
   0x8   :  { %v68_v20 = vadd.f32 %v338_v5, %v48_v10  ;;  %v56_v21 = vmul.f32 %v333_v4, %v36_v16  ;;  %v80_v26 = vmax.f32 %v64_v18, 0.0  ;;  %v81_v27 = vmax.f32 %v65_v19, 0.0  ;;  %v430_v13 = vld [vmem:[%s533_s5] ss:$0 sm:$0xff] }
   0x9   :  { %v72_v23 = vadd.f32 %v338_v5, %v52_v14  ;;  %v57_v29 = vmul.f32 %v333_v4, %v37_v17  ;;  %v85_v31 = vmax.f32 %v69_v22, 0.0  ;;  %v89_v33 = vmax.f32 %v73_v24, 0.0 }
   0xa   :  { %v84_v28 = vmax.f32 %v68_v20, 0.0  ;;  %v76_v34 = vadd.f32 %v338_v5, %v56_v21  ;;  %v96_v36 = vpack.c.bf16 %v81_v27, %v80_v26  ;;  %v54_v49 = vmul.f32 %v333_v4, %v34_v39 }
   0xb   :  { %v88_v32 = vmax.f32 %v72_v23, 0.0  ;;  %v77_v37 = vadd.f32 %v338_v5, %v57_v29  ;;  %v55_v50 = vmul.f32 %v333_v4, %v35_v40  ;;  %v66_v54 = vadd.f32 %v338_v5, %v46_v45 }
   0xc   :  { %v98_v41 = vpack.c.bf16 %v85_v31, %v84_v28  ;;  %v92_v43 = vmax.f32 %v76_v34, 0.0  ;;  %263 = vmatmul.msk.bf16.vlgmr.msra.gmra.mxu0 %vm120_vm0, %v96_v36  ;;  %v67_v55 = vadd.f32 %v338_v5, %v47_v46  ;;  %v58_v56 = vmul.f32 %v333_v4, %v38_v51 }
   0xd   :  { %v100_v42 = vpack.c.bf16 %v89_v33, %v88_v32  ;;  %v93_v44 = vmax.f32 %v77_v37, 0.0  ;;  %v59_v57 = vmul.f32 %v333_v4, %v39_v52  ;;  %v70_v58 = vadd.f32 %v338_v5, %v50_v47 }
   0xe   :  { %265 = vmatmul.msk.bf16.vlgmr.msra.gmra.mxu1 %vm120_vm0, %v98_v41  ;;  %v71_v59 = vadd.f32 %v338_v5, %v51_v48  ;;  %v74_v60 = vadd.f32 %v338_v5, %v54_v49  ;;  %v75_v61 = vadd.f32 %v338_v5, %v55_v50  ;;  %v82_v62 = vmax.f32 %v66_v54, 0.0 }
   0xf   :  { %267 = vmatmul.msk.bf16.vlgmr.msra.gmra.mxu2 %vm120_vm0, %v100_v42  ;;  %v102_v53 = vpack.c.bf16 %v93_v44, %v92_v43  ;;  %v83_v63 = vmax.f32 %v67_v55, 0.0  ;;  %v78_v0 = vadd.f32 %v338_v5, %v58_v56  ;;  %v79_v1 = vadd.f32 %v338_v5, %v59_v57  ;;  %v425_v5 = vld [vmem:[%s532_s4] ss:$0 sm:$0xff] }
  0x10   :  { %v86_v2 = vmax.f32 %v70_v58, 0.0  ;;  %v87_v3 = vmax.f32 %v71_v59, 0.0  ;;  %v90_v6 = vmax.f32 %v74_v60, 0.0  ;;  %v91_v7 = vmax.f32 %v75_v61, 0.0 }
  0x11   :  { %269 = vmatmul.msk.bf16.vlgmr.msra.gmra.mxu3 %vm120_vm0, %v102_v53  ;;  %v97_v8 = vpack.c.bf16 %v83_v63, %v82_v62  ;;  %v94_v4 = vmax.f32 %v78_v0, 0.0  ;;  %v95_v9 = vmax.f32 %v79_v1, 0.0 }
  0x12   :  { %v99_v10 = vpack.c.bf16 %v87_v3, %v86_v2  ;;  %v101_v11 = vpack.c.bf16 %v91_v7, %v90_v6 }
  0x13   :  { %v103_v12 = vpack.c.bf16 %v95_v9, %v94_v4 }
  0x1c   :  { %264 = vmatmul.msk.bf16.gmra.mxu0 %vm120_vm0, %v97_v8 }
  0x1e   :  { %266 = vmatmul.msk.bf16.gmra.mxu1 %vm120_vm0, %v99_v10 }
  0x1f   :  { %268 = vmatmul.msk.bf16.gmra.mxu2 %vm120_vm0, %v101_v11 }
  0x21   :  { %270 = vmatmul.msk.bf16.gmra.mxu3 %vm120_vm0, %v103_v12 }
  0x89   :  { %v154_v14 = vpop.f32.mrf.mxu0 }
  0x8a   :  { %v198_v15 = vmul.f32 %v425_v5, %v154_v14 }
  0x8b   :  { %v164_v16 = vpop.f32.mrf.mxu1 }
  0x8c   :  { %v202_v17 = vmul.f32 %v425_v5, %v164_v16  ;;  %v218_v18 = vadd.f32 %v430_v13, %v198_v15 }
  0x8e   :  { %v222_v19 = vadd.f32 %v430_v13, %v202_v17  ;;  %235 = vst.msk [vmem:[%s534_s6] sm:$0xff] %vm234_vm1, %v218_v18 }
  0x90   :  { %239 = vst.msk [vmem:[%s534_s6 + $0x20] sm:$0xff] %vm234_vm1, %v222_v19 }
  0x91   :  { %v156_v22 = vpop.f32.mrf.mxu0 }
  0x92   :  { %v174_v20 = vpop.f32.mrf.mxu2  ;;  %v199_v23 = vmul.f32 %v425_v5, %v156_v22 }
  0x93   :  { %v206_v21 = vmul.f32 %v425_v5, %v174_v20  ;;  %v166_v24 = vpop.f32.mrf.mxu1 }
  0x94   :  { %v184_v26 = vpop.f32.mrf.mxu3  ;;  %v203_v27 = vmul.f32 %v425_v5, %v166_v24  ;;  %v219_v29 = vadd.f32 %v430_v13, %v199_v23 }
  0x95   :  { %v226_v25 = vadd.f32 %v430_v13, %v206_v21  ;;  %v210_v28 = vmul.f32 %v425_v5, %v184_v26 }
  0x96   :  { %v223_v30 = vadd.f32 %v430_v13, %v203_v27  ;;  %236 = vst.msk [vmem:[%s534_s6 + $0x8] sm:$0xff] %vm234_vm1, %v219_v29 }
  0x97   :  { %243 = vst.msk [vmem:[%s534_s6 + $0x40] sm:$0xff] %vm234_vm1, %v226_v25  ;;  %v230_v31 = vadd.f32 %v430_v13, %v210_v28 }
  0x98   :  { %240 = vst.msk [vmem:[%s534_s6 + $0x28] sm:$0xff] %vm234_vm1, %v223_v30 }
  0x99   :  { %247 = vst.msk [vmem:[%s534_s6 + $0x60] sm:$0xff] %vm234_vm1, %v230_v31  ;;  %v159_v34 = vpop.f32.mrf.mxu0 }
  0x9a   :  { %v176_v32 = vpop.f32.mrf.mxu2  ;;  %v200_v35 = vmul.f32 %v425_v5, %v159_v34 }
  0x9b   :  { %v207_v33 = vmul.f32 %v425_v5, %v176_v32  ;;  %v169_v36 = vpop.f32.mrf.mxu1 }
  0x9c   :  { %v186_v38 = vpop.f32.mrf.mxu3  ;;  %v204_v39 = vmul.f32 %v425_v5, %v169_v36  ;;  %v220_v41 = vadd.f32 %v430_v13, %v200_v35 }
  0x9d   :  { %v227_v37 = vadd.f32 %v430_v13, %v207_v33  ;;  %v211_v40 = vmul.f32 %v425_v5, %v186_v38 }
  0x9e   :  { %v224_v42 = vadd.f32 %v430_v13, %v204_v39  ;;  %237 = vst.msk [vmem:[%s534_s6 + $0x10] sm:$0xff] %vm234_vm1, %v220_v41 }
  0x9f   :  { %244 = vst.msk [vmem:[%s534_s6 + $0x48] sm:$0xff] %vm234_vm1, %v227_v37  ;;  %v231_v43 = vadd.f32 %v430_v13, %v211_v40 }
  0xa0   :  { %241 = vst.msk [vmem:[%s534_s6 + $0x30] sm:$0xff] %vm234_vm1, %v224_v42 }
  0xa1   :  { %248 = vst.msk [vmem:[%s534_s6 + $0x68] sm:$0xff] %vm234_vm1, %v231_v43  ;;  %v161_v46 = vpop.f32.mrf.mxu0 }
  0xa2   :  { %v179_v44 = vpop.f32.mrf.mxu2  ;;  %v201_v47 = vmul.f32 %v425_v5, %v161_v46 }
  0xa3   :  { %v208_v45 = vmul.f32 %v425_v5, %v179_v44  ;;  %v171_v48 = vpop.f32.mrf.mxu1 }
  0xa4   :  { %v189_v50 = vpop.f32.mrf.mxu3  ;;  %v205_v51 = vmul.f32 %v425_v5, %v171_v48  ;;  %v221_v53 = vadd.f32 %v430_v13, %v201_v47 }
  0xa5   :  { %v228_v49 = vadd.f32 %v430_v13, %v208_v45  ;;  %v212_v52 = vmul.f32 %v425_v5, %v189_v50 }
  0xa6   :  { %v225_v54 = vadd.f32 %v430_v13, %v205_v51  ;;  %238 = vst.msk [vmem:[%s534_s6 + $0x18] sm:$0xff] %vm234_vm1, %v221_v53 }
  0xa7   :  { %245 = vst.msk [vmem:[%s534_s6 + $0x50] sm:$0xff] %vm234_vm1, %v228_v49  ;;  %v232_v55 = vadd.f32 %v430_v13, %v212_v52 }
  0xa8   :  { %242 = vst.msk [vmem:[%s534_s6 + $0x38] sm:$0xff] %vm234_vm1, %v225_v54 }
  0xa9   :  { %249 = vst.msk [vmem:[%s534_s6 + $0x70] sm:$0xff] %vm234_vm1, %v232_v55 }
  0xaa   :  { %v181_v56 = vpop.f32.mrf.mxu2 }
  0xab   :  { %v209_v57 = vmul.f32 %v425_v5, %v181_v56 }
  0xac   :  { %v191_v59 = vpop.f32.mrf.mxu3 }
  0xad   :  { %v229_v58 = vadd.f32 %v430_v13, %v209_v57  ;;  %v213_v60 = vmul.f32 %v425_v5, %v191_v59 }
  0xaf   :  { %246 = vst.msk [vmem:[%s534_s6 + $0x58] sm:$0xff] %vm234_vm1, %v229_v58  ;;  %v233_v61 = vadd.f32 %v430_v13, %v213_v60 }
  0xb1   :  { %250 = vst.msk [vmem:[%s534_s6 + $0x78] sm:$0xff] %vm234_vm1, %v233_v61 }

// kernel: densenet_forward.25
= control target key start
LH: loop header
LB: loop body
LE: loop exit
PB: predicated region body
PF: predicated region fallthrough
CT: control target
= control target key end

     0   :  { %s5082_s15 = smov 0   ;;  %s6655_s0 = inlined_call_operand.vmem [shape: f32[2,380,12], index: 0, kind: input, shape index: {}]   ;;  %s6656_s1 = inlined_call_operand.vmem [shape: bf16[16,12,16], index: 1, kind: input, shape index: {}]   ;;  %s6657_s2 = inlined_call_operand.vmem [shape: f32[1,16], index: 2, kind: input, shape index: {}]   ;;  %s6658_s3 = inlined_call_operand.vmem [shape: f32[1,16], index: 3, kind: input, shape index: {}]   ;;  %s6659_s4 = inlined_call_operand.vmem [shape: f32[2,304,16], index: 4, kind: output, shape index: {}]  }
   0x1 LB: > { %s4612_s16 = sadd.s32 4294967295, %s5055_s15   ;;  %p4616_p0 = scmp.ge.s32.totalorder %s5055_s15, 1  ;;  %s5055_s15 = sphi %s5082_s15, %s14_s15  }
   0x2   : > { %p162_p1 = scmp.lt.s32.totalorder %s5055_s15, 3 }
   0x4   : > { %p163_p2 = pnand %p4616_p0, %p162_p1 }
   0x5   : > { %p188_p3 = scmp.lt.s32.totalorder (!%p163_p2), %s4612_s16, 1 }
   0x6   : > { %166 = sbr.rel (%p163_p2) target bundleno = 1374 (0x55e), region = 36 }
   0xb   : > { %v4623_v0 = vld [vmem:[%s6656_s1 + $0x8] sm:$0xf]  ;;  %v5020_v1 = vld [vmem:[%s6656_s1 + $0x8] sm:$0x30]  ;;  %vm381_vm0 = vcmask 1045504   ;;  %s6661_s16 = smov (!%p188_p3, %s4612_s16), 1 }
   0xc   : > { %v4624_v2 = vor.u32 %v5020_v1, %v4623_v0  ;;  %v4646_v3 = vld [vmem:[%s6656_s1] sm:$0xf]  ;;  %v5019_v4 = vld [vmem:[%s6656_s1] sm:$0x30]  ;;  %v4671_v5 = vld [vmem:[%s6656_s1 + $0x10] sm:$0xf] }
   0xd   : > { %v4647_v6 = vor.u32 %v5019_v4, %v4646_v3  ;;  %v5021_v7 = vld [vmem:[%s6656_s1 + $0x10] sm:$0x30]  ;;  %v4696_v8 = vld [vmem:[%s6656_s1 + $0x18] sm:$0xf]  ;;  %v5022_v9 = vld [vmem:[%s6656_s1 + $0x18] sm:$0x30] }
   0xe   : > { %v383_v10 = vsel %vm381_vm0, %v4624_v2, 0  ;;  %v4672_v11 = vor.u32 %v5021_v7, %v4671_v5  ;;  %v4697_v12 = vor.u32 %v5022_v9, %v4696_v8  ;;  %v4771_v13 = vld [vmem:[%s6656_s1 + $0x30] sm:$0xf]  ;;  %v5025_v15 = vld [vmem:[%s6656_s1 + $0x30] sm:$0x30]  ;;  %s5035_s13 = smul.u32 384, %s6661_s16 }
   0xf   : > { %392 = vmatpush.bf16.msra.mxu0 %v383_v10  ;;  %v552_v14 = vsel %vm381_vm0, %v4647_v6, 0  ;;  %v4721_v16 = vld [vmem:[%s6656_s1 + $0x20] sm:$0xf]  ;;  %v4772_v19 = vor.u32 %v5025_v15, %v4771_v13  ;;  %v5023_v20 = vld [vmem:[%s6656_s1 + $0x20] sm:$0x30]  ;;  %vm323_vm1 = vcmask 97280  }
  0x10   : > { %561 = vmatpush.bf16.msra.mxu1 %v552_v14  ;;  %v781_v17 = vsel %vm381_vm0, %v4672_v11, 0  ;;  %v1048_v18 = vsel %vm381_vm0, %v4697_v12, 0  ;;  %v4722_v21 = vor.u32 %v5023_v20, %v4721_v16  ;;  %v4796_v22 = vld [vmem:[%s6656_s1 + $0x38] sm:$0xf]  ;;  %v5026_v23 = vld [vmem:[%s6656_s1 + $0x38] sm:$0x30]  ;;  %s5145_s26 = scalar_lea.vmem %s6655_s0, %s5035_s13 }
  0x11   : > { %790 = vmatpush.bf16.msra.mxu2 %v781_v17  ;;  %1057 = vmatpush.bf16.msra.mxu3 %v1048_v18  ;;  %v4746_v24 = vld [vmem:[%s6656_s1 + $0x28] sm:$0xf]  ;;  %v1849_v25 = vsel %vm381_vm0, %v4772_v19, 0  ;;  %v4797_v26 = vor.u32 %v5026_v23, %v4796_v22  ;;  %v5024_v27 = vld [vmem:[%s6656_s1 + $0x28] sm:$0x30]  ;;  %v199_v30 = vld [vmem:[%s5145_s26] sm:$0xff] }
  0x12   : > { %v258_v28 = vld [vmem:[%s5145_s26 + $0x1] sm:$0xff]  ;;  %v259_v29 = vld [vmem:[%s5145_s26 + $0x9] sm:$0xff]  ;;  %v1315_v31 = vsel %vm381_vm0, %v4722_v21, 0  ;;  %v4747_v32 = vor.u32 %v5024_v27, %v4746_v24  ;;  %v260_v44 = vld [vmem:[%s5145_s26 + $0x11] sm:$0xff]  ;;  %s5036_s18 = smul.u32 304, %s6661_s16  ;;  %vm4518_vm2 = vcmask 130048  }
  0x13   : > { %v296_v33 = vpack.c.bf16 %v259_v29, %v258_v28  ;;  %v200_v34 = vld [vmem:[%s5145_s26 + $0x8] sm:$0xff]  ;;  %1324 = vmatpush.bf16.msrb.mxu0 %v1315_v31  ;;  %v2116_v37 = vsel %vm381_vm0, %v4797_v26, 0  ;;  %v261_v45 = vld [vmem:[%s5145_s26 + $0x19] sm:$0xff]  ;;  %v201_v46 = vld [vmem:[%s5145_s26 + $0x10] sm:$0xff] }
  0x14   : > { %v658_v35 = vld [vmem:[%s5145_s26 + $0x2] sm:$0xff]  ;;  %v659_v36 = vld [vmem:[%s5145_s26 + $0xa] sm:$0xff]  ;;  %v237_v38 = vpack.c.bf16 %v200_v34, %v199_v30  ;;  %v1582_v42 = vsel %vm381_vm0, %v4747_v32, 0  ;;  %v202_v47 = vld [vmem:[%s5145_s26 + $0x18] sm:$0xff]  ;;  %v297_v52 = vpack.c.bf16 %v261_v45, %v260_v44  ;;  %s6342_s21 = scalar_lea.vmem %s6659_s4, %s5036_s18 }
  0x15   : > { %1858 = vmatpush.bf16.msrb.mxu2 %v1849_v25  ;;  %v696_v39 = vpack.c.bf16 %v659_v36, %v658_v35  ;;  %v925_v40 = vld [vmem:[%s5145_s26 + $0x3] sm:$0xff]  ;;  %v926_v41 = vld [vmem:[%s5145_s26 + $0xb] sm:$0xff]  ;;  %2125 = vmatpush.bf16.msrb.mxu3 %v2116_v37  ;;  %v661_v49 = vld [vmem:[%s5145_s26 + $0x1a] sm:$0xff]  ;;  %v238_v53 = vpack.c.bf16 %v202_v47, %v201_v46 }
  0x16   : > { %4625 = vmatmul.msk.bf16.vlgmr.msra.gmra.mxu0 %vm323_vm1, %v296_v33  ;;  %v963_v43 = vpack.c.bf16 %v926_v41, %v925_v40  ;;  %1591 = vmatpush.bf16.msrb.mxu1 %v1582_v42  ;;  %v660_v48 = vld [vmem:[%s5145_s26 + $0x12] sm:$0xff]  ;;  %v928_v51 = vld [vmem:[%s5145_s26 + $0x1b] sm:$0xff]  ;;  %v263_v57 = vld [vmem:[%s5145_s26 + $0x29] sm:$0xff] }
  0x17   : > { %4648 = vmatmul.msk.bf16.vlgmr.msra.gmra.mxu1 %vm323_vm1, %v237_v38  ;;  %4673 = vmatmul.msk.bf16.vlgmr.msra.gmra.mxu2 %vm323_vm1, %v696_v39  ;;  %v927_v50 = vld [vmem:[%s5145_s26 + $0x13] sm:$0xff]  ;;  %v697_v54 = vpack.c.bf16 %v661_v49, %v660_v48  ;;  %v262_v56 = vld [vmem:[%s5145_s26 + $0x21] sm:$0xff]  ;;  %v663_v61 = vld [vmem:[%s5145_s26 + $0x2a] sm:$0xff] }
  0x18   : > { %4698 = vmatmul.msk.bf16.vlgmr.msra.gmra.mxu3 %vm323_vm1, %v963_v43  ;;  %v5174_v55 = vpack.c.bf16 %v928_v51, %v927_v50  ;;  %v203_v58 = vld [vmem:[%s5145_s26 + $0x20] sm:$0xff]  ;;  %v204_v59 = vld [vmem:[%s5145_s26 + $0x28] sm:$0xff]  ;;  %v298_v0 = vpack.c.bf16 %v263_v57, %v262_v56  ;;  %v264_v4 = vld [vmem:[%s5145_s26 + $0x31] sm:$0xff] }
  0x19   : > { %v662_v60 = vld [vmem:[%s5145_s26 + $0x22] sm:$0xff]  ;;  %v930_v63 = vld [vmem:[%s5145_s26 + $0x2b] sm:$0xff]  ;;  %v239_v1 = vpack.c.bf16 %v204_v59, %v203_v58  ;;  %v265_v5 = vld [vmem:[%s5145_s26 + $0x39] sm:$0xff] }
  0x1a   : > { %v929_v62 = vld [vmem:[%s5145_s26 + $0x23] sm:$0xff]  ;;  %v698_v2 = vpack.c.bf16 %v663_v61, %v662_v60  ;;  %v205_v6 = vld [vmem:[%s5145_s26 + $0x30] sm:$0xff]  ;;  %v206_v7 = vld [vmem:[%s5145_s26 + $0x38] sm:$0xff]  ;;  %v299_v12 = vpack.c.bf16 %v265_v5, %v264_v4 }
  0x1b   : > { %v5189_v3 = vpack.c.bf16 %v930_v63, %v929_v62  ;;  %v664_v8 = vld [vmem:[%s5145_s26 + $0x32] sm:$0xff]  ;;  %v665_v9 = vld [vmem:[%s5145_s26 + $0x3a] sm:$0xff]  ;;  %v240_v13 = vpack.c.bf16 %v206_v7, %v205_v6  ;;  %v267_v17 = vld [vmem:[%s5145_s26 + $0x49] sm:$0xff] }
  0x1c   : > { %v931_v10 = vld [vmem:[%s5145_s26 + $0x33] sm:$0xff]  ;;  %v932_v11 = vld [vmem:[%s5145_s26 + $0x3b] sm:$0xff]  ;;  %v699_v14 = vpack.c.bf16 %v665_v9, %v664_v8  ;;  %v208_v19 = vld [vmem:[%s5145_s26 + $0x48] sm:$0xff] }
  0x1d   : > { %v5204_v15 = vpack.c.bf16 %v932_v11, %v931_v10  ;;  %v266_v16 = vld [vmem:[%s5145_s26 + $0x41] sm:$0xff]  ;;  %v667_v21 = vld [vmem:[%s5145_s26 + $0x4a] sm:$0xff]  ;;  %v269_v29 = vld [vmem:[%s5145_s26 + $0x59] sm:$0xff] }
  0x1e   : > { %v207_v18 = vld [vmem:[%s5145_s26 + $0x40] sm:$0xff]  ;;  %v934_v23 = vld [vmem:[%s5145_s26 + $0x4b] sm:$0xff]  ;;  %v300_v24 = vpack.c.bf16 %v267_v17, %v266_v16  ;;  %v210_v31 = vld [vmem:[%s5145_s26 + $0x58] sm:$0xff] }
  0x1f   : > { %v666_v20 = vld [vmem:[%s5145_s26 + $0x42] sm:$0xff]  ;;  %v241_v25 = vpack.c.bf16 %v208_v19, %v207_v18  ;;  %v268_v28 = vld [vmem:[%s5145_s26 + $0x51] sm:$0xff]  ;;  %v669_v33 = vld [vmem:[%s5145_s26 + $0x5a] sm:$0xff] }
  0x20   : > { %v933_v22 = vld [vmem:[%s5145_s26 + $0x43] sm:$0xff]  ;;  %v700_v26 = vpack.c.bf16 %v667_v21, %v666_v20  ;;  %v209_v30 = vld [vmem:[%s5145_s26 + $0x50] sm:$0xff]  ;;  %v936_v35 = vld [vmem:[%s5145_s26 + $0x5b] sm:$0xff]  ;;  %v301_v36 = vpack.c.bf16 %v269_v29, %v268_v28 }
  0x21   : > { %v5219_v27 = vpack.c.bf16 %v934_v23, %v933_v22  ;;  %v668_v32 = vld [vmem:[%s5145_s26 + $0x52] sm:$0xff]  ;;  %v242_v37 = vpack.c.bf16 %v210_v31, %v209_v30  ;;  %v270_v40 = vld [vmem:[%s5145_s26 + $0x61] sm:$0xff]  ;;  %v271_v41 = vld [vmem:[%s5145_s26 + $0x69] sm:$0xff] }
  0x22   : > { %v935_v34 = vld [vmem:[%s5145_s26 + $0x53] sm:$0xff]  ;;  %v701_v38 = vpack.c.bf16 %v669_v33, %v668_v32  ;;  %v211_v42 = vld [vmem:[%s5145_s26 + $0x60] sm:$0xff]  ;;  %v212_v43 = vld [vmem:[%s5145_s26 + $0x68] sm:$0xff]  ;;  %v302_v48 = vpack.c.bf16 %v271_v41, %v270_v40 }
  0x23   : > { %v5234_v39 = vpack.c.bf16 %v936_v35, %v935_v34  ;;  %v670_v44 = vld [vmem:[%s5145_s26 + $0x62] sm:$0xff]  ;;  %v671_v45 = vld [vmem:[%s5145_s26 + $0x6a] sm:$0xff]  ;;  %v243_v49 = vpack.c.bf16 %v212_v43, %v211_v42  ;;  %v214_v56 = vld [vmem:[%s5145_s26 + $0x78] sm:$0xff] }
  0x24   : > { %v937_v46 = vld [vmem:[%s5145_s26 + $0x63] sm:$0xff]  ;;  %v938_v47 = vld [vmem:[%s5145_s26 + $0x6b] sm:$0xff]  ;;  %v702_v50 = vpack.c.bf16 %v671_v45, %v670_v44  ;;  %v673_v58 = vld [vmem:[%s5145_s26 + $0x7a] sm:$0xff] }
  0x25   : > { %v969_v51 = vpack.c.bf16 %v938_v47, %v937_v46  ;;  %v672_v57 = vld [vmem:[%s5145_s26 + $0x72] sm:$0xff]  ;;  %v940_v60 = vld [vmem:[%s5145_s26 + $0x7b] sm:$0xff]  ;;  %v216_v5 = vld [vmem:[%s5145_s26 + $0x88] sm:$0xff] }
  0x26   : > { %4626 = vmatmul.msk.bf16.gmra.mxu0 %vm323_vm1, %v297_v52  ;;  %v272_v52 = vld [vmem:[%s5145_s26 + $0x71] sm:$0xff]  ;;  %v703_v63 = vpack.c.bf16 %v673_v58, %v672_v57  ;;  %v215_v4 = vld [vmem:[%s5145_s26 + $0x80] sm:$0xff]  ;;  %v220_v57 = vld [vmem:[%s5145_s26 + $0xa8] sm:$0xff] }
  0x27   : > { %4649 = vmatmul.msk.bf16.gmra.mxu1 %vm323_vm1, %v238_v53  ;;  %4674 = vmatmul.msk.bf16.gmra.mxu2 %vm323_vm1, %v697_v54  ;;  %v273_v53 = vld [vmem:[%s5145_s26 + $0x79] sm:$0xff]  ;;  %v213_v54 = vld [vmem:[%s5145_s26 + $0x70] sm:$0xff]  ;;  %v674_v6 = vld [vmem:[%s5145_s26 + $0x82] sm:$0xff] }
  0x28   : > { %4699 = vmatmul.msk.bf16.gmra.mxu3 %vm323_vm1, %v5174_v55  ;;  %v939_v59 = vld [vmem:[%s5145_s26 + $0x73] sm:$0xff]  ;;  %v303_v61 = vpack.c.bf16 %v273_v53, %v272_v52  ;;  %v244_v62 = vpack.c.bf16 %v214_v56, %v213_v54  ;;  %v675_v7 = vld [vmem:[%s5145_s26 + $0x8a] sm:$0xff]  ;;  %v944_v33 = vld [vmem:[%s5145_s26 + $0x9b] sm:$0xff] }
  0x29   : > { %v941_v8 = vld [vmem:[%s5145_s26 + $0x83] sm:$0xff]  ;;  %v942_v9 = vld [vmem:[%s5145_s26 + $0x8b] sm:$0xff]  ;;  %v218_v29 = vld [vmem:[%s5145_s26 + $0x98] sm:$0xff] }
  0x2a   : > { %v971_v16 = vpack.c.bf16 %v942_v9, %v941_v8  ;;  %v217_v28 = vld [vmem:[%s5145_s26 + $0x90] sm:$0xff]  ;;  %v677_v31 = vld [vmem:[%s5145_s26 + $0x9a] sm:$0xff]  ;;  %v678_v58 = vld [vmem:[%s5145_s26 + $0xa2] sm:$0xff] }
  0x2b   : > { %v676_v30 = vld [vmem:[%s5145_s26 + $0x92] sm:$0xff]  ;;  %v246_v40 = vpack.c.bf16 %v218_v29, %v217_v28  ;;  %v278_v53 = vld [vmem:[%s5145_s26 + $0xa1] sm:$0xff]  ;;  %v279_v54 = vld [vmem:[%s5145_s26 + $0xa9] sm:$0xff] }
  0x2c   : > { %v943_v32 = vld [vmem:[%s5145_s26 + $0x93] sm:$0xff]  ;;  %v705_v41 = vpack.c.bf16 %v677_v31, %v676_v30  ;;  %v219_v56 = vld [vmem:[%s5145_s26 + $0xa0] sm:$0xff] }
  0x2d   : > { %v972_v43 = vpack.c.bf16 %v944_v33, %v943_v32 }
  0x36   : > { %4627 = vmatmul.msk.bf16.gmra.mxu0 %vm323_vm1, %v298_v0  ;;  %v970_v0 = vpack.c.bf16 %v940_v60, %v939_v59  ;;  %v679_v59 = vld [vmem:[%s5145_s26 + $0xaa] sm:$0xff] }
  0x37   : > { %4650 = vmatmul.msk.bf16.gmra.mxu1 %vm323_vm1, %v239_v1  ;;  %4675 = vmatmul.msk.bf16.gmra.mxu2 %vm323_vm1, %v698_v2  ;;  %v274_v1 = vld [vmem:[%s5145_s26 + $0x81] sm:$0xff]  ;;  %v275_v2 = vld [vmem:[%s5145_s26 + $0x89] sm:$0xff] }
  0x38   : > { %4700 = vmatmul.msk.bf16.gmra.mxu3 %vm323_vm1, %v5189_v3  ;;  %v304_v10 = vpack.c.bf16 %v275_v2, %v274_v1  ;;  %v945_v60 = vld [vmem:[%s5145_s26 + $0xa3] sm:$0xff] }
  0x46   : > { %4628 = vmatmul.msk.bf16.gmra.mxu0 %vm323_vm1, %v299_v12  ;;  %v245_v12 = vpack.c.bf16 %v216_v5, %v215_v4  ;;  %v247_v4 = vpack.c.bf16 %v220_v57, %v219_v56  ;;  %v706_v5 = vpack.c.bf16 %v679_v59, %v678_v58  ;;  %v949_v56 = vld [vmem:[%s5145_s26 + $0xc3] sm:$0xff]  ;;  %v950_v57 = vld [vmem:[%s5145_s26 + $0xcb] sm:$0xff] }
  0x47   : > { %4651 = vmatmul.msk.bf16.gmra.mxu1 %vm323_vm1, %v240_v13  ;;  %4676 = vmatmul.msk.bf16.gmra.mxu2 %vm323_vm1, %v699_v14  ;;  %v704_v13 = vpack.c.bf16 %v675_v7, %v674_v6 }
  0x48   : > { %4701 = vmatmul.msk.bf16.gmra.mxu3 %vm323_vm1, %v5204_v15 }
  0x56   : > { %4629 = vmatmul.msk.bf16.gmra.mxu0 %vm323_vm1, %v300_v24 }
  0x57   : > { %4652 = vmatmul.msk.bf16.gmra.mxu1 %vm323_vm1, %v241_v25  ;;  %4677 = vmatmul.msk.bf16.gmra.mxu2 %vm323_vm1, %v700_v26  ;;  %v276_v25 = vld [vmem:[%s5145_s26 + $0x91] sm:$0xff]  ;;  %v277_v26 = vld [vmem:[%s5145_s26 + $0x99] sm:$0xff] }
  0x58   : > { %4702 = vmatmul.msk.bf16.gmra.mxu3 %vm323_vm1, %v5219_v27  ;;  %v305_v35 = vpack.c.bf16 %v277_v26, %v276_v25  ;;  %v947_v25 = vld [vmem:[%s5145_s26 + $0xb3] sm:$0xff]  ;;  %v948_v26 = vld [vmem:[%s5145_s26 + $0xbb] sm:$0xff] }
  0x66   : > { %4630 = vmatmul.msk.bf16.gmra.mxu0 %vm323_vm1, %v301_v36 }
  0x67   : > { %4653 = vmatmul.msk.bf16.gmra.mxu1 %vm323_vm1, %v242_v37  ;;  %4678 = vmatmul.msk.bf16.gmra.mxu2 %vm323_vm1, %v701_v38 }
  0x68   : > { %4703 = vmatmul.msk.bf16.gmra.mxu3 %vm323_vm1, %v5234_v39 }
  0x76   : > { %4631 = vmatmul.msk.bf16.gmra.mxu0 %vm323_vm1, %v302_v48 }
  0x77   : > { %4654 = vmatmul.msk.bf16.gmra.mxu1 %vm323_vm1, %v243_v49  ;;  %4679 = vmatmul.msk.bf16.gmra.mxu2 %vm323_vm1, %v702_v50 }
  0x78   : > { %4704 = vmatmul.msk.bf16.gmra.mxu3 %vm323_vm1, %v969_v51 }
  0x86   : > { %4632 = vmatmul.msk.bf16.gmra.mxu0 %vm323_vm1, %v303_v61  ;;  %v946_v61 = vld [vmem:[%s5145_s26 + $0xab] sm:$0xff] }
  0x87   : > { %4655 = vmatmul.msk.bf16.gmra.mxu1 %vm323_vm1, %v244_v62  ;;  %4680 = vmatmul.msk.bf16.gmra.mxu2 %vm323_vm1, %v703_v63  ;;  %v306_v63 = vpack.c.bf16 %v279_v54, %v278_v53  ;;  %v973_v7 = vpack.c.bf16 %v946_v61, %v945_v60  ;;  %v682_v53 = vld [vmem:[%s5145_s26 + $0xc2] sm:$0xff]  ;;  %v683_v54 = vld [vmem:[%s5145_s26 + $0xca] sm:$0xff] }
  0x88   : > { %4705 = vmatmul.msk.bf16.gmra.mxu3 %vm323_vm1, %v970_v0 }
  0x93   : > { %v394_v11 = vpop.f32.mrf.mxu0 }
  0x94   : > { %v563_v14 = vpop.f32.mrf.mxu1 }
  0x95   : > { %v564_v17 = vadd.f32 %v563_v14, %v394_v11 }
  0x96   : > { %4633 = vmatmul.msk.bf16.gmra.mxu0 %vm323_vm1, %v304_v10 }
  0x97   : > { %4656 = vmatmul.msk.bf16.gmra.mxu1 %vm323_vm1, %v245_v12  ;;  %4681 = vmatmul.msk.bf16.gmra.mxu2 %vm323_vm1, %v704_v13 }
  0x98   : > { %4706 = vmatmul.msk.bf16.gmra.mxu3 %vm323_vm1, %v971_v16 }
  0x9a   : > { %v792_v18 = vpop.f32.mrf.mxu2 }
  0x9b   : > { %v887_v19 = vadd.f32 %v792_v18, %v564_v17  ;;  %v1059_v20 = vpop.f32.mrf.mxu3  ;;  %v396_v21 = vpop.f32.mrf.mxu0  ;;  %v280_v18 = vld [vmem:[%s5145_s26 + $0xb1] sm:$0xff] }
  0x9c   : > { %v565_v22 = vpop.f32.mrf.mxu1 }
  0x9d   : > { %v5277_v23 = vadd.f32 %v1059_v20, %v887_v19  ;;  %v566_v24 = vadd.f32 %v565_v22, %v396_v21  ;;  %v281_v19 = vld [vmem:[%s5145_s26 + $0xb9] sm:$0xff]  ;;  %v221_v20 = vld [vmem:[%s5145_s26 + $0xb0] sm:$0xff] }
  0x9e   : > { %v222_v21 = vld [vmem:[%s5145_s26 + $0xb8] sm:$0xff]  ;;  %v307_v29 = vpack.c.bf16 %v281_v19, %v280_v18  ;;  %v225_v18 = vld [vmem:[%s5145_s26 + $0xd0] sm:$0xff] }
  0x9f   : > { %v680_v22 = vld [vmem:[%s5145_s26 + $0xb2] sm:$0xff]  ;;  %v248_v33 = vpack.c.bf16 %v222_v21, %v221_v20  ;;  %v685_v21 = vld [vmem:[%s5145_s26 + $0xda] sm:$0xff] }
  0xa0   : > { %v226_v19 = vld [vmem:[%s5145_s26 + $0xd8] sm:$0xff] }
  0xa1   : > { %v684_v20 = vld [vmem:[%s5145_s26 + $0xd2] sm:$0xff] }
  0xa2   : > { %v794_v34 = vpop.f32.mrf.mxu2 }
  0xa3   : > { %v888_v36 = vadd.f32 %v794_v34, %v566_v24  ;;  %v1061_v37 = vpop.f32.mrf.mxu3  ;;  %v399_v38 = vpop.f32.mrf.mxu0  ;;  %v681_v24 = vld [vmem:[%s5145_s26 + $0xba] sm:$0xff] }
  0xa4   : > { %v568_v42 = vpop.f32.mrf.mxu1  ;;  %v707_v34 = vpack.c.bf16 %v681_v24, %v680_v22  ;;  %v951_v22 = vld [vmem:[%s5145_s26 + $0xd3] sm:$0xff]  ;;  %v952_v24 = vld [vmem:[%s5145_s26 + $0xdb] sm:$0xff] }
  0xa5   : > { %v5287_v44 = vadd.f32 %v1061_v37, %v888_v36  ;;  %v569_v45 = vadd.f32 %v568_v42, %v399_v38  ;;  %v974_v36 = vpack.c.bf16 %v948_v26, %v947_v25 }
  0xa6   : > { %4634 = vmatmul.msk.bf16.gmra.mxu0 %vm323_vm1, %v305_v35 }
  0xa7   : > { %4657 = vmatmul.msk.bf16.gmra.mxu1 %vm323_vm1, %v246_v40  ;;  %4682 = vmatmul.msk.bf16.gmra.mxu2 %vm323_vm1, %v705_v41 }
  0xa8   : > { %4707 = vmatmul.msk.bf16.gmra.mxu3 %vm323_vm1, %v972_v43 }
  0xaa   : > { %v797_v46 = vpop.f32.mrf.mxu2 }
  0xab   : > { %v889_v47 = vadd.f32 %v797_v46, %v569_v45  ;;  %v1064_v48 = vpop.f32.mrf.mxu3  ;;  %v401_v49 = vpop.f32.mrf.mxu0 }
  0xac   : > { %v570_v50 = vpop.f32.mrf.mxu1 }
  0xad   : > { %v5293_v51 = vadd.f32 %v1064_v48, %v889_v47  ;;  %v571_v52 = vadd.f32 %v570_v50, %v401_v49  ;;  %v282_v48 = vld [vmem:[%s5145_s26 + $0xc1] sm:$0xff]  ;;  %v283_v49 = vld [vmem:[%s5145_s26 + $0xc9] sm:$0xff] }
  0xae   : > { %v223_v50 = vld [vmem:[%s5145_s26 + $0xc0] sm:$0xff]  ;;  %v308_v59 = vpack.c.bf16 %v283_v49, %v282_v48  ;;  %v287_v49 = vld [vmem:[%s5145_s26 + $0xe9] sm:$0xff] }
  0xaf   : > { %v286_v48 = vld [vmem:[%s5145_s26 + $0xe1] sm:$0xff] }
  0xb2   : > { %v799_v62 = vpop.f32.mrf.mxu2 }
  0xb3   : > { %v890_v0 = vadd.f32 %v799_v62, %v571_v52  ;;  %v1066_v1 = vpop.f32.mrf.mxu3  ;;  %v404_v2 = vpop.f32.mrf.mxu0  ;;  %v224_v52 = vld [vmem:[%s5145_s26 + $0xc8] sm:$0xff] }
  0xb4   : > { %v573_v6 = vpop.f32.mrf.mxu1 }
  0xb5   : > { %v5303_v8 = vadd.f32 %v1066_v1, %v890_v0  ;;  %v574_v9 = vadd.f32 %v573_v6, %v404_v2  ;;  %v708_v0 = vpack.c.bf16 %v683_v54, %v682_v53  ;;  %v975_v2 = vpack.c.bf16 %v950_v57, %v949_v56  ;;  %v686_v53 = vld [vmem:[%s5145_s26 + $0xe2] sm:$0xff]  ;;  %v687_v54 = vld [vmem:[%s5145_s26 + $0xea] sm:$0xff] }
  0xb6   : > { %4635 = vmatmul.msk.bf16.gmra.mxu0 %vm323_vm1, %v306_v63  ;;  %v249_v63 = vpack.c.bf16 %v224_v52, %v223_v50  ;;  %v227_v50 = vld [vmem:[%s5145_s26 + $0xe0] sm:$0xff]  ;;  %v228_v52 = vld [vmem:[%s5145_s26 + $0xe8] sm:$0xff] }
  0xb7   : > { %4658 = vmatmul.msk.bf16.gmra.mxu1 %vm323_vm1, %v247_v4  ;;  %4683 = vmatmul.msk.bf16.gmra.mxu2 %vm323_vm1, %v706_v5  ;;  %v953_v56 = vld [vmem:[%s5145_s26 + $0xe3] sm:$0xff]  ;;  %v954_v57 = vld [vmem:[%s5145_s26 + $0xeb] sm:$0xff] }
  0xb8   : > { %4708 = vmatmul.msk.bf16.gmra.mxu3 %vm323_vm1, %v973_v7 }
  0xba   : > { %v802_v10 = vpop.f32.mrf.mxu2 }
  0xbb   : > { %v891_v11 = vadd.f32 %v802_v10, %v574_v9  ;;  %v1069_v12 = vpop.f32.mrf.mxu3  ;;  %v406_v13 = vpop.f32.mrf.mxu0 }
  0xbc   : > { %v575_v14 = vpop.f32.mrf.mxu1 }
  0xbd   : > { %v5309_v16 = vadd.f32 %v1069_v12, %v891_v11  ;;  %v576_v17 = vadd.f32 %v575_v14, %v406_v13  ;;  %v284_v14 = vld [vmem:[%s5145_s26 + $0xd1] sm:$0xff] }
  0xc2   : > { %v804_v28 = vpop.f32.mrf.mxu2 }
  0xc3   : > { %v892_v30 = vadd.f32 %v804_v28, %v576_v17  ;;  %v1071_v31 = vpop.f32.mrf.mxu3  ;;  %v409_v32 = vpop.f32.mrf.mxu0  ;;  %v285_v17 = vld [vmem:[%s5145_s26 + $0xd9] sm:$0xff] }
  0xc4   : > { %v578_v35 = vpop.f32.mrf.mxu1  ;;  %v309_v26 = vpack.c.bf16 %v285_v17, %v284_v14 }
  0xc5   : > { %v5319_v37 = vadd.f32 %v1071_v31, %v892_v30  ;;  %v579_v38 = vadd.f32 %v578_v35, %v409_v32  ;;  %v250_v31 = vpack.c.bf16 %v226_v19, %v225_v18  ;;  %v709_v32 = vpack.c.bf16 %v685_v21, %v684_v20  ;;  %v288_v18 = vld [vmem:[%s5145_s26 + $0xf1] sm:$0xff]  ;;  %v289_v19 = vld [vmem:[%s5145_s26 + $0xf9] sm:$0xff] }
  0xc6   : > { %4636 = vmatmul.msk.bf16.gmra.mxu0 %vm323_vm1, %v307_v29  ;;  %v229_v20 = vld [vmem:[%s5145_s26 + $0xf0] sm:$0xff]  ;;  %v230_v21 = vld [vmem:[%s5145_s26 + $0xf8] sm:$0xff] }
  0xc7   : > { %4659 = vmatmul.msk.bf16.gmra.mxu1 %vm323_vm1, %v248_v33  ;;  %4684 = vmatmul.msk.bf16.gmra.mxu2 %vm323_vm1, %v707_v34  ;;  %v976_v34 = vpack.c.bf16 %v952_v24, %v951_v22  ;;  %v688_v22 = vld [vmem:[%s5145_s26 + $0xf2] sm:$0xff]  ;;  %v689_v24 = vld [vmem:[%s5145_s26 + $0xfa] sm:$0xff] }
  0xc8   : > { %4709 = vmatmul.msk.bf16.gmra.mxu3 %vm323_vm1, %v974_v36 }
  0xca   : > { %v807_v40 = vpop.f32.mrf.mxu2 }
  0xcb   : > { %v893_v41 = vadd.f32 %v807_v40, %v579_v38  ;;  %v1074_v42 = vpop.f32.mrf.mxu3  ;;  %v411_v43 = vpop.f32.mrf.mxu0 }
  0xcc   : > { %v580_v45 = vpop.f32.mrf.mxu1 }
  0xcd   : > { %v5325_v46 = vadd.f32 %v1074_v42, %v893_v41  ;;  %v581_v47 = vadd.f32 %v580_v45, %v411_v43 }
  0xd2   : > { %v809_v58 = vpop.f32.mrf.mxu2 }
  0xd3   : > { %v894_v60 = vadd.f32 %v809_v58, %v581_v47  ;;  %v1076_v61 = vpop.f32.mrf.mxu3  ;;  %v414_v62 = vpop.f32.mrf.mxu0 }
  0xd4   : > { %v583_v1 = vpop.f32.mrf.mxu1 }
  0xd5   : > { %v5335_v4 = vadd.f32 %v1076_v61, %v894_v60  ;;  %v584_v5 = vadd.f32 %v583_v1, %v414_v62 }
  0xd6   : > { %4637 = vmatmul.msk.bf16.gmra.mxu0 %vm323_vm1, %v308_v59  ;;  %v310_v59 = vpack.c.bf16 %v287_v49, %v286_v48 }
  0xd7   : > { %4660 = vmatmul.msk.bf16.gmra.mxu1 %vm323_vm1, %v249_v63  ;;  %4685 = vmatmul.msk.bf16.gmra.mxu2 %vm323_vm1, %v708_v0  ;;  %v251_v63 = vpack.c.bf16 %v228_v52, %v227_v50  ;;  %v710_v0 = vpack.c.bf16 %v687_v54, %v686_v53  ;;  %v290_v53 = vld [vmem:[%s5145_s26 + $0x101] sm:$0xff]  ;;  %v291_v54 = vld [vmem:[%s5145_s26 + $0x109] sm:$0xff] }
  0xd8   : > { %4710 = vmatmul.msk.bf16.gmra.mxu3 %vm323_vm1, %v975_v2  ;;  %v977_v2 = vpack.c.bf16 %v954_v57, %v953_v56  ;;  %v231_v56 = vld [vmem:[%s5145_s26 + $0x100] sm:$0xff]  ;;  %v232_v57 = vld [vmem:[%s5145_s26 + $0x108] sm:$0xff] }
  0xda   : > { %v812_v6 = vpop.f32.mrf.mxu2 }
  0xdb   : > { %v895_v7 = vadd.f32 %v812_v6, %v584_v5  ;;  %v1079_v9 = vpop.f32.mrf.mxu3  ;;  %v416_v10 = vpop.f32.mrf.mxu0 }
  0xdc   : > { %v585_v11 = vpop.f32.mrf.mxu1 }
  0xdd   : > { %v5341_v12 = vadd.f32 %v1079_v9, %v895_v7  ;;  %v586_v13 = vadd.f32 %v585_v11, %v416_v10 }
  0xe2   : > { %v814_v25 = vpop.f32.mrf.mxu2 }
  0xe3   : > { %v896_v28 = vadd.f32 %v814_v25, %v586_v13  ;;  %v1081_v29 = vpop.f32.mrf.mxu3  ;;  %v419_v30 = vpop.f32.mrf.mxu0  ;;  %v955_v25 = vld [vmem:[%s5145_s26 + $0xf3] sm:$0xff] }
  0xe4   : > { %v588_v33 = vpop.f32.mrf.mxu1 }
  0xe5   : > { %v5351_v35 = vadd.f32 %v1081_v29, %v896_v28  ;;  %v589_v36 = vadd.f32 %v588_v33, %v419_v30  ;;  %v311_v29 = vpack.c.bf16 %v289_v19, %v288_v18  ;;  %v252_v33 = vpack.c.bf16 %v230_v21, %v229_v20 }
  0xe6   : > { %4638 = vmatmul.msk.bf16.gmra.mxu0 %vm323_vm1, %v309_v26  ;;  %v956_v26 = vld [vmem:[%s5145_s26 + $0xfb] sm:$0xff] }
  0xe7   : > { %4661 = vmatmul.msk.bf16.gmra.mxu1 %vm323_vm1, %v250_v31  ;;  %4686 = vmatmul.msk.bf16.gmra.mxu2 %vm323_vm1, %v709_v32 }
  0xe8   : > { %4711 = vmatmul.msk.bf16.gmra.mxu3 %vm323_vm1, %v976_v34  ;;  %v711_v34 = vpack.c.bf16 %v689_v24, %v688_v22 }
  0xea   : > { %v817_v38 = vpop.f32.mrf.mxu2 }
  0xeb   : > { %v897_v40 = vadd.f32 %v817_v38, %v589_v36  ;;  %v1084_v41 = vpop.f32.mrf.mxu3  ;;  %v421_v42 = vpop.f32.mrf.mxu0  ;;  %v978_v38 = vpack.c.bf16 %v956_v26, %v955_v25  ;;  %v292_v25 = vld [vmem:[%s5145_s26 + $0x111] sm:$0xff]  ;;  %v293_v26 = vld [vmem:[%s5145_s26 + $0x119] sm:$0xff] }
  0xec   : > { %v590_v43 = vpop.f32.mrf.mxu1 }
  0xed   : > { %v5357_v45 = vadd.f32 %v1084_v41, %v897_v40  ;;  %v591_v47 = vadd.f32 %v590_v43, %v421_v42 }
  0xf2   : > { %v819_v58 = vpop.f32.mrf.mxu2 }
  0xf3   : > { %v898_v60 = vadd.f32 %v819_v58, %v591_v47  ;;  %v1086_v61 = vpop.f32.mrf.mxu3  ;;  %v424_v62 = vpop.f32.mrf.mxu0  ;;  %v690_v58 = vld [vmem:[%s5145_s26 + $0x102] sm:$0xff] }
  0xf4   : > { %v593_v1 = vpop.f32.mrf.mxu1 }
  0xf5   : > { %v5367_v5 = vadd.f32 %v1086_v61, %v898_v60  ;;  %v594_v6 = vadd.f32 %v593_v1, %v424_v62  ;;  %v957_v60 = vld [vmem:[%s5145_s26 + $0x103] sm:$0xff]  ;;  %v958_v61 = vld [vmem:[%s5145_s26 + $0x10b] sm:$0xff] }
  0xf6   : > { %4639 = vmatmul.msk.bf16.gmra.mxu0 %vm323_vm1, %v310_v59  ;;  %v691_v59 = vld [vmem:[%s5145_s26 + $0x10a] sm:$0xff] }
  0xf7   : > { %4662 = vmatmul.msk.bf16.gmra.mxu1 %vm323_vm1, %v251_v63  ;;  %4687 = vmatmul.msk.bf16.gmra.mxu2 %vm323_vm1, %v710_v0  ;;  %v312_v63 = vpack.c.bf16 %v291_v54, %v290_v53  ;;  %v4871_v54 = vld [vmem:[%s6656_s1 + $0x50] sm:$0xf] }
  0xf8   : > { %4712 = vmatmul.msk.bf16.gmra.mxu3 %vm323_vm1, %v977_v2 }
  0xfa   : > { %v822_v7 = vpop.f32.mrf.mxu2 }
  0xfb   : > { %v899_v9 = vadd.f32 %v822_v7, %v594_v6  ;;  %v1089_v10 = vpop.f32.mrf.mxu3  ;;  %v426_v11 = vpop.f32.mrf.mxu0  ;;  %v253_v6 = vpack.c.bf16 %v232_v57, %v231_v56  ;;  %v712_v7 = vpack.c.bf16 %v691_v59, %v690_v58  ;;  %v5029_v56 = vld [vmem:[%s6656_s1 + $0x50] sm:$0x30]  ;;  %v4821_v57 = vld [vmem:[%s6656_s1 + $0x40] sm:$0xf]  ;;  %v5027_v59 = vld [vmem:[%s6656_s1 + $0x40] sm:$0x30] }
  0xfc   : > { %v595_v13 = vpop.f32.mrf.mxu1  ;;  %v4872_v58 = vor.u32 %v5029_v56, %v4871_v54 }
  0xfd   : > { %v5373_v14 = vadd.f32 %v1089_v10, %v899_v9  ;;  %v596_v17 = vadd.f32 %v595_v13, %v426_v11  ;;  %v979_v10 = vpack.c.bf16 %v958_v61, %v957_v60  ;;  %v4896_v60 = vld [vmem:[%s6656_s1 + $0x58] sm:$0xf]  ;;  %v5030_v61 = vld [vmem:[%s6656_s1 + $0x58] sm:$0x30] }
 0x102   : > { %v824_v28 = vpop.f32.mrf.mxu2 }
 0x103   : > { %v900_v30 = vadd.f32 %v824_v28, %v596_v17  ;;  %v1091_v31 = vpop.f32.mrf.mxu3  ;;  %v429_v32 = vpop.f32.mrf.mxu0  ;;  %v233_v28 = vld [vmem:[%s5145_s26 + $0x110] sm:$0xff] }
 0x104   : > { %v598_v36 = vpop.f32.mrf.mxu1 }
 0x105   : > { %v5383_v40 = vadd.f32 %v1091_v31, %v900_v30  ;;  %v599_v41 = vadd.f32 %v598_v36, %v429_v32  ;;  %v692_v30 = vld [vmem:[%s5145_s26 + $0x112] sm:$0xff]  ;;  %v693_v31 = vld [vmem:[%s5145_s26 + $0x11a] sm:$0xff]  ;;  %v313_v36 = vpack.c.bf16 %v293_v26, %v292_v25  ;;  %v295_v25 = vld [vmem:[%s5145_s26 + $0x129] sm:$0xff] }
 0x106   : > { %4640 = vmatmul.msk.bf16.gmra.mxu0 %vm323_vm1, %v311_v29  ;;  %v234_v29 = vld [vmem:[%s5145_s26 + $0x118] sm:$0xff]  ;;  %v235_v26 = vld [vmem:[%s5145_s26 + $0x120] sm:$0xff] }
 0x107   : > { %4663 = vmatmul.msk.bf16.gmra.mxu1 %vm323_vm1, %v252_v33  ;;  %4688 = vmatmul.msk.bf16.gmra.mxu2 %vm323_vm1, %v711_v34  ;;  %v959_v32 = vld [vmem:[%s5145_s26 + $0x113] sm:$0xff]  ;;  %v960_v33 = vld [vmem:[%s5145_s26 + $0x11b] sm:$0xff] }
 0x108   : > { %4713 = vmatmul.msk.bf16.gmra.mxu3 %vm323_vm1, %v978_v38 }
 0x10a   : > { %v827_v42 = vpop.f32.mrf.mxu2 }
 0x10b   : > { %v901_v43 = vadd.f32 %v827_v42, %v599_v41  ;;  %v1094_v47 = vpop.f32.mrf.mxu3  ;;  %v431_v48 = vpop.f32.mrf.mxu0 }
 0x10c   : > { %v600_v49 = vpop.f32.mrf.mxu1 }
 0x10d   : > { %v5389_v50 = vadd.f32 %v1094_v47, %v901_v43  ;;  %v601_v52 = vadd.f32 %v600_v49, %v431_v48  ;;  %v254_v43 = vpack.c.bf16 %v234_v29, %v233_v28  ;;  %v713_v47 = vpack.c.bf16 %v693_v31, %v692_v30  ;;  %v236_v28 = vld [vmem:[%s5145_s26 + $0x128] sm:$0xff] }
 0x10e   : > { %v980_v49 = vpack.c.bf16 %v960_v33, %v959_v32  ;;  %v694_v29 = vld [vmem:[%s5145_s26 + $0x122] sm:$0xff]  ;;  %v695_v30 = vld [vmem:[%s5145_s26 + $0x12a] sm:$0xff] }
 0x10f   : > { %v961_v32 = vld [vmem:[%s5145_s26 + $0x123] sm:$0xff]  ;;  %v962_v33 = vld [vmem:[%s5145_s26 + $0x12b] sm:$0xff] }
 0x112   : > { %v829_v62 = vpop.f32.mrf.mxu2 }
 0x113   : > { %v902_v0 = vadd.f32 %v829_v62, %v601_v52  ;;  %v1096_v1 = vpop.f32.mrf.mxu3  ;;  %v434_v2 = vpop.f32.mrf.mxu0 }
 0x114   : > { %v603_v9 = vpop.f32.mrf.mxu1 }
 0x115   : > { %v5399_v11 = vadd.f32 %v1096_v1, %v902_v0  ;;  %v604_v13 = vadd.f32 %v603_v9, %v434_v2  ;;  %v4897_v0 = vor.u32 %v5030_v61, %v4896_v60 }
 0x116   : > { %4641 = vmatmul.msk.bf16.gmra.mxu0 %vm323_vm1, %v312_v63  ;;  %v4822_v63 = vor.u32 %v5027_v59, %v4821_v57 }
 0x117   : > { %4664 = vmatmul.msk.bf16.gmra.mxu1 %vm323_vm1, %v253_v6  ;;  %4689 = vmatmul.msk.bf16.gmra.mxu2 %vm323_vm1, %v712_v7  ;;  %v2917_v7 = vsel %vm381_vm0, %v4872_v58, 0 }
 0x118   : > { %4714 = vmatmul.msk.bf16.gmra.mxu3 %vm323_vm1, %v979_v10  ;;  %2926 = vmatpush.bf16.msra.mxu2 %v2917_v7  ;;  %v2383_v10 = vsel %vm381_vm0, %v4822_v63, 0  ;;  %v1459_v63 = vld [vmem:[%s5145_s26 + $0x14] sm:$0xff]  ;;  %v1994_v7 = vld [vmem:[%s5145_s26 + $0x1e] sm:$0xff] }
 0x119   : > { %2392 = vmatpush.bf16.msra.mxu0 %v2383_v10 }
 0x11a   : > { %v832_v17 = vpop.f32.mrf.mxu2 }
 0x11b   : > { %v903_v18 = vadd.f32 %v832_v17, %v604_v13  ;;  %v1099_v19 = vpop.f32.mrf.mxu3  ;;  %v436_v20 = vpop.f32.mrf.mxu0  ;;  %v3184_v13 = vsel %vm381_vm0, %v4897_v0, 0  ;;  %v1460_v0 = vld [vmem:[%s5145_s26 + $0x1c] sm:$0xff] }
 0x11c   : > { %v605_v21 = vpop.f32.mrf.mxu1  ;;  %3193 = vmatpush.bf16.msra.mxu3 %v3184_v13 }
 0x11d   : > { %v5405_v22 = vadd.f32 %v1099_v19, %v903_v18  ;;  %v606_v24 = vadd.f32 %v605_v21, %v436_v20  ;;  %v4846_v19 = vld [vmem:[%s6656_s1 + $0x48] sm:$0xf]  ;;  %v5028_v20 = vld [vmem:[%s6656_s1 + $0x48] sm:$0x30] }
 0x11e   : > { %v4847_v21 = vor.u32 %v5028_v20, %v4846_v19  ;;  %v1497_v19 = vpack.c.bf16 %v1460_v0, %v1459_v63 }
 0x120   : > { %v2650_v31 = vsel %vm381_vm0, %v4847_v21, 0 }
 0x121   : > { %2659 = vmatpush.bf16.msra.mxu1 %v2650_v31 }
 0x122   : > { %v834_v34 = vpop.f32.mrf.mxu2 }
 0x123   : > { %v904_v38 = vadd.f32 %v834_v34, %v606_v24  ;;  %v1101_v41 = vpop.f32.mrf.mxu3  ;;  %v439_v42 = vpop.f32.mrf.mxu0  ;;  %v294_v24 = vld [vmem:[%s5145_s26 + $0x121] sm:$0xff] }
 0x124   : > { %v608_v48 = vpop.f32.mrf.mxu1 }
 0x125   : > { %v5415_v52 = vadd.f32 %v1101_v41, %v904_v38  ;;  %v609_v53 = vadd.f32 %v608_v48, %v439_v42 }
 0x126   : > { %4642 = vmatmul.msk.bf16.gmra.mxu0 %vm323_vm1, %v313_v36  ;;  %v314_v36 = vpack.c.bf16 %v295_v25, %v294_v24 }
 0x127   : > { %4665 = vmatmul.msk.bf16.gmra.mxu1 %vm323_vm1, %v254_v43  ;;  %4690 = vmatmul.msk.bf16.gmra.mxu2 %vm323_vm1, %v713_v47  ;;  %v255_v43 = vpack.c.bf16 %v236_v28, %v235_v26  ;;  %v714_v47 = vpack.c.bf16 %v695_v30, %v694_v29 }
 0x128   : > { %4715 = vmatmul.msk.bf16.gmra.mxu3 %vm323_vm1, %v980_v49  ;;  %v981_v49 = vpack.c.bf16 %v962_v33, %v961_v32 }
 0x12a   : > { %v837_v62 = vpop.f32.mrf.mxu2 }
 0x12b   : > { %v905_v1 = vadd.f32 %v837_v62, %v609_v53  ;;  %v1104_v2 = vpop.f32.mrf.mxu3  ;;  %v441_v6 = vpop.f32.mrf.mxu0 }
 0x12c   : > { %v610_v9 = vpop.f32.mrf.mxu1 }
 0x12d   : > { %v5442_v17 = vadd.f32 %v1104_v2, %v905_v1  ;;  %v611_v18 = vadd.f32 %v610_v9, %v441_v6  ;;  %v1726_v1 = vld [vmem:[%s5145_s26 + $0x15] sm:$0xff]  ;;  %v1727_v2 = vld [vmem:[%s5145_s26 + $0x1d] sm:$0xff] }
 0x12e   : > { %v1993_v6 = vld [vmem:[%s5145_s26 + $0x16] sm:$0xff]  ;;  %v1764_v20 = vpack.c.bf16 %v1727_v2, %v1726_v1 }
 0x12f   : > { %v2031_v24 = vpack.c.bf16 %v1994_v7, %v1993_v6 }
 0x132   : > { %v839_v34 = vpop.f32.mrf.mxu2 }
 0x133   : > { %v906_v38 = vadd.f32 %v839_v34, %v611_v18  ;;  %v1106_v41 = vpop.f32.mrf.mxu3  ;;  %v444_v42 = vpop.f32.mrf.mxu0 }
 0x134   : > { %v613_v48 = vpop.f32.mrf.mxu1 }
 0x135   : > { %v5459_v53 = vadd.f32 %v1106_v41, %v906_v38  ;;  %v614_v54 = vadd.f32 %v613_v48, %v444_v42  ;;  %v1462_v38 = vld [vmem:[%s5145_s26 + $0x2c] sm:$0xff] }
 0x136   : > { %4643 = vmatmul.msk.bf16.gmra.mxu0 %vm323_vm1, %v314_v36  ;;  %v1461_v36 = vld [vmem:[%s5145_s26 + $0x24] sm:$0xff]  ;;  %v1729_v42 = vld [vmem:[%s5145_s26 + $0x2d] sm:$0xff] }
 0x137   : > { %4666 = vmatmul.msk.bf16.gmra.mxu1 %vm323_vm1, %v255_v43  ;;  %4691 = vmatmul.msk.bf16.gmra.mxu2 %vm323_vm1, %v714_v47  ;;  %v1728_v41 = vld [vmem:[%s5145_s26 + $0x25] sm:$0xff]  ;;  %v1996_v43 = vld [vmem:[%s5145_s26 + $0x2e] sm:$0xff] }
 0x138   : > { %4716 = vmatmul.msk.bf16.gmra.mxu3 %vm323_vm1, %v981_v49 }
 0x13a   : > { %v842_v56 = vpop.f32.mrf.mxu2 }
 0x13b   : > { %v907_v57 = vadd.f32 %v842_v56, %v614_v54  ;;  %v1109_v58 = vpop.f32.mrf.mxu3  ;;  %v446_v59 = vpop.f32.mrf.mxu0  ;;  %v1498_v56 = vpack.c.bf16 %v1462_v38, %v1461_v36 }
 0x13c   : > { %v615_v60 = vpop.f32.mrf.mxu1 }
 0x13d   : > { %v5465_v61 = vadd.f32 %v1109_v58, %v907_v57  ;;  %v616_v62 = vadd.f32 %v615_v60, %v446_v59  ;;  %v1765_v57 = vpack.c.bf16 %v1729_v42, %v1728_v41 }
 0x142   : > { %v844_v9 = vpop.f32.mrf.mxu2 }
 0x143   : > { %v908_v10 = vadd.f32 %v844_v9, %v616_v62  ;;  %v1111_v13 = vpop.f32.mrf.mxu3  ;;  %v449_v18 = vpop.f32.mrf.mxu0 }
 0x144   : > { %v618_v21 = vpop.f32.mrf.mxu1 }
 0x145   : > { %v5473_v25 = vadd.f32 %v1111_v13, %v908_v10  ;;  %v619_v26 = vadd.f32 %v618_v21, %v449_v18  ;;  %v1463_v10 = vld [vmem:[%s5145_s26 + $0x34] sm:$0xff]  ;;  %v1464_v13 = vld [vmem:[%s5145_s26 + $0x3c] sm:$0xff] }
 0x146   : > { %4723 = vmatmul.msk.bf16.vlgmr.msrb.gmra.mxu0 %vm323_vm1, %v5174_v55  ;;  %v1995_v55 = vld [vmem:[%s5145_s26 + $0x26] sm:$0xff]  ;;  %v1730_v18 = vld [vmem:[%s5145_s26 + $0x35] sm:$0xff] }
 0x147   : > { %4748 = vmatmul.msk.bf16.vlgmr.msrb.gmra.mxu1 %vm323_vm1, %v1497_v19  ;;  %4773 = vmatmul.msk.bf16.vlgmr.msrb.gmra.mxu2 %vm323_vm1, %v1764_v20  ;;  %v2032_v59 = vpack.c.bf16 %v1996_v43, %v1995_v55  ;;  %v1731_v19 = vld [vmem:[%s5145_s26 + $0x3d] sm:$0xff] }
 0x148   : > { %4798 = vmatmul.msk.bf16.vlgmr.msrb.gmra.mxu3 %vm323_vm1, %v2031_v24  ;;  %v1998_v20 = vld [vmem:[%s5145_s26 + $0x3e] sm:$0xff] }
 0x14a   : > { %v847_v28 = vpop.f32.mrf.mxu2 }
 0x14b   : > { %v909_v29 = vadd.f32 %v847_v28, %v619_v26  ;;  %v1114_v30 = vpop.f32.mrf.mxu3  ;;  %v451_v31 = vpop.f32.mrf.mxu0 }
 0x14c   : > { %v620_v32 = vpop.f32.mrf.mxu1 }
 0x14d   : > { %v5480_v33 = vadd.f32 %v1114_v30, %v909_v29  ;;  %v621_v34 = vadd.f32 %v620_v32, %v451_v31  ;;  %v1499_v29 = vpack.c.bf16 %v1464_v13, %v1463_v10  ;;  %v1766_v30 = vpack.c.bf16 %v1731_v19, %v1730_v18 }
 0x152   : > { %v849_v47 = vpop.f32.mrf.mxu2 }
 0x153   : > { %v910_v48 = vadd.f32 %v849_v47, %v621_v34  ;;  %v1116_v49 = vpop.f32.mrf.mxu3  ;;  %v454_v54 = vpop.f32.mrf.mxu0 }
 0x154   : > { %v623_v58 = vpop.f32.mrf.mxu1 }
 0x155   : > { %v5488_v60 = vadd.f32 %v1116_v49, %v910_v48  ;;  %v624_v62 = vadd.f32 %v623_v58, %v454_v54  ;;  %v1465_v49 = vld [vmem:[%s5145_s26 + $0x44] sm:$0xff]  ;;  %v1466_v54 = vld [vmem:[%s5145_s26 + $0x4c] sm:$0xff] }
 0x156   : > { %4724 = vmatmul.msk.bf16.gmra.mxu0 %vm323_vm1, %v5189_v3  ;;  %v1997_v3 = vld [vmem:[%s5145_s26 + $0x36] sm:$0xff]  ;;  %v2000_v58 = vld [vmem:[%s5145_s26 + $0x4e] sm:$0xff] }
 0x157   : > { %4749 = vmatmul.msk.bf16.gmra.mxu1 %vm323_vm1, %v1498_v56  ;;  %4774 = vmatmul.msk.bf16.gmra.mxu2 %vm323_vm1, %v1765_v57  ;;  %v2033_v32 = vpack.c.bf16 %v1998_v20, %v1997_v3  ;;  %v1732_v56 = vld [vmem:[%s5145_s26 + $0x45] sm:$0xff]  ;;  %v1733_v57 = vld [vmem:[%s5145_s26 + $0x4d] sm:$0xff] }
 0x158   : > { %4799 = vmatmul.msk.bf16.gmra.mxu3 %vm323_vm1, %v2032_v59 }
 0x15a   : > { %v852_v63 = vpop.f32.mrf.mxu2 }
 0x15b   : > { %v911_v0 = vadd.f32 %v852_v63, %v624_v62  ;;  %v1119_v1 = vpop.f32.mrf.mxu3  ;;  %v456_v2 = vpop.f32.mrf.mxu0 }
 0x15c   : > { %v625_v6 = vpop.f32.mrf.mxu1 }
 0x15d   : > { %v5495_v7 = vadd.f32 %v1119_v1, %v911_v0  ;;  %v626_v9 = vadd.f32 %v625_v6, %v456_v2  ;;  %v1500_v1 = vpack.c.bf16 %v1466_v54, %v1465_v49  ;;  %v1767_v2 = vpack.c.bf16 %v1733_v57, %v1732_v56 }
 0x162   : > { %v854_v21 = vpop.f32.mrf.mxu2 }
 0x163   : > { %v912_v24 = vadd.f32 %v854_v21, %v626_v9  ;;  %v1121_v26 = vpop.f32.mrf.mxu3  ;;  %v459_v28 = vpop.f32.mrf.mxu0 }
 0x164   : > { %v628_v31 = vpop.f32.mrf.mxu1 }
 0x165   : > { %v5503_v34 = vadd.f32 %v1121_v26, %v912_v24  ;;  %v629_v36 = vadd.f32 %v628_v31, %v459_v28  ;;  %v1467_v28 = vld [vmem:[%s5145_s26 + $0x54] sm:$0xff]  ;;  %v1735_v31 = vld [vmem:[%s5145_s26 + $0x5d] sm:$0xff] }
 0x166   : > { %4725 = vmatmul.msk.bf16.gmra.mxu0 %vm323_vm1, %v5204_v15  ;;  %v1999_v15 = vld [vmem:[%s5145_s26 + $0x46] sm:$0xff] }
 0x167   : > { %4750 = vmatmul.msk.bf16.gmra.mxu1 %vm323_vm1, %v1499_v29  ;;  %4775 = vmatmul.msk.bf16.gmra.mxu2 %vm323_vm1, %v1766_v30  ;;  %v2034_v9 = vpack.c.bf16 %v2000_v58, %v1999_v15  ;;  %v1468_v29 = vld [vmem:[%s5145_s26 + $0x5c] sm:$0xff] }
 0x168   : > { %4800 = vmatmul.msk.bf16.gmra.mxu3 %vm323_vm1, %v2033_v32  ;;  %v1734_v30 = vld [vmem:[%s5145_s26 + $0x55] sm:$0xff]  ;;  %v2002_v32 = vld [vmem:[%s5145_s26 + $0x5e] sm:$0xff] }
 0x16a   : > { %v857_v38 = vpop.f32.mrf.mxu2 }
 0x16b   : > { %v913_v41 = vadd.f32 %v857_v38, %v629_v36  ;;  %v1124_v42 = vpop.f32.mrf.mxu3  ;;  %v461_v55 = vpop.f32.mrf.mxu0 }
 0x16c   : > { %v630_v43 = vpop.f32.mrf.mxu1 }
 0x16d   : > { %v5510_v47 = vadd.f32 %v1124_v42, %v913_v41  ;;  %v631_v48 = vadd.f32 %v630_v43, %v461_v55  ;;  %v1501_v55 = vpack.c.bf16 %v1468_v29, %v1467_v28  ;;  %v1768_v43 = vpack.c.bf16 %v1735_v31, %v1734_v30 }
 0x172   : > { %v859_v59 = vpop.f32.mrf.mxu2 }
 0x173   : > { %v914_v62 = vadd.f32 %v859_v59, %v631_v48  ;;  %v1126_v63 = vpop.f32.mrf.mxu3  ;;  %v464_v0 = vpop.f32.mrf.mxu0 }
 0x174   : > { %v633_v6 = vpop.f32.mrf.mxu1 }
 0x175   : > { %v5518_v10 = vadd.f32 %v1126_v63, %v914_v62  ;;  %v634_v13 = vadd.f32 %v633_v6, %v464_v0  ;;  %v1470_v6 = vld [vmem:[%s5145_s26 + $0x6c] sm:$0xff] }
 0x176   : > { %4726 = vmatmul.msk.bf16.gmra.mxu0 %vm323_vm1, %v5219_v27  ;;  %v2001_v27 = vld [vmem:[%s5145_s26 + $0x56] sm:$0xff] }
 0x177   : > { %4751 = vmatmul.msk.bf16.gmra.mxu1 %vm323_vm1, %v1500_v1  ;;  %4776 = vmatmul.msk.bf16.gmra.mxu2 %vm323_vm1, %v1767_v2  ;;  %v2035_v49 = vpack.c.bf16 %v2002_v32, %v2001_v27  ;;  %v1202_v1 = vld [vmem:[%s5145_s26 + $0x63] sm:$0xff]  ;;  %v1203_v2 = vld [vmem:[%s5145_s26 + $0x6b] sm:$0xff] }
 0x178   : > { %4801 = vmatmul.msk.bf16.gmra.mxu3 %vm323_vm1, %v2034_v9  ;;  %v1736_v9 = vld [vmem:[%s5145_s26 + $0x65] sm:$0xff] }
 0x17a   : > { %v862_v18 = vpop.f32.mrf.mxu2 }
 0x17b   : > { %v915_v19 = vadd.f32 %v862_v18, %v634_v13  ;;  %v1129_v3 = vpop.f32.mrf.mxu3  ;;  %v466_v20 = vpop.f32.mrf.mxu0  ;;  %v1737_v13 = vld [vmem:[%s5145_s26 + $0x6d] sm:$0xff] }
 0x17c   : > { %v635_v21 = vpop.f32.mrf.mxu1  ;;  %v2003_v18 = vld [vmem:[%s5145_s26 + $0x66] sm:$0xff]  ;;  %v1769_v30 = vpack.c.bf16 %v1737_v13, %v1736_v9 }
 0x17d   : > { %v5525_v24 = vadd.f32 %v1129_v3, %v915_v19  ;;  %v636_v26 = vadd.f32 %v635_v21, %v466_v20  ;;  %v2004_v19 = vld [vmem:[%s5145_s26 + $0x6e] sm:$0xff]  ;;  %v1235_v20 = vpack.c.bf16 %v1203_v2, %v1202_v1  ;;  %v2006_v1 = vld [vmem:[%s5145_s26 + $0x7e] sm:$0xff] }
 0x17e   : > { %v2036_v27 = vpack.c.bf16 %v2004_v19, %v2003_v18 }
 0x182   : > { %v864_v36 = vpop.f32.mrf.mxu2 }
 0x183   : > { %v916_v38 = vadd.f32 %v864_v36, %v636_v26  ;;  %v1131_v41 = vpop.f32.mrf.mxu3  ;;  %v469_v42 = vpop.f32.mrf.mxu0 }
 0x184   : > { %v638_v48 = vpop.f32.mrf.mxu1 }
 0x185   : > { %v5533_v54 = vadd.f32 %v1131_v41, %v916_v38  ;;  %v639_v56 = vadd.f32 %v638_v48, %v469_v42 }
 0x186   : > { %4727 = vmatmul.msk.bf16.gmra.mxu0 %vm323_vm1, %v5234_v39  ;;  %v1469_v39 = vld [vmem:[%s5145_s26 + $0x64] sm:$0xff] }
 0x187   : > { %4752 = vmatmul.msk.bf16.gmra.mxu1 %vm323_vm1, %v1501_v55  ;;  %4777 = vmatmul.msk.bf16.gmra.mxu2 %vm323_vm1, %v1768_v43  ;;  %v1502_v29 = vpack.c.bf16 %v1470_v6, %v1469_v39 }
 0x188   : > { %4802 = vmatmul.msk.bf16.gmra.mxu3 %vm323_vm1, %v2035_v49 }
 0x18a   : > { %v867_v57 = vpop.f32.mrf.mxu2 }
 0x18b   : > { %v917_v15 = vadd.f32 %v867_v57, %v639_v56  ;;  %v1134_v58 = vpop.f32.mrf.mxu3  ;;  %v471_v59 = vpop.f32.mrf.mxu0  ;;  %v1204_v56 = vld [vmem:[%s5145_s26 + $0x73] sm:$0xff]  ;;  %v1205_v57 = vld [vmem:[%s5145_s26 + $0x7b] sm:$0xff] }
 0x18c   : > { %v640_v62 = vpop.f32.mrf.mxu1  ;;  %v1236_v39 = vpack.c.bf16 %v1205_v57, %v1204_v56  ;;  %v1741_v56 = vld [vmem:[%s5145_s26 + $0x8d] sm:$0xff] }
 0x18d   : > { %v5540_v63 = vadd.f32 %v1134_v58, %v917_v15  ;;  %v641_v0 = vadd.f32 %v640_v62, %v471_v59  ;;  %v1471_v15 = vld [vmem:[%s5145_s26 + $0x74] sm:$0xff]  ;;  %v1472_v58 = vld [vmem:[%s5145_s26 + $0x7c] sm:$0xff]  ;;  %v2007_v57 = vld [vmem:[%s5145_s26 + $0x86] sm:$0xff] }
 0x18e   : > { %v1738_v59 = vld [vmem:[%s5145_s26 + $0x75] sm:$0xff]  ;;  %v1739_v62 = vld [vmem:[%s5145_s26 + $0x7d] sm:$0xff]  ;;  %v1503_v18 = vpack.c.bf16 %v1472_v58, %v1471_v15 }
 0x18f   : > { %v1770_v19 = vpack.c.bf16 %v1739_v62, %v1738_v59  ;;  %v2008_v15 = vld [vmem:[%s5145_s26 + $0x8e] sm:$0xff] }
 0x192   : > { %v869_v3 = vpop.f32.mrf.mxu2 }
 0x193   : > { %v918_v21 = vadd.f32 %v869_v3, %v641_v0  ;;  %v1136_v26 = vpop.f32.mrf.mxu3  ;;  %v474_v28 = vpop.f32.mrf.mxu0  ;;  %v2005_v0 = vld [vmem:[%s5145_s26 + $0x76] sm:$0xff] }
 0x194   : > { %v643_v31 = vpop.f32.mrf.mxu1 }
 0x195   : > { %v5550_v32 = vadd.f32 %v1136_v26, %v918_v21  ;;  %v644_v36 = vadd.f32 %v643_v31, %v474_v28 }
 0x196   : > { %4728 = vmatmul.msk.bf16.gmra.mxu0 %vm323_vm1, %v1235_v20  ;;  %v2037_v20 = vpack.c.bf16 %v2006_v1, %v2005_v0 }
 0x197   : > { %4753 = vmatmul.msk.bf16.gmra.mxu1 %vm323_vm1, %v1502_v29  ;;  %4778 = vmatmul.msk.bf16.gmra.mxu2 %vm323_vm1, %v1769_v30 }
 0x198   : > { %4803 = vmatmul.msk.bf16.gmra.mxu3 %vm323_vm1, %v2036_v27 }
 0x19a   : > { %v872_v38 = vpop.f32.mrf.mxu2 }
 0x19b   : > { %v919_v41 = vadd.f32 %v872_v38, %v644_v36  ;;  %v1139_v42 = vpop.f32.mrf.mxu3  ;;  %v476_v55 = vpop.f32.mrf.mxu0 }
 0x19c   : > { %v645_v43 = vpop.f32.mrf.mxu1 }
 0x19d   : > { %v5556_v48 = vadd.f32 %v1139_v42, %v919_v41  ;;  %v646_v49 = vadd.f32 %v645_v43, %v476_v55  ;;  %v1206_v41 = vld [vmem:[%s5145_s26 + $0x83] sm:$0xff]  ;;  %v1207_v42 = vld [vmem:[%s5145_s26 + $0x8b] sm:$0xff] }
 0x19e   : > { %v1473_v55 = vld [vmem:[%s5145_s26 + $0x84] sm:$0xff]  ;;  %v1474_v43 = vld [vmem:[%s5145_s26 + $0x8c] sm:$0xff]  ;;  %v1237_v59 = vpack.c.bf16 %v1207_v42, %v1206_v41  ;;  %v1476_v41 = vld [vmem:[%s5145_s26 + $0x9c] sm:$0xff] }
 0x19f   : > { %v1742_v42 = vld [vmem:[%s5145_s26 + $0x95] sm:$0xff] }
 0x1a2   : > { %v874_v2 = vpop.f32.mrf.mxu2 }
 0x1a3   : > { %v920_v6 = vadd.f32 %v874_v2, %v646_v49  ;;  %v1141_v9 = vpop.f32.mrf.mxu3  ;;  %v479_v13 = vpop.f32.mrf.mxu0  ;;  %v1740_v49 = vld [vmem:[%s5145_s26 + $0x85] sm:$0xff]  ;;  %v1504_v2 = vpack.c.bf16 %v1474_v43, %v1473_v55  ;;  %v1743_v55 = vld [vmem:[%s5145_s26 + $0x9d] sm:$0xff] }
 0x1a4   : > { %v648_v3 = vpop.f32.mrf.mxu1  ;;  %v2009_v43 = vld [vmem:[%s5145_s26 + $0x96] sm:$0xff] }
 0x1a5   : > { %v5566_v21 = vadd.f32 %v1141_v9, %v920_v6  ;;  %v649_v26 = vadd.f32 %v648_v3, %v479_v13  ;;  %v2038_v9 = vpack.c.bf16 %v2008_v15, %v2007_v57 }
 0x1a6   : > { %4729 = vmatmul.msk.bf16.gmra.mxu0 %vm323_vm1, %v1236_v39  ;;  %v1771_v39 = vpack.c.bf16 %v1741_v56, %v1740_v49  ;;  %v2010_v49 = vld [vmem:[%s5145_s26 + $0x9e] sm:$0xff] }
 0x1a7   : > { %4754 = vmatmul.msk.bf16.gmra.mxu1 %vm323_vm1, %v1503_v18  ;;  %4779 = vmatmul.msk.bf16.gmra.mxu2 %vm323_vm1, %v1770_v19 }
 0x1a8   : > { %4804 = vmatmul.msk.bf16.gmra.mxu3 %vm323_vm1, %v2037_v20 }
 0x1aa   : > { %v877_v28 = vpop.f32.mrf.mxu2 }
 0x1ab   : > { %v921_v29 = vadd.f32 %v877_v28, %v649_v26  ;;  %v1144_v30 = vpop.f32.mrf.mxu3  ;;  %v481_v31 = vpop.f32.mrf.mxu0 }
 0x1ac   : > { %v650_v27 = vpop.f32.mrf.mxu1 }
 0x1ad   : > { %v5572_v36 = vadd.f32 %v1144_v30, %v921_v29  ;;  %v651_v38 = vadd.f32 %v650_v27, %v481_v31  ;;  %v1208_v31 = vld [vmem:[%s5145_s26 + $0x93] sm:$0xff]  ;;  %v1209_v27 = vld [vmem:[%s5145_s26 + $0x9b] sm:$0xff] }
 0x1ae   : > { %v1238_v57 = vpack.c.bf16 %v1209_v27, %v1208_v31  ;;  %v1210_v31 = vld [vmem:[%s5145_s26 + $0xa3] sm:$0xff]  ;;  %v1211_v27 = vld [vmem:[%s5145_s26 + $0xab] sm:$0xff] }
 0x1b2   : > { %v879_v58 = vpop.f32.mrf.mxu2 }
 0x1b3   : > { %v922_v62 = vadd.f32 %v879_v58, %v651_v38  ;;  %v1146_v0 = vpop.f32.mrf.mxu3  ;;  %v484_v1 = vpop.f32.mrf.mxu0  ;;  %v1475_v38 = vld [vmem:[%s5145_s26 + $0x94] sm:$0xff] }
 0x1b4   : > { %v653_v6 = vpop.f32.mrf.mxu1 }
 0x1b5   : > { %v5582_v13 = vadd.f32 %v1146_v0, %v922_v62  ;;  %v654_v18 = vadd.f32 %v653_v6, %v484_v1  ;;  %v1505_v62 = vpack.c.bf16 %v1476_v41, %v1475_v38  ;;  %v1772_v0 = vpack.c.bf16 %v1743_v55, %v1742_v42  ;;  %v1477_v38 = vld [vmem:[%s5145_s26 + $0xa4] sm:$0xff]  ;;  %v1478_v41 = vld [vmem:[%s5145_s26 + $0xac] sm:$0xff] }
 0x1b6   : > { %4730 = vmatmul.msk.bf16.gmra.mxu0 %vm323_vm1, %v1237_v59  ;;  %v1744_v42 = vld [vmem:[%s5145_s26 + $0xa5] sm:$0xff]  ;;  %v1745_v55 = vld [vmem:[%s5145_s26 + $0xad] sm:$0xff] }
 0x1b7   : > { %4755 = vmatmul.msk.bf16.gmra.mxu1 %vm323_vm1, %v1504_v2  ;;  %4780 = vmatmul.msk.bf16.gmra.mxu2 %vm323_vm1, %v1771_v39  ;;  %v2039_v39 = vpack.c.bf16 %v2010_v49, %v2009_v43  ;;  %v2011_v43 = vld [vmem:[%s5145_s26 + $0xa6] sm:$0xff]  ;;  %v2012_v49 = vld [vmem:[%s5145_s26 + $0xae] sm:$0xff] }
 0x1b8   : > { %4805 = vmatmul.msk.bf16.gmra.mxu3 %vm323_vm1, %v2038_v9 }
 0x1ba   : > { %v882_v19 = vpop.f32.mrf.mxu2 }
 0x1bb   : > { %v923_v3 = vadd.f32 %v882_v19, %v654_v18  ;;  %v1149_v20 = vpop.f32.mrf.mxu3  ;;  %v486_v26 = vpop.f32.mrf.mxu0 }
 0x1bc   : > { %v655_v28 = vpop.f32.mrf.mxu1 }
 0x1bd   : > { %v5588_v29 = vadd.f32 %v1149_v20, %v923_v3  ;;  %v656_v30 = vadd.f32 %v655_v28, %v486_v26 }
 0x1c2   : > { %v884_v56 = vpop.f32.mrf.mxu2 }
 0x1c3   : > { %v924_v15 = vadd.f32 %v884_v56, %v656_v30  ;;  %v1151_v58 = vpop.f32.mrf.mxu3  ;;  %v1326_v59 = vpop.f32.mrf.mxu0 }
 0x1c4   : > { %v1421_v1 = vadd.f32 %v1326_v59, %v5277_v23  ;;  %v1593_v2 = vpop.f32.mrf.mxu1 }
 0x1c5   : > { %v5599_v6 = vadd.f32 %v1151_v58, %v924_v15 }
 0x1c6   : > { %v1688_v9 = vadd.f32 %v1593_v2, %v1421_v1  ;;  %4731 = vmatmul.msk.bf16.gmra.mxu0 %vm323_vm1, %v1238_v57  ;;  %v1239_v57 = vpack.c.bf16 %v1211_v27, %v1210_v31  ;;  %v2040_v2 = vpack.c.bf16 %v2012_v49, %v2011_v43  ;;  %v1212_v31 = vld [vmem:[%s5145_s26 + $0xb3] sm:$0xff]  ;;  %v1213_v27 = vld [vmem:[%s5145_s26 + $0xbb] sm:$0xff] }
 0x1c7   : > { %4756 = vmatmul.msk.bf16.gmra.mxu1 %vm323_vm1, %v1505_v62  ;;  %4781 = vmatmul.msk.bf16.gmra.mxu2 %vm323_vm1, %v1772_v0  ;;  %v1506_v62 = vpack.c.bf16 %v1478_v41, %v1477_v38  ;;  %v1773_v0 = vpack.c.bf16 %v1745_v55, %v1744_v42  ;;  %v1479_v38 = vld [vmem:[%s5145_s26 + $0xb4] sm:$0xff]  ;;  %v1480_v41 = vld [vmem:[%s5145_s26 + $0xbc] sm:$0xff] }
 0x1c8   : > { %4806 = vmatmul.msk.bf16.gmra.mxu3 %vm323_vm1, %v2039_v39  ;;  %v1746_v42 = vld [vmem:[%s5145_s26 + $0xb5] sm:$0xff]  ;;  %v1747_v55 = vld [vmem:[%s5145_s26 + $0xbd] sm:$0xff] }
 0x1c9   : > { %v2013_v43 = vld [vmem:[%s5145_s26 + $0xb6] sm:$0xff]  ;;  %v2014_v49 = vld [vmem:[%s5145_s26 + $0xbe] sm:$0xff] }
 0x1ca   : > { %v1860_v23 = vpop.f32.mrf.mxu2 }
 0x1cb   : > { %v1955_v18 = vadd.f32 %v1860_v23, %v1688_v9  ;;  %v2127_v19 = vpop.f32.mrf.mxu3  ;;  %v1328_v3 = vpop.f32.mrf.mxu0 }
 0x1cc   : > { %v1422_v20 = vadd.f32 %v1328_v3, %v5287_v44  ;;  %v1595_v26 = vpop.f32.mrf.mxu1 }
 0x1cd   : > { %v5606_v28 = vadd.f32 %v2127_v19, %v1955_v18 }
 0x1ce   : > { %v1689_v30 = vadd.f32 %v1595_v26, %v1422_v20 }
 0x1d2   : > { %v1862_v56 = vpop.f32.mrf.mxu2 }
 0x1d3   : > { %v1956_v15 = vadd.f32 %v1862_v56, %v1689_v30  ;;  %v2129_v58 = vpop.f32.mrf.mxu3  ;;  %v1331_v59 = vpop.f32.mrf.mxu0 }
 0x1d4   : > { %v1423_v44 = vadd.f32 %v1331_v59, %v5293_v51  ;;  %v1598_v1 = vpop.f32.mrf.mxu1 }
 0x1d5   : > { %v5617_v39 = vadd.f32 %v2129_v58, %v1956_v15 }
 0x1d6   : > { %v1690_v9 = vadd.f32 %v1598_v1, %v1423_v44  ;;  %4732 = vmatmul.msk.bf16.gmra.mxu0 %vm323_vm1, %v1239_v57  ;;  %v1240_v57 = vpack.c.bf16 %v1213_v27, %v1212_v31  ;;  %v2041_v1 = vpack.c.bf16 %v2014_v49, %v2013_v43  ;;  %v1214_v31 = vld [vmem:[%s5145_s26 + $0xc3] sm:$0xff]  ;;  %v1215_v27 = vld [vmem:[%s5145_s26 + $0xcb] sm:$0xff] }
 0x1d7   : > { %4757 = vmatmul.msk.bf16.gmra.mxu1 %vm323_vm1, %v1506_v62  ;;  %4782 = vmatmul.msk.bf16.gmra.mxu2 %vm323_vm1, %v1773_v0  ;;  %v1507_v62 = vpack.c.bf16 %v1480_v41, %v1479_v38  ;;  %v1774_v0 = vpack.c.bf16 %v1747_v55, %v1746_v42  ;;  %v1481_v38 = vld [vmem:[%s5145_s26 + $0xc4] sm:$0xff]  ;;  %v1482_v41 = vld [vmem:[%s5145_s26 + $0xcc] sm:$0xff] }
 0x1d8   : > { %4807 = vmatmul.msk.bf16.gmra.mxu3 %vm323_vm1, %v2040_v2  ;;  %v1748_v42 = vld [vmem:[%s5145_s26 + $0xc5] sm:$0xff]  ;;  %v1749_v55 = vld [vmem:[%s5145_s26 + $0xcd] sm:$0xff] }
 0x1d9   : > { %v2015_v43 = vld [vmem:[%s5145_s26 + $0xc6] sm:$0xff]  ;;  %v2016_v49 = vld [vmem:[%s5145_s26 + $0xce] sm:$0xff] }
 0x1da   : > { %v1865_v51 = vpop.f32.mrf.mxu2 }
 0x1db   : > { %v1957_v23 = vadd.f32 %v1865_v51, %v1690_v9  ;;  %v2132_v18 = vpop.f32.mrf.mxu3  ;;  %v1333_v19 = vpop.f32.mrf.mxu0 }
 0x1dc   : > { %v1424_v3 = vadd.f32 %v1333_v19, %v5303_v8  ;;  %v1600_v20 = vpop.f32.mrf.mxu1 }
 0x1dd   : > { %v5624_v26 = vadd.f32 %v2132_v18, %v1957_v23 }
 0x1de   : > { %v1691_v30 = vadd.f32 %v1600_v20, %v1424_v3 }
 0x1e2   : > { %v1867_v56 = vpop.f32.mrf.mxu2 }
 0x1e3   : > { %v1958_v15 = vadd.f32 %v1867_v56, %v1691_v30  ;;  %v2134_v58 = vpop.f32.mrf.mxu3  ;;  %v1336_v59 = vpop.f32.mrf.mxu0 }
 0x1e4   : > { %v1425_v8 = vadd.f32 %v1336_v59, %v5309_v16  ;;  %v1603_v44 = vpop.f32.mrf.mxu1 }
 0x1e5   : > { %v5635_v2 = vadd.f32 %v2134_v58, %v1958_v15 }
 0x1e6   : > { %v1692_v9 = vadd.f32 %v1603_v44, %v1425_v8  ;;  %4733 = vmatmul.msk.bf16.gmra.mxu0 %vm323_vm1, %v1240_v57  ;;  %v1241_v57 = vpack.c.bf16 %v1215_v27, %v1214_v31  ;;  %v2042_v44 = vpack.c.bf16 %v2016_v49, %v2015_v43  ;;  %v1216_v31 = vld [vmem:[%s5145_s26 + $0xd3] sm:$0xff]  ;;  %v1217_v27 = vld [vmem:[%s5145_s26 + $0xdb] sm:$0xff] }
 0x1e7   : > { %4758 = vmatmul.msk.bf16.gmra.mxu1 %vm323_vm1, %v1507_v62  ;;  %4783 = vmatmul.msk.bf16.gmra.mxu2 %vm323_vm1, %v1774_v0  ;;  %v1508_v62 = vpack.c.bf16 %v1482_v41, %v1481_v38  ;;  %v1775_v0 = vpack.c.bf16 %v1749_v55, %v1748_v42  ;;  %v1483_v38 = vld [vmem:[%s5145_s26 + $0xd4] sm:$0xff]  ;;  %v1484_v41 = vld [vmem:[%s5145_s26 + $0xdc] sm:$0xff] }
 0x1e8   : > { %4808 = vmatmul.msk.bf16.gmra.mxu3 %vm323_vm1, %v2041_v1  ;;  %v1750_v42 = vld [vmem:[%s5145_s26 + $0xd5] sm:$0xff]  ;;  %v1751_v55 = vld [vmem:[%s5145_s26 + $0xdd] sm:$0xff] }
 0x1e9   : > { %v2017_v43 = vld [vmem:[%s5145_s26 + $0xd6] sm:$0xff]  ;;  %v2018_v49 = vld [vmem:[%s5145_s26 + $0xde] sm:$0xff] }
 0x1ea   : > { %v1870_v16 = vpop.f32.mrf.mxu2 }
 0x1eb   : > { %v1959_v51 = vadd.f32 %v1870_v16, %v1692_v9  ;;  %v2137_v23 = vpop.f32.mrf.mxu3  ;;  %v1338_v18 = vpop.f32.mrf.mxu0 }
 0x1ec   : > { %v1426_v19 = vadd.f32 %v1338_v18, %v5319_v37  ;;  %v1605_v3 = vpop.f32.mrf.mxu1 }
 0x1ed   : > { %v5642_v20 = vadd.f32 %v2137_v23, %v1959_v51 }
 0x1ee   : > { %v1693_v30 = vadd.f32 %v1605_v3, %v1426_v19 }
 0x1f2   : > { %v1872_v56 = vpop.f32.mrf.mxu2 }
 0x1f3   : > { %v1960_v15 = vadd.f32 %v1872_v56, %v1693_v30  ;;  %v2139_v58 = vpop.f32.mrf.mxu3  ;;  %v1341_v59 = vpop.f32.mrf.mxu0 }
 0x1f4   : > { %v1427_v37 = vadd.f32 %v1341_v59, %v5325_v46  ;;  %v1608_v8 = vpop.f32.mrf.mxu1 }
 0x1f5   : > { %v5653_v1 = vadd.f32 %v2139_v58, %v1960_v15 }
 0x1f6   : > { %v1694_v9 = vadd.f32 %v1608_v8, %v1427_v37  ;;  %4734 = vmatmul.msk.bf16.gmra.mxu0 %vm323_vm1, %v1241_v57  ;;  %v1242_v57 = vpack.c.bf16 %v1217_v27, %v1216_v31  ;;  %v2043_v8 = vpack.c.bf16 %v2018_v49, %v2017_v43  ;;  %v1218_v31 = vld [vmem:[%s5145_s26 + $0xe3] sm:$0xff]  ;;  %v1219_v27 = vld [vmem:[%s5145_s26 + $0xeb] sm:$0xff] }
 0x1f7   : > { %4759 = vmatmul.msk.bf16.gmra.mxu1 %vm323_vm1, %v1508_v62  ;;  %4784 = vmatmul.msk.bf16.gmra.mxu2 %vm323_vm1, %v1775_v0  ;;  %v1509_v62 = vpack.c.bf16 %v1484_v41, %v1483_v38  ;;  %v1776_v0 = vpack.c.bf16 %v1751_v55, %v1750_v42  ;;  %v1485_v38 = vld [vmem:[%s5145_s26 + $0xe4] sm:$0xff]  ;;  %v1486_v41 = vld [vmem:[%s5145_s26 + $0xec] sm:$0xff] }
 0x1f8   : > { %4809 = vmatmul.msk.bf16.gmra.mxu3 %vm323_vm1, %v2042_v44  ;;  %v1752_v42 = vld [vmem:[%s5145_s26 + $0xe5] sm:$0xff]  ;;  %v1753_v55 = vld [vmem:[%s5145_s26 + $0xed] sm:$0xff] }
 0x1f9   : > { %v2019_v43 = vld [vmem:[%s5145_s26 + $0xe6] sm:$0xff]  ;;  %v2020_v49 = vld [vmem:[%s5145_s26 + $0xee] sm:$0xff] }
 0x1fa   : > { %v1875_v46 = vpop.f32.mrf.mxu2 }
 0x1fb   : > { %v1961_v16 = vadd.f32 %v1875_v46, %v1694_v9  ;;  %v2142_v51 = vpop.f32.mrf.mxu3  ;;  %v1343_v23 = vpop.f32.mrf.mxu0 }
 0x1fc   : > { %v1428_v18 = vadd.f32 %v1343_v23, %v5335_v4  ;;  %v1610_v19 = vpop.f32.mrf.mxu1 }
 0x1fd   : > { %v5660_v3 = vadd.f32 %v2142_v51, %v1961_v16 }
 0x1fe   : > { %v1695_v30 = vadd.f32 %v1610_v19, %v1428_v18 }
 0x202   : > { %v1877_v56 = vpop.f32.mrf.mxu2 }
 0x203   : > { %v1962_v15 = vadd.f32 %v1877_v56, %v1695_v30  ;;  %v2144_v58 = vpop.f32.mrf.mxu3  ;;  %v1346_v59 = vpop.f32.mrf.mxu0 }
 0x204   : > { %v1429_v4 = vadd.f32 %v1346_v59, %v5341_v12  ;;  %v1613_v37 = vpop.f32.mrf.mxu1 }
 0x205   : > { %v5671_v44 = vadd.f32 %v2144_v58, %v1962_v15 }
 0x206   : > { %v1696_v9 = vadd.f32 %v1613_v37, %v1429_v4  ;;  %4735 = vmatmul.msk.bf16.gmra.mxu0 %vm323_vm1, %v1242_v57  ;;  %v1243_v57 = vpack.c.bf16 %v1219_v27, %v1218_v31  ;;  %v2044_v37 = vpack.c.bf16 %v2020_v49, %v2019_v43  ;;  %v1220_v31 = vld [vmem:[%s5145_s26 + $0xf3] sm:$0xff]  ;;  %v1221_v27 = vld [vmem:[%s5145_s26 + $0xfb] sm:$0xff] }
 0x207   : > { %4760 = vmatmul.msk.bf16.gmra.mxu1 %vm323_vm1, %v1509_v62  ;;  %4785 = vmatmul.msk.bf16.gmra.mxu2 %vm323_vm1, %v1776_v0  ;;  %v1510_v62 = vpack.c.bf16 %v1486_v41, %v1485_v38  ;;  %v1777_v0 = vpack.c.bf16 %v1753_v55, %v1752_v42  ;;  %v1487_v38 = vld [vmem:[%s5145_s26 + $0xf4] sm:$0xff]  ;;  %v1488_v41 = vld [vmem:[%s5145_s26 + $0xfc] sm:$0xff] }
 0x208   : > { %4810 = vmatmul.msk.bf16.gmra.mxu3 %vm323_vm1, %v2043_v8  ;;  %v1754_v42 = vld [vmem:[%s5145_s26 + $0xf5] sm:$0xff]  ;;  %v1755_v55 = vld [vmem:[%s5145_s26 + $0xfd] sm:$0xff] }
 0x209   : > { %v2021_v43 = vld [vmem:[%s5145_s26 + $0xf6] sm:$0xff]  ;;  %v2022_v49 = vld [vmem:[%s5145_s26 + $0xfe] sm:$0xff] }
 0x20a   : > { %v1880_v12 = vpop.f32.mrf.mxu2 }
 0x20b   : > { %v1963_v46 = vadd.f32 %v1880_v12, %v1696_v9  ;;  %v2147_v16 = vpop.f32.mrf.mxu3  ;;  %v1348_v51 = vpop.f32.mrf.mxu0 }
 0x20c   : > { %v1430_v23 = vadd.f32 %v1348_v51, %v5351_v35  ;;  %v1615_v18 = vpop.f32.mrf.mxu1 }
 0x20d   : > { %v5678_v19 = vadd.f32 %v2147_v16, %v1963_v46 }
 0x20e   : > { %v1697_v30 = vadd.f32 %v1615_v18, %v1430_v23 }
 0x212   : > { %v1882_v56 = vpop.f32.mrf.mxu2 }
 0x213   : > { %v1964_v15 = vadd.f32 %v1882_v56, %v1697_v30  ;;  %v2149_v58 = vpop.f32.mrf.mxu3  ;;  %v1351_v59 = vpop.f32.mrf.mxu0 }
 0x214   : > { %v1431_v35 = vadd.f32 %v1351_v59, %v5357_v45  ;;  %v1618_v4 = vpop.f32.mrf.mxu1 }
 0x215   : > { %v5689_v8 = vadd.f32 %v2149_v58, %v1964_v15 }
 0x216   : > { %v1698_v9 = vadd.f32 %v1618_v4, %v1431_v35  ;;  %4736 = vmatmul.msk.bf16.gmra.mxu0 %vm323_vm1, %v1243_v57  ;;  %v1244_v57 = vpack.c.bf16 %v1221_v27, %v1220_v31  ;;  %v2045_v4 = vpack.c.bf16 %v2022_v49, %v2021_v43  ;;  %v1222_v31 = vld [vmem:[%s5145_s26 + $0x103] sm:$0xff]  ;;  %v1223_v27 = vld [vmem:[%s5145_s26 + $0x10b] sm:$0xff] }
 0x217   : > { %4761 = vmatmul.msk.bf16.gmra.mxu1 %vm323_vm1, %v1510_v62  ;;  %4786 = vmatmul.msk.bf16.gmra.mxu2 %vm323_vm1, %v1777_v0  ;;  %v1511_v62 = vpack.c.bf16 %v1488_v41, %v1487_v38  ;;  %v1778_v0 = vpack.c.bf16 %v1755_v55, %v1754_v42  ;;  %v1489_v38 = vld [vmem:[%s5145_s26 + $0x104] sm:$0xff]  ;;  %v1490_v41 = vld [vmem:[%s5145_s26 + $0x10c] sm:$0xff] }
 0x218   : > { %4811 = vmatmul.msk.bf16.gmra.mxu3 %vm323_vm1, %v2044_v37  ;;  %v1756_v42 = vld [vmem:[%s5145_s26 + $0x105] sm:$0xff]  ;;  %v1757_v55 = vld [vmem:[%s5145_s26 + $0x10d] sm:$0xff] }
 0x219   : > { %v2023_v43 = vld [vmem:[%s5145_s26 + $0x106] sm:$0xff]  ;;  %v2024_v49 = vld [vmem:[%s5145_s26 + $0x10e] sm:$0xff] }
 0x21a   : > { %v1885_v45 = vpop.f32.mrf.mxu2 }
 0x21b   : > { %v1965_v12 = vadd.f32 %v1885_v45, %v1698_v9  ;;  %v2152_v46 = vpop.f32.mrf.mxu3  ;;  %v1353_v16 = vpop.f32.mrf.mxu0 }
 0x21c   : > { %v1432_v51 = vadd.f32 %v1353_v16, %v5367_v5  ;;  %v1620_v23 = vpop.f32.mrf.mxu1 }
 0x21d   : > { %v5696_v18 = vadd.f32 %v2152_v46, %v1965_v12 }
 0x21e   : > { %v1699_v30 = vadd.f32 %v1620_v23, %v1432_v51 }
 0x222   : > { %v1887_v56 = vpop.f32.mrf.mxu2 }
 0x223   : > { %v1966_v15 = vadd.f32 %v1887_v56, %v1699_v30  ;;  %v2154_v58 = vpop.f32.mrf.mxu3  ;;  %v1356_v59 = vpop.f32.mrf.mxu0 }
 0x224   : > { %v1433_v5 = vadd.f32 %v1356_v59, %v5373_v14  ;;  %v1623_v35 = vpop.f32.mrf.mxu1 }
 0x225   : > { %v5707_v37 = vadd.f32 %v2154_v58, %v1966_v15 }
 0x226   : > { %v1700_v9 = vadd.f32 %v1623_v35, %v1433_v5  ;;  %4737 = vmatmul.msk.bf16.gmra.mxu0 %vm323_vm1, %v1244_v57  ;;  %v1245_v57 = vpack.c.bf16 %v1223_v27, %v1222_v31  ;;  %v2046_v35 = vpack.c.bf16 %v2024_v49, %v2023_v43  ;;  %v1224_v31 = vld [vmem:[%s5145_s26 + $0x113] sm:$0xff]  ;;  %v1225_v27 = vld [vmem:[%s5145_s26 + $0x11b] sm:$0xff] }
 0x227   : > { %4762 = vmatmul.msk.bf16.gmra.mxu1 %vm323_vm1, %v1511_v62  ;;  %4787 = vmatmul.msk.bf16.gmra.mxu2 %vm323_vm1, %v1778_v0  ;;  %v1512_v62 = vpack.c.bf16 %v1490_v41, %v1489_v38  ;;  %v1779_v0 = vpack.c.bf16 %v1757_v55, %v1756_v42  ;;  %v1491_v38 = vld [vmem:[%s5145_s26 + $0x114] sm:$0xff]  ;;  %v1492_v41 = vld [vmem:[%s5145_s26 + $0x11c] sm:$0xff] }
 0x228   : > { %4812 = vmatmul.msk.bf16.gmra.mxu3 %vm323_vm1, %v2045_v4  ;;  %v1758_v42 = vld [vmem:[%s5145_s26 + $0x115] sm:$0xff]  ;;  %v1759_v55 = vld [vmem:[%s5145_s26 + $0x11d] sm:$0xff] }
 0x229   : > { %v2025_v43 = vld [vmem:[%s5145_s26 + $0x116] sm:$0xff]  ;;  %v2026_v49 = vld [vmem:[%s5145_s26 + $0x11e] sm:$0xff] }
 0x22a   : > { %v1890_v14 = vpop.f32.mrf.mxu2 }
 0x22b   : > { %v1967_v45 = vadd.f32 %v1890_v14, %v1700_v9  ;;  %v2157_v12 = vpop.f32.mrf.mxu3  ;;  %v1358_v46 = vpop.f32.mrf.mxu0 }
 0x22c   : > { %v1434_v16 = vadd.f32 %v1358_v46, %v5383_v40  ;;  %v1625_v51 = vpop.f32.mrf.mxu1 }
 0x22d   : > { %v5714_v23 = vadd.f32 %v2157_v12, %v1967_v45 }
 0x22e   : > { %v1701_v30 = vadd.f32 %v1625_v51, %v1434_v16 }
 0x232   : > { %v1892_v56 = vpop.f32.mrf.mxu2 }
 0x233   : > { %v1968_v15 = vadd.f32 %v1892_v56, %v1701_v30  ;;  %v2159_v58 = vpop.f32.mrf.mxu3  ;;  %v1361_v59 = vpop.f32.mrf.mxu0 }
 0x234   : > { %v1435_v40 = vadd.f32 %v1361_v59, %v5389_v50  ;;  %v1628_v5 = vpop.f32.mrf.mxu1 }
 0x235   : > { %v5725_v4 = vadd.f32 %v2159_v58, %v1968_v15 }
 0x236   : > { %v1702_v9 = vadd.f32 %v1628_v5, %v1435_v40  ;;  %4738 = vmatmul.msk.bf16.gmra.mxu0 %vm323_vm1, %v1245_v57  ;;  %v1246_v57 = vpack.c.bf16 %v1225_v27, %v1224_v31  ;;  %v2047_v5 = vpack.c.bf16 %v2026_v49, %v2025_v43  ;;  %v1226_v31 = vld [vmem:[%s5145_s26 + $0x123] sm:$0xff]  ;;  %v1227_v27 = vld [vmem:[%s5145_s26 + $0x12b] sm:$0xff] }
 0x237   : > { %4763 = vmatmul.msk.bf16.gmra.mxu1 %vm323_vm1, %v1512_v62  ;;  %4788 = vmatmul.msk.bf16.gmra.mxu2 %vm323_vm1, %v1779_v0  ;;  %v1513_v62 = vpack.c.bf16 %v1492_v41, %v1491_v38  ;;  %v1780_v0 = vpack.c.bf16 %v1759_v55, %v1758_v42  ;;  %v1493_v38 = vld [vmem:[%s5145_s26 + $0x124] sm:$0xff]  ;;  %v1494_v41 = vld [vmem:[%s5145_s26 + $0x12c] sm:$0xff] }
 0x238   : > { %4813 = vmatmul.msk.bf16.gmra.mxu3 %vm323_vm1, %v2046_v35  ;;  %v1760_v42 = vld [vmem:[%s5145_s26 + $0x125] sm:$0xff]  ;;  %v1761_v55 = vld [vmem:[%s5145_s26 + $0x12d] sm:$0xff] }
 0x239   : > { %v2027_v43 = vld [vmem:[%s5145_s26 + $0x126] sm:$0xff]  ;;  %v2028_v49 = vld [vmem:[%s5145_s26 + $0x12e] sm:$0xff] }
 0x23a   : > { %v1895_v50 = vpop.f32.mrf.mxu2 }
 0x23b   : > { %v1969_v14 = vadd.f32 %v1895_v50, %v1702_v9  ;;  %v2162_v45 = vpop.f32.mrf.mxu3  ;;  %v1363_v12 = vpop.f32.mrf.mxu0 }
 0x23c   : > { %v1436_v46 = vadd.f32 %v1363_v12, %v5399_v11  ;;  %v1630_v16 = vpop.f32.mrf.mxu1 }
 0x23d   : > { %v5732_v51 = vadd.f32 %v2162_v45, %v1969_v14 }
 0x23e   : > { %v1703_v30 = vadd.f32 %v1630_v16, %v1436_v46 }
 0x242   : > { %v1897_v56 = vpop.f32.mrf.mxu2 }
 0x243   : > { %v1970_v15 = vadd.f32 %v1897_v56, %v1703_v30  ;;  %v2164_v58 = vpop.f32.mrf.mxu3  ;;  %v1366_v59 = vpop.f32.mrf.mxu0 }
 0x244   : > { %v1437_v11 = vadd.f32 %v1366_v59, %v5405_v22  ;;  %v1633_v40 = vpop.f32.mrf.mxu1 }
 0x245   : > { %v5743_v35 = vadd.f32 %v2164_v58, %v1970_v15 }
 0x246   : > { %v1704_v9 = vadd.f32 %v1633_v40, %v1437_v11  ;;  %4739 = vmatmul.msk.bf16.gmra.mxu0 %vm323_vm1, %v1246_v57  ;;  %v1247_v57 = vpack.c.bf16 %v1227_v27, %v1226_v31  ;;  %v2048_v40 = vpack.c.bf16 %v2028_v49, %v2027_v43 }
 0x247   : > { %4764 = vmatmul.msk.bf16.gmra.mxu1 %vm323_vm1, %v1513_v62  ;;  %4789 = vmatmul.msk.bf16.gmra.mxu2 %vm323_vm1, %v1780_v0  ;;  %v1514_v62 = vpack.c.bf16 %v1494_v41, %v1493_v38  ;;  %v1781_v0 = vpack.c.bf16 %v1761_v55, %v1760_v42 }
 0x248   : > { %4814 = vmatmul.msk.bf16.gmra.mxu3 %vm323_vm1, %v2047_v5 }
 0x24a   : > { %v1900_v22 = vpop.f32.mrf.mxu2 }
 0x24b   : > { %v1971_v50 = vadd.f32 %v1900_v22, %v1704_v9  ;;  %v2167_v14 = vpop.f32.mrf.mxu3  ;;  %v1368_v45 = vpop.f32.mrf.mxu0  ;;  %v4971_v22 = vld [vmem:[%s6656_s1 + $0x70] sm:$0xf] }
 0x24c   : > { %v1438_v12 = vadd.f32 %v1368_v45, %v5415_v52  ;;  %v1635_v46 = vpop.f32.mrf.mxu1  ;;  %v5031_v45 = vld [vmem:[%s6656_s1 + $0x60] sm:$0x30] }
 0x24d   : > { %v5750_v16 = vadd.f32 %v2167_v14, %v1971_v50  ;;  %v4921_v50 = vld [vmem:[%s6656_s1 + $0x60] sm:$0xf] }
 0x24e   : > { %v1705_v30 = vadd.f32 %v1635_v46, %v1438_v12  ;;  %v4996_v12 = vld [vmem:[%s6656_s1 + $0x78] sm:$0xf]  ;;  %v5034_v46 = vld [vmem:[%s6656_s1 + $0x78] sm:$0x30]  ;;  %v4922_v31 = vor.u32 %v5031_v45, %v4921_v50 }
 0x24f   : > { %v4997_v27 = vor.u32 %v5034_v46, %v4996_v12  ;;  %v2029_v50 = vld [vmem:[%s5145_s26 + $0x136] sm:$0xff] }
 0x252   : > { %v1902_v56 = vpop.f32.mrf.mxu2 }
 0x253   : > { %v1972_v15 = vadd.f32 %v1902_v56, %v1705_v30  ;;  %v2169_v58 = vpop.f32.mrf.mxu3  ;;  %v1371_v59 = vpop.f32.mrf.mxu0  ;;  %v3451_v56 = vsel %vm381_vm0, %v4922_v31, 0 }
 0x254   : > { %v1439_v52 = vadd.f32 %v1371_v59, %v5442_v17  ;;  %v1638_v11 = vpop.f32.mrf.mxu1  ;;  %v5033_v17 = vld [vmem:[%s6656_s1 + $0x70] sm:$0x30]  ;;  %3460 = vmatpush.bf16.msrb.mxu0 %v3451_v56 }
 0x255   : > { %v5761_v5 = vadd.f32 %v2169_v58, %v1972_v15  ;;  %v4972_v14 = vor.u32 %v5033_v17, %v4971_v22  ;;  %v4946_v58 = vld [vmem:[%s6656_s1 + $0x68] sm:$0xf]  ;;  %v1763_v22 = vld [vmem:[%s5145_s26 + $0x13d] sm:$0xff] }
 0x256   : > { %v1706_v9 = vadd.f32 %v1638_v11, %v1439_v52  ;;  %4740 = vmatmul.msk.bf16.gmra.mxu0 %vm323_vm1, %v1247_v57  ;;  %v4252_v57 = vsel %vm381_vm0, %v4997_v27, 0  ;;  %v1229_v52 = vld [vmem:[%s5145_s26 + $0x13b] sm:$0xff] }
 0x257   : > { %4765 = vmatmul.msk.bf16.gmra.mxu1 %vm323_vm1, %v1514_v62  ;;  %4790 = vmatmul.msk.bf16.gmra.mxu2 %vm323_vm1, %v1781_v0  ;;  %v3985_v55 = vsel %vm381_vm0, %v4972_v14, 0  ;;  %v1228_v0 = vld [vmem:[%s5145_s26 + $0x133] sm:$0xff]  ;;  %v2030_v14 = vld [vmem:[%s5145_s26 + $0x13e] sm:$0xff] }
 0x258   : > { %4815 = vmatmul.msk.bf16.gmra.mxu3 %vm323_vm1, %v2048_v40  ;;  %3994 = vmatpush.bf16.msrb.mxu2 %v3985_v55  ;;  %v1495_v11 = vld [vmem:[%s5145_s26 + $0x134] sm:$0xff]  ;;  %v1496_v40 = vld [vmem:[%s5145_s26 + $0x13c] sm:$0xff]  ;;  %v1248_v12 = vpack.c.bf16 %v1229_v52, %v1228_v0  ;;  %v2049_v55 = vpack.c.bf16 %v2030_v14, %v2029_v50  ;;  %v2260_v52 = vld [vmem:[%s5145_s26 + $0x26] sm:$0xff] }
 0x259   : > { %4261 = vmatpush.bf16.msrb.mxu3 %v4252_v57  ;;  %v1515_v27 = vpack.c.bf16 %v1496_v40, %v1495_v11  ;;  %v2261_v11 = vld [vmem:[%s5145_s26 + $0x2e] sm:$0xff] }
 0x25a   : > { %v1905_v30 = vpop.f32.mrf.mxu2  ;;  %v2527_v40 = vld [vmem:[%s5145_s26 + $0x27] sm:$0xff]  ;;  %v3062_v14 = vld [vmem:[%s5145_s26 + $0x31] sm:$0xff] }
 0x25b   : > { %v1973_v38 = vadd.f32 %v1905_v30, %v1706_v9  ;;  %v2172_v41 = vpop.f32.mrf.mxu3  ;;  %v1373_v42 = vpop.f32.mrf.mxu0  ;;  %v1762_v9 = vld [vmem:[%s5145_s26 + $0x135] sm:$0xff]  ;;  %v3061_v50 = vld [vmem:[%s5145_s26 + $0x29] sm:$0xff] }
 0x25c   : > { %v1440_v43 = vadd.f32 %v1373_v42, %v5459_v53  ;;  %v1640_v49 = vpop.f32.mrf.mxu1  ;;  %v5032_v53 = vld [vmem:[%s6656_s1 + $0x68] sm:$0x30] }
 0x25d   : > { %v5789_v15 = vadd.f32 %v2172_v41, %v1973_v38  ;;  %v4947_v62 = vor.u32 %v5032_v53, %v4946_v58  ;;  %v1782_v38 = vpack.c.bf16 %v1763_v22, %v1762_v9  ;;  %v2528_v9 = vld [vmem:[%s5145_s26 + $0x2f] sm:$0xff] }
 0x25e   : > { %v1707_v59 = vadd.f32 %v1640_v49, %v1440_v43  ;;  %v2794_v22 = vld [vmem:[%s5145_s26 + $0x28] sm:$0xff] }
 0x25f   : > { %v3718_v17 = vsel %vm381_vm0, %v4947_v62, 0 }
 0x260   : > { %3727 = vmatpush.bf16.msrb.mxu1 %v3718_v17  ;;  %v2795_v17 = vld [vmem:[%s5145_s26 + $0x30] sm:$0xff] }
 0x262   : > { %v1907_v45 = vpop.f32.mrf.mxu2 }
 0x263   : > { %v1974_v46 = vadd.f32 %v1907_v45, %v1707_v59  ;;  %v2174_v30 = vpop.f32.mrf.mxu3  ;;  %v1376_v31 = vpop.f32.mrf.mxu0 }
 0x264   : > { %v1441_v41 = vadd.f32 %v1376_v31, %v5465_v61  ;;  %v1643_v42 = vpop.f32.mrf.mxu1 }
 0x265   : > { %v5807_v43 = vadd.f32 %v2174_v30, %v1974_v46 }
 0x266   : > { %v1708_v49 = vadd.f32 %v1643_v42, %v1441_v41  ;;  %4741 = vmatmul.msk.bf16.gmra.mxu0 %vm323_vm1, %v1248_v12  ;;  %v2298_v12 = vpack.c.bf16 %v2261_v11, %v2260_v52  ;;  %v3099_v42 = vpack.c.bf16 %v3062_v14, %v3061_v50  ;;  %v2262_v52 = vld [vmem:[%s5145_s26 + $0x36] sm:$0xff]  ;;  %v2263_v11 = vld [vmem:[%s5145_s26 + $0x3e] sm:$0xff] }
 0x267   : > { %4766 = vmatmul.msk.bf16.gmra.mxu1 %vm323_vm1, %v1515_v27  ;;  %4791 = vmatmul.msk.bf16.gmra.mxu2 %vm323_vm1, %v1782_v38  ;;  %v2565_v27 = vpack.c.bf16 %v2528_v9, %v2527_v40  ;;  %v2832_v38 = vpack.c.bf16 %v2795_v17, %v2794_v22  ;;  %v2529_v40 = vld [vmem:[%s5145_s26 + $0x37] sm:$0xff]  ;;  %v2530_v9 = vld [vmem:[%s5145_s26 + $0x3f] sm:$0xff] }
 0x268   : > { %4816 = vmatmul.msk.bf16.gmra.mxu3 %vm323_vm1, %v2049_v55  ;;  %v2796_v22 = vld [vmem:[%s5145_s26 + $0x38] sm:$0xff]  ;;  %v2797_v17 = vld [vmem:[%s5145_s26 + $0x40] sm:$0xff] }
 0x269   : > { %v3063_v50 = vld [vmem:[%s5145_s26 + $0x39] sm:$0xff]  ;;  %v3064_v14 = vld [vmem:[%s5145_s26 + $0x41] sm:$0xff] }
 0x26a   : > { %v1910_v61 = vpop.f32.mrf.mxu2 }
 0x26b   : > { %v1975_v56 = vadd.f32 %v1910_v61, %v1708_v49  ;;  %v2177_v57 = vpop.f32.mrf.mxu3  ;;  %v1378_v58 = vpop.f32.mrf.mxu0 }
 0x26c   : > { %v1442_v53 = vadd.f32 %v1378_v58, %v5473_v25  ;;  %v1645_v59 = vpop.f32.mrf.mxu1 }
 0x26d   : > { %v5814_v62 = vadd.f32 %v2177_v57, %v1975_v56 }
 0x26e   : > { %v1709_v0 = vadd.f32 %v1645_v59, %v1442_v53 }
 0x272   : > { %v1912_v45 = vpop.f32.mrf.mxu2 }
 0x273   : > { %v1976_v46 = vadd.f32 %v1912_v45, %v1709_v0  ;;  %v2179_v30 = vpop.f32.mrf.mxu3  ;;  %v1381_v31 = vpop.f32.mrf.mxu0 }
 0x274   : > { %v1443_v25 = vadd.f32 %v1381_v31, %v5480_v33  ;;  %v1648_v41 = vpop.f32.mrf.mxu1 }
 0x275   : > { %v5825_v55 = vadd.f32 %v2179_v30, %v1976_v46 }
 0x276   : > { %v1710_v49 = vadd.f32 %v1648_v41, %v1443_v25  ;;  %4823 = vmatmul.msk.bf16.vlgmr.msra.gmra.mxu0 %vm323_vm1, %v2298_v12  ;;  %v2299_v12 = vpack.c.bf16 %v2263_v11, %v2262_v52  ;;  %v3100_v41 = vpack.c.bf16 %v3064_v14, %v3063_v50  ;;  %v2264_v52 = vld [vmem:[%s5145_s26 + $0x46] sm:$0xff]  ;;  %v2265_v11 = vld [vmem:[%s5145_s26 + $0x4e] sm:$0xff] }
 0x277   : > { %4848 = vmatmul.msk.bf16.vlgmr.msra.gmra.mxu1 %vm323_vm1, %v2565_v27  ;;  %4873 = vmatmul.msk.bf16.vlgmr.msra.gmra.mxu2 %vm323_vm1, %v2832_v38  ;;  %v2566_v27 = vpack.c.bf16 %v2530_v9, %v2529_v40  ;;  %v2833_v38 = vpack.c.bf16 %v2797_v17, %v2796_v22  ;;  %v2531_v40 = vld [vmem:[%s5145_s26 + $0x47] sm:$0xff]  ;;  %v2532_v9 = vld [vmem:[%s5145_s26 + $0x4f] sm:$0xff] }
 0x278   : > { %4898 = vmatmul.msk.bf16.vlgmr.msra.gmra.mxu3 %vm323_vm1, %v3099_v42  ;;  %v2798_v22 = vld [vmem:[%s5145_s26 + $0x48] sm:$0xff]  ;;  %v2799_v17 = vld [vmem:[%s5145_s26 + $0x50] sm:$0xff] }
 0x279   : > { %v3065_v50 = vld [vmem:[%s5145_s26 + $0x49] sm:$0xff]  ;;  %v3066_v14 = vld [vmem:[%s5145_s26 + $0x51] sm:$0xff] }
 0x27a   : > { %v1915_v33 = vpop.f32.mrf.mxu2 }
 0x27b   : > { %v1977_v61 = vadd.f32 %v1915_v33, %v1710_v49  ;;  %v2182_v56 = vpop.f32.mrf.mxu3  ;;  %v1383_v57 = vpop.f32.mrf.mxu0 }
 0x27c   : > { %v1444_v58 = vadd.f32 %v1383_v57, %v5488_v60  ;;  %v1650_v53 = vpop.f32.mrf.mxu1 }
 0x27d   : > { %v5832_v59 = vadd.f32 %v2182_v56, %v1977_v61 }
 0x27e   : > { %v1711_v0 = vadd.f32 %v1650_v53, %v1444_v58 }
 0x282   : > { %v1917_v45 = vpop.f32.mrf.mxu2 }
 0x283   : > { %v1978_v46 = vadd.f32 %v1917_v45, %v1711_v0  ;;  %v2184_v30 = vpop.f32.mrf.mxu3  ;;  %v1386_v31 = vpop.f32.mrf.mxu0 }
 0x284   : > { %v1445_v60 = vadd.f32 %v1386_v31, %v5495_v7  ;;  %v1653_v25 = vpop.f32.mrf.mxu1 }
 0x285   : > { %v5843_v42 = vadd.f32 %v2184_v30, %v1978_v46 }
 0x286   : > { %v1712_v49 = vadd.f32 %v1653_v25, %v1445_v60  ;;  %4824 = vmatmul.msk.bf16.gmra.mxu0 %vm323_vm1, %v2299_v12  ;;  %v2300_v12 = vpack.c.bf16 %v2265_v11, %v2264_v52  ;;  %v3101_v25 = vpack.c.bf16 %v3066_v14, %v3065_v50  ;;  %v2266_v52 = vld [vmem:[%s5145_s26 + $0x56] sm:$0xff]  ;;  %v2267_v11 = vld [vmem:[%s5145_s26 + $0x5e] sm:$0xff] }
 0x287   : > { %4849 = vmatmul.msk.bf16.gmra.mxu1 %vm323_vm1, %v2566_v27  ;;  %4874 = vmatmul.msk.bf16.gmra.mxu2 %vm323_vm1, %v2833_v38  ;;  %v2567_v27 = vpack.c.bf16 %v2532_v9, %v2531_v40  ;;  %v2834_v38 = vpack.c.bf16 %v2799_v17, %v2798_v22  ;;  %v2533_v40 = vld [vmem:[%s5145_s26 + $0x57] sm:$0xff]  ;;  %v2534_v9 = vld [vmem:[%s5145_s26 + $0x5f] sm:$0xff] }
 0x288   : > { %4899 = vmatmul.msk.bf16.gmra.mxu3 %vm323_vm1, %v3100_v41  ;;  %v2800_v22 = vld [vmem:[%s5145_s26 + $0x58] sm:$0xff]  ;;  %v2801_v17 = vld [vmem:[%s5145_s26 + $0x60] sm:$0xff] }
 0x289   : > { %v3067_v50 = vld [vmem:[%s5145_s26 + $0x59] sm:$0xff]  ;;  %v3068_v14 = vld [vmem:[%s5145_s26 + $0x61] sm:$0xff] }
 0x28a   : > { %v1920_v7 = vpop.f32.mrf.mxu2 }
 0x28b   : > { %v1979_v33 = vadd.f32 %v1920_v7, %v1712_v49  ;;  %v2187_v61 = vpop.f32.mrf.mxu3  ;;  %v1388_v56 = vpop.f32.mrf.mxu0 }
 0x28c   : > { %v1446_v57 = vadd.f32 %v1388_v56, %v5503_v34  ;;  %v1655_v58 = vpop.f32.mrf.mxu1 }
 0x28d   : > { %v5850_v53 = vadd.f32 %v2187_v61, %v1979_v33 }
 0x28e   : > { %v1713_v0 = vadd.f32 %v1655_v58, %v1446_v57 }
 0x292   : > { %v1922_v45 = vpop.f32.mrf.mxu2 }
 0x293   : > { %v1980_v46 = vadd.f32 %v1922_v45, %v1713_v0  ;;  %v2189_v30 = vpop.f32.mrf.mxu3  ;;  %v1391_v31 = vpop.f32.mrf.mxu0 }
 0x294   : > { %v1447_v34 = vadd.f32 %v1391_v31, %v5510_v47  ;;  %v1658_v60 = vpop.f32.mrf.mxu1 }
 0x295   : > { %v5861_v41 = vadd.f32 %v2189_v30, %v1980_v46 }
 0x296   : > { %v1714_v49 = vadd.f32 %v1658_v60, %v1447_v34  ;;  %4825 = vmatmul.msk.bf16.gmra.mxu0 %vm323_vm1, %v2300_v12  ;;  %v2301_v12 = vpack.c.bf16 %v2267_v11, %v2266_v52  ;;  %v3102_v60 = vpack.c.bf16 %v3068_v14, %v3067_v50  ;;  %v2268_v52 = vld [vmem:[%s5145_s26 + $0x66] sm:$0xff]  ;;  %v2269_v11 = vld [vmem:[%s5145_s26 + $0x6e] sm:$0xff] }
 0x297   : > { %4850 = vmatmul.msk.bf16.gmra.mxu1 %vm323_vm1, %v2567_v27  ;;  %4875 = vmatmul.msk.bf16.gmra.mxu2 %vm323_vm1, %v2834_v38  ;;  %v2568_v27 = vpack.c.bf16 %v2534_v9, %v2533_v40  ;;  %v2835_v38 = vpack.c.bf16 %v2801_v17, %v2800_v22  ;;  %v2535_v40 = vld [vmem:[%s5145_s26 + $0x67] sm:$0xff]  ;;  %v2536_v9 = vld [vmem:[%s5145_s26 + $0x6f] sm:$0xff] }
 0x298   : > { %4900 = vmatmul.msk.bf16.gmra.mxu3 %vm323_vm1, %v3101_v25  ;;  %v2802_v22 = vld [vmem:[%s5145_s26 + $0x68] sm:$0xff]  ;;  %v2803_v17 = vld [vmem:[%s5145_s26 + $0x70] sm:$0xff] }
 0x299   : > { %v3069_v50 = vld [vmem:[%s5145_s26 + $0x69] sm:$0xff]  ;;  %v3070_v14 = vld [vmem:[%s5145_s26 + $0x71] sm:$0xff] }
 0x29a   : > { %v1925_v47 = vpop.f32.mrf.mxu2 }
 0x29b   : > { %v1981_v7 = vadd.f32 %v1925_v47, %v1714_v49  ;;  %v2192_v33 = vpop.f32.mrf.mxu3  ;;  %v1393_v61 = vpop.f32.mrf.mxu0 }
 0x29c   : > { %v1448_v56 = vadd.f32 %v1393_v61, %v5518_v10  ;;  %v1660_v57 = vpop.f32.mrf.mxu1 }
 0x29d   : > { %v5868_v58 = vadd.f32 %v2192_v33, %v1981_v7 }
 0x29e   : > { %v1715_v0 = vadd.f32 %v1660_v57, %v1448_v56 }
 0x2a2   : > { %v1927_v45 = vpop.f32.mrf.mxu2 }
 0x2a3   : > { %v1982_v46 = vadd.f32 %v1927_v45, %v1715_v0  ;;  %v2194_v30 = vpop.f32.mrf.mxu3  ;;  %v1396_v31 = vpop.f32.mrf.mxu0 }
 0x2a4   : > { %v1449_v10 = vadd.f32 %v1396_v31, %v5525_v24  ;;  %v1663_v34 = vpop.f32.mrf.mxu1 }
 0x2a5   : > { %v5879_v25 = vadd.f32 %v2194_v30, %v1982_v46 }
 0x2a6   : > { %v1716_v49 = vadd.f32 %v1663_v34, %v1449_v10  ;;  %4826 = vmatmul.msk.bf16.gmra.mxu0 %vm323_vm1, %v2301_v12  ;;  %v2302_v12 = vpack.c.bf16 %v2269_v11, %v2268_v52  ;;  %v3103_v34 = vpack.c.bf16 %v3070_v14, %v3069_v50  ;;  %v2270_v52 = vld [vmem:[%s5145_s26 + $0x76] sm:$0xff]  ;;  %v2271_v11 = vld [vmem:[%s5145_s26 + $0x7e] sm:$0xff] }
 0x2a7   : > { %4851 = vmatmul.msk.bf16.gmra.mxu1 %vm323_vm1, %v2568_v27  ;;  %4876 = vmatmul.msk.bf16.gmra.mxu2 %vm323_vm1, %v2835_v38  ;;  %v2569_v27 = vpack.c.bf16 %v2536_v9, %v2535_v40  ;;  %v2836_v38 = vpack.c.bf16 %v2803_v17, %v2802_v22  ;;  %v2537_v40 = vld [vmem:[%s5145_s26 + $0x77] sm:$0xff]  ;;  %v2538_v9 = vld [vmem:[%s5145_s26 + $0x7f] sm:$0xff] }
 0x2a8   : > { %4901 = vmatmul.msk.bf16.gmra.mxu3 %vm323_vm1, %v3102_v60  ;;  %v2804_v22 = vld [vmem:[%s5145_s26 + $0x78] sm:$0xff]  ;;  %v2805_v17 = vld [vmem:[%s5145_s26 + $0x80] sm:$0xff] }
 0x2a9   : > { %v3071_v50 = vld [vmem:[%s5145_s26 + $0x79] sm:$0xff]  ;;  %v3072_v14 = vld [vmem:[%s5145_s26 + $0x81] sm:$0xff] }
 0x2aa   : > { %v1930_v24 = vpop.f32.mrf.mxu2 }
 0x2ab   : > { %v1983_v47 = vadd.f32 %v1930_v24, %v1716_v49  ;;  %v2197_v7 = vpop.f32.mrf.mxu3  ;;  %v1398_v33 = vpop.f32.mrf.mxu0 }
 0x2ac   : > { %v1450_v61 = vadd.f32 %v1398_v33, %v5533_v54  ;;  %v1665_v56 = vpop.f32.mrf.mxu1 }
 0x2ad   : > { %v5886_v57 = vadd.f32 %v2197_v7, %v1983_v47 }
 0x2ae   : > { %v1717_v0 = vadd.f32 %v1665_v56, %v1450_v61 }
 0x2b2   : > { %v1932_v45 = vpop.f32.mrf.mxu2 }
 0x2b3   : > { %v1984_v46 = vadd.f32 %v1932_v45, %v1717_v0  ;;  %v2199_v30 = vpop.f32.mrf.mxu3  ;;  %v1401_v31 = vpop.f32.mrf.mxu0 }
 0x2b4   : > { %v1451_v54 = vadd.f32 %v1401_v31, %v5540_v63  ;;  %v1668_v10 = vpop.f32.mrf.mxu1 }
 0x2b5   : > { %v5897_v60 = vadd.f32 %v2199_v30, %v1984_v46 }
 0x2b6   : > { %v1718_v49 = vadd.f32 %v1668_v10, %v1451_v54  ;;  %4827 = vmatmul.msk.bf16.gmra.mxu0 %vm323_vm1, %v2302_v12  ;;  %v2303_v12 = vpack.c.bf16 %v2271_v11, %v2270_v52  ;;  %v3104_v10 = vpack.c.bf16 %v3072_v14, %v3071_v50  ;;  %v2272_v52 = vld [vmem:[%s5145_s26 + $0x86] sm:$0xff]  ;;  %v2273_v11 = vld [vmem:[%s5145_s26 + $0x8e] sm:$0xff] }
 0x2b7   : > { %4852 = vmatmul.msk.bf16.gmra.mxu1 %vm323_vm1, %v2569_v27  ;;  %4877 = vmatmul.msk.bf16.gmra.mxu2 %vm323_vm1, %v2836_v38  ;;  %v2570_v27 = vpack.c.bf16 %v2538_v9, %v2537_v40  ;;  %v2837_v38 = vpack.c.bf16 %v2805_v17, %v2804_v22  ;;  %v2539_v40 = vld [vmem:[%s5145_s26 + $0x87] sm:$0xff]  ;;  %v2540_v9 = vld [vmem:[%s5145_s26 + $0x8f] sm:$0xff] }
 0x2b8   : > { %4902 = vmatmul.msk.bf16.gmra.mxu3 %vm323_vm1, %v3103_v34  ;;  %v2806_v22 = vld [vmem:[%s5145_s26 + $0x88] sm:$0xff]  ;;  %v2807_v17 = vld [vmem:[%s5145_s26 + $0x90] sm:$0xff] }
 0x2b9   : > { %v3073_v50 = vld [vmem:[%s5145_s26 + $0x89] sm:$0xff]  ;;  %v3074_v14 = vld [vmem:[%s5145_s26 + $0x91] sm:$0xff] }
 0x2ba   : > { %v1935_v63 = vpop.f32.mrf.mxu2 }
 0x2bb   : > { %v1985_v24 = vadd.f32 %v1935_v63, %v1718_v49  ;;  %v2202_v47 = vpop.f32.mrf.mxu3  ;;  %v1403_v7 = vpop.f32.mrf.mxu0 }
 0x2bc   : > { %v1452_v33 = vadd.f32 %v1403_v7, %v5550_v32  ;;  %v1670_v61 = vpop.f32.mrf.mxu1 }
 0x2bd   : > { %v5904_v56 = vadd.f32 %v2202_v47, %v1985_v24 }
 0x2be   : > { %v1719_v0 = vadd.f32 %v1670_v61, %v1452_v33 }
 0x2c2   : > { %v1937_v45 = vpop.f32.mrf.mxu2 }
 0x2c3   : > { %v1986_v46 = vadd.f32 %v1937_v45, %v1719_v0  ;;  %v2204_v30 = vpop.f32.mrf.mxu3  ;;  %v1406_v31 = vpop.f32.mrf.mxu0 }
 0x2c4   : > { %v1453_v32 = vadd.f32 %v1406_v31, %v5556_v48  ;;  %v1673_v54 = vpop.f32.mrf.mxu1 }
 0x2c5   : > { %v5915_v34 = vadd.f32 %v2204_v30, %v1986_v46 }
 0x2c6   : > { %v1720_v49 = vadd.f32 %v1673_v54, %v1453_v32  ;;  %4828 = vmatmul.msk.bf16.gmra.mxu0 %vm323_vm1, %v2303_v12  ;;  %v2304_v12 = vpack.c.bf16 %v2273_v11, %v2272_v52  ;;  %v3105_v54 = vpack.c.bf16 %v3074_v14, %v3073_v50  ;;  %v2274_v52 = vld [vmem:[%s5145_s26 + $0x96] sm:$0xff]  ;;  %v2275_v11 = vld [vmem:[%s5145_s26 + $0x9e] sm:$0xff] }
 0x2c7   : > { %4853 = vmatmul.msk.bf16.gmra.mxu1 %vm323_vm1, %v2570_v27  ;;  %4878 = vmatmul.msk.bf16.gmra.mxu2 %vm323_vm1, %v2837_v38  ;;  %v2571_v27 = vpack.c.bf16 %v2540_v9, %v2539_v40  ;;  %v2838_v38 = vpack.c.bf16 %v2807_v17, %v2806_v22  ;;  %v2541_v40 = vld [vmem:[%s5145_s26 + $0x97] sm:$0xff]  ;;  %v2542_v9 = vld [vmem:[%s5145_s26 + $0x9f] sm:$0xff] }
 0x2c8   : > { %4903 = vmatmul.msk.bf16.gmra.mxu3 %vm323_vm1, %v3104_v10  ;;  %v2808_v22 = vld [vmem:[%s5145_s26 + $0x98] sm:$0xff]  ;;  %v2809_v17 = vld [vmem:[%s5145_s26 + $0xa0] sm:$0xff] }
 0x2c9   : > { %v3075_v50 = vld [vmem:[%s5145_s26 + $0x99] sm:$0xff]  ;;  %v3076_v14 = vld [vmem:[%s5145_s26 + $0xa1] sm:$0xff] }
 0x2ca   : > { %v1940_v48 = vpop.f32.mrf.mxu2 }
 0x2cb   : > { %v1987_v63 = vadd.f32 %v1940_v48, %v1720_v49  ;;  %v2207_v24 = vpop.f32.mrf.mxu3  ;;  %v1408_v47 = vpop.f32.mrf.mxu0 }
 0x2cc   : > { %v1454_v7 = vadd.f32 %v1408_v47, %v5566_v21  ;;  %v1675_v33 = vpop.f32.mrf.mxu1 }
 0x2cd   : > { %v5922_v61 = vadd.f32 %v2207_v24, %v1987_v63 }
 0x2ce   : > { %v1721_v0 = vadd.f32 %v1675_v33, %v1454_v7 }
 0x2d2   : > { %v1942_v45 = vpop.f32.mrf.mxu2 }
 0x2d3   : > { %v1988_v46 = vadd.f32 %v1942_v45, %v1721_v0  ;;  %v2209_v30 = vpop.f32.mrf.mxu3  ;;  %v1411_v31 = vpop.f32.mrf.mxu0 }
 0x2d4   : > { %v1455_v21 = vadd.f32 %v1411_v31, %v5572_v36  ;;  %v1678_v32 = vpop.f32.mrf.mxu1 }
 0x2d5   : > { %v5933_v10 = vadd.f32 %v2209_v30, %v1988_v46 }
 0x2d6   : > { %v1722_v49 = vadd.f32 %v1678_v32, %v1455_v21  ;;  %4829 = vmatmul.msk.bf16.gmra.mxu0 %vm323_vm1, %v2304_v12  ;;  %v2305_v12 = vpack.c.bf16 %v2275_v11, %v2274_v52  ;;  %v3106_v32 = vpack.c.bf16 %v3076_v14, %v3075_v50  ;;  %v2276_v52 = vld [vmem:[%s5145_s26 + $0xa6] sm:$0xff]  ;;  %v2277_v11 = vld [vmem:[%s5145_s26 + $0xae] sm:$0xff] }
 0x2d7   : > { %4854 = vmatmul.msk.bf16.gmra.mxu1 %vm323_vm1, %v2571_v27  ;;  %4879 = vmatmul.msk.bf16.gmra.mxu2 %vm323_vm1, %v2838_v38  ;;  %v2572_v27 = vpack.c.bf16 %v2542_v9, %v2541_v40  ;;  %v2839_v38 = vpack.c.bf16 %v2809_v17, %v2808_v22  ;;  %v2543_v40 = vld [vmem:[%s5145_s26 + $0xa7] sm:$0xff]  ;;  %v2544_v9 = vld [vmem:[%s5145_s26 + $0xaf] sm:$0xff] }
 0x2d8   : > { %4904 = vmatmul.msk.bf16.gmra.mxu3 %vm323_vm1, %v3105_v54  ;;  %v2810_v22 = vld [vmem:[%s5145_s26 + $0xa8] sm:$0xff]  ;;  %v2811_v17 = vld [vmem:[%s5145_s26 + $0xb0] sm:$0xff] }
 0x2d9   : > { %v3077_v50 = vld [vmem:[%s5145_s26 + $0xa9] sm:$0xff]  ;;  %v3078_v14 = vld [vmem:[%s5145_s26 + $0xb1] sm:$0xff] }
 0x2da   : > { %v1945_v36 = vpop.f32.mrf.mxu2 }
 0x2db   : > { %v1989_v48 = vadd.f32 %v1945_v36, %v1722_v49  ;;  %v2212_v63 = vpop.f32.mrf.mxu3  ;;  %v1413_v24 = vpop.f32.mrf.mxu0 }
 0x2dc   : > { %v1456_v47 = vadd.f32 %v1413_v24, %v5582_v13  ;;  %v1680_v7 = vpop.f32.mrf.mxu1 }
 0x2dd   : > { %v5940_v33 = vadd.f32 %v2212_v63, %v1989_v48 }
 0x2de   : > { %v1723_v0 = vadd.f32 %v1680_v7, %v1456_v47 }
 0x2e2   : > { %v1947_v45 = vpop.f32.mrf.mxu2 }
 0x2e3   : > { %v1990_v46 = vadd.f32 %v1947_v45, %v1723_v0  ;;  %v2214_v30 = vpop.f32.mrf.mxu3  ;;  %v1416_v31 = vpop.f32.mrf.mxu0 }
 0x2e4   : > { %v1457_v13 = vadd.f32 %v1416_v31, %v5588_v29  ;;  %v1683_v21 = vpop.f32.mrf.mxu1 }
 0x2e5   : > { %v5951_v54 = vadd.f32 %v2214_v30, %v1990_v46 }
 0x2e6   : > { %v1724_v49 = vadd.f32 %v1683_v21, %v1457_v13  ;;  %4830 = vmatmul.msk.bf16.gmra.mxu0 %vm323_vm1, %v2305_v12  ;;  %v2306_v12 = vpack.c.bf16 %v2277_v11, %v2276_v52  ;;  %v3107_v21 = vpack.c.bf16 %v3078_v14, %v3077_v50  ;;  %v2278_v52 = vld [vmem:[%s5145_s26 + $0xb6] sm:$0xff]  ;;  %v2279_v11 = vld [vmem:[%s5145_s26 + $0xbe] sm:$0xff] }
 0x2e7   : > { %4855 = vmatmul.msk.bf16.gmra.mxu1 %vm323_vm1, %v2572_v27  ;;  %4880 = vmatmul.msk.bf16.gmra.mxu2 %vm323_vm1, %v2839_v38  ;;  %v2573_v27 = vpack.c.bf16 %v2544_v9, %v2543_v40  ;;  %v2840_v38 = vpack.c.bf16 %v2811_v17, %v2810_v22  ;;  %v2545_v40 = vld [vmem:[%s5145_s26 + $0xb7] sm:$0xff]  ;;  %v2546_v9 = vld [vmem:[%s5145_s26 + $0xbf] sm:$0xff] }
 0x2e8   : > { %4905 = vmatmul.msk.bf16.gmra.mxu3 %vm323_vm1, %v3106_v32  ;;  %v2812_v22 = vld [vmem:[%s5145_s26 + $0xb8] sm:$0xff]  ;;  %v2813_v17 = vld [vmem:[%s5145_s26 + $0xc0] sm:$0xff] }
 0x2e9   : > { %v3079_v50 = vld [vmem:[%s5145_s26 + $0xb9] sm:$0xff]  ;;  %v3080_v14 = vld [vmem:[%s5145_s26 + $0xc1] sm:$0xff] }
 0x2ea   : > { %v1950_v29 = vpop.f32.mrf.mxu2 }
 0x2eb   : > { %v1991_v36 = vadd.f32 %v1950_v29, %v1724_v49  ;;  %v2217_v48 = vpop.f32.mrf.mxu3  ;;  %v1418_v63 = vpop.f32.mrf.mxu0 }
 0x2ec   : > { %v1458_v24 = vadd.f32 %v1418_v63, %v5599_v6  ;;  %v1685_v47 = vpop.f32.mrf.mxu1 }
 0x2ed   : > { %v5958_v7 = vadd.f32 %v2217_v48, %v1991_v36 }
 0x2ee   : > { %v1725_v0 = vadd.f32 %v1685_v47, %v1458_v24 }
 0x2f2   : > { %v1952_v45 = vpop.f32.mrf.mxu2 }
 0x2f3   : > { %v1992_v46 = vadd.f32 %v1952_v45, %v1725_v0  ;;  %v2219_v30 = vpop.f32.mrf.mxu3  ;;  %v2394_v31 = vpop.f32.mrf.mxu0 }
 0x2f4   : > { %v2489_v6 = vadd.f32 %v2394_v31, %v5606_v28  ;;  %v2661_v13 = vpop.f32.mrf.mxu1 }
 0x2f5   : > { %v5969_v32 = vadd.f32 %v2219_v30, %v1992_v46 }
 0x2f6   : > { %v2756_v49 = vadd.f32 %v2661_v13, %v2489_v6  ;;  %4831 = vmatmul.msk.bf16.gmra.mxu0 %vm323_vm1, %v2306_v12  ;;  %v2307_v12 = vpack.c.bf16 %v2279_v11, %v2278_v52  ;;  %v3108_v13 = vpack.c.bf16 %v3080_v14, %v3079_v50  ;;  %v2280_v52 = vld [vmem:[%s5145_s26 + $0xc6] sm:$0xff]  ;;  %v2281_v11 = vld [vmem:[%s5145_s26 + $0xce] sm:$0xff] }
 0x2f7   : > { %4856 = vmatmul.msk.bf16.gmra.mxu1 %vm323_vm1, %v2573_v27  ;;  %4881 = vmatmul.msk.bf16.gmra.mxu2 %vm323_vm1, %v2840_v38  ;;  %v2574_v27 = vpack.c.bf16 %v2546_v9, %v2545_v40  ;;  %v2841_v38 = vpack.c.bf16 %v2813_v17, %v2812_v22  ;;  %v2547_v40 = vld [vmem:[%s5145_s26 + $0xc7] sm:$0xff]  ;;  %v2548_v9 = vld [vmem:[%s5145_s26 + $0xcf] sm:$0xff] }
 0x2f8   : > { %4906 = vmatmul.msk.bf16.gmra.mxu3 %vm323_vm1, %v3107_v21  ;;  %v2814_v22 = vld [vmem:[%s5145_s26 + $0xc8] sm:$0xff]  ;;  %v2815_v17 = vld [vmem:[%s5145_s26 + $0xd0] sm:$0xff] }
 0x2f9   : > { %v3081_v50 = vld [vmem:[%s5145_s26 + $0xc9] sm:$0xff]  ;;  %v3082_v14 = vld [vmem:[%s5145_s26 + $0xd1] sm:$0xff] }
 0x2fa   : > { %v2928_v28 = vpop.f32.mrf.mxu2 }
 0x2fb   : > { %v3023_v29 = vadd.f32 %v2928_v28, %v2756_v49  ;;  %v3195_v36 = vpop.f32.mrf.mxu3  ;;  %v2396_v48 = vpop.f32.mrf.mxu0 }
 0x2fc   : > { %v2490_v63 = vadd.f32 %v2396_v48, %v5617_v39  ;;  %v2663_v24 = vpop.f32.mrf.mxu1 }
 0x2fd   : > { %v5976_v47 = vadd.f32 %v3195_v36, %v3023_v29 }
 0x2fe   : > { %v2757_v0 = vadd.f32 %v2663_v24, %v2490_v63 }
 0x302   : > { %v2930_v45 = vpop.f32.mrf.mxu2 }
 0x303   : > { %v3024_v46 = vadd.f32 %v2930_v45, %v2757_v0  ;;  %v3197_v30 = vpop.f32.mrf.mxu3  ;;  %v2399_v31 = vpop.f32.mrf.mxu0 }
 0x304   : > { %v2491_v39 = vadd.f32 %v2399_v31, %v5624_v26  ;;  %v2666_v6 = vpop.f32.mrf.mxu1 }
 0x305   : > { %v5987_v21 = vadd.f32 %v3197_v30, %v3024_v46 }
 0x306   : > { %v2758_v49 = vadd.f32 %v2666_v6, %v2491_v39  ;;  %4832 = vmatmul.msk.bf16.gmra.mxu0 %vm323_vm1, %v2307_v12  ;;  %v2308_v12 = vpack.c.bf16 %v2281_v11, %v2280_v52  ;;  %v3109_v6 = vpack.c.bf16 %v3082_v14, %v3081_v50  ;;  %v2282_v52 = vld [vmem:[%s5145_s26 + $0xd6] sm:$0xff]  ;;  %v2283_v11 = vld [vmem:[%s5145_s26 + $0xde] sm:$0xff] }
 0x307   : > { %4857 = vmatmul.msk.bf16.gmra.mxu1 %vm323_vm1, %v2574_v27  ;;  %4882 = vmatmul.msk.bf16.gmra.mxu2 %vm323_vm1, %v2841_v38  ;;  %v2575_v27 = vpack.c.bf16 %v2548_v9, %v2547_v40  ;;  %v2842_v38 = vpack.c.bf16 %v2815_v17, %v2814_v22  ;;  %v2549_v40 = vld [vmem:[%s5145_s26 + $0xd7] sm:$0xff]  ;;  %v2550_v9 = vld [vmem:[%s5145_s26 + $0xdf] sm:$0xff] }
 0x308   : > { %4907 = vmatmul.msk.bf16.gmra.mxu3 %vm323_vm1, %v3108_v13  ;;  %v2816_v22 = vld [vmem:[%s5145_s26 + $0xd8] sm:$0xff]  ;;  %v2817_v17 = vld [vmem:[%s5145_s26 + $0xe0] sm:$0xff] }
 0x309   : > { %v3083_v50 = vld [vmem:[%s5145_s26 + $0xd9] sm:$0xff]  ;;  %v3084_v14 = vld [vmem:[%s5145_s26 + $0xe1] sm:$0xff] }
 0x30a   : > { %v2933_v26 = vpop.f32.mrf.mxu2 }
 0x30b   : > { %v3025_v28 = vadd.f32 %v2933_v26, %v2758_v49  ;;  %v3200_v29 = vpop.f32.mrf.mxu3  ;;  %v2401_v36 = vpop.f32.mrf.mxu0 }
 0x30c   : > { %v2492_v48 = vadd.f32 %v2401_v36, %v5635_v2  ;;  %v2668_v63 = vpop.f32.mrf.mxu1 }
 0x30d   : > { %v5994_v24 = vadd.f32 %v3200_v29, %v3025_v28 }
 0x30e   : > { %v2759_v0 = vadd.f32 %v2668_v63, %v2492_v48 }
 0x312   : > { %v2935_v45 = vpop.f32.mrf.mxu2 }
 0x313   : > { %v3026_v46 = vadd.f32 %v2935_v45, %v2759_v0  ;;  %v3202_v30 = vpop.f32.mrf.mxu3  ;;  %v2404_v31 = vpop.f32.mrf.mxu0 }
 0x314   : > { %v2493_v2 = vadd.f32 %v2404_v31, %v5642_v20  ;;  %v2671_v39 = vpop.f32.mrf.mxu1 }
 0x315   : > { %v6005_v13 = vadd.f32 %v3202_v30, %v3026_v46 }
 0x316   : > { %v2760_v49 = vadd.f32 %v2671_v39, %v2493_v2  ;;  %4833 = vmatmul.msk.bf16.gmra.mxu0 %vm323_vm1, %v2308_v12  ;;  %v2309_v12 = vpack.c.bf16 %v2283_v11, %v2282_v52  ;;  %v3110_v39 = vpack.c.bf16 %v3084_v14, %v3083_v50  ;;  %v2284_v52 = vld [vmem:[%s5145_s26 + $0xe6] sm:$0xff]  ;;  %v2285_v11 = vld [vmem:[%s5145_s26 + $0xee] sm:$0xff] }
 0x317   : > { %4858 = vmatmul.msk.bf16.gmra.mxu1 %vm323_vm1, %v2575_v27  ;;  %4883 = vmatmul.msk.bf16.gmra.mxu2 %vm323_vm1, %v2842_v38  ;;  %v2576_v27 = vpack.c.bf16 %v2550_v9, %v2549_v40  ;;  %v2843_v38 = vpack.c.bf16 %v2817_v17, %v2816_v22  ;;  %v2551_v40 = vld [vmem:[%s5145_s26 + $0xe7] sm:$0xff]  ;;  %v2552_v9 = vld [vmem:[%s5145_s26 + $0xef] sm:$0xff] }
 0x318   : > { %4908 = vmatmul.msk.bf16.gmra.mxu3 %vm323_vm1, %v3109_v6  ;;  %v2818_v22 = vld [vmem:[%s5145_s26 + $0xe8] sm:$0xff]  ;;  %v2819_v17 = vld [vmem:[%s5145_s26 + $0xf0] sm:$0xff] }
 0x319   : > { %v3085_v50 = vld [vmem:[%s5145_s26 + $0xe9] sm:$0xff]  ;;  %v3086_v14 = vld [vmem:[%s5145_s26 + $0xf1] sm:$0xff] }
 0x31a   : > { %v2938_v20 = vpop.f32.mrf.mxu2 }
 0x31b   : > { %v3027_v26 = vadd.f32 %v2938_v20, %v2760_v49  ;;  %v3205_v28 = vpop.f32.mrf.mxu3  ;;  %v2406_v29 = vpop.f32.mrf.mxu0 }
 0x31c   : > { %v2494_v36 = vadd.f32 %v2406_v29, %v5653_v1  ;;  %v2673_v48 = vpop.f32.mrf.mxu1 }
 0x31d   : > { %v6012_v63 = vadd.f32 %v3205_v28, %v3027_v26 }
 0x31e   : > { %v2761_v0 = vadd.f32 %v2673_v48, %v2494_v36 }
 0x322   : > { %v2940_v45 = vpop.f32.mrf.mxu2 }
 0x323   : > { %v3028_v46 = vadd.f32 %v2940_v45, %v2761_v0  ;;  %v3207_v30 = vpop.f32.mrf.mxu3  ;;  %v2409_v31 = vpop.f32.mrf.mxu0 }
 0x324   : > { %v2495_v1 = vadd.f32 %v2409_v31, %v5660_v3  ;;  %v2676_v2 = vpop.f32.mrf.mxu1 }
 0x325   : > { %v6023_v6 = vadd.f32 %v3207_v30, %v3028_v46 }
 0x326   : > { %v2762_v49 = vadd.f32 %v2676_v2, %v2495_v1  ;;  %4834 = vmatmul.msk.bf16.gmra.mxu0 %vm323_vm1, %v2309_v12  ;;  %v2310_v12 = vpack.c.bf16 %v2285_v11, %v2284_v52  ;;  %v3111_v2 = vpack.c.bf16 %v3086_v14, %v3085_v50  ;;  %v2286_v52 = vld [vmem:[%s5145_s26 + $0xf6] sm:$0xff]  ;;  %v2287_v11 = vld [vmem:[%s5145_s26 + $0xfe] sm:$0xff] }
 0x327   : > { %4859 = vmatmul.msk.bf16.gmra.mxu1 %vm323_vm1, %v2576_v27  ;;  %4884 = vmatmul.msk.bf16.gmra.mxu2 %vm323_vm1, %v2843_v38  ;;  %v2577_v27 = vpack.c.bf16 %v2552_v9, %v2551_v40  ;;  %v2844_v38 = vpack.c.bf16 %v2819_v17, %v2818_v22  ;;  %v2553_v40 = vld [vmem:[%s5145_s26 + $0xf7] sm:$0xff]  ;;  %v2554_v9 = vld [vmem:[%s5145_s26 + $0xff] sm:$0xff] }
 0x328   : > { %4909 = vmatmul.msk.bf16.gmra.mxu3 %vm323_vm1, %v3110_v39  ;;  %v2820_v22 = vld [vmem:[%s5145_s26 + $0xf8] sm:$0xff]  ;;  %v2821_v17 = vld [vmem:[%s5145_s26 + $0x100] sm:$0xff] }
 0x329   : > { %v3087_v50 = vld [vmem:[%s5145_s26 + $0xf9] sm:$0xff]  ;;  %v3088_v14 = vld [vmem:[%s5145_s26 + $0x101] sm:$0xff] }
 0x32a   : > { %v2943_v3 = vpop.f32.mrf.mxu2 }
 0x32b   : > { %v3029_v20 = vadd.f32 %v2943_v3, %v2762_v49  ;;  %v3210_v26 = vpop.f32.mrf.mxu3  ;;  %v2411_v28 = vpop.f32.mrf.mxu0 }
 0x32c   : > { %v2496_v29 = vadd.f32 %v2411_v28, %v5671_v44  ;;  %v2678_v36 = vpop.f32.mrf.mxu1 }
 0x32d   : > { %v6030_v48 = vadd.f32 %v3210_v26, %v3029_v20 }
 0x32e   : > { %v2763_v0 = vadd.f32 %v2678_v36, %v2496_v29 }
 0x332   : > { %v2945_v45 = vpop.f32.mrf.mxu2 }
 0x333   : > { %v3030_v46 = vadd.f32 %v2945_v45, %v2763_v0  ;;  %v3212_v30 = vpop.f32.mrf.mxu3  ;;  %v2414_v31 = vpop.f32.mrf.mxu0 }
 0x334   : > { %v2497_v44 = vadd.f32 %v2414_v31, %v5678_v19  ;;  %v2681_v1 = vpop.f32.mrf.mxu1 }
 0x335   : > { %v6041_v39 = vadd.f32 %v3212_v30, %v3030_v46 }
 0x336   : > { %v2764_v49 = vadd.f32 %v2681_v1, %v2497_v44  ;;  %4835 = vmatmul.msk.bf16.gmra.mxu0 %vm323_vm1, %v2310_v12  ;;  %v2311_v12 = vpack.c.bf16 %v2287_v11, %v2286_v52  ;;  %v3112_v1 = vpack.c.bf16 %v3088_v14, %v3087_v50  ;;  %v2288_v52 = vld [vmem:[%s5145_s26 + $0x106] sm:$0xff]  ;;  %v2289_v11 = vld [vmem:[%s5145_s26 + $0x10e] sm:$0xff] }
 0x337   : > { %4860 = vmatmul.msk.bf16.gmra.mxu1 %vm323_vm1, %v2577_v27  ;;  %4885 = vmatmul.msk.bf16.gmra.mxu2 %vm323_vm1, %v2844_v38  ;;  %v2578_v27 = vpack.c.bf16 %v2554_v9, %v2553_v40  ;;  %v2845_v38 = vpack.c.bf16 %v2821_v17, %v2820_v22  ;;  %v2555_v40 = vld [vmem:[%s5145_s26 + $0x107] sm:$0xff]  ;;  %v2556_v9 = vld [vmem:[%s5145_s26 + $0x10f] sm:$0xff] }
 0x338   : > { %4910 = vmatmul.msk.bf16.gmra.mxu3 %vm323_vm1, %v3111_v2  ;;  %v2822_v22 = vld [vmem:[%s5145_s26 + $0x108] sm:$0xff]  ;;  %v2823_v17 = vld [vmem:[%s5145_s26 + $0x110] sm:$0xff] }
 0x339   : > { %v3089_v50 = vld [vmem:[%s5145_s26 + $0x109] sm:$0xff]  ;;  %v3090_v14 = vld [vmem:[%s5145_s26 + $0x111] sm:$0xff] }
 0x33a   : > { %v2948_v19 = vpop.f32.mrf.mxu2 }
 0x33b   : > { %v3031_v3 = vadd.f32 %v2948_v19, %v2764_v49  ;;  %v3215_v20 = vpop.f32.mrf.mxu3  ;;  %v2416_v26 = vpop.f32.mrf.mxu0 }
 0x33c   : > { %v2498_v28 = vadd.f32 %v2416_v26, %v5689_v8  ;;  %v2683_v29 = vpop.f32.mrf.mxu1 }
 0x33d   : > { %v6048_v36 = vadd.f32 %v3215_v20, %v3031_v3 }
 0x33e   : > { %v2765_v0 = vadd.f32 %v2683_v29, %v2498_v28 }
 0x342   : > { %v2950_v45 = vpop.f32.mrf.mxu2 }
 0x343   : > { %v3032_v46 = vadd.f32 %v2950_v45, %v2765_v0  ;;  %v3217_v30 = vpop.f32.mrf.mxu3  ;;  %v2419_v31 = vpop.f32.mrf.mxu0 }
 0x344   : > { %v2499_v8 = vadd.f32 %v2419_v31, %v5696_v18  ;;  %v2686_v44 = vpop.f32.mrf.mxu1 }
 0x345   : > { %v6059_v2 = vadd.f32 %v3217_v30, %v3032_v46 }
 0x346   : > { %v2766_v49 = vadd.f32 %v2686_v44, %v2499_v8  ;;  %4836 = vmatmul.msk.bf16.gmra.mxu0 %vm323_vm1, %v2311_v12  ;;  %v2312_v12 = vpack.c.bf16 %v2289_v11, %v2288_v52  ;;  %v3113_v44 = vpack.c.bf16 %v3090_v14, %v3089_v50  ;;  %v2290_v52 = vld [vmem:[%s5145_s26 + $0x116] sm:$0xff]  ;;  %v2291_v11 = vld [vmem:[%s5145_s26 + $0x11e] sm:$0xff] }
 0x347   : > { %4861 = vmatmul.msk.bf16.gmra.mxu1 %vm323_vm1, %v2578_v27  ;;  %4886 = vmatmul.msk.bf16.gmra.mxu2 %vm323_vm1, %v2845_v38  ;;  %v2579_v27 = vpack.c.bf16 %v2556_v9, %v2555_v40  ;;  %v2846_v38 = vpack.c.bf16 %v2823_v17, %v2822_v22  ;;  %v2557_v40 = vld [vmem:[%s5145_s26 + $0x117] sm:$0xff]  ;;  %v2558_v9 = vld [vmem:[%s5145_s26 + $0x11f] sm:$0xff] }
 0x348   : > { %4911 = vmatmul.msk.bf16.gmra.mxu3 %vm323_vm1, %v3112_v1  ;;  %v2824_v22 = vld [vmem:[%s5145_s26 + $0x118] sm:$0xff]  ;;  %v2825_v17 = vld [vmem:[%s5145_s26 + $0x120] sm:$0xff] }
 0x349   : > { %v3091_v50 = vld [vmem:[%s5145_s26 + $0x119] sm:$0xff]  ;;  %v3092_v14 = vld [vmem:[%s5145_s26 + $0x121] sm:$0xff] }
 0x34a   : > { %v2953_v18 = vpop.f32.mrf.mxu2 }
 0x34b   : > { %v3033_v19 = vadd.f32 %v2953_v18, %v2766_v49  ;;  %v3220_v3 = vpop.f32.mrf.mxu3  ;;  %v2421_v20 = vpop.f32.mrf.mxu0 }
 0x34c   : > { %v2500_v26 = vadd.f32 %v2421_v20, %v5707_v37  ;;  %v2688_v28 = vpop.f32.mrf.mxu1 }
 0x34d   : > { %v6066_v29 = vadd.f32 %v3220_v3, %v3033_v19 }
 0x34e   : > { %v2767_v0 = vadd.f32 %v2688_v28, %v2500_v26 }
 0x352   : > { %v2955_v45 = vpop.f32.mrf.mxu2 }
 0x353   : > { %v3034_v46 = vadd.f32 %v2955_v45, %v2767_v0  ;;  %v3222_v30 = vpop.f32.mrf.mxu3  ;;  %v2424_v31 = vpop.f32.mrf.mxu0 }
 0x354   : > { %v2501_v37 = vadd.f32 %v2424_v31, %v5714_v23  ;;  %v2691_v8 = vpop.f32.mrf.mxu1 }
 0x355   : > { %v6077_v1 = vadd.f32 %v3222_v30, %v3034_v46 }
 0x356   : > { %v2768_v49 = vadd.f32 %v2691_v8, %v2501_v37  ;;  %4837 = vmatmul.msk.bf16.gmra.mxu0 %vm323_vm1, %v2312_v12  ;;  %v2313_v12 = vpack.c.bf16 %v2291_v11, %v2290_v52  ;;  %v3114_v8 = vpack.c.bf16 %v3092_v14, %v3091_v50  ;;  %v2292_v52 = vld [vmem:[%s5145_s26 + $0x126] sm:$0xff]  ;;  %v2293_v11 = vld [vmem:[%s5145_s26 + $0x12e] sm:$0xff] }
 0x357   : > { %4862 = vmatmul.msk.bf16.gmra.mxu1 %vm323_vm1, %v2579_v27  ;;  %4887 = vmatmul.msk.bf16.gmra.mxu2 %vm323_vm1, %v2846_v38  ;;  %v2580_v27 = vpack.c.bf16 %v2558_v9, %v2557_v40  ;;  %v2847_v38 = vpack.c.bf16 %v2825_v17, %v2824_v22  ;;  %v2559_v40 = vld [vmem:[%s5145_s26 + $0x127] sm:$0xff]  ;;  %v2560_v9 = vld [vmem:[%s5145_s26 + $0x12f] sm:$0xff] }
 0x358   : > { %4912 = vmatmul.msk.bf16.gmra.mxu3 %vm323_vm1, %v3113_v44  ;;  %v2826_v22 = vld [vmem:[%s5145_s26 + $0x128] sm:$0xff]  ;;  %v2827_v17 = vld [vmem:[%s5145_s26 + $0x130] sm:$0xff] }
 0x359   : > { %v3093_v50 = vld [vmem:[%s5145_s26 + $0x129] sm:$0xff]  ;;  %v3094_v14 = vld [vmem:[%s5145_s26 + $0x131] sm:$0xff] }
 0x35a   : > { %v2958_v23 = vpop.f32.mrf.mxu2 }
 0x35b   : > { %v3035_v18 = vadd.f32 %v2958_v23, %v2768_v49  ;;  %v3225_v19 = vpop.f32.mrf.mxu3  ;;  %v2426_v3 = vpop.f32.mrf.mxu0 }
 0x35c   : > { %v2502_v20 = vadd.f32 %v2426_v3, %v5725_v4  ;;  %v2693_v26 = vpop.f32.mrf.mxu1 }
 0x35d   : > { %v6084_v28 = vadd.f32 %v3225_v19, %v3035_v18 }
 0x35e   : > { %v2769_v0 = vadd.f32 %v2693_v26, %v2502_v20 }
 0x362   : > { %v2960_v45 = vpop.f32.mrf.mxu2 }
 0x363   : > { %v3036_v46 = vadd.f32 %v2960_v45, %v2769_v0  ;;  %v3227_v30 = vpop.f32.mrf.mxu3  ;;  %v2429_v31 = vpop.f32.mrf.mxu0 }
 0x364   : > { %v2503_v4 = vadd.f32 %v2429_v31, %v5732_v51  ;;  %v2696_v37 = vpop.f32.mrf.mxu1 }
 0x365   : > { %v6095_v44 = vadd.f32 %v3227_v30, %v3036_v46 }
 0x366   : > { %v2770_v49 = vadd.f32 %v2696_v37, %v2503_v4  ;;  %4838 = vmatmul.msk.bf16.gmra.mxu0 %vm323_vm1, %v2313_v12  ;;  %v2314_v12 = vpack.c.bf16 %v2293_v11, %v2292_v52  ;;  %v3115_v37 = vpack.c.bf16 %v3094_v14, %v3093_v50  ;;  %v2294_v52 = vld [vmem:[%s5145_s26 + $0x136] sm:$0xff]  ;;  %v2295_v11 = vld [vmem:[%s5145_s26 + $0x13e] sm:$0xff] }
 0x367   : > { %4863 = vmatmul.msk.bf16.gmra.mxu1 %vm323_vm1, %v2580_v27  ;;  %4888 = vmatmul.msk.bf16.gmra.mxu2 %vm323_vm1, %v2847_v38  ;;  %v2581_v27 = vpack.c.bf16 %v2560_v9, %v2559_v40  ;;  %v2848_v38 = vpack.c.bf16 %v2827_v17, %v2826_v22  ;;  %v2561_v40 = vld [vmem:[%s5145_s26 + $0x137] sm:$0xff]  ;;  %v2562_v9 = vld [vmem:[%s5145_s26 + $0x13f] sm:$0xff] }
 0x368   : > { %4913 = vmatmul.msk.bf16.gmra.mxu3 %vm323_vm1, %v3114_v8  ;;  %v2828_v22 = vld [vmem:[%s5145_s26 + $0x138] sm:$0xff]  ;;  %v2829_v17 = vld [vmem:[%s5145_s26 + $0x140] sm:$0xff] }
 0x369   : > { %v3095_v50 = vld [vmem:[%s5145_s26 + $0x139] sm:$0xff]  ;;  %v3096_v14 = vld [vmem:[%s5145_s26 + $0x141] sm:$0xff] }
 0x36a   : > { %v2963_v51 = vpop.f32.mrf.mxu2 }
 0x36b   : > { %v3037_v23 = vadd.f32 %v2963_v51, %v2770_v49  ;;  %v3230_v18 = vpop.f32.mrf.mxu3  ;;  %v2431_v19 = vpop.f32.mrf.mxu0 }
 0x36c   : > { %v2504_v3 = vadd.f32 %v2431_v19, %v5743_v35  ;;  %v2698_v20 = vpop.f32.mrf.mxu1 }
 0x36d   : > { %v6102_v26 = vadd.f32 %v3230_v18, %v3037_v23 }
 0x36e   : > { %v2771_v0 = vadd.f32 %v2698_v20, %v2504_v3 }
 0x372   : > { %v2965_v45 = vpop.f32.mrf.mxu2 }
 0x373   : > { %v3038_v46 = vadd.f32 %v2965_v45, %v2771_v0  ;;  %v3232_v30 = vpop.f32.mrf.mxu3  ;;  %v2434_v31 = vpop.f32.mrf.mxu0 }
 0x374   : > { %v2505_v35 = vadd.f32 %v2434_v31, %v5750_v16  ;;  %v2701_v4 = vpop.f32.mrf.mxu1 }
 0x375   : > { %v6113_v8 = vadd.f32 %v3232_v30, %v3038_v46 }
 0x376   : > { %v2772_v49 = vadd.f32 %v2701_v4, %v2505_v35  ;;  %4839 = vmatmul.msk.bf16.gmra.mxu0 %vm323_vm1, %v2314_v12  ;;  %v2315_v12 = vpack.c.bf16 %v2295_v11, %v2294_v52  ;;  %v3116_v4 = vpack.c.bf16 %v3096_v14, %v3095_v50  ;;  %v2296_v52 = vld [vmem:[%s5145_s26 + $0x146] sm:$0xff]  ;;  %v2297_v11 = vld [vmem:[%s5145_s26 + $0x14e] sm:$0xff] }
 0x377   : > { %4864 = vmatmul.msk.bf16.gmra.mxu1 %vm323_vm1, %v2581_v27  ;;  %4889 = vmatmul.msk.bf16.gmra.mxu2 %vm323_vm1, %v2848_v38  ;;  %v2582_v27 = vpack.c.bf16 %v2562_v9, %v2561_v40  ;;  %v2849_v38 = vpack.c.bf16 %v2829_v17, %v2828_v22  ;;  %v2563_v40 = vld [vmem:[%s5145_s26 + $0x147] sm:$0xff]  ;;  %v2564_v9 = vld [vmem:[%s5145_s26 + $0x14f] sm:$0xff] }
 0x378   : > { %4914 = vmatmul.msk.bf16.gmra.mxu3 %vm323_vm1, %v3115_v37  ;;  %v2830_v22 = vld [vmem:[%s5145_s26 + $0x148] sm:$0xff]  ;;  %v2831_v17 = vld [vmem:[%s5145_s26 + $0x150] sm:$0xff] }
 0x379   : > { %v3097_v50 = vld [vmem:[%s5145_s26 + $0x149] sm:$0xff]  ;;  %v3098_v14 = vld [vmem:[%s5145_s26 + $0x151] sm:$0xff] }
 0x37a   : > { %v2968_v16 = vpop.f32.mrf.mxu2 }
 0x37b   : > { %v3039_v51 = vadd.f32 %v2968_v16, %v2772_v49  ;;  %v3235_v23 = vpop.f32.mrf.mxu3  ;;  %v2436_v18 = vpop.f32.mrf.mxu0 }
 0x37c   : > { %v2506_v19 = vadd.f32 %v2436_v18, %v5761_v5  ;;  %v2703_v3 = vpop.f32.mrf.mxu1 }
 0x37d   : > { %v6120_v20 = vadd.f32 %v3235_v23, %v3039_v51 }
 0x37e   : > { %v2773_v0 = vadd.f32 %v2703_v3, %v2506_v19 }
 0x382   : > { %v2970_v45 = vpop.f32.mrf.mxu2 }
 0x383   : > { %v3040_v46 = vadd.f32 %v2970_v45, %v2773_v0  ;;  %v3237_v30 = vpop.f32.mrf.mxu3  ;;  %v2439_v31 = vpop.f32.mrf.mxu0 }
 0x384   : > { %v2507_v5 = vadd.f32 %v2439_v31, %v5789_v15  ;;  %v2706_v35 = vpop.f32.mrf.mxu1 }
 0x385   : > { %v6131_v37 = vadd.f32 %v3237_v30, %v3040_v46 }
 0x386   : > { %v2774_v49 = vadd.f32 %v2706_v35, %v2507_v5  ;;  %4840 = vmatmul.msk.bf16.gmra.mxu0 %vm323_vm1, %v2315_v12  ;;  %v2316_v12 = vpack.c.bf16 %v2297_v11, %v2296_v52  ;;  %v3117_v35 = vpack.c.bf16 %v3098_v14, %v3097_v50  ;;  %v3328_v52 = vld [vmem:[%s5145_s26 + $0x39] sm:$0xff]  ;;  %v3329_v11 = vld [vmem:[%s5145_s26 + $0x41] sm:$0xff] }
 0x387   : > { %4865 = vmatmul.msk.bf16.gmra.mxu1 %vm323_vm1, %v2582_v27  ;;  %4890 = vmatmul.msk.bf16.gmra.mxu2 %vm323_vm1, %v2849_v38  ;;  %v2583_v27 = vpack.c.bf16 %v2564_v9, %v2563_v40  ;;  %v2850_v38 = vpack.c.bf16 %v2831_v17, %v2830_v22  ;;  %v3595_v40 = vld [vmem:[%s5145_s26 + $0x3a] sm:$0xff]  ;;  %v3596_v9 = vld [vmem:[%s5145_s26 + $0x42] sm:$0xff] }
 0x388   : > { %4915 = vmatmul.msk.bf16.gmra.mxu3 %vm323_vm1, %v3116_v4  ;;  %v3862_v22 = vld [vmem:[%s5145_s26 + $0x3b] sm:$0xff]  ;;  %v3863_v17 = vld [vmem:[%s5145_s26 + $0x43] sm:$0xff] }
 0x389   : > { %v4129_v50 = vld [vmem:[%s5145_s26 + $0x3c] sm:$0xff]  ;;  %v4130_v14 = vld [vmem:[%s5145_s26 + $0x44] sm:$0xff] }
 0x38a   : > { %v2973_v15 = vpop.f32.mrf.mxu2 }
 0x38b   : > { %v3041_v16 = vadd.f32 %v2973_v15, %v2774_v49  ;;  %v3240_v51 = vpop.f32.mrf.mxu3  ;;  %v2441_v23 = vpop.f32.mrf.mxu0 }
 0x38c   : > { %v2508_v18 = vadd.f32 %v2441_v23, %v5807_v43  ;;  %v2708_v19 = vpop.f32.mrf.mxu1 }
 0x38d   : > { %v6138_v3 = vadd.f32 %v3240_v51, %v3041_v16 }
 0x38e   : > { %v2775_v0 = vadd.f32 %v2708_v19, %v2508_v18 }
 0x392   : > { %v2975_v45 = vpop.f32.mrf.mxu2 }
 0x393   : > { %v3042_v46 = vadd.f32 %v2975_v45, %v2775_v0  ;;  %v3242_v30 = vpop.f32.mrf.mxu3  ;;  %v2444_v31 = vpop.f32.mrf.mxu0 }
 0x394   : > { %v2509_v43 = vadd.f32 %v2444_v31, %v5814_v62  ;;  %v2711_v5 = vpop.f32.mrf.mxu1 }
 0x395   : > { %v6149_v4 = vadd.f32 %v3242_v30, %v3042_v46 }
 0x396   : > { %v2776_v49 = vadd.f32 %v2711_v5, %v2509_v43  ;;  %4841 = vmatmul.msk.bf16.gmra.mxu0 %vm323_vm1, %v2316_v12  ;;  %v3366_v12 = vpack.c.bf16 %v3329_v11, %v3328_v52  ;;  %v4167_v5 = vpack.c.bf16 %v4130_v14, %v4129_v50  ;;  %v3330_v52 = vld [vmem:[%s5145_s26 + $0x49] sm:$0xff]  ;;  %v3331_v11 = vld [vmem:[%s5145_s26 + $0x51] sm:$0xff] }
 0x397   : > { %4866 = vmatmul.msk.bf16.gmra.mxu1 %vm323_vm1, %v2583_v27  ;;  %4891 = vmatmul.msk.bf16.gmra.mxu2 %vm323_vm1, %v2850_v38  ;;  %v3633_v27 = vpack.c.bf16 %v3596_v9, %v3595_v40  ;;  %v3900_v38 = vpack.c.bf16 %v3863_v17, %v3862_v22  ;;  %v3597_v40 = vld [vmem:[%s5145_s26 + $0x4a] sm:$0xff]  ;;  %v3598_v9 = vld [vmem:[%s5145_s26 + $0x52] sm:$0xff] }
 0x398   : > { %4916 = vmatmul.msk.bf16.gmra.mxu3 %vm323_vm1, %v3117_v35  ;;  %v3864_v22 = vld [vmem:[%s5145_s26 + $0x4b] sm:$0xff]  ;;  %v3865_v17 = vld [vmem:[%s5145_s26 + $0x53] sm:$0xff] }
 0x399   : > { %v4131_v50 = vld [vmem:[%s5145_s26 + $0x4c] sm:$0xff]  ;;  %v4132_v14 = vld [vmem:[%s5145_s26 + $0x54] sm:$0xff] }
 0x39a   : > { %v2978_v62 = vpop.f32.mrf.mxu2 }
 0x39b   : > { %v3043_v15 = vadd.f32 %v2978_v62, %v2776_v49  ;;  %v3245_v16 = vpop.f32.mrf.mxu3  ;;  %v2446_v51 = vpop.f32.mrf.mxu0 }
 0x39c   : > { %v2510_v23 = vadd.f32 %v2446_v51, %v5825_v55  ;;  %v2713_v18 = vpop.f32.mrf.mxu1 }
 0x39d   : > { %v6156_v19 = vadd.f32 %v3245_v16, %v3043_v15 }
 0x39e   : > { %v2777_v0 = vadd.f32 %v2713_v18, %v2510_v23 }
 0x3a2   : > { %v2980_v45 = vpop.f32.mrf.mxu2 }
 0x3a3   : > { %v3044_v46 = vadd.f32 %v2980_v45, %v2777_v0  ;;  %v3247_v30 = vpop.f32.mrf.mxu3  ;;  %v2449_v31 = vpop.f32.mrf.mxu0 }
 0x3a4   : > { %v2511_v55 = vadd.f32 %v2449_v31, %v5832_v59  ;;  %v2716_v43 = vpop.f32.mrf.mxu1 }
 0x3a5   : > { %v6167_v35 = vadd.f32 %v3247_v30, %v3044_v46 }
 0x3a6   : > { %v2778_v49 = vadd.f32 %v2716_v43, %v2511_v55  ;;  %4923 = vmatmul.msk.bf16.vlgmr.msrb.gmra.mxu0 %vm323_vm1, %v3366_v12  ;;  %v3367_v12 = vpack.c.bf16 %v3331_v11, %v3330_v52  ;;  %v4168_v43 = vpack.c.bf16 %v4132_v14, %v4131_v50  ;;  %v3332_v52 = vld [vmem:[%s5145_s26 + $0x59] sm:$0xff]  ;;  %v3333_v11 = vld [vmem:[%s5145_s26 + $0x61] sm:$0xff] }
 0x3a7   : > { %4948 = vmatmul.msk.bf16.vlgmr.msrb.gmra.mxu1 %vm323_vm1, %v3633_v27  ;;  %4973 = vmatmul.msk.bf16.vlgmr.msrb.gmra.mxu2 %vm323_vm1, %v3900_v38  ;;  %v3634_v27 = vpack.c.bf16 %v3598_v9, %v3597_v40  ;;  %v3901_v38 = vpack.c.bf16 %v3865_v17, %v3864_v22  ;;  %v3599_v40 = vld [vmem:[%s5145_s26 + $0x5a] sm:$0xff]  ;;  %v3600_v9 = vld [vmem:[%s5145_s26 + $0x62] sm:$0xff] }
 0x3a8   : > { %4998 = vmatmul.msk.bf16.vlgmr.msrb.gmra.mxu3 %vm323_vm1, %v4167_v5  ;;  %v3866_v22 = vld [vmem:[%s5145_s26 + $0x5b] sm:$0xff]  ;;  %v3867_v17 = vld [vmem:[%s5145_s26 + $0x63] sm:$0xff] }
 0x3a9   : > { %v4133_v50 = vld [vmem:[%s5145_s26 + $0x5c] sm:$0xff]  ;;  %v4134_v14 = vld [vmem:[%s5145_s26 + $0x64] sm:$0xff] }
 0x3aa   : > { %v2983_v59 = vpop.f32.mrf.mxu2 }
 0x3ab   : > { %v3045_v62 = vadd.f32 %v2983_v59, %v2778_v49  ;;  %v3250_v15 = vpop.f32.mrf.mxu3  ;;  %v2451_v16 = vpop.f32.mrf.mxu0 }
 0x3ac   : > { %v2512_v51 = vadd.f32 %v2451_v16, %v5843_v42  ;;  %v2718_v23 = vpop.f32.mrf.mxu1 }
 0x3ad   : > { %v6174_v18 = vadd.f32 %v3250_v15, %v3045_v62 }
 0x3ae   : > { %v2779_v0 = vadd.f32 %v2718_v23, %v2512_v51 }
 0x3b2   : > { %v2985_v45 = vpop.f32.mrf.mxu2 }
 0x3b3   : > { %v3046_v46 = vadd.f32 %v2985_v45, %v2779_v0  ;;  %v3252_v30 = vpop.f32.mrf.mxu3  ;;  %v2454_v31 = vpop.f32.mrf.mxu0 }
 0x3b4   : > { %v2513_v42 = vadd.f32 %v2454_v31, %v5850_v53  ;;  %v2721_v55 = vpop.f32.mrf.mxu1 }
 0x3b5   : > { %v6185_v5 = vadd.f32 %v3252_v30, %v3046_v46 }
 0x3b6   : > { %v2780_v49 = vadd.f32 %v2721_v55, %v2513_v42  ;;  %4924 = vmatmul.msk.bf16.gmra.mxu0 %vm323_vm1, %v3367_v12  ;;  %v3368_v12 = vpack.c.bf16 %v3333_v11, %v3332_v52  ;;  %v4169_v55 = vpack.c.bf16 %v4134_v14, %v4133_v50  ;;  %v3334_v52 = vld [vmem:[%s5145_s26 + $0x69] sm:$0xff]  ;;  %v3335_v11 = vld [vmem:[%s5145_s26 + $0x71] sm:$0xff] }
 0x3b7   : > { %4949 = vmatmul.msk.bf16.gmra.mxu1 %vm323_vm1, %v3634_v27  ;;  %4974 = vmatmul.msk.bf16.gmra.mxu2 %vm323_vm1, %v3901_v38  ;;  %v3635_v27 = vpack.c.bf16 %v3600_v9, %v3599_v40  ;;  %v3902_v38 = vpack.c.bf16 %v3867_v17, %v3866_v22  ;;  %v3601_v40 = vld [vmem:[%s5145_s26 + $0x6a] sm:$0xff]  ;;  %v3602_v9 = vld [vmem:[%s5145_s26 + $0x72] sm:$0xff] }
 0x3b8   : > { %4999 = vmatmul.msk.bf16.gmra.mxu3 %vm323_vm1, %v4168_v43  ;;  %v3868_v22 = vld [vmem:[%s5145_s26 + $0x6b] sm:$0xff]  ;;  %v3869_v17 = vld [vmem:[%s5145_s26 + $0x73] sm:$0xff] }
 0x3b9   : > { %v4135_v50 = vld [vmem:[%s5145_s26 + $0x6c] sm:$0xff]  ;;  %v4136_v14 = vld [vmem:[%s5145_s26 + $0x74] sm:$0xff] }
 0x3ba   : > { %v2988_v53 = vpop.f32.mrf.mxu2 }
 0x3bb   : > { %v3047_v59 = vadd.f32 %v2988_v53, %v2780_v49  ;;  %v3255_v62 = vpop.f32.mrf.mxu3  ;;  %v2456_v15 = vpop.f32.mrf.mxu0 }
 0x3bc   : > { %v2514_v16 = vadd.f32 %v2456_v15, %v5861_v41  ;;  %v2723_v51 = vpop.f32.mrf.mxu1 }
 0x3bd   : > { %v6192_v23 = vadd.f32 %v3255_v62, %v3047_v59 }
 0x3be   : > { %v2781_v0 = vadd.f32 %v2723_v51, %v2514_v16 }
 0x3c2   : > { %v2990_v45 = vpop.f32.mrf.mxu2 }
 0x3c3   : > { %v3048_v46 = vadd.f32 %v2990_v45, %v2781_v0  ;;  %v3257_v30 = vpop.f32.mrf.mxu3  ;;  %v2459_v31 = vpop.f32.mrf.mxu0 }
 0x3c4   : > { %v2515_v41 = vadd.f32 %v2459_v31, %v5868_v58  ;;  %v2726_v42 = vpop.f32.mrf.mxu1 }
 0x3c5   : > { %v6203_v43 = vadd.f32 %v3257_v30, %v3048_v46 }
 0x3c6   : > { %v2782_v49 = vadd.f32 %v2726_v42, %v2515_v41  ;;  %4925 = vmatmul.msk.bf16.gmra.mxu0 %vm323_vm1, %v3368_v12  ;;  %v3369_v12 = vpack.c.bf16 %v3335_v11, %v3334_v52  ;;  %v4170_v42 = vpack.c.bf16 %v4136_v14, %v4135_v50  ;;  %v3336_v52 = vld [vmem:[%s5145_s26 + $0x79] sm:$0xff]  ;;  %v3337_v11 = vld [vmem:[%s5145_s26 + $0x81] sm:$0xff] }
 0x3c7   : > { %4950 = vmatmul.msk.bf16.gmra.mxu1 %vm323_vm1, %v3635_v27  ;;  %4975 = vmatmul.msk.bf16.gmra.mxu2 %vm323_vm1, %v3902_v38  ;;  %v3636_v27 = vpack.c.bf16 %v3602_v9, %v3601_v40  ;;  %v3903_v38 = vpack.c.bf16 %v3869_v17, %v3868_v22  ;;  %v3603_v40 = vld [vmem:[%s5145_s26 + $0x7a] sm:$0xff]  ;;  %v3604_v9 = vld [vmem:[%s5145_s26 + $0x82] sm:$0xff] }
 0x3c8   : > { %5000 = vmatmul.msk.bf16.gmra.mxu3 %vm323_vm1, %v4169_v55  ;;  %v3870_v22 = vld [vmem:[%s5145_s26 + $0x7b] sm:$0xff]  ;;  %v3871_v17 = vld [vmem:[%s5145_s26 + $0x83] sm:$0xff] }
 0x3c9   : > { %v4137_v50 = vld [vmem:[%s5145_s26 + $0x7c] sm:$0xff]  ;;  %v4138_v14 = vld [vmem:[%s5145_s26 + $0x84] sm:$0xff] }
 0x3ca   : > { %v2993_v58 = vpop.f32.mrf.mxu2 }
 0x3cb   : > { %v3049_v53 = vadd.f32 %v2993_v58, %v2782_v49  ;;  %v3260_v59 = vpop.f32.mrf.mxu3  ;;  %v2461_v62 = vpop.f32.mrf.mxu0 }
 0x3cc   : > { %v2516_v15 = vadd.f32 %v2461_v62, %v5879_v25  ;;  %v2728_v16 = vpop.f32.mrf.mxu1 }
 0x3cd   : > { %v6210_v51 = vadd.f32 %v3260_v59, %v3049_v53 }
 0x3ce   : > { %v2783_v0 = vadd.f32 %v2728_v16, %v2516_v15 }
 0x3d2   : > { %v2995_v45 = vpop.f32.mrf.mxu2 }
 0x3d3   : > { %v3050_v46 = vadd.f32 %v2995_v45, %v2783_v0  ;;  %v3262_v30 = vpop.f32.mrf.mxu3  ;;  %v2464_v31 = vpop.f32.mrf.mxu0 }
 0x3d4   : > { %v2517_v25 = vadd.f32 %v2464_v31, %v5886_v57  ;;  %v2731_v41 = vpop.f32.mrf.mxu1 }
 0x3d5   : > { %v6221_v55 = vadd.f32 %v3262_v30, %v3050_v46 }
 0x3d6   : > { %v2784_v49 = vadd.f32 %v2731_v41, %v2517_v25  ;;  %4926 = vmatmul.msk.bf16.gmra.mxu0 %vm323_vm1, %v3369_v12  ;;  %v3370_v12 = vpack.c.bf16 %v3337_v11, %v3336_v52  ;;  %v4171_v41 = vpack.c.bf16 %v4138_v14, %v4137_v50  ;;  %v3338_v52 = vld [vmem:[%s5145_s26 + $0x89] sm:$0xff]  ;;  %v3339_v11 = vld [vmem:[%s5145_s26 + $0x91] sm:$0xff] }
 0x3d7   : > { %4951 = vmatmul.msk.bf16.gmra.mxu1 %vm323_vm1, %v3636_v27  ;;  %4976 = vmatmul.msk.bf16.gmra.mxu2 %vm323_vm1, %v3903_v38  ;;  %v3637_v27 = vpack.c.bf16 %v3604_v9, %v3603_v40  ;;  %v3904_v38 = vpack.c.bf16 %v3871_v17, %v3870_v22  ;;  %v3605_v40 = vld [vmem:[%s5145_s26 + $0x8a] sm:$0xff]  ;;  %v3606_v9 = vld [vmem:[%s5145_s26 + $0x92] sm:$0xff] }
 0x3d8   : > { %5001 = vmatmul.msk.bf16.gmra.mxu3 %vm323_vm1, %v4170_v42  ;;  %v3872_v22 = vld [vmem:[%s5145_s26 + $0x8b] sm:$0xff]  ;;  %v3873_v17 = vld [vmem:[%s5145_s26 + $0x93] sm:$0xff] }
 0x3d9   : > { %v4139_v50 = vld [vmem:[%s5145_s26 + $0x8c] sm:$0xff]  ;;  %v4140_v14 = vld [vmem:[%s5145_s26 + $0x94] sm:$0xff] }
 0x3da   : > { %v2998_v57 = vpop.f32.mrf.mxu2 }
 0x3db   : > { %v3051_v58 = vadd.f32 %v2998_v57, %v2784_v49  ;;  %v3265_v53 = vpop.f32.mrf.mxu3  ;;  %v2466_v59 = vpop.f32.mrf.mxu0 }
 0x3dc   : > { %v2518_v62 = vadd.f32 %v2466_v59, %v5897_v60  ;;  %v2733_v15 = vpop.f32.mrf.mxu1 }
 0x3dd   : > { %v6228_v16 = vadd.f32 %v3265_v53, %v3051_v58 }
 0x3de   : > { %v2785_v0 = vadd.f32 %v2733_v15, %v2518_v62 }
 0x3e2   : > { %v3000_v45 = vpop.f32.mrf.mxu2 }
 0x3e3   : > { %v3052_v46 = vadd.f32 %v3000_v45, %v2785_v0  ;;  %v3267_v30 = vpop.f32.mrf.mxu3  ;;  %v2469_v31 = vpop.f32.mrf.mxu0 }
 0x3e4   : > { %v2519_v60 = vadd.f32 %v2469_v31, %v5904_v56  ;;  %v2736_v25 = vpop.f32.mrf.mxu1 }
 0x3e5   : > { %v6239_v42 = vadd.f32 %v3267_v30, %v3052_v46 }
 0x3e6   : > { %v2786_v49 = vadd.f32 %v2736_v25, %v2519_v60  ;;  %4927 = vmatmul.msk.bf16.gmra.mxu0 %vm323_vm1, %v3370_v12  ;;  %v3371_v12 = vpack.c.bf16 %v3339_v11, %v3338_v52  ;;  %v4172_v25 = vpack.c.bf16 %v4140_v14, %v4139_v50  ;;  %v3340_v52 = vld [vmem:[%s5145_s26 + $0x99] sm:$0xff]  ;;  %v3341_v11 = vld [vmem:[%s5145_s26 + $0xa1] sm:$0xff] }
 0x3e7   : > { %4952 = vmatmul.msk.bf16.gmra.mxu1 %vm323_vm1, %v3637_v27  ;;  %4977 = vmatmul.msk.bf16.gmra.mxu2 %vm323_vm1, %v3904_v38  ;;  %v3638_v27 = vpack.c.bf16 %v3606_v9, %v3605_v40  ;;  %v3905_v38 = vpack.c.bf16 %v3873_v17, %v3872_v22  ;;  %v3607_v40 = vld [vmem:[%s5145_s26 + $0x9a] sm:$0xff]  ;;  %v3608_v9 = vld [vmem:[%s5145_s26 + $0xa2] sm:$0xff] }
 0x3e8   : > { %5002 = vmatmul.msk.bf16.gmra.mxu3 %vm323_vm1, %v4171_v41  ;;  %v3874_v22 = vld [vmem:[%s5145_s26 + $0x9b] sm:$0xff]  ;;  %v3875_v17 = vld [vmem:[%s5145_s26 + $0xa3] sm:$0xff] }
 0x3e9   : > { %v4141_v50 = vld [vmem:[%s5145_s26 + $0x9c] sm:$0xff]  ;;  %v4142_v14 = vld [vmem:[%s5145_s26 + $0xa4] sm:$0xff] }
 0x3ea   : > { %v3003_v56 = vpop.f32.mrf.mxu2 }
 0x3eb   : > { %v3053_v57 = vadd.f32 %v3003_v56, %v2786_v49  ;;  %v3270_v58 = vpop.f32.mrf.mxu3  ;;  %v2471_v53 = vpop.f32.mrf.mxu0 }
 0x3ec   : > { %v2520_v59 = vadd.f32 %v2471_v53, %v5915_v34  ;;  %v2738_v62 = vpop.f32.mrf.mxu1 }
 0x3ed   : > { %v6246_v15 = vadd.f32 %v3270_v58, %v3053_v57 }
 0x3ee   : > { %v2787_v0 = vadd.f32 %v2738_v62, %v2520_v59 }
 0x3f2   : > { %v3005_v45 = vpop.f32.mrf.mxu2 }
 0x3f3   : > { %v3054_v46 = vadd.f32 %v3005_v45, %v2787_v0  ;;  %v3272_v30 = vpop.f32.mrf.mxu3  ;;  %v2474_v31 = vpop.f32.mrf.mxu0 }
 0x3f4   : > { %v2521_v34 = vadd.f32 %v2474_v31, %v5922_v61  ;;  %v2741_v60 = vpop.f32.mrf.mxu1 }
 0x3f5   : > { %v6257_v41 = vadd.f32 %v3272_v30, %v3054_v46 }
 0x3f6   : > { %v2788_v49 = vadd.f32 %v2741_v60, %v2521_v34  ;;  %4928 = vmatmul.msk.bf16.gmra.mxu0 %vm323_vm1, %v3371_v12  ;;  %v3372_v12 = vpack.c.bf16 %v3341_v11, %v3340_v52  ;;  %v4173_v60 = vpack.c.bf16 %v4142_v14, %v4141_v50  ;;  %v3342_v52 = vld [vmem:[%s5145_s26 + $0xa9] sm:$0xff]  ;;  %v3343_v11 = vld [vmem:[%s5145_s26 + $0xb1] sm:$0xff] }
 0x3f7   : > { %4953 = vmatmul.msk.bf16.gmra.mxu1 %vm323_vm1, %v3638_v27  ;;  %4978 = vmatmul.msk.bf16.gmra.mxu2 %vm323_vm1, %v3905_v38  ;;  %v3639_v27 = vpack.c.bf16 %v3608_v9, %v3607_v40  ;;  %v3906_v38 = vpack.c.bf16 %v3875_v17, %v3874_v22  ;;  %v3609_v40 = vld [vmem:[%s5145_s26 + $0xaa] sm:$0xff]  ;;  %v3610_v9 = vld [vmem:[%s5145_s26 + $0xb2] sm:$0xff] }
 0x3f8   : > { %5003 = vmatmul.msk.bf16.gmra.mxu3 %vm323_vm1, %v4172_v25  ;;  %v3876_v22 = vld [vmem:[%s5145_s26 + $0xab] sm:$0xff]  ;;  %v3877_v17 = vld [vmem:[%s5145_s26 + $0xb3] sm:$0xff] }
 0x3f9   : > { %v4143_v50 = vld [vmem:[%s5145_s26 + $0xac] sm:$0xff]  ;;  %v4144_v14 = vld [vmem:[%s5145_s26 + $0xb4] sm:$0xff] }
 0x3fa   : > { %v3008_v61 = vpop.f32.mrf.mxu2 }
 0x3fb   : > { %v3055_v56 = vadd.f32 %v3008_v61, %v2788_v49  ;;  %v3275_v57 = vpop.f32.mrf.mxu3  ;;  %v2476_v58 = vpop.f32.mrf.mxu0 }
 0x3fc   : > { %v2522_v53 = vadd.f32 %v2476_v58, %v5933_v10  ;;  %v2743_v59 = vpop.f32.mrf.mxu1 }
 0x3fd   : > { %v6264_v62 = vadd.f32 %v3275_v57, %v3055_v56 }
 0x3fe   : > { %v2789_v0 = vadd.f32 %v2743_v59, %v2522_v53 }
 0x402   : > { %v3010_v45 = vpop.f32.mrf.mxu2 }
 0x403   : > { %v3056_v46 = vadd.f32 %v3010_v45, %v2789_v0  ;;  %v3277_v30 = vpop.f32.mrf.mxu3  ;;  %v2479_v31 = vpop.f32.mrf.mxu0 }
 0x404   : > { %v2523_v10 = vadd.f32 %v2479_v31, %v5940_v33  ;;  %v2746_v34 = vpop.f32.mrf.mxu1 }
 0x405   : > { %v6275_v25 = vadd.f32 %v3277_v30, %v3056_v46 }
 0x406   : > { %v2790_v49 = vadd.f32 %v2746_v34, %v2523_v10  ;;  %4929 = vmatmul.msk.bf16.gmra.mxu0 %vm323_vm1, %v3372_v12  ;;  %v3373_v12 = vpack.c.bf16 %v3343_v11, %v3342_v52  ;;  %v4174_v34 = vpack.c.bf16 %v4144_v14, %v4143_v50  ;;  %v3344_v52 = vld [vmem:[%s5145_s26 + $0xb9] sm:$0xff]  ;;  %v3345_v11 = vld [vmem:[%s5145_s26 + $0xc1] sm:$0xff] }
 0x407   : > { %4954 = vmatmul.msk.bf16.gmra.mxu1 %vm323_vm1, %v3639_v27  ;;  %4979 = vmatmul.msk.bf16.gmra.mxu2 %vm323_vm1, %v3906_v38  ;;  %v3640_v27 = vpack.c.bf16 %v3610_v9, %v3609_v40  ;;  %v3907_v38 = vpack.c.bf16 %v3877_v17, %v3876_v22  ;;  %v3611_v40 = vld [vmem:[%s5145_s26 + $0xba] sm:$0xff]  ;;  %v3612_v9 = vld [vmem:[%s5145_s26 + $0xc2] sm:$0xff] }
 0x408   : > { %5004 = vmatmul.msk.bf16.gmra.mxu3 %vm323_vm1, %v4173_v60  ;;  %v3878_v22 = vld [vmem:[%s5145_s26 + $0xbb] sm:$0xff]  ;;  %v3879_v17 = vld [vmem:[%s5145_s26 + $0xc3] sm:$0xff] }
 0x409   : > { %v4145_v50 = vld [vmem:[%s5145_s26 + $0xbc] sm:$0xff]  ;;  %v4146_v14 = vld [vmem:[%s5145_s26 + $0xc4] sm:$0xff] }
 0x40a   : > { %v3013_v33 = vpop.f32.mrf.mxu2 }
 0x40b   : > { %v3057_v61 = vadd.f32 %v3013_v33, %v2790_v49  ;;  %v3280_v56 = vpop.f32.mrf.mxu3  ;;  %v2481_v57 = vpop.f32.mrf.mxu0 }
 0x40c   : > { %v2524_v58 = vadd.f32 %v2481_v57, %v5951_v54  ;;  %v2748_v53 = vpop.f32.mrf.mxu1 }
 0x40d   : > { %v6282_v59 = vadd.f32 %v3280_v56, %v3057_v61 }
 0x40e   : > { %v2791_v0 = vadd.f32 %v2748_v53, %v2524_v58 }
 0x412   : > { %v3015_v45 = vpop.f32.mrf.mxu2 }
 0x413   : > { %v3058_v46 = vadd.f32 %v3015_v45, %v2791_v0  ;;  %v3282_v30 = vpop.f32.mrf.mxu3  ;;  %v2484_v31 = vpop.f32.mrf.mxu0 }
 0x414   : > { %v2525_v54 = vadd.f32 %v2484_v31, %v5958_v7  ;;  %v2751_v10 = vpop.f32.mrf.mxu1 }
 0x415   : > { %v6293_v60 = vadd.f32 %v3282_v30, %v3058_v46 }
 0x416   : > { %v2792_v49 = vadd.f32 %v2751_v10, %v2525_v54  ;;  %4930 = vmatmul.msk.bf16.gmra.mxu0 %vm323_vm1, %v3373_v12  ;;  %v3374_v12 = vpack.c.bf16 %v3345_v11, %v3344_v52  ;;  %v4175_v54 = vpack.c.bf16 %v4146_v14, %v4145_v50  ;;  %v3880_v50 = vld [vmem:[%s5145_s26 + $0xcb] sm:$0xff]  ;;  %v3881_v14 = vld [vmem:[%s5145_s26 + $0xd3] sm:$0xff] }
 0x417   : > { %4955 = vmatmul.msk.bf16.gmra.mxu1 %vm323_vm1, %v3640_v27  ;;  %4980 = vmatmul.msk.bf16.gmra.mxu2 %vm323_vm1, %v3907_v38  ;;  %v3641_v27 = vpack.c.bf16 %v3612_v9, %v3611_v40  ;;  %v3908_v38 = vpack.c.bf16 %v3879_v17, %v3878_v22  ;;  %v3346_v40 = vld [vmem:[%s5145_s26 + $0xc9] sm:$0xff]  ;;  %v3347_v9 = vld [vmem:[%s5145_s26 + $0xd1] sm:$0xff] }
 0x418   : > { %5005 = vmatmul.msk.bf16.gmra.mxu3 %vm323_vm1, %v4174_v34  ;;  %v3613_v22 = vld [vmem:[%s5145_s26 + $0xca] sm:$0xff]  ;;  %v3614_v17 = vld [vmem:[%s5145_s26 + $0xd2] sm:$0xff] }
 0x41a   : > { %v3018_v7 = vpop.f32.mrf.mxu2 }
 0x41b   : > { %v3059_v33 = vadd.f32 %v3018_v7, %v2792_v49  ;;  %v3285_v61 = vpop.f32.mrf.mxu3  ;;  %v2486_v56 = vpop.f32.mrf.mxu0 }
 0x41c   : > { %v2526_v57 = vadd.f32 %v2486_v56, %v5969_v32  ;;  %v2753_v58 = vpop.f32.mrf.mxu1 }
 0x41d   : > { %v6300_v53 = vadd.f32 %v3285_v61, %v3059_v33 }
 0x41e   : > { %v2793_v0 = vadd.f32 %v2753_v58, %v2526_v57 }
 0x422   : > { %v3020_v45 = vpop.f32.mrf.mxu2 }
 0x423   : > { %v3060_v46 = vadd.f32 %v3020_v45, %v2793_v0  ;;  %v3287_v30 = vpop.f32.mrf.mxu3  ;;  %v3462_v31 = vpop.f32.mrf.mxu0  ;;  %v6325_v0 = vld [vmem:[%s6658_s3] ss:$0 sm:$0xff] }
 0x424   : > { %v3729_v32 = vpop.f32.mrf.mxu1  ;;  %v3557_v34 = vadd.f32 %v3462_v31, %v5976_v47  ;;  %v6320_v47 = vld [vmem:[%s6657_s2] ss:$0 sm:$0xff]  ;;  %v3375_v31 = vpack.c.bf16 %v3347_v9, %v3346_v40 }
 0x425   : > { %v6310_v10 = vadd.f32 %v3287_v30, %v3060_v46  ;;  %v4147_v46 = vld [vmem:[%s5145_s26 + $0xcc] sm:$0xff]  ;;  %v4148_v30 = vld [vmem:[%s5145_s26 + $0xd4] sm:$0xff] }
 0x426   : > { %4931 = vmatmul.msk.bf16.gmra.mxu0 %vm323_vm1, %v3374_v12  ;;  %v3824_v49 = vadd.f32 %v3729_v32, %v3557_v34  ;;  %v3642_v34 = vpack.c.bf16 %v3614_v17, %v3613_v22 }
 0x427   : > { %4956 = vmatmul.msk.bf16.gmra.mxu1 %vm323_vm1, %v3641_v27  ;;  %4981 = vmatmul.msk.bf16.gmra.mxu2 %vm323_vm1, %v3908_v38 }
 0x428   : > { %5006 = vmatmul.msk.bf16.gmra.mxu3 %vm323_vm1, %v4175_v54 }
 0x42a   : > { %v3996_v7 = vpop.f32.mrf.mxu2 }
 0x42b   : > { %v4091_v33 = vadd.f32 %v3996_v7, %v3824_v49  ;;  %v4263_v61 = vpop.f32.mrf.mxu3  ;;  %v3464_v56 = vpop.f32.mrf.mxu0  ;;  %v3909_v49 = vpack.c.bf16 %v3881_v14, %v3880_v50 }
 0x42c   : > { %v3731_v57 = vpop.f32.mrf.mxu1  ;;  %v3558_v52 = vadd.f32 %v3464_v56, %v5987_v21 }
 0x42d   : > { %v4358_v58 = vadd.f32 %v4263_v61, %v4091_v33  ;;  %v4176_v33 = vpack.c.bf16 %v4148_v30, %v4147_v46  ;;  %v3349_v46 = vld [vmem:[%s5145_s26 + $0xe1] sm:$0xff] }
 0x42e   : > { %v3825_v12 = vadd.f32 %v3731_v57, %v3558_v52  ;;  %v3615_v30 = vld [vmem:[%s5145_s26 + $0xda] sm:$0xff] }
 0x42f   : > { %v4400_v11 = vmul.f32 %v6320_v47, %v4358_v58 }
 0x431   : > { %v4442_v45 = vadd.f32 %v6325_v0, %v4400_v11 }
 0x432   : > { %v3998_v21 = vpop.f32.mrf.mxu2 }
 0x433   : > { %v4480_v27 = vmax.f32 %v4442_v45, 0.0  ;;  %v4092_v38 = vadd.f32 %v3998_v21, %v3825_v12  ;;  %v4265_v32 = vpop.f32.mrf.mxu3  ;;  %v3467_v54 = vpop.f32.mrf.mxu0  ;;  %v3348_v12 = vld [vmem:[%s5145_s26 + $0xd9] sm:$0xff]  ;;  %v3616_v21 = vld [vmem:[%s5145_s26 + $0xe2] sm:$0xff] }
 0x434   : > { %v3734_v7 = vpop.f32.mrf.mxu1  ;;  %v3559_v56 = vadd.f32 %v3467_v54, %v5994_v24  ;;  %v4149_v54 = vld [vmem:[%s5145_s26 + $0xdc] sm:$0xff] }
 0x435   : > { %4519 = vst.msk [vmem:[%s6342_s21] sm:$0xff] %vm4518_vm2, %v4480_v27  ;;  %v4359_v61 = vadd.f32 %v4265_v32, %v4092_v38  ;;  %v3883_v27 = vld [vmem:[%s5145_s26 + $0xe3] sm:$0xff] }
 0x436   : > { %4932 = vmatmul.msk.bf16.gmra.mxu0 %vm323_vm1, %v3375_v31  ;;  %v3826_v52 = vadd.f32 %v3734_v7, %v3559_v56  ;;  %v3882_v31 = vld [vmem:[%s5145_s26 + $0xdb] sm:$0xff]  ;;  %v3376_v7 = vpack.c.bf16 %v3349_v46, %v3348_v12 }
 0x437   : > { %v4401_v57 = vmul.f32 %v6320_v47, %v4359_v61  ;;  %4957 = vmatmul.msk.bf16.gmra.mxu1 %vm323_vm1, %v3642_v34  ;;  %4982 = vmatmul.msk.bf16.gmra.mxu2 %vm323_vm1, %v3909_v49  ;;  %v4150_v34 = vld [vmem:[%s5145_s26 + $0xe4] sm:$0xff] }
 0x438   : > { %5007 = vmatmul.msk.bf16.gmra.mxu3 %vm323_vm1, %v4176_v33 }
 0x439   : > { %v4443_v58 = vadd.f32 %v6325_v0, %v4401_v57  ;;  %v3643_v57 = vpack.c.bf16 %v3616_v21, %v3615_v30 }
 0x43a   : > { %v4001_v24 = vpop.f32.mrf.mxu2 }
 0x43b   : > { %v4481_v11 = vmax.f32 %v4443_v58, 0.0  ;;  %v4093_v40 = vadd.f32 %v4001_v24, %v3826_v52  ;;  %v4268_v9 = vpop.f32.mrf.mxu3  ;;  %v3469_v22 = vpop.f32.mrf.mxu0  ;;  %v3910_v58 = vpack.c.bf16 %v3883_v27, %v3882_v31  ;;  %v4177_v24 = vpack.c.bf16 %v4150_v34, %v4149_v54  ;;  %v3350_v27 = vld [vmem:[%s5145_s26 + $0xe9] sm:$0xff]  ;;  %v3618_v54 = vld [vmem:[%s5145_s26 + $0xf2] sm:$0xff] }
 0x43c   : > { %v3736_v17 = vpop.f32.mrf.mxu1  ;;  %v3560_v14 = vadd.f32 %v3469_v22, %v6005_v13  ;;  %v3884_v34 = vld [vmem:[%s5145_s26 + $0xeb] sm:$0xff] }
 0x43d   : > { %4520 = vst.msk [vmem:[%s6342_s21 + $0x8] sm:$0xff] %vm4518_vm2, %v4481_v11  ;;  %v4360_v50 = vadd.f32 %v4268_v9, %v4093_v40 }
 0x43e   : > { %v3827_v32 = vadd.f32 %v3736_v17, %v3560_v14 }
 0x43f   : > { %v4402_v45 = vmul.f32 %v6320_v47, %v4360_v50 }
 0x441   : > { %v4444_v38 = vadd.f32 %v6325_v0, %v4402_v45 }
 0x442   : > { %v4003_v49 = vpop.f32.mrf.mxu2 }
 0x443   : > { %v4482_v33 = vmax.f32 %v4444_v38, 0.0  ;;  %v4094_v61 = vadd.f32 %v4003_v49, %v3827_v32  ;;  %v4270_v56 = vpop.f32.mrf.mxu3  ;;  %v3472_v13 = vpop.f32.mrf.mxu0  ;;  %v3351_v38 = vld [vmem:[%s5145_s26 + $0xf1] sm:$0xff] }
 0x444   : > { %v3739_v52 = vpop.f32.mrf.mxu1  ;;  %v3561_v40 = vadd.f32 %v3472_v13, %v6012_v63  ;;  %v3617_v32 = vld [vmem:[%s5145_s26 + $0xea] sm:$0xff]  ;;  %v3885_v49 = vld [vmem:[%s5145_s26 + $0xf3] sm:$0xff] }
 0x445   : > { %4521 = vst.msk [vmem:[%s6342_s21 + $0x10] sm:$0xff] %vm4518_vm2, %v4482_v33  ;;  %v4361_v11 = vadd.f32 %v4270_v56, %v4094_v61  ;;  %v4151_v61 = vld [vmem:[%s5145_s26 + $0xec] sm:$0xff]  ;;  %v4152_v56 = vld [vmem:[%s5145_s26 + $0xf4] sm:$0xff] }
 0x446   : > { %4933 = vmatmul.msk.bf16.gmra.mxu0 %vm323_vm1, %v3376_v7  ;;  %v3828_v17 = vadd.f32 %v3739_v52, %v3561_v40  ;;  %v3911_v40 = vpack.c.bf16 %v3885_v49, %v3884_v34  ;;  %v3353_v34 = vld [vmem:[%s5145_s26 + $0x101] sm:$0xff] }
 0x447   : > { %v4403_v9 = vmul.f32 %v6320_v47, %v4361_v11  ;;  %4958 = vmatmul.msk.bf16.gmra.mxu1 %vm323_vm1, %v3643_v57  ;;  %4983 = vmatmul.msk.bf16.gmra.mxu2 %vm323_vm1, %v3910_v58  ;;  %v3377_v57 = vpack.c.bf16 %v3351_v38, %v3350_v27  ;;  %v3644_v11 = vpack.c.bf16 %v3618_v54, %v3617_v32  ;;  %v3352_v54 = vld [vmem:[%s5145_s26 + $0xf9] sm:$0xff] }
 0x448   : > { %5008 = vmatmul.msk.bf16.gmra.mxu3 %vm323_vm1, %v4177_v24  ;;  %v3619_v49 = vld [vmem:[%s5145_s26 + $0xfa] sm:$0xff] }
 0x449   : > { %v4445_v22 = vadd.f32 %v6325_v0, %v4403_v9 }
 0x44a   : > { %v4006_v63 = vpop.f32.mrf.mxu2 }
 0x44b   : > { %v4483_v50 = vmax.f32 %v4445_v22, 0.0  ;;  %v4095_v14 = vadd.f32 %v4006_v63, %v3828_v17  ;;  %v4273_v45 = vpop.f32.mrf.mxu3  ;;  %v3474_v12 = vpop.f32.mrf.mxu0  ;;  %v4178_v22 = vpack.c.bf16 %v4152_v56, %v4151_v61  ;;  %v3887_v61 = vld [vmem:[%s5145_s26 + $0x103] sm:$0xff] }
 0x44c   : > { %v3741_v46 = vpop.f32.mrf.mxu1  ;;  %v3562_v21 = vadd.f32 %v3474_v12, %v6023_v6 }
 0x44d   : > { %4522 = vst.msk [vmem:[%s6342_s21 + $0x18] sm:$0xff] %vm4518_vm2, %v4483_v50  ;;  %v4362_v30 = vadd.f32 %v4273_v45, %v4095_v14 }
 0x44e   : > { %v3829_v33 = vadd.f32 %v3741_v46, %v3562_v21 }
 0x44f   : > { %v4404_v31 = vmul.f32 %v6320_v47, %v4362_v30 }
 0x451   : > { %v4446_v7 = vadd.f32 %v6325_v0, %v4404_v31 }
 0x452   : > { %v4008_v13 = vpop.f32.mrf.mxu2 }
 0x453   : > { %v4484_v58 = vmax.f32 %v4446_v7, 0.0  ;;  %v4096_v52 = vadd.f32 %v4008_v13, %v3829_v33  ;;  %v4275_v24 = vpop.f32.mrf.mxu3  ;;  %v3477_v6 = vpop.f32.mrf.mxu0  ;;  %v3620_v7 = vld [vmem:[%s5145_s26 + $0x102] sm:$0xff] }
 0x454   : > { %v3744_v9 = vpop.f32.mrf.mxu1  ;;  %v3563_v63 = vadd.f32 %v3477_v6, %v6030_v48  ;;  %v3886_v33 = vld [vmem:[%s5145_s26 + $0xfb] sm:$0xff] }
 0x455   : > { %4523 = vst.msk [vmem:[%s6342_s21 + $0x20] sm:$0xff] %vm4518_vm2, %v4484_v58  ;;  %v4363_v17 = vadd.f32 %v4275_v24, %v4096_v52  ;;  %v4154_v58 = vld [vmem:[%s5145_s26 + $0x104] sm:$0xff]  ;;  %v3378_v24 = vpack.c.bf16 %v3353_v34, %v3352_v54 }
 0x456   : > { %4934 = vmatmul.msk.bf16.gmra.mxu0 %vm323_vm1, %v3377_v57  ;;  %v3830_v45 = vadd.f32 %v3744_v9, %v3563_v63  ;;  %v4153_v57 = vld [vmem:[%s5145_s26 + $0xfc] sm:$0xff]  ;;  %v3645_v9 = vpack.c.bf16 %v3620_v7, %v3619_v49  ;;  %v3354_v34 = vld [vmem:[%s5145_s26 + $0x109] sm:$0xff]  ;;  %v3355_v49 = vld [vmem:[%s5145_s26 + $0x111] sm:$0xff] }
 0x457   : > { %v4405_v50 = vmul.f32 %v6320_v47, %v4363_v17  ;;  %4959 = vmatmul.msk.bf16.gmra.mxu1 %vm323_vm1, %v3644_v11  ;;  %4984 = vmatmul.msk.bf16.gmra.mxu2 %vm323_vm1, %v3911_v40  ;;  %v4179_v63 = vpack.c.bf16 %v4154_v58, %v4153_v57  ;;  %v3621_v7 = vld [vmem:[%s5145_s26 + $0x10a] sm:$0xff] }
 0x458   : > { %5009 = vmatmul.msk.bf16.gmra.mxu3 %vm323_vm1, %v4178_v22  ;;  %v3912_v22 = vpack.c.bf16 %v3887_v61, %v3886_v33  ;;  %v3622_v33 = vld [vmem:[%s5145_s26 + $0x112] sm:$0xff] }
 0x459   : > { %v4447_v14 = vadd.f32 %v6325_v0, %v4405_v50  ;;  %v3888_v61 = vld [vmem:[%s5145_s26 + $0x10b] sm:$0xff] }
 0x45a   : > { %v4011_v48 = vpop.f32.mrf.mxu2  ;;  %v4155_v58 = vld [vmem:[%s5145_s26 + $0x10c] sm:$0xff] }
 0x45b   : > { %v4485_v12 = vmax.f32 %v4447_v14, 0.0  ;;  %v4097_v46 = vadd.f32 %v4011_v48, %v3830_v45  ;;  %v4278_v30 = vpop.f32.mrf.mxu3  ;;  %v3479_v21 = vpop.f32.mrf.mxu0 }
 0x45c   : > { %v3746_v31 = vpop.f32.mrf.mxu1  ;;  %v3564_v38 = vadd.f32 %v3479_v21, %v6041_v39 }
 0x45d   : > { %4524 = vst.msk [vmem:[%s6342_s21 + $0x28] sm:$0xff] %vm4518_vm2, %v4485_v12  ;;  %v4364_v27 = vadd.f32 %v4278_v30, %v4097_v46 }
 0x45e   : > { %v3831_v13 = vadd.f32 %v3746_v31, %v3564_v38 }
 0x45f   : > { %v4406_v32 = vmul.f32 %v6320_v47, %v4364_v27 }
 0x461   : > { %v4448_v56 = vadd.f32 %v6325_v0, %v4406_v32 }
 0x462   : > { %v4013_v52 = vpop.f32.mrf.mxu2 }
 0x463   : > { %v4486_v6 = vmax.f32 %v4448_v56, 0.0  ;;  %v4098_v11 = vadd.f32 %v4013_v52, %v3831_v13  ;;  %v4280_v40 = vpop.f32.mrf.mxu3  ;;  %v3482_v39 = vpop.f32.mrf.mxu0  ;;  %v3889_v56 = vld [vmem:[%s5145_s26 + $0x113] sm:$0xff] }
 0x464   : > { %v3749_v17 = vpop.f32.mrf.mxu1  ;;  %v3565_v14 = vadd.f32 %v3482_v39, %v6048_v36  ;;  %v4156_v52 = vld [vmem:[%s5145_s26 + $0x114] sm:$0xff] }
 0x465   : > { %4525 = vst.msk [vmem:[%s6342_s21 + $0x30] sm:$0xff] %vm4518_vm2, %v4486_v6  ;;  %v4365_v50 = vadd.f32 %v4280_v40, %v4098_v11  ;;  %v3379_v6 = vpack.c.bf16 %v3355_v49, %v3354_v34  ;;  %v3357_v34 = vld [vmem:[%s5145_s26 + $0x121] sm:$0xff] }
 0x466   : > { %4935 = vmatmul.msk.bf16.gmra.mxu0 %vm323_vm1, %v3378_v24  ;;  %v3832_v12 = vadd.f32 %v3749_v17, %v3565_v14  ;;  %v3623_v49 = vld [vmem:[%s5145_s26 + $0x11a] sm:$0xff] }
 0x467   : > { %v4407_v45 = vmul.f32 %v6320_v47, %v4365_v50  ;;  %4960 = vmatmul.msk.bf16.gmra.mxu1 %vm323_vm1, %v3645_v9  ;;  %4985 = vmatmul.msk.bf16.gmra.mxu2 %vm323_vm1, %v3912_v22  ;;  %v3646_v9 = vpack.c.bf16 %v3622_v33, %v3621_v7  ;;  %v3913_v22 = vpack.c.bf16 %v3889_v56, %v3888_v61  ;;  %v3624_v7 = vld [vmem:[%s5145_s26 + $0x122] sm:$0xff] }
 0x468   : > { %5010 = vmatmul.msk.bf16.gmra.mxu3 %vm323_vm1, %v4179_v63  ;;  %v4180_v63 = vpack.c.bf16 %v4156_v52, %v4155_v58  ;;  %v3890_v33 = vld [vmem:[%s5145_s26 + $0x11b] sm:$0xff]  ;;  %v3891_v61 = vld [vmem:[%s5145_s26 + $0x123] sm:$0xff] }
 0x469   : > { %v4449_v48 = vadd.f32 %v6325_v0, %v4407_v45  ;;  %v4158_v58 = vld [vmem:[%s5145_s26 + $0x124] sm:$0xff] }
 0x46a   : > { %v4016_v36 = vpop.f32.mrf.mxu2 }
 0x46b   : > { %v4487_v46 = vmax.f32 %v4449_v48, 0.0  ;;  %v4099_v30 = vadd.f32 %v4016_v36, %v3832_v12  ;;  %v4283_v21 = vpop.f32.mrf.mxu3  ;;  %v3484_v31 = vpop.f32.mrf.mxu0 }
 0x46c   : > { %v3751_v27 = vpop.f32.mrf.mxu1  ;;  %v3566_v32 = vadd.f32 %v3484_v31, %v6059_v2 }
 0x46d   : > { %4526 = vst.msk [vmem:[%s6342_s21 + $0x38] sm:$0xff] %vm4518_vm2, %v4487_v46  ;;  %v4366_v38 = vadd.f32 %v4283_v21, %v4099_v30 }
 0x46e   : > { %v3833_v57 = vadd.f32 %v3751_v27, %v3566_v32 }
 0x46f   : > { %v4408_v54 = vmul.f32 %v6320_v47, %v4366_v38 }
 0x471   : > { %v4450_v13 = vadd.f32 %v6325_v0, %v4408_v54  ;;  %v3356_v54 = vld [vmem:[%s5145_s26 + $0x119] sm:$0xff] }
 0x472   : > { %v4018_v24 = vpop.f32.mrf.mxu2 }
 0x473   : > { %v4488_v11 = vmax.f32 %v4450_v13, 0.0  ;;  %v4100_v40 = vadd.f32 %v4018_v24, %v3833_v57  ;;  %v4285_v39 = vpop.f32.mrf.mxu3  ;;  %v3487_v2 = vpop.f32.mrf.mxu0  ;;  %v4157_v57 = vld [vmem:[%s5145_s26 + $0x11c] sm:$0xff]  ;;  %v3380_v24 = vpack.c.bf16 %v3357_v34, %v3356_v54  ;;  %v3626_v54 = vld [vmem:[%s5145_s26 + $0x132] sm:$0xff] }
 0x474   : > { %v3754_v17 = vpop.f32.mrf.mxu1  ;;  %v3567_v14 = vadd.f32 %v3487_v2, %v6066_v29  ;;  %v3914_v2 = vpack.c.bf16 %v3891_v61, %v3890_v33  ;;  %v3892_v34 = vld [vmem:[%s5145_s26 + $0x12b] sm:$0xff] }
 0x475   : > { %4527 = vst.msk [vmem:[%s6342_s21 + $0x40] sm:$0xff] %vm4518_vm2, %v4488_v11  ;;  %v4367_v50 = vadd.f32 %v4285_v39, %v4100_v40  ;;  %v3647_v39 = vpack.c.bf16 %v3624_v7, %v3623_v49  ;;  %v3893_v49 = vld [vmem:[%s5145_s26 + $0x133] sm:$0xff] }
 0x476   : > { %4936 = vmatmul.msk.bf16.gmra.mxu0 %vm323_vm1, %v3379_v6  ;;  %v3834_v12 = vadd.f32 %v3754_v17, %v3567_v14  ;;  %v4159_v61 = vld [vmem:[%s5145_s26 + $0x12c] sm:$0xff] }
 0x477   : > { %v4409_v45 = vmul.f32 %v6320_v47, %v4367_v50  ;;  %4961 = vmatmul.msk.bf16.gmra.mxu1 %vm323_vm1, %v3646_v9  ;;  %4986 = vmatmul.msk.bf16.gmra.mxu2 %vm323_vm1, %v3913_v22  ;;  %v4181_v22 = vpack.c.bf16 %v4158_v58, %v4157_v57 }
 0x478   : > { %5011 = vmatmul.msk.bf16.gmra.mxu3 %vm323_vm1, %v4180_v63 }
 0x479   : > { %v4451_v48 = vadd.f32 %v6325_v0, %v4409_v45 }
 0x47a   : > { %v4021_v29 = vpop.f32.mrf.mxu2 }
 0x47b   : > { %v4489_v36 = vmax.f32 %v4451_v48, 0.0  ;;  %v4101_v46 = vadd.f32 %v4021_v29, %v3834_v12  ;;  %v4288_v30 = vpop.f32.mrf.mxu3  ;;  %v3489_v21 = vpop.f32.mrf.mxu0 }
 0x47c   : > { %v3756_v31 = vpop.f32.mrf.mxu1  ;;  %v3568_v38 = vadd.f32 %v3489_v21, %v6077_v1 }
 0x47d   : > { %4528 = vst.msk [vmem:[%s6342_s21 + $0x48] sm:$0xff] %vm4518_vm2, %v4489_v36  ;;  %v4368_v27 = vadd.f32 %v4288_v30, %v4101_v46 }
 0x47e   : > { %v3835_v13 = vadd.f32 %v3756_v31, %v3568_v38  ;;  %v3359_v38 = vld [vmem:[%s5145_s26 + $0x131] sm:$0xff] }
 0x47f   : > { %v4410_v32 = vmul.f32 %v6320_v47, %v4368_v27  ;;  %v3358_v27 = vld [vmem:[%s5145_s26 + $0x129] sm:$0xff] }
 0x480   : > { %v3381_v57 = vpack.c.bf16 %v3359_v38, %v3358_v27  ;;  %v3895_v27 = vld [vmem:[%s5145_s26 + $0x143] sm:$0xff] }
 0x481   : > { %v4452_v56 = vadd.f32 %v6325_v0, %v4410_v32  ;;  %v3625_v32 = vld [vmem:[%s5145_s26 + $0x12a] sm:$0xff] }
 0x482   : > { %v4023_v52 = vpop.f32.mrf.mxu2 }
 0x483   : > { %v4490_v6 = vmax.f32 %v4452_v56, 0.0  ;;  %v4102_v11 = vadd.f32 %v4023_v52, %v3835_v13  ;;  %v4290_v40 = vpop.f32.mrf.mxu3  ;;  %v3492_v1 = vpop.f32.mrf.mxu0  ;;  %v4160_v56 = vld [vmem:[%s5145_s26 + $0x134] sm:$0xff] }
 0x484   : > { %v3759_v9 = vpop.f32.mrf.mxu1  ;;  %v3569_v63 = vadd.f32 %v3492_v1, %v6084_v28  ;;  %v4182_v1 = vpack.c.bf16 %v4160_v56, %v4159_v61 }
 0x485   : > { %4529 = vst.msk [vmem:[%s6342_s21 + $0x50] sm:$0xff] %vm4518_vm2, %v4490_v6  ;;  %v4369_v17 = vadd.f32 %v4290_v40, %v4102_v11  ;;  %v3648_v6 = vpack.c.bf16 %v3626_v54, %v3625_v32  ;;  %v3915_v11 = vpack.c.bf16 %v3893_v49, %v3892_v34  ;;  %v4161_v54 = vld [vmem:[%s5145_s26 + $0x13c] sm:$0xff]  ;;  %v4162_v34 = vld [vmem:[%s5145_s26 + $0x144] sm:$0xff] }
 0x486   : > { %4937 = vmatmul.msk.bf16.gmra.mxu0 %vm323_vm1, %v3380_v24  ;;  %v3836_v45 = vadd.f32 %v3759_v9, %v3569_v63 }
 0x487   : > { %v4411_v50 = vmul.f32 %v6320_v47, %v4369_v17  ;;  %4962 = vmatmul.msk.bf16.gmra.mxu1 %vm323_vm1, %v3647_v39  ;;  %4987 = vmatmul.msk.bf16.gmra.mxu2 %vm323_vm1, %v3914_v2 }
 0x488   : > { %5012 = vmatmul.msk.bf16.gmra.mxu3 %vm323_vm1, %v4181_v22 }
 0x489   : > { %v4453_v14 = vadd.f32 %v6325_v0, %v4411_v50 }
 0x48a   : > { %v4026_v28 = vpop.f32.mrf.mxu2 }
 0x48b   : > { %v4491_v48 = vmax.f32 %v4453_v14, 0.0  ;;  %v4103_v12 = vadd.f32 %v4026_v28, %v3836_v45  ;;  %v4293_v29 = vpop.f32.mrf.mxu3  ;;  %v3494_v36 = vpop.f32.mrf.mxu0 }
 0x48c   : > { %v3761_v46 = vpop.f32.mrf.mxu1  ;;  %v3570_v21 = vadd.f32 %v3494_v36, %v6095_v44  ;;  %v3360_v36 = vld [vmem:[%s5145_s26 + $0x139] sm:$0xff] }
 0x48d   : > { %4530 = vst.msk [vmem:[%s6342_s21 + $0x58] sm:$0xff] %vm4518_vm2, %v4491_v48  ;;  %v4370_v30 = vadd.f32 %v4293_v29, %v4103_v12 }
 0x48e   : > { %v3837_v33 = vadd.f32 %v3761_v46, %v3570_v21  ;;  %v3361_v46 = vld [vmem:[%s5145_s26 + $0x141] sm:$0xff] }
 0x48f   : > { %v4412_v31 = vmul.f32 %v6320_v47, %v4370_v30  ;;  %v3627_v30 = vld [vmem:[%s5145_s26 + $0x13a] sm:$0xff]  ;;  %v3628_v21 = vld [vmem:[%s5145_s26 + $0x142] sm:$0xff] }
 0x491   : > { %v4454_v7 = vadd.f32 %v6325_v0, %v4412_v31  ;;  %v3894_v31 = vld [vmem:[%s5145_s26 + $0x13b] sm:$0xff] }
 0x492   : > { %v4028_v13 = vpop.f32.mrf.mxu2 }
 0x493   : > { %v4492_v58 = vmax.f32 %v4454_v7, 0.0  ;;  %v4104_v52 = vadd.f32 %v4028_v13, %v3837_v33  ;;  %v4295_v24 = vpop.f32.mrf.mxu3  ;;  %v3497_v44 = vpop.f32.mrf.mxu0  ;;  %v3382_v7 = vpack.c.bf16 %v3361_v46, %v3360_v36  ;;  %v3649_v13 = vpack.c.bf16 %v3628_v21, %v3627_v30  ;;  %v4163_v46 = vld [vmem:[%s5145_s26 + $0x14c] sm:$0xff]  ;;  %v4164_v30 = vld [vmem:[%s5145_s26 + $0x154] sm:$0xff] }
 0x494   : > { %v3764_v40 = vpop.f32.mrf.mxu1  ;;  %v3571_v2 = vadd.f32 %v3497_v44, %v6102_v26 }
 0x495   : > { %4531 = vst.msk [vmem:[%s6342_s21 + $0x60] sm:$0xff] %vm4518_vm2, %v4492_v58  ;;  %v4371_v39 = vadd.f32 %v4295_v24, %v4104_v52  ;;  %v4183_v52 = vpack.c.bf16 %v4162_v34, %v4161_v54 }
 0x496   : > { %4938 = vmatmul.msk.bf16.gmra.mxu0 %vm323_vm1, %v3381_v57  ;;  %v3838_v17 = vadd.f32 %v3764_v40, %v3571_v2  ;;  %v3916_v57 = vpack.c.bf16 %v3895_v27, %v3894_v31 }
 0x497   : > { %v4413_v9 = vmul.f32 %v6320_v47, %v4371_v39  ;;  %4963 = vmatmul.msk.bf16.gmra.mxu1 %vm323_vm1, %v3648_v6  ;;  %4988 = vmatmul.msk.bf16.gmra.mxu2 %vm323_vm1, %v3915_v11 }
 0x498   : > { %5013 = vmatmul.msk.bf16.gmra.mxu3 %vm323_vm1, %v4182_v1 }
 0x499   : > { %v4455_v22 = vadd.f32 %v6325_v0, %v4413_v9 }
 0x49a   : > { %v4031_v26 = vpop.f32.mrf.mxu2 }
 0x49b   : > { %v4493_v63 = vmax.f32 %v4455_v22, 0.0  ;;  %v4105_v50 = vadd.f32 %v4031_v26, %v3838_v17  ;;  %v4298_v14 = vpop.f32.mrf.mxu3  ;;  %v3499_v45 = vpop.f32.mrf.mxu0 }
 0x49c   : > { %v3766_v28 = vpop.f32.mrf.mxu1  ;;  %v3572_v12 = vadd.f32 %v3499_v45, %v6113_v8  ;;  %v3629_v45 = vld [vmem:[%s5145_s26 + $0x14a] sm:$0xff] }
 0x49d   : > { %4532 = vst.msk [vmem:[%s6342_s21 + $0x68] sm:$0xff] %vm4518_vm2, %v4493_v63  ;;  %v4372_v48 = vadd.f32 %v4298_v14, %v4105_v50  ;;  %v3362_v50 = vld [vmem:[%s5145_s26 + $0x149] sm:$0xff]  ;;  %v3363_v14 = vld [vmem:[%s5145_s26 + $0x151] sm:$0xff] }
 0x49e   : > { %v3839_v32 = vadd.f32 %v3766_v28, %v3572_v12  ;;  %v3630_v28 = vld [vmem:[%s5145_s26 + $0x152] sm:$0xff]  ;;  %v3383_v31 = vpack.c.bf16 %v3363_v14, %v3362_v50  ;;  %v4166_v50 = vld [vmem:[%s5145_s26 + $0x164] sm:$0xff] }
 0x49f   : > { %v4414_v29 = vmul.f32 %v6320_v47, %v4372_v48  ;;  %v3896_v48 = vld [vmem:[%s5145_s26 + $0x14b] sm:$0xff]  ;;  %v3897_v12 = vld [vmem:[%s5145_s26 + $0x153] sm:$0xff]  ;;  %v3650_v54 = vpack.c.bf16 %v3630_v28, %v3629_v45 }
 0x4a0   : > { %v3917_v34 = vpack.c.bf16 %v3897_v12, %v3896_v48 }
 0x4a1   : > { %v4456_v38 = vadd.f32 %v6325_v0, %v4414_v29 }
 0x4a2   : > { %v4033_v49 = vpop.f32.mrf.mxu2 }
 0x4a3   : > { %v4494_v33 = vmax.f32 %v4456_v38, 0.0  ;;  %v4106_v61 = vadd.f32 %v4033_v49, %v3839_v32  ;;  %v4300_v56 = vpop.f32.mrf.mxu3  ;;  %v3502_v8 = vpop.f32.mrf.mxu0 }
 0x4a4   : > { %v3769_v58 = vpop.f32.mrf.mxu1  ;;  %v3573_v44 = vadd.f32 %v3502_v8, %v6120_v20 }
 0x4a5   : > { %4533 = vst.msk [vmem:[%s6342_s21 + $0x70] sm:$0xff] %vm4518_vm2, %v4494_v33  ;;  %v4373_v24 = vadd.f32 %v4300_v56, %v4106_v61 }
 0x4a6   : > { %4939 = vmatmul.msk.bf16.gmra.mxu0 %vm323_vm1, %v3382_v7  ;;  %v3840_v40 = vadd.f32 %v3769_v58, %v3573_v44  ;;  %v4184_v7 = vpack.c.bf16 %v4164_v30, %v4163_v46 }
 0x4a7   : > { %v4415_v6 = vmul.f32 %v6320_v47, %v4373_v24  ;;  %4964 = vmatmul.msk.bf16.gmra.mxu1 %vm323_vm1, %v3649_v13  ;;  %4989 = vmatmul.msk.bf16.gmra.mxu2 %vm323_vm1, %v3916_v57 }
 0x4a8   : > { %5014 = vmatmul.msk.bf16.gmra.mxu3 %vm323_vm1, %v4183_v52 }
 0x4a9   : > { %v4457_v11 = vadd.f32 %v6325_v0, %v4415_v6 }
 0x4aa   : > { %v4036_v20 = vpop.f32.mrf.mxu2 }
 0x4ab   : > { %v4495_v1 = vmax.f32 %v4457_v11, 0.0  ;;  %v4107_v39 = vadd.f32 %v4036_v20, %v3840_v40  ;;  %v4303_v2 = vpop.f32.mrf.mxu3  ;;  %v3504_v9 = vpop.f32.mrf.mxu0  ;;  %v3364_v20 = vld [vmem:[%s5145_s26 + $0x159] sm:$0xff] }
 0x4ac   : > { %v3771_v22 = vpop.f32.mrf.mxu1  ;;  %v3574_v26 = vadd.f32 %v3504_v9, %v6131_v37  ;;  %v3898_v9 = vld [vmem:[%s5145_s26 + $0x15b] sm:$0xff] }
 0x4ad   : > { %4534 = vst.msk [vmem:[%s6342_s21 + $0x78] sm:$0xff] %vm4518_vm2, %v4495_v1  ;;  %v4374_v17 = vadd.f32 %v4303_v2, %v4107_v39  ;;  %v3365_v1 = vld [vmem:[%s5145_s26 + $0x161] sm:$0xff] }
 0x4ae   : > { %v3841_v36 = vadd.f32 %v3771_v22, %v3574_v26  ;;  %v3631_v39 = vld [vmem:[%s5145_s26 + $0x15a] sm:$0xff]  ;;  %v3632_v2 = vld [vmem:[%s5145_s26 + $0x162] sm:$0xff]  ;;  %v3384_v45 = vpack.c.bf16 %v3365_v1, %v3364_v20 }
 0x4af   : > { %v4416_v63 = vmul.f32 %v6320_v47, %v4374_v17  ;;  %v3899_v22 = vld [vmem:[%s5145_s26 + $0x163] sm:$0xff] }
 0x4b1   : > { %v4458_v29 = vadd.f32 %v6325_v0, %v4416_v63  ;;  %v4165_v63 = vld [vmem:[%s5145_s26 + $0x15c] sm:$0xff] }
 0x4b2   : > { %v4038_v21 = vpop.f32.mrf.mxu2  ;;  %v4185_v30 = vpack.c.bf16 %v4166_v50, %v4165_v63 }
 0x4b3   : > { %v4496_v27 = vmax.f32 %v4458_v29, 0.0  ;;  %v4108_v38 = vadd.f32 %v4038_v21, %v3841_v36  ;;  %v4305_v32 = vpop.f32.mrf.mxu3  ;;  %v3507_v37 = vpop.f32.mrf.mxu0  ;;  %v3651_v29 = vpack.c.bf16 %v3632_v2, %v3631_v39  ;;  %v3918_v36 = vpack.c.bf16 %v3899_v22, %v3898_v9 }
 0x4b4   : > { %v3774_v49 = vpop.f32.mrf.mxu1  ;;  %v3575_v61 = vadd.f32 %v3507_v37, %v6138_v3 }
 0x4b5   : > { %4535 = vst.msk [vmem:[%s6342_s21 + $0x80] sm:$0xff] %vm4518_vm2, %v4496_v27  ;;  %v4375_v33 = vadd.f32 %v4305_v32, %v4108_v38 }
 0x4b6   : > { %4940 = vmatmul.msk.bf16.gmra.mxu0 %vm323_vm1, %v3383_v31  ;;  %v3842_v13 = vadd.f32 %v3774_v49, %v3575_v61 }
 0x4b7   : > { %v4417_v56 = vmul.f32 %v6320_v47, %v4375_v33  ;;  %4965 = vmatmul.msk.bf16.gmra.mxu1 %vm323_vm1, %v3650_v54  ;;  %4990 = vmatmul.msk.bf16.gmra.mxu2 %vm323_vm1, %v3917_v34 }
 0x4b8   : > { %5015 = vmatmul.msk.bf16.gmra.mxu3 %vm323_vm1, %v4184_v7 }
 0x4b9   : > { %v4459_v8 = vadd.f32 %v6325_v0, %v4417_v56 }
 0x4ba   : > { %v4041_v3 = vpop.f32.mrf.mxu2 }
 0x4bb   : > { %v4497_v57 = vmax.f32 %v4459_v8, 0.0  ;;  %v4109_v58 = vadd.f32 %v4041_v3, %v3842_v13  ;;  %v4308_v52 = vpop.f32.mrf.mxu3  ;;  %v3509_v24 = vpop.f32.mrf.mxu0 }
 0x4bc   : > { %v3776_v44 = vpop.f32.mrf.mxu1  ;;  %v3576_v11 = vadd.f32 %v3509_v24, %v6149_v4 }
 0x4bd   : > { %4536 = vst.msk [vmem:[%s6342_s21 + $0x88] sm:$0xff] %vm4518_vm2, %v4497_v57  ;;  %v4376_v6 = vadd.f32 %v4308_v52, %v4109_v58 }
 0x4be   : > { %v3843_v26 = vadd.f32 %v3776_v44, %v3576_v11 }
 0x4bf   : > { %v4418_v40 = vmul.f32 %v6320_v47, %v4376_v6 }
 0x4c1   : > { %v4460_v17 = vadd.f32 %v6325_v0, %v4418_v40 }
 0x4c2   : > { %v4043_v14 = vpop.f32.mrf.mxu2 }
 0x4c3   : > { %v4498_v28 = vmax.f32 %v4460_v17, 0.0  ;;  %v4110_v48 = vadd.f32 %v4043_v14, %v3843_v26  ;;  %v4310_v12 = vpop.f32.mrf.mxu3  ;;  %v3512_v4 = vpop.f32.mrf.mxu0 }
 0x4c4   : > { %v3779_v46 = vpop.f32.mrf.mxu1  ;;  %v3577_v31 = vadd.f32 %v3512_v4, %v6156_v19 }
 0x4c5   : > { %4537 = vst.msk [vmem:[%s6342_s21 + $0x90] sm:$0xff] %vm4518_vm2, %v4498_v28  ;;  %v4377_v21 = vadd.f32 %v4310_v12, %v4110_v48 }
 0x4c6   : > { %4941 = vmatmul.msk.bf16.gmra.mxu0 %vm323_vm1, %v3384_v45  ;;  %v3844_v32 = vadd.f32 %v3779_v46, %v3577_v31 }
 0x4c7   : > { %v4419_v27 = vmul.f32 %v6320_v47, %v4377_v21  ;;  %4966 = vmatmul.msk.bf16.gmra.mxu1 %vm323_vm1, %v3651_v29  ;;  %4991 = vmatmul.msk.bf16.gmra.mxu2 %vm323_vm1, %v3918_v36 }
 0x4c8   : > { %5016 = vmatmul.msk.bf16.gmra.mxu3 %vm323_vm1, %v4185_v30 }
 0x4c9   : > { %v4461_v38 = vadd.f32 %v6325_v0, %v4419_v27 }
 0x4ca   : > { %v4046_v37 = vpop.f32.mrf.mxu2 }
 0x4cb   : > { %v4499_v54 = vmax.f32 %v4461_v38, 0.0  ;;  %v4111_v34 = vadd.f32 %v4046_v37, %v3844_v32  ;;  %v4313_v49 = vpop.f32.mrf.mxu3  ;;  %v3514_v7 = vpop.f32.mrf.mxu0 }
 0x4cc   : > { %v3781_v19 = vpop.f32.mrf.mxu1  ;;  %v3578_v61 = vadd.f32 %v3514_v7, %v6167_v35 }
 0x4cd   : > { %4538 = vst.msk [vmem:[%s6342_s21 + $0x98] sm:$0xff] %vm4518_vm2, %v4499_v54  ;;  %v4378_v33 = vadd.f32 %v4313_v49, %v4111_v34 }
 0x4ce   : > { %v3845_v13 = vadd.f32 %v3781_v19, %v3578_v61 }
 0x4cf   : > { %v4420_v56 = vmul.f32 %v6320_v47, %v4378_v33 }
 0x4d1   : > { %v4462_v8 = vadd.f32 %v6325_v0, %v4420_v56 }
 0x4d2   : > { %v4048_v3 = vpop.f32.mrf.mxu2 }
 0x4d3   : > { %v4500_v57 = vmax.f32 %v4462_v8, 0.0  ;;  %v4112_v58 = vadd.f32 %v4048_v3, %v3845_v13  ;;  %v4315_v52 = vpop.f32.mrf.mxu3  ;;  %v3517_v24 = vpop.f32.mrf.mxu0 }
 0x4d4   : > { %v3784_v44 = vpop.f32.mrf.mxu1  ;;  %v3579_v11 = vadd.f32 %v3517_v24, %v6174_v18 }
 0x4d5   : > { %4539 = vst.msk [vmem:[%s6342_s21 + $0xa0] sm:$0xff] %vm4518_vm2, %v4500_v57  ;;  %v4379_v6 = vadd.f32 %v4315_v52, %v4112_v58 }
 0x4d6   : > { %v3846_v20 = vadd.f32 %v3784_v44, %v3579_v11 }
 0x4d7   : > { %v4421_v40 = vmul.f32 %v6320_v47, %v4379_v6 }
 0x4d9   : > { %v4463_v35 = vadd.f32 %v6325_v0, %v4421_v40 }
 0x4da   : > { %v4051_v1 = vpop.f32.mrf.mxu2 }
 0x4db   : > { %v4501_v39 = vmax.f32 %v4463_v35, 0.0  ;;  %v4113_v2 = vadd.f32 %v4051_v1, %v3846_v20  ;;  %v4318_v9 = vpop.f32.mrf.mxu3  ;;  %v3519_v22 = vpop.f32.mrf.mxu0 }
 0x4dc   : > { %v3786_v17 = vpop.f32.mrf.mxu1  ;;  %v3580_v63 = vadd.f32 %v3519_v22, %v6185_v5 }
 0x4dd   : > { %4540 = vst.msk [vmem:[%s6342_s21 + $0xa8] sm:$0xff] %vm4518_vm2, %v4501_v39  ;;  %v4380_v26 = vadd.f32 %v4318_v9, %v4113_v2 }
 0x4de   : > { %v3847_v14 = vadd.f32 %v3786_v17, %v3580_v63 }
 0x4df   : > { %v4422_v50 = vmul.f32 %v6320_v47, %v4380_v26 }
 0x4e1   : > { %v4464_v18 = vadd.f32 %v6325_v0, %v4422_v50 }
 0x4e2   : > { %v4053_v45 = vpop.f32.mrf.mxu2 }
 0x4e3   : > { %v4502_v28 = vmax.f32 %v4464_v18, 0.0  ;;  %v4114_v48 = vadd.f32 %v4053_v45, %v3847_v14  ;;  %v4320_v12 = vpop.f32.mrf.mxu3  ;;  %v3522_v4 = vpop.f32.mrf.mxu0 }
 0x4e4   : > { %v3789_v29 = vpop.f32.mrf.mxu1  ;;  %v3581_v46 = vadd.f32 %v3522_v4, %v6192_v23 }
 0x4e5   : > { %4541 = vst.msk [vmem:[%s6342_s21 + $0xb0] sm:$0xff] %vm4518_vm2, %v4502_v28  ;;  %v4381_v36 = vadd.f32 %v4320_v12, %v4114_v48 }
 0x4e6   : > { %v3848_v21 = vadd.f32 %v3789_v29, %v3581_v46 }
 0x4e7   : > { %v4423_v30 = vmul.f32 %v6320_v47, %v4381_v36 }
 0x4e9   : > { %v4465_v5 = vadd.f32 %v6325_v0, %v4423_v30 }
 0x4ea   : > { %v4056_v31 = vpop.f32.mrf.mxu2 }
 0x4eb   : > { %v4503_v27 = vmax.f32 %v4465_v5, 0.0  ;;  %v4115_v38 = vadd.f32 %v4056_v31, %v3848_v21  ;;  %v4323_v32 = vpop.f32.mrf.mxu3  ;;  %v3524_v37 = vpop.f32.mrf.mxu0 }
 0x4ec   : > { %v3791_v54 = vpop.f32.mrf.mxu1  ;;  %v3582_v49 = vadd.f32 %v3524_v37, %v6203_v43 }
 0x4ed   : > { %4542 = vst.msk [vmem:[%s6342_s21 + $0xb8] sm:$0xff] %vm4518_vm2, %v4503_v27  ;;  %v4382_v34 = vadd.f32 %v4323_v32, %v4115_v38 }
 0x4ee   : > { %v3849_v19 = vadd.f32 %v3791_v54, %v3582_v49 }
 0x4ef   : > { %v4424_v7 = vmul.f32 %v6320_v47, %v4382_v34 }
 0x4f1   : > { %v4466_v23 = vadd.f32 %v6325_v0, %v4424_v7 }
 0x4f2   : > { %v4058_v33 = vpop.f32.mrf.mxu2 }
 0x4f3   : > { %v4504_v61 = vmax.f32 %v4466_v23, 0.0  ;;  %v4116_v56 = vadd.f32 %v4058_v33, %v3849_v19  ;;  %v4325_v8 = vpop.f32.mrf.mxu3  ;;  %v3527_v13 = vpop.f32.mrf.mxu0 }
 0x4f4   : > { %v3794_v3 = vpop.f32.mrf.mxu1  ;;  %v3583_v58 = vadd.f32 %v3527_v13, %v6210_v51 }
 0x4f5   : > { %4543 = vst.msk [vmem:[%s6342_s21 + $0xc0] sm:$0xff] %vm4518_vm2, %v4504_v61  ;;  %v4383_v57 = vadd.f32 %v4325_v8, %v4116_v56 }
 0x4f6   : > { %v3850_v24 = vadd.f32 %v3794_v3, %v3583_v58 }
 0x4f7   : > { %v4425_v52 = vmul.f32 %v6320_v47, %v4383_v57 }
 0x4f9   : > { %v4467_v43 = vadd.f32 %v6325_v0, %v4425_v52 }
 0x4fa   : > { %v4061_v44 = vpop.f32.mrf.mxu2 }
 0x4fb   : > { %v4505_v6 = vmax.f32 %v4467_v43, 0.0  ;;  %v4117_v11 = vadd.f32 %v4061_v44, %v3850_v24  ;;  %v4328_v40 = vpop.f32.mrf.mxu3  ;;  %v3529_v35 = vpop.f32.mrf.mxu0 }
 0x4fc   : > { %v3796_v20 = vpop.f32.mrf.mxu1  ;;  %v3584_v39 = vadd.f32 %v3529_v35, %v6221_v55 }
 0x4fd   : > { %4544 = vst.msk [vmem:[%s6342_s21 + $0xc8] sm:$0xff] %vm4518_vm2, %v4505_v6  ;;  %v4384_v1 = vadd.f32 %v4328_v40, %v4117_v11 }
 0x4fe   : > { %v3851_v9 = vadd.f32 %v3796_v20, %v3584_v39 }
 0x4ff   : > { %v4426_v2 = vmul.f32 %v6320_v47, %v4384_v1 }
 0x501   : > { %v4468_v51 = vadd.f32 %v6325_v0, %v4426_v2 }
 0x502   : > { %v4063_v22 = vpop.f32.mrf.mxu2 }
 0x503   : > { %v4506_v17 = vmax.f32 %v4468_v51, 0.0  ;;  %v4118_v26 = vadd.f32 %v4063_v22, %v3851_v9  ;;  %v4330_v63 = vpop.f32.mrf.mxu3  ;;  %v3532_v50 = vpop.f32.mrf.mxu0 }
 0x504   : > { %v3799_v18 = vpop.f32.mrf.mxu1  ;;  %v3585_v45 = vadd.f32 %v3532_v50, %v6228_v16 }
 0x505   : > { %4545 = vst.msk [vmem:[%s6342_s21 + $0xd0] sm:$0xff] %vm4518_vm2, %v4506_v17  ;;  %v4385_v14 = vadd.f32 %v4330_v63, %v4118_v26 }
 0x506   : > { %v3852_v48 = vadd.f32 %v3799_v18, %v3585_v45 }
 0x507   : > { %v4427_v28 = vmul.f32 %v6320_v47, %v4385_v14 }
 0x509   : > { %v4469_v55 = vadd.f32 %v6325_v0, %v4427_v28 }
 0x50a   : > { %v4066_v12 = vpop.f32.mrf.mxu2 }
 0x50b   : > { %v4507_v4 = vmax.f32 %v4469_v55, 0.0  ;;  %v4119_v29 = vadd.f32 %v4066_v12, %v3852_v48  ;;  %v4333_v36 = vpop.f32.mrf.mxu3  ;;  %v3534_v46 = vpop.f32.mrf.mxu0 }
 0x50c   : > { %v3801_v30 = vpop.f32.mrf.mxu1  ;;  %v3586_v21 = vadd.f32 %v3534_v46, %v6239_v42  ;;  %v6602_v42 = vld [vmem:[%s6657_s2] ss:$0 sm:$0xff] }
 0x50d   : > { %4546 = vst.msk [vmem:[%s6342_s21 + $0xd8] sm:$0xff] %vm4518_vm2, %v4507_v4  ;;  %v4386_v5 = vadd.f32 %v4333_v36, %v4119_v29 }
 0x50e   : > { %v3853_v27 = vadd.f32 %v3801_v30, %v3586_v21 }
 0x50f   : > { %v4428_v31 = vmul.f32 %v6320_v47, %v4386_v5 }
 0x511   : > { %v4470_v16 = vadd.f32 %v6325_v0, %v4428_v31  ;;  %v6608_v0 = vld [vmem:[%s6658_s3] ss:$0 sm:$0xff] }
 0x512   : > { %v4068_v38 = vpop.f32.mrf.mxu2 }
 0x513   : > { %v4508_v32 = vmax.f32 %v4470_v16, 0.0  ;;  %v4120_v37 = vadd.f32 %v4068_v38, %v3853_v27  ;;  %v4335_v54 = vpop.f32.mrf.mxu3  ;;  %v3537_v34 = vpop.f32.mrf.mxu0 }
 0x514   : > { %v3804_v49 = vpop.f32.mrf.mxu1  ;;  %v3587_v23 = vadd.f32 %v3537_v34, %v6246_v15 }
 0x515   : > { %4547 = vst.msk [vmem:[%s6342_s21 + $0xe0] sm:$0xff] %vm4518_vm2, %v4508_v32  ;;  %v4387_v7 = vadd.f32 %v4335_v54, %v4120_v37 }
 0x516   : > { %v3854_v33 = vadd.f32 %v3804_v49, %v3587_v23 }
 0x517   : > { %v4429_v47 = vmul.f32 %v6602_v42, %v4387_v7 }
 0x519   : > { %v4471_v19 = vadd.f32 %v6608_v0, %v4429_v47 }
 0x51a   : > { %v4071_v61 = vpop.f32.mrf.mxu2 }
 0x51b   : > { %v4509_v56 = vmax.f32 %v4471_v19, 0.0  ;;  %v4121_v8 = vadd.f32 %v4071_v61, %v3854_v33  ;;  %v4338_v15 = vpop.f32.mrf.mxu3  ;;  %v3539_v13 = vpop.f32.mrf.mxu0 }
 0x51c   : > { %v3806_v3 = vpop.f32.mrf.mxu1  ;;  %v3588_v58 = vadd.f32 %v3539_v13, %v6257_v41 }
 0x51d   : > { %4548 = vst.msk [vmem:[%s6342_s21 + $0xe8] sm:$0xff] %vm4518_vm2, %v4509_v56  ;;  %v4388_v57 = vadd.f32 %v4338_v15, %v4121_v8 }
 0x51e   : > { %v3855_v24 = vadd.f32 %v3806_v3, %v3588_v58 }
 0x51f   : > { %v4430_v52 = vmul.f32 %v6602_v42, %v4388_v57 }
 0x521   : > { %v4472_v43 = vadd.f32 %v6608_v0, %v4430_v52 }
 0x522   : > { %v4073_v44 = vpop.f32.mrf.mxu2 }
 0x523   : > { %v4510_v6 = vmax.f32 %v4472_v43, 0.0  ;;  %v4122_v11 = vadd.f32 %v4073_v44, %v3855_v24  ;;  %v4340_v40 = vpop.f32.mrf.mxu3  ;;  %v3542_v35 = vpop.f32.mrf.mxu0 }
 0x524   : > { %v3809_v20 = vpop.f32.mrf.mxu1  ;;  %v3589_v39 = vadd.f32 %v3542_v35, %v6264_v62 }
 0x525   : > { %4549 = vst.msk [vmem:[%s6342_s21 + $0xf0] sm:$0xff] %vm4518_vm2, %v4510_v6  ;;  %v4389_v1 = vadd.f32 %v4340_v40, %v4122_v11 }
 0x526   : > { %v3856_v51 = vadd.f32 %v3809_v20, %v3589_v39 }
 0x527   : > { %v4431_v2 = vmul.f32 %v6602_v42, %v4389_v1 }
 0x529   : > { %v4473_v41 = vadd.f32 %v6608_v0, %v4431_v2 }
 0x52a   : > { %v4076_v9 = vpop.f32.mrf.mxu2 }
 0x52b   : > { %v4511_v22 = vmax.f32 %v4473_v41, 0.0  ;;  %v4123_v17 = vadd.f32 %v4076_v9, %v3856_v51  ;;  %v4343_v26 = vpop.f32.mrf.mxu3  ;;  %v3544_v63 = vpop.f32.mrf.mxu0 }
 0x52c   : > { %v3811_v50 = vpop.f32.mrf.mxu1  ;;  %v3590_v14 = vadd.f32 %v3544_v63, %v6275_v25 }
 0x52d   : > { %4550 = vst.msk [vmem:[%s6342_s21 + $0xf8] sm:$0xff] %vm4518_vm2, %v4511_v22  ;;  %v4390_v18 = vadd.f32 %v4343_v26, %v4123_v17 }
 0x52e   : > { %v3857_v28 = vadd.f32 %v3811_v50, %v3590_v14 }
 0x52f   : > { %v4432_v45 = vmul.f32 %v6602_v42, %v4390_v18 }
 0x531   : > { %v4474_v62 = vadd.f32 %v6608_v0, %v4432_v45 }
 0x532   : > { %v4078_v55 = vpop.f32.mrf.mxu2 }
 0x533   : > { %v4512_v48 = vmax.f32 %v4474_v62, 0.0  ;;  %v4124_v12 = vadd.f32 %v4078_v55, %v3857_v28  ;;  %v4345_v4 = vpop.f32.mrf.mxu3  ;;  %v3547_v29 = vpop.f32.mrf.mxu0 }
 0x534   : > { %v3814_v36 = vpop.f32.mrf.mxu1  ;;  %v3591_v30 = vadd.f32 %v3547_v29, %v6282_v59 }
 0x535   : > { %4551 = vst.msk [vmem:[%s6342_s21 + $0x100] sm:$0xff] %vm4518_vm2, %v4512_v48  ;;  %v4391_v46 = vadd.f32 %v4345_v4, %v4124_v12 }
 0x536   : > { %v3858_v21 = vadd.f32 %v3814_v36, %v3591_v30 }
 0x537   : > { %v4433_v5 = vmul.f32 %v6602_v42, %v4391_v46 }
 0x539   : > { %v4475_v25 = vadd.f32 %v6608_v0, %v4433_v5 }
 0x53a   : > { %v4081_v31 = vpop.f32.mrf.mxu2 }
 0x53b   : > { %v4513_v16 = vmax.f32 %v4475_v25, 0.0  ;;  %v4125_v27 = vadd.f32 %v4081_v31, %v3858_v21  ;;  %v4348_v38 = vpop.f32.mrf.mxu3  ;;  %v3549_v32 = vpop.f32.mrf.mxu0 }
 0x53c   : > { %v3816_v37 = vpop.f32.mrf.mxu1  ;;  %v3592_v34 = vadd.f32 %v3549_v32, %v6293_v60 }
 0x53d   : > { %4552 = vst.msk [vmem:[%s6342_s21 + $0x108] sm:$0xff] %vm4518_vm2, %v4513_v16  ;;  %v4392_v54 = vadd.f32 %v4348_v38, %v4125_v27 }
 0x53e   : > { %v3859_v7 = vadd.f32 %v3816_v37, %v3592_v34 }
 0x53f   : > { %v4434_v49 = vmul.f32 %v6602_v42, %v4392_v54 }
 0x541   : > { %v4476_v59 = vadd.f32 %v6608_v0, %v4434_v49 }
 0x542   : > { %v4083_v23 = vpop.f32.mrf.mxu2 }
 0x543   : > { %v4514_v47 = vmax.f32 %v4476_v59, 0.0  ;;  %v4126_v19 = vadd.f32 %v4083_v23, %v3859_v7  ;;  %v4350_v33 = vpop.f32.mrf.mxu3  ;;  %v3552_v61 = vpop.f32.mrf.mxu0 }
 0x544   : > { %v3593_v8 = vadd.f32 %v3552_v61, %v6300_v53  ;;  %v3819_v15 = vpop.f32.mrf.mxu1 }
 0x545   : > { %4553 = vst.msk [vmem:[%s6342_s21 + $0x110] sm:$0xff] %vm4518_vm2, %v4514_v47  ;;  %v4393_v56 = vadd.f32 %v4350_v33, %v4126_v19 }
 0x546   : > { %v3860_v3 = vadd.f32 %v3819_v15, %v3593_v8 }
 0x547   : > { %v4435_v13 = vmul.f32 %v6602_v42, %v4393_v56 }
 0x549   : > { %v4477_v60 = vadd.f32 %v6608_v0, %v4435_v13 }
 0x54a   : > { %v4086_v57 = vpop.f32.mrf.mxu2 }
 0x54b   : > { %v4515_v58 = vmax.f32 %v4477_v60, 0.0  ;;  %v4127_v52 = vadd.f32 %v4086_v57, %v3860_v3  ;;  %v4353_v43 = vpop.f32.mrf.mxu3  ;;  %v3554_v24 = vpop.f32.mrf.mxu0 }
 0x54c   : > { %v3594_v6 = vadd.f32 %v3554_v24, %v6310_v10  ;;  %v3821_v11 = vpop.f32.mrf.mxu1 }
 0x54d   : > { %4554 = vst.msk [vmem:[%s6342_s21 + $0x118] sm:$0xff] %vm4518_vm2, %v4515_v58  ;;  %v4394_v44 = vadd.f32 %v4353_v43, %v4127_v52 }
 0x54e   : > { %v3861_v35 = vadd.f32 %v3821_v11, %v3594_v6 }
 0x54f   : > { %v4436_v53 = vmul.f32 %v6602_v42, %v4394_v44 }
 0x551   : > { %v4478_v40 = vadd.f32 %v6608_v0, %v4436_v53 }
 0x552   : > { %v4088_v20 = vpop.f32.mrf.mxu2 }
 0x553   : > { %v4516_v1 = vmax.f32 %v4478_v40, 0.0  ;;  %v4128_v39 = vadd.f32 %v4088_v20, %v3861_v35  ;;  %v4355_v2 = vpop.f32.mrf.mxu3 }
 0x555   : > { %4555 = vst.msk [vmem:[%s6342_s21 + $0x120] sm:$0xff] %vm4518_vm2, %v4516_v1  ;;  %v4395_v41 = vadd.f32 %v4355_v2, %v4128_v39 }
 0x557   : > { %v4437_v51 = vmul.f32 %v6602_v42, %v4395_v41 }
 0x559   : > { %v4479_v9 = vadd.f32 %v6608_v0, %v4437_v51 }
 0x55b   : > { %v4517_v22 = vmax.f32 %v4479_v9, 0.0 }
 0x55d   : > { %4556 = vst.msk [vmem:[%s6342_s21 + $0x128] sm:$0xff] %vm4518_vm2, %v4517_v22 }
 0x55e PF: > { %s14_s15 = sadd.s32 1, %s5055_s15  }
 0x55f   : > { %p11_p4 = scmp.ge.s32.totalorder %s14_s15, 4  }
 0x561   :  { %13 = sbr.rel (!%p11_p4) target bundleno = 1 (0x1), region = 81 }

// kernel: densenet_forward.32
= control target key start
LH: loop header
LB: loop body
LE: loop exit
PB: predicated region body
PF: predicated region fallthrough
CT: control target
= control target key end

     0   :  { %vm49_vm0 = vcmask 130048   ;;  %s143_s0 = inlined_call_operand.vmem [shape: f32[32,16], index: 0, kind: input, shape index: {}]   ;;  %s144_s1 = inlined_call_operand.vmem [shape: f32[32,16], index: 1, kind: input, shape index: {}]   ;;  %s145_s2 = inlined_call_operand.vmem [shape: f32[32,16], index: 2, kind: input, shape index: {}]   ;;  %s146_s3 = inlined_call_operand.vmem [shape: f32[32,16], index: 3, kind: input, shape index: {}]   ;;  %s147_s4 = inlined_call_operand.vmem [shape: f32[32,16], index: 4, kind: output, shape index: {}]  }
   0x1   :  { %v17_v0 = vld [vmem:[%s143_s0] sm:$0xff]  ;;  %v18_v4 = vld [vmem:[%s143_s0 + $0x8] sm:$0xff]  ;;  %v19_v9 = vld [vmem:[%s143_s0 + $0x10] sm:$0xff] }
   0x2   :  { %v21_v1 = vld [vmem:[%s144_s1] sm:$0xff]  ;;  %v22_v5 = vld [vmem:[%s144_s1 + $0x8] sm:$0xff]  ;;  %v23_v12 = vld [vmem:[%s144_s1 + $0x10] sm:$0xff] }
   0x3   :  { %v29_v2 = vld [vmem:[%s145_s2] sm:$0xff]  ;;  %v25_v3 = vadd.f32 %v21_v1, %v17_v0  ;;  %v26_v7 = vadd.f32 %v22_v5, %v18_v4  ;;  %v30_v8 = vld [vmem:[%s145_s2 + $0x8] sm:$0xff]  ;;  %v31_v13 = vld [vmem:[%s145_s2 + $0x10] sm:$0xff]  ;;  %v27_v15 = vadd.f32 %v23_v12, %v19_v9 }
   0x4   :  { %v37_v6 = vld [vmem:[%s146_s3] sm:$0xff]  ;;  %v38_v11 = vld [vmem:[%s146_s3 + $0x8] sm:$0xff]  ;;  %v20_v16 = vld [vmem:[%s143_s0 + $0x18] sm:$0xff] }
   0x5   :  { %v33_v10 = vadd.f32 %v29_v2, %v25_v3  ;;  %v34_v14 = vadd.f32 %v30_v8, %v26_v7  ;;  %v24_v17 = vld [vmem:[%s144_s1 + $0x18] sm:$0xff]  ;;  %v39_v20 = vld [vmem:[%s146_s3 + $0x10] sm:$0xff]  ;;  %v35_v23 = vadd.f32 %v31_v13, %v27_v15 }
   0x6   :  { %v32_v18 = vld [vmem:[%s145_s2 + $0x18] sm:$0xff]  ;;  %v28_v21 = vadd.f32 %v24_v17, %v20_v16 }
   0x7   :  { %v41_v19 = vadd.f32 %v37_v6, %v33_v10  ;;  %v42_v22 = vadd.f32 %v38_v11, %v34_v14  ;;  %v40_v24 = vld [vmem:[%s146_s3 + $0x18] sm:$0xff]  ;;  %v43_v28 = vadd.f32 %v39_v20, %v35_v23 }
   0x8   :  { %v36_v26 = vadd.f32 %v32_v18, %v28_v21 }
   0x9   :  { %v45_v25 = vmul.f32 0.25, %v41_v19  ;;  %v46_v27 = vmul.f32 0.25, %v42_v22  ;;  %v47_v30 = vmul.f32 0.25, %v43_v28 }
   0xa   :  { %v44_v29 = vadd.f32 %v40_v24, %v36_v26 }
   0xb   :  { %50 = vst.msk [vmem:[%s147_s4] sm:$0xff] %vm49_vm0, %v45_v25 }
   0xc   :  { %51 = vst.msk [vmem:[%s147_s4 + $0x8] sm:$0xff] %vm49_vm0, %v46_v27  ;;  %v48_v31 = vmul.f32 0.25, %v44_v29 }
   0xd   :  { %52 = vst.msk [vmem:[%s147_s4 + $0x10] sm:$0xff] %vm49_vm0, %v47_v30 }
   0xe   :  { %53 = vst.msk [vmem:[%s147_s4 + $0x18] sm:$0xff] %vm49_vm0, %v48_v31 }

// kernel: densenet_forward.33
= control target key start
LH: loop header
LB: loop body
LE: loop exit
PB: predicated region body
PF: predicated region fallthrough
CT: control target
= control target key end

     0   :  { %vm58_vm0 = vcmask 130048   ;;  %vm108_vm1 = vcmask 257024   ;;  %s207_s3 = inlined_call_operand.vmem [shape: bf16[16,32], index: 3, kind: input, shape index: {}]   ;;  %s208_s0 = inlined_call_operand.vmem [shape: f32[32,16], index: 0, kind: input, shape index: {}]   ;;  %s209_s1 = inlined_call_operand.vmem [shape: f32[1,16], index: 1, kind: input, shape index: {}]   ;;  %s210_s2 = inlined_call_operand.vmem [shape: f32[1,16], index: 2, kind: input, shape index: {}]   ;;  %s211_s4 = inlined_call_operand.vmem [shape: f32[1,32], index: 4, kind: input, shape index: {}]   ;;  %s212_s5 = inlined_call_operand.vmem [shape: f32[1,32], index: 5, kind: input, shape index: {}]   ;;  %s213_s6 = inlined_call_operand.vmem [shape: bf16[32,32], index: 6, kind: output, shape index: {}]  }
   0x1   :  { %v123_v0 = vld [vmem:[%s207_s3] sm:$0xff]  ;;  %v25_v2 = vld [vmem:[%s208_s0 + $0x8] sm:$0xff]  ;;  %v26_v5 = vld [vmem:[%s208_s0 + $0x10] sm:$0xff] }
   0x2   :  { %v24_v1 = vld [vmem:[%s208_s0] sm:$0xff]  ;;  %72 = vmatpush.bf16.msra.mxu0 %v123_v0  ;;  %124 = vmatpush.bf16.msra.mxu1 %v123_v0  ;;  %v27_v6 = vld [vmem:[%s208_s0 + $0x18] sm:$0xff] }
   0x3   :  { %v125_v3 = vld [vmem:[%s209_s1] ss:$0 sm:$0xff] }
   0x4   :  { %v126_v4 = vld [vmem:[%s210_s2] ss:$0 sm:$0xff]  ;;  %v32_v7 = vmul.f32 %v125_v3, %v24_v1  ;;  %v33_v8 = vmul.f32 %v125_v3, %v25_v2  ;;  %v34_v9 = vmul.f32 %v125_v3, %v26_v5  ;;  %v35_v10 = vmul.f32 %v125_v3, %v27_v6 }
   0x5   :  { %v127_v21 = vld [vmem:[%s211_s4] ss:$0 sm:$0xff] }
   0x6   :  { %v40_v11 = vadd.f32 %v126_v4, %v32_v7  ;;  %v41_v12 = vadd.f32 %v126_v4, %v33_v8  ;;  %v42_v13 = vadd.f32 %v126_v4, %v34_v9  ;;  %v43_v14 = vadd.f32 %v126_v4, %v35_v10  ;;  %v128_v22 = vld [vmem:[%s212_s5] ss:$0 sm:$0xff] }
   0x8   :  { %v44_v15 = vmax.f32 %v40_v11, 0.0  ;;  %v45_v16 = vmax.f32 %v41_v12, 0.0  ;;  %v46_v17 = vmax.f32 %v42_v13, 0.0  ;;  %v47_v18 = vmax.f32 %v43_v14, 0.0 }
   0xa   :  { %v48_v19 = vpack.c.bf16 %v45_v16, %v44_v15  ;;  %v49_v20 = vpack.c.bf16 %v47_v18, %v46_v17 }
   0xc   :  { %121 = vmatmul.msk.bf16.vlgmr.msra.gmra.mxu0 %vm58_vm0, %v48_v19  ;;  %122 = vmatmul.msk.bf16.vlgmr.msra.gmra.mxu1 %vm58_vm0, %v49_v20 }
  0x89   :  { %v74_v23 = vpop.f32.mrf.mxu0  ;;  %v79_v24 = vpop.f32.mrf.mxu1 }
  0x8a   :  { %v88_v25 = vmul.f32 %v127_v21, %v74_v23  ;;  %v90_v26 = vmul.f32 %v127_v21, %v79_v24 }
  0x8c   :  { %v96_v27 = vadd.f32 %v128_v22, %v88_v25  ;;  %v98_v28 = vadd.f32 %v128_v22, %v90_v26 }
  0x8e   :  { %v100_v29 = vmax.f32 %v96_v27, 0.0  ;;  %v102_v30 = vmax.f32 %v98_v28, 0.0 }
  0x90   :  { %v104_v31 = vpack.c.bf16 %v100_v29, %v100_v29  ;;  %v106_v32 = vpack.c.bf16 %v102_v30, %v102_v30 }
  0x91   :  { %v76_v33 = vpop.f32.mrf.mxu0  ;;  %v81_v34 = vpop.f32.mrf.mxu1 }
  0x92   :  { %109 = vst.msk [vmem:[%s213_s6] sm:$0xf] %vm108_vm1, %v104_v31  ;;  %v89_v35 = vmul.f32 %v127_v21, %v76_v33  ;;  %v91_v36 = vmul.f32 %v127_v21, %v81_v34 }
  0x93   :  { %111 = vst.msk [vmem:[%s213_s6 + $0x8] sm:$0xf] %vm108_vm1, %v106_v32 }
  0x94   :  { %v97_v37 = vadd.f32 %v128_v22, %v89_v35  ;;  %v99_v38 = vadd.f32 %v128_v22, %v91_v36 }
  0x96   :  { %v101_v39 = vmax.f32 %v97_v37, 0.0  ;;  %v103_v40 = vmax.f32 %v99_v38, 0.0 }
  0x98   :  { %v105_v41 = vpack.c.bf16 %v101_v39, %v101_v39  ;;  %v107_v42 = vpack.c.bf16 %v103_v40, %v103_v40 }
  0x9a   :  { %110 = vst.msk [vmem:[%s213_s6 + $0x4] sm:$0xf] %vm108_vm1, %v105_v41 }
  0x9b   :  { %112 = vst.msk [vmem:[%s213_s6 + $0xc] sm:$0xf] %vm108_vm1, %v107_v42 }

// kernel: densenet_forward.34
= control target key start
LH: loop header
LB: loop body
LE: loop exit
PB: predicated region body
PF: predicated region fallthrough
CT: control target
= control target key end

     0   :  { %s987_s15 = smov 0   ;;  %s1135_s0 = inlined_call_operand.vmem [shape: bf16[2,42,32], index: 0, kind: input, shape index: {}]   ;;  %s1136_s1 = inlined_call_operand.vmem [shape: bf16[9,32,8], index: 1, kind: input, shape index: {}]   ;;  %s1137_s2 = inlined_call_operand.vmem [shape: f32[1,8], index: 2, kind: input, shape index: {}]   ;;  %s1138_s3 = inlined_call_operand.vmem [shape: f32[1,8], index: 3, kind: input, shape index: {}]   ;;  %s1139_s4 = inlined_call_operand.vmem [shape: f32[2,24,8], index: 4, kind: output, shape index: {}]  }
   0x1 LB: > { %s783_s16 = sadd.s32 4294967295, %s960_s15   ;;  %p787_p0 = scmp.ge.s32.totalorder %s960_s15, 1  ;;  %s960_s15 = sphi %s987_s15, %s14_s15  }
   0x2   : > { %p162_p1 = scmp.lt.s32.totalorder %s960_s15, 3 }
   0x4   : > { %p163_p2 = pnand %p787_p0, %p162_p1 }
   0x5   : > { %p188_p3 = scmp.lt.s32.totalorder (!%p163_p2), %s783_s16, 1 }
   0x6   : > { %166 = sbr.rel (%p163_p2) target bundleno = 230 (0xe6), region = 36 }
   0xb   : > { %v917_v0 = vld [vmem:[%s1136_s1 + $0x18] sm:$0xff]  ;;  %v919_v1 = vld [vmem:[%s1136_s1 + $0x28] sm:$0xff]  ;;  %v916_v3 = vld [vmem:[%s1136_s1 + $0x10] sm:$0xff]  ;;  %s1141_s16 = smov (!%p188_p3, %s783_s16), 1  ;;  %vm320_vm0 = vcmask 1046528   ;;  %vm250_vm2 = vcmask 261120  }
   0xc   : > { %v921_v2 = vld [vmem:[%s1136_s1 + $0x38] sm:$0xff]  ;;  %263 = vmatpush.bf16.msra.mxu0 %v917_v0  ;;  %941 = vmatpush.bf16.msra.mxu1 %v917_v0  ;;  %v915_v4 = vld [vmem:[%s1136_s1 + $0x8] sm:$0xff]  ;;  %v918_v5 = vld [vmem:[%s1136_s1 + $0x20] sm:$0xff]  ;;  %s943_s29 = smul.u32 24, %s1141_s16  ;;  %vm222_vm1 = vsmask.f32 7424 }
   0xd   : > { %348 = vmatpush.bf16.msra.mxu2 %v919_v1  ;;  %404 = vmatpush.bf16.msra.mxu3 %v921_v2  ;;  %v920_v6 = vld [vmem:[%s1136_s1 + $0x30] sm:$0xff]  ;;  %v923_v7 = vld [vmem:[%s1136_s1 + $0x48] sm:$0xff]  ;;  %v929_v9 = vld [vmem:[%s1136_s1 + $0x78] sm:$0xff]  ;;  %vm376_vm3 = vcmask 1044480   ;;  %vm428_vm4 = vsmask.f32 4352 }
   0xe   : > { %v927_v8 = vld [vmem:[%s1136_s1 + $0x68] sm:$0xff]  ;;  %s1033_s14 = scalar_lea.vmem %s1135_s0, %s943_s29  ;;  %v914_v10 = vld [vmem:[%s1136_s1] sm:$0xff]  ;;  %v928_v26 = vld [vmem:[%s1136_s1 + $0x70] sm:$0xff]  ;;  %vm550_vm5 = vcmask 1045504   ;;  %vm602_vm6 = vsmask.f32 5376 }
   0xf   : > { %v922_v11 = vld [vmem:[%s1136_s1 + $0x40] sm:$0xff]  ;;  %v1045_v13 = vld [vmem:[%s1033_s14 + $0x8] sm:$0xff]   ;;  %v925_v43 = vld [vmem:[%s1136_s1 + $0x58] sm:$0xff]  ;;  %vm724_vm7 = vcmask 64512  }
  0x10   : > { %264 = vmatpush.bf16.msra.mxu0 %v916_v3  ;;  %942 = vmatpush.bf16.msra.mxu1 %v916_v3  ;;  %v1042_v12 = vld [vmem:[%s1033_s14] sm:$0xff]   ;;  %v206_v14 = vld [vmem:[%s1033_s14 + $0xc] sm:$0x1]  ;;  %v1049_v15 = vunpack.c.l.b16 %v1045_v13  ;;  %v426_v30 = vunpack.c.h.b16 %v1045_v13  ;;  %v438_v50 = vshrl.u32 %v1045_v13, 16  ;;  %v441_v51 = vshll.u32 %v1045_v13, 16  ;;  %v924_v52 = vld [vmem:[%s1136_s1 + $0x50] sm:$0xff] }
  0x11   : > { %349 = vmatpush.bf16.msra.mxu2 %v918_v5  ;;  %v219_v16 = vunpack.c.l.b16 %v206_v14  ;;  %v224_v17 = vshrl.u32 %v1042_v12, 16  ;;  %v226_v18 = vshll.u32 %v1042_v12, 16  ;;  %405 = vmatpush.bf16.msra.mxu3 %v920_v6  ;;  %v311_v19 = vld [vmem:[%s1033_s14] sm:$0xe]  ;;  %v1056_v21 = vunpack.c.h.b16 %v1042_v12  ;;  %v364_v23 = vld [vmem:[%s1033_s14 + $0xc] sm:$0x7] }
  0x12   : > { %v363_v20 = vld [vmem:[%s1033_s14] sm:$0x8]  ;;  %v318_v22 = vunpack.c.l.b16 %v311_v19  ;;  %v373_v29 = vunpack.c.l.b16 %v364_v23  ;;  %v931_v44 = vld [vmem:[%s1136_s1 + $0x88] sm:$0xff]  ;;  %v440_v56 = vrot.slane %v438_v50, 3  ;;  %v443_v57 = vrot.slane %v441_v51, 4 }
  0x13   : > { %v372_v24 = vunpack.c.l.b16 %v363_v20  ;;  %v926_v25 = vld [vmem:[%s1136_s1 + $0x60] sm:$0xff]  ;;  %v221_v27 = vpack.c.b16 %v219_v16, %v1049_v15  ;;  %v228_v28 = vrot.slane %v226_v18, 1  ;;  %v940_v59 = vld [vmem:[%s1033_s14 + $0x8] sm:$0xff]   ;;  %v593_v60 = vld [vmem:[%s1033_s14 + $0x10] sm:$0x7] }
  0x14   : > { %299 = vmatpush.bf16.msrb.mxu1 %v915_v4  ;;  %470 = vmatpush.bf16.msrb.mxu0 %v923_v7  ;;  %v319_v31 = vpack.c.b16 %v1056_v21, %v318_v22  ;;  %v375_v38 = vpack.c.b16 %v373_v29, %v1049_v15  ;;  %v930_v53 = vld [vmem:[%s1136_s1 + $0x80] sm:$0xff]  ;;  %v444_v62 = vor.u32 %v443_v57, %v440_v56  ;;  %v938_v63 = vunpack.c.l.b16 %v940_v59  ;;  %v534_v4 = vld [vmem:[%s1033_s14 + $0x10] sm:$0x3] }
  0x15   : > { %578 = vmatpush.bf16.msrb.mxu2 %v927_v8  ;;  %644 = vmatpush.bf16.msrb.mxu3 %v929_v9  ;;  %v374_v32 = vpack.c.b16 %v1056_v21, %v372_v24  ;;  %v229_v33 = vor.u32 %v228_v28, %v224_v17  ;;  %v231_v34 = vshll.u32 %v221_v27, 16  ;;  %v235_v35 = vshrl.u32 %v221_v27, 16  ;;  %v531_v58 = vld [vmem:[%s1033_s14 + $0x4] sm:$0xc] }
  0x16   : > { %v322_v36 = vrot.slane %v221_v27, 1  ;;  %v321_v37 = vrot.slane %v319_v31, 1  ;;  %v378_v42 = vrot.slane %v375_v38, 3  ;;  %v939_v0 = vunpack.c.h.b16 %v940_v59  ;;  %v659_v27 = vld [vmem:[%s1033_s14 + $0x4] sm:$0x8]  ;;  %s197_s14 = scalar_lea.vmem %s1139_s4, %s943_s29 }
  0x17   : > { %v377_v39 = vrot.slane %v374_v32, 3  ;;  %v233_v40 = vrot.slane %v231_v34, 1  ;;  %v430_v48 = vshrl.u32 %v374_v32, 16  ;;  %v433_v49 = vshll.u32 %v374_v32, 16 }
  0x18   : > { %300 = vmatpush.bf16.msrb.mxu1 %v914_v10  ;;  %471 = vmatpush.bf16.msrb.mxu0 %v922_v11  ;;  %v323_v41 = vsel %vm320_vm0, %v321_v37, %v322_v36  ;;  %v544_v1 = vunpack.c.l.b16 %v531_v58  ;;  %v600_v2 = vunpack.c.l.b16 %v593_v60  ;;  %v547_v7 = vunpack.c.l.b16 %v534_v4 }
  0x19   : > { %579 = vmatpush.bf16.msrb.mxu2 %v926_v25  ;;  %645 = vmatpush.bf16.msrb.mxu3 %v928_v26  ;;  %v234_v45 = vsel %vm222_vm1, %v229_v33, %v233_v40  ;;  %v237_v46 = vor.u32 %v235_v35, %v233_v40  ;;  %v379_v47 = vsel %vm376_vm3, %v377_v39, %v378_v42  ;;  %v432_v54 = vrot.slane %v430_v48, 3 }
  0x1a   : > { %826 = vmatmul.msk.bf16.vlgmr.msra.gmra.mxu2 %vm250_vm2, %v323_v41  ;;  %802 = vmatmul.msk.bf16.vlgmr.msra.gmra.mxu0 %vm250_vm2, %v234_v45  ;;  %v435_v55 = vrot.slane %v433_v49, 4  ;;  %v548_v5 = vpack.c.b16 %v938_v63, %v544_v1  ;;  %v601_v6 = vpack.c.b16 %v600_v2, %v939_v0  ;;  %v549_v14 = vpack.c.b16 %v547_v7, %v939_v0 }
  0x1b   : > { %803 = vmatmul.msk.bf16.vlgmr.msra.gmra.mxu1 %vm250_vm2, %v237_v46  ;;  %840 = vmatmul.msk.bf16.vlgmr.msra.gmra.mxu3 %vm250_vm2, %v379_v47  ;;  %v666_v28 = vunpack.c.l.b16 %v659_v27  ;;  %v490_v34 = vpack.c.b16 %v1049_v15, %v1056_v21  ;;  %v491_v35 = vpack.c.b16 %v426_v30, %v426_v30 }
  0x1c   : > { %516 = vmatpush.bf16.msra.mxu1 %v925_v43  ;;  %695 = vmatpush.bf16.msra.mxu0 %v931_v44  ;;  %v436_v61 = vor.u32 %v435_v55, %v432_v54  ;;  %v604_v8 = vshrl.u32 %v548_v5, 16  ;;  %v607_v9 = vshll.u32 %v548_v5, 16  ;;  %v612_v10 = vshrl.u32 %v601_v6, 16 }
  0x1d   : > { %v615_v11 = vshll.u32 %v601_v6, 16  ;;  %v551_v20 = vrot.slane %v548_v5, 2  ;;  %v552_v22 = vrot.slane %v549_v14, 2  ;;  %v667_v29 = vpack.c.b16 %v938_v63, %v666_v28 }
  0x1e   : > { %v445_v3 = vsel %vm428_vm4, %v436_v61, %v444_v62  ;;  %v606_v16 = vrot.slane %v604_v8, 2  ;;  %v609_v17 = vrot.slane %v607_v9, 3  ;;  %v614_v18 = vrot.slane %v612_v10, 2  ;;  %v953_v10 = vld [vmem:[%s1138_s3] ss:$0 sm:$0xff] }
  0x1f   : > { %v617_v19 = vrot.slane %v615_v11, 3  ;;  %v553_v25 = vsel %vm550_vm5, %v551_v20, %v552_v22  ;;  %v668_v31 = vrot.slane %v667_v29, 3  ;;  %v669_v32 = vrot.slane %v601_v6, 3  ;;  %v952_v6 = vld [vmem:[%s1137_s2] ss:$0 sm:$0xff] }
  0x20   : > { %517 = vmatpush.bf16.msra.mxu1 %v924_v52  ;;  %696 = vmatpush.bf16.msra.mxu0 %v930_v53  ;;  %v610_v23 = vor.u32 %v609_v17, %v606_v16 }
  0x21   : > { %v618_v24 = vor.u32 %v617_v19, %v614_v18  ;;  %v670_v33 = vsel %vm376_vm3, %v668_v31, %v669_v32 }
  0x23   : > { %v619_v26 = vsel %vm602_vm6, %v610_v23, %v618_v24 }
  0x2a   : > { %827 = vmatmul.msk.bf16.gmra.mxu2 %vm250_vm2, %v322_v36  ;;  %854 = vmatmul.msk.bf16.vlgmr.msrb.gmra.mxu0 %vm250_vm2, %v445_v3 }
  0x2b   : > { %812 = vmatmul.msk.bf16.vlgmr.msrb.gmra.mxu1 %vm250_vm2, %v1042_v12  ;;  %841 = vmatmul.msk.bf16.gmra.mxu3 %vm250_vm2, %v378_v42  ;;  %v275_v12 = vpack.c.b16 %v1049_v15, %v1049_v15 }
  0x3a   : > { %882 = vmatmul.msk.bf16.vlgmr.msrb.gmra.mxu2 %vm250_vm2, %v553_v25  ;;  %855 = vmatmul.msk.bf16.gmra.mxu0 %vm250_vm2, %v444_v62 }
  0x3b   : > { %813 = vmatmul.msk.bf16.gmra.mxu1 %vm250_vm2, %v275_v12  ;;  %896 = vmatmul.msk.bf16.vlgmr.msrb.gmra.mxu3 %vm250_vm2, %v619_v26 }
  0x4a   : > { %883 = vmatmul.msk.bf16.gmra.mxu2 %vm250_vm2, %v552_v22  ;;  %910 = vmatmul.msk.bf16.vlgmr.msra.gmra.mxu0 %vm250_vm2, %v670_v33 }
  0x4b   : > { %868 = vmatmul.msk.bf16.vlgmr.msra.gmra.mxu1 %vm250_vm2, %v490_v34  ;;  %897 = vmatmul.msk.bf16.gmra.mxu3 %vm250_vm2, %v618_v24 }
  0x5a   : > { %911 = vmatmul.msk.bf16.gmra.mxu0 %vm250_vm2, %v669_v32 }
  0x5b   : > { %869 = vmatmul.msk.bf16.gmra.mxu1 %vm250_vm2, %v491_v35 }
  0x97   : > { %v266_v36 = vpop.f32.mrf.mxu0 }
  0x98   : > { %v271_v37 = vpop.f32.mrf.mxu1 }
  0x9d   : > { %v351_v38 = vpop.f32.mrf.mxu2 }
  0x9e   : > { %v407_v15 = vpop.f32.mrf.mxu3 }
  0x9f   : > { %v268_v21 = vpop.f32.mrf.mxu0 }
  0xa0   : > { %v273_v39 = vpop.f32.mrf.mxu1 }
  0xa5   : > { %v353_v40 = vpop.f32.mrf.mxu2 }
  0xa6   : > { %v409_v41 = vpop.f32.mrf.mxu3 }
  0xa7   : > { %v473_v42 = vpop.f32.mrf.mxu0 }
  0xa8   : > { %v302_v43 = vpop.f32.mrf.mxu1 }
  0xa9   : > { %v303_v50 = vadd.f32 %v302_v43, %v266_v36 }
  0xab   : > { %v360_v53 = vadd.f32 %v351_v38, %v303_v50 }
  0xad   : > { %v356_v44 = vpop.f32.mrf.mxu2  ;;  %v416_v57 = vadd.f32 %v407_v15, %v360_v53 }
  0xae   : > { %v412_v45 = vpop.f32.mrf.mxu3 }
  0xaf   : > { %v475_v46 = vpop.f32.mrf.mxu0  ;;  %v482_v62 = vadd.f32 %v473_v42, %v416_v57 }
  0xb0   : > { %v304_v13 = vpop.f32.mrf.mxu1 }
  0xb1   : > { %v305_v56 = vadd.f32 %v304_v13, %v268_v21 }
  0xb3   : > { %v361_v60 = vadd.f32 %v353_v40, %v305_v56 }
  0xb5   : > { %v358_v47 = vpop.f32.mrf.mxu2  ;;  %v417_v3 = vadd.f32 %v409_v41, %v361_v60 }
  0xb6   : > { %v414_v30 = vpop.f32.mrf.mxu3 }
  0xb7   : > { %v478_v48 = vpop.f32.mrf.mxu0  ;;  %v483_v14 = vadd.f32 %v475_v46, %v417_v3 }
  0xb8   : > { %v307_v49 = vpop.f32.mrf.mxu1 }
  0xb9   : > { %v308_v1 = vadd.f32 %v307_v49, %v271_v37 }
  0xbb   : > { %v362_v8 = vadd.f32 %v356_v44, %v308_v1 }
  0xbd   : > { %v581_v51 = vpop.f32.mrf.mxu2  ;;  %v418_v22 = vadd.f32 %v412_v45, %v362_v8 }
  0xbe   : > { %v647_v52 = vpop.f32.mrf.mxu3 }
  0xbf   : > { %v480_v54 = vpop.f32.mrf.mxu0  ;;  %v484_v27 = vadd.f32 %v478_v48, %v418_v22 }
  0xc0   : > { %v309_v55 = vpop.f32.mrf.mxu1 }
  0xc5   : > { %v583_v58 = vpop.f32.mrf.mxu2 }
  0xc6   : > { %v649_v59 = vpop.f32.mrf.mxu3 }
  0xc7   : > { %v698_v61 = vpop.f32.mrf.mxu0 }
  0xc8   : > { %v519_v63 = vpop.f32.mrf.mxu1 }
  0xc9   : > { %v528_v0 = vadd.f32 %v519_v63, %v482_v62 }
  0xcb   : > { %v590_v2 = vadd.f32 %v581_v51, %v528_v0 }
  0xcd   : > { %v586_v4 = vpop.f32.mrf.mxu2  ;;  %v656_v5 = vadd.f32 %v647_v52, %v590_v2 }
  0xce   : > { %v652_v7 = vpop.f32.mrf.mxu3 }
  0xcf   : > { %v707_v9 = vadd.f32 %v698_v61, %v656_v5  ;;  %v700_v11 = vpop.f32.mrf.mxu0 }
  0xd0   : > { %v521_v16 = vpop.f32.mrf.mxu1 }
  0xd1   : > { %v714_v17 = vmul.f32 %v952_v6, %v707_v9  ;;  %v529_v18 = vadd.f32 %v521_v16, %v483_v14 }
  0xd3   : > { %v721_v19 = vadd.f32 %v953_v10, %v714_v17  ;;  %v591_v20 = vadd.f32 %v583_v58, %v529_v18 }
  0xd5   : > { %v588_v23 = vpop.f32.mrf.mxu2  ;;  %725 = vst.msk [vmem:[%s197_s14] sm:$0xff] %vm724_vm7, %v721_v19  ;;  %v657_v24 = vadd.f32 %v649_v59, %v591_v20 }
  0xd6   : > { %v654_v25 = vpop.f32.mrf.mxu3 }
  0xd7   : > { %v708_v12 = vadd.f32 %v700_v11, %v657_v24  ;;  %v703_v26 = vpop.f32.mrf.mxu0 }
  0xd8   : > { %v524_v28 = vpop.f32.mrf.mxu1 }
  0xd9   : > { %v715_v29 = vmul.f32 %v952_v6, %v708_v12  ;;  %v530_v31 = vadd.f32 %v524_v28, %v484_v27 }
  0xdb   : > { %v722_v32 = vadd.f32 %v953_v10, %v715_v29  ;;  %v592_v33 = vadd.f32 %v586_v4, %v530_v31 }
  0xdd   : > { %726 = vst.msk [vmem:[%s197_s14 + $0x8] sm:$0xff] %vm724_vm7, %v722_v32  ;;  %v658_v34 = vadd.f32 %v652_v7, %v592_v33 }
  0xdf   : > { %v709_v35 = vadd.f32 %v703_v26, %v658_v34  ;;  %v705_v36 = vpop.f32.mrf.mxu0 }
  0xe0   : > { %v526_v37 = vpop.f32.mrf.mxu1 }
  0xe1   : > { %v716_v38 = vmul.f32 %v952_v6, %v709_v35 }
  0xe3   : > { %v723_v15 = vadd.f32 %v953_v10, %v716_v38 }
  0xe5   : > { %727 = vst.msk [vmem:[%s197_s14 + $0x10] sm:$0xff] %vm724_vm7, %v723_v15 }
  0xe6 PF: > { %s14_s15 = sadd.s32 1, %s960_s15  }
  0xe7   : > { %p11_p4 = scmp.ge.s32.totalorder %s14_s15, 4  }
  0xe9   :  { %13 = sbr.rel (!%p11_p4) target bundleno = 1 (0x1), region = 74 }

// kernel: densenet_forward.35
= control target key start
LH: loop header
LB: loop body
LE: loop exit
PB: predicated region body
PF: predicated region fallthrough
CT: control target
= control target key end

     0   :  { %11 = vsyncpa [#allocation3], 0  ;;  %s387_s0 = inlined_call_operand.vmem [shape: f32[32,24], index: 0, kind: input, shape index: {}]   ;;  %s388_s1 = inlined_call_operand.hbm [shape: f32[1,24], index: 1, kind: input, shape index: {}]   ;;  %s389_s2 = inlined_call_operand.hbm [shape: f32[1,24], index: 2, kind: input, shape index: {}]   ;;  %s390_s3 = inlined_call_operand.vmem [shape: bf16[24,32], index: 3, kind: input, shape index: {}]   ;;  %s391_s4 = inlined_call_operand.hbm [shape: f32[1,32], index: 4, kind: input, shape index: {}]   ;;  %s392_s5 = inlined_call_operand.hbm [shape: f32[1,32], index: 5, kind: input, shape index: {}]   ;;  %s393_s6 = inlined_call_operand.vmem [shape: bf16[32,32], index: 6, kind: output, shape index: {}]  }
   0x1   :  { %12 = vsyncpa [#allocation5], 0  ;;  %s32_s23 = sshll.u32 %s389_s2, 4  ;;  %s33_s23 = int_to_ptr.hbm [resolvable:$true] %s32_s23 }
   0x2   :  { %13 = vsyncpa [#allocation8], 0  ;;  %s302_s24 = smov [#allocation4]   ;;  %s21_s28 = sshll.u32 %s388_s1, 4  ;;  %s22_s28 = int_to_ptr.hbm [resolvable:$true] %s21_s28 }
   0x3   :  { %s34_s25 = sshll.u32 %s302_s24, 4  ;;  %s303_s29 = smov [#allocation2]   ;;  %s35_s25 = int_to_ptr.vmem [resolvable:$true] %s34_s25 }
   0x4   :  { %37 = dma.hbm_to_vmem [thread:$0]  %s33_s23, 16, %s35_s25, [#allocation5]  }
   0x5   :  { %s23_s30 = sshll.u32 %s303_s29, 4  ;;  %s45_s9 = sshll.u32 %s391_s4, 4  ;;  %s24_s30 = int_to_ptr.vmem [resolvable:$true] %s23_s30  ;;  %s46_s9 = int_to_ptr.hbm [resolvable:$true] %s45_s9 }
   0x6   :  { %26 = dma.hbm_to_vmem [thread:$0]  %s22_s28, 16, %s24_s30, [#allocation3]  }
   0x7   :  { %s56_s11 = sshll.u32 %s392_s5, 4  ;;  %s304_s12 = smov [#allocation6]   ;;  %s57_s11 = int_to_ptr.hbm [resolvable:$true] %s56_s11 }
   0x8   :  { %s47_s13 = sshll.u32 %s304_s12, 4  ;;  %s305_s1 = smov [#allocation7]   ;;  %s48_s13 = int_to_ptr.vmem [resolvable:$true] %s47_s13 }
   0x9   :  { %50 = dma.hbm_to_vmem [thread:$0]  %s46_s9, 16, %s48_s13, [#allocation5]  }
   0xa   :  { %s58_s14 = sshll.u32 %s305_s1, 4  ;;  %s59_s14 = int_to_ptr.vmem [resolvable:$true] %s58_s14 }
   0xb   :  { %61 = dma.hbm_to_vmem [thread:$0]  %s57_s11, 16, %s59_s14, [#allocation8]  }
   0xc   :  { %296 = dma.done.wait [#allocation3], 16  }
   0xd   :  { %297 = vsyncadd [#allocation3], 4294967280 }
   0xe   :  { %298 = dma.done.wait [#allocation5], 32  }
   0xf   :  { %299 = vsyncadd [#allocation5], 4294967264 }
  0x10   :  { %300 = dma.done.wait [#allocation8], 16  }
  0x11   :  { %301 = vsyncadd [#allocation8], 4294967280  ;;  %v107_v0 = vld [vmem:[%s390_s3 + $0x8] sm:$0xf]  ;;  %v79_v1 = vld [vmem:[%s387_s0] sm:$0xff]  ;;  %vm124_vm0 = vcmask 1043456  }
  0x12   :  { %v113_v2 = vunpack.c.l.b16 %v107_v0  ;;  %v80_v3 = vld [vmem:[%s387_s0 + $0x8] sm:$0xff]  ;;  %v196_v4 = vld [vmem:[#allocation2] ss:$0 sm:$0xff]  ;;  %v197_v5 = vld [vmem:[#allocation4] ss:$0 sm:$0xff]  ;;  %vm117_vm1 = vcmask 195584  }
  0x13   :  { %v81_v6 = vld [vmem:[%s387_s0 + $0x10] sm:$0xff]  ;;  %v87_v8 = vmul.f32 %v196_v4, %v79_v1  ;;  %v88_v9 = vmul.f32 %v196_v4, %v80_v3  ;;  %v82_v10 = vld [vmem:[%s387_s0 + $0x18] sm:$0xff]  ;;  %v189_v17 = vld [vmem:[%s390_s3] sm:$0xff]  ;;  %vm171_vm2 = vcmask 257024  }
  0x14   :  { %v115_v7 = vpack.c.b16 %v113_v2, %v113_v2  ;;  %v89_v11 = vmul.f32 %v196_v4, %v81_v6  ;;  %v90_v12 = vmul.f32 %v196_v4, %v82_v10  ;;  %v198_v25 = vld [vmem:[#allocation6] ss:$0 sm:$0xff]  ;;  %v199_v26 = vld [vmem:[#allocation7] ss:$0 sm:$0xff] }
  0x15   :  { %v95_v14 = vadd.f32 %v197_v5, %v87_v8  ;;  %v96_v15 = vadd.f32 %v197_v5, %v88_v9 }
  0x16   :  { %v126_v13 = vsel %vm124_vm0, %v115_v7, 0  ;;  %v97_v16 = vadd.f32 %v197_v5, %v89_v11  ;;  %v98_v18 = vadd.f32 %v197_v5, %v90_v12 }
  0x17   :  { %134 = vmatpush.bf16.msra.mxu0 %v126_v13  ;;  %190 = vmatpush.bf16.msra.mxu1 %v126_v13  ;;  %v99_v19 = vmax.f32 %v95_v14, 0.0  ;;  %v100_v20 = vmax.f32 %v96_v15, 0.0 }
  0x18   :  { %v101_v21 = vmax.f32 %v97_v16, 0.0  ;;  %v102_v22 = vmax.f32 %v98_v18, 0.0 }
  0x19   :  { %v103_v23 = vpack.c.bf16 %v100_v20, %v99_v19 }
  0x1a   :  { %v104_v24 = vpack.c.bf16 %v102_v22, %v101_v21 }
  0x1b   :  { %135 = vmatpush.bf16.msra.mxu0 %v189_v17  ;;  %191 = vmatpush.bf16.msra.mxu1 %v189_v17 }
  0x1e   :  { %187 = vmatmul.msk.bf16.vlgmr.msra.gmra.mxu0 %vm117_vm1, %v103_v23  ;;  %188 = vmatmul.msk.bf16.vlgmr.msra.gmra.mxu1 %vm117_vm1, %v104_v24 }
  0x9b   :  { %v137_v27 = vpop.f32.mrf.mxu0  ;;  %v142_v28 = vpop.f32.mrf.mxu1 }
  0x9c   :  { %v151_v29 = vmul.f32 %v198_v25, %v137_v27  ;;  %v153_v30 = vmul.f32 %v198_v25, %v142_v28 }
  0x9e   :  { %v159_v31 = vadd.f32 %v199_v26, %v151_v29  ;;  %v161_v32 = vadd.f32 %v199_v26, %v153_v30 }
  0xa0   :  { %v163_v33 = vmax.f32 %v159_v31, 0.0  ;;  %v165_v34 = vmax.f32 %v161_v32, 0.0 }
  0xa2   :  { %v167_v35 = vpack.c.bf16 %v163_v33, %v163_v33  ;;  %v169_v36 = vpack.c.bf16 %v165_v34, %v165_v34 }
  0xa3   :  { %v139_v37 = vpop.f32.mrf.mxu0  ;;  %v144_v38 = vpop.f32.mrf.mxu1 }
  0xa4   :  { %172 = vst.msk [vmem:[%s393_s6] sm:$0xf] %vm171_vm2, %v167_v35  ;;  %v152_v39 = vmul.f32 %v198_v25, %v139_v37  ;;  %v154_v40 = vmul.f32 %v198_v25, %v144_v38 }
  0xa5   :  { %174 = vst.msk [vmem:[%s393_s6 + $0x8] sm:$0xf] %vm171_vm2, %v169_v36 }
  0xa6   :  { %v160_v41 = vadd.f32 %v199_v26, %v152_v39  ;;  %v162_v42 = vadd.f32 %v199_v26, %v154_v40 }
  0xa8   :  { %v164_v43 = vmax.f32 %v160_v41, 0.0  ;;  %v166_v44 = vmax.f32 %v162_v42, 0.0 }
  0xaa   :  { %v168_v45 = vpack.c.bf16 %v164_v43, %v164_v43  ;;  %v170_v46 = vpack.c.bf16 %v166_v44, %v166_v44 }
  0xac   :  { %173 = vst.msk [vmem:[%s393_s6 + $0x4] sm:$0xf] %vm171_vm2, %v168_v45 }
  0xad   :  { %175 = vst.msk [vmem:[%s393_s6 + $0xc] sm:$0xf] %vm171_vm2, %v170_v46 }
  0xae   :  { %180 = vsyncpa [#allocation3], 1 }
  0xaf   :  { %181 = vsyncpa [#allocation5], 1 }
  0xb0   :  { %182 = vsyncpa [#allocation8], 1 }

// kernel: densenet_forward.37
= control target key start
LH: loop header
LB: loop body
LE: loop exit
PB: predicated region body
PF: predicated region fallthrough
CT: control target
= control target key end

     0   :  { %vm66_vm0 = vcmask 261120   ;;  %vm108_vm1 = vcmask 130048   ;;  %s212_s3 = inlined_call_operand.vmem [shape: bf16[32,16], index: 3, kind: input, shape index: {}]   ;;  %s213_s0 = inlined_call_operand.vmem [shape: f32[32,32], index: 0, kind: input, shape index: {}]   ;;  %s214_s1 = inlined_call_operand.vmem [shape: f32[1,32], index: 1, kind: input, shape index: {}]   ;;  %s215_s2 = inlined_call_operand.vmem [shape: f32[1,32], index: 2, kind: input, shape index: {}]   ;;  %s216_s4 = inlined_call_operand.vmem [shape: f32[1,16], index: 4, kind: input, shape index: {}]   ;;  %s217_s5 = inlined_call_operand.vmem [shape: f32[1,16], index: 5, kind: input, shape index: {}]   ;;  %s218_s6 = inlined_call_operand.vmem [shape: f32[32,16], index: 6, kind: output, shape index: {}]  }
   0x1   :  { %v128_v0 = vld [vmem:[%s212_s3 + $0x8] sm:$0xff]  ;;  %v127_v1 = vld [vmem:[%s212_s3] sm:$0xff]  ;;  %v26_v6 = vld [vmem:[%s213_s0 + $0x10] sm:$0xff] }
   0x2   :  { %v24_v2 = vld [vmem:[%s213_s0] sm:$0xff]  ;;  %v25_v3 = vld [vmem:[%s213_s0 + $0x8] sm:$0xff]  ;;  %79 = vmatpush.bf16.msra.mxu0 %v128_v0  ;;  %129 = vmatpush.bf16.msra.mxu1 %v128_v0  ;;  %v27_v9 = vld [vmem:[%s213_s0 + $0x18] sm:$0xff] }
   0x3   :  { %v131_v4 = vld [vmem:[%s214_s1] ss:$0 sm:$0xff] }
   0x4   :  { %v132_v5 = vld [vmem:[%s215_s2] ss:$0 sm:$0xff]  ;;  %v32_v7 = vmul.f32 %v131_v4, %v24_v2  ;;  %v33_v8 = vmul.f32 %v131_v4, %v25_v3  ;;  %v34_v10 = vmul.f32 %v131_v4, %v26_v6  ;;  %v35_v11 = vmul.f32 %v131_v4, %v27_v9 }
   0x5   :  { %v133_v22 = vld [vmem:[%s216_s4] ss:$0 sm:$0xff] }
   0x6   :  { %v40_v12 = vadd.f32 %v132_v5, %v32_v7  ;;  %v41_v13 = vadd.f32 %v132_v5, %v33_v8  ;;  %v42_v14 = vadd.f32 %v132_v5, %v34_v10  ;;  %80 = vmatpush.bf16.msra.mxu0 %v127_v1  ;;  %130 = vmatpush.bf16.msra.mxu1 %v127_v1  ;;  %v134_v23 = vld [vmem:[%s217_s5] ss:$0 sm:$0xff] }
   0x7   :  { %v43_v15 = vadd.f32 %v132_v5, %v35_v11 }
   0x8   :  { %v44_v16 = vmax.f32 %v40_v12, 0.0  ;;  %v45_v17 = vmax.f32 %v41_v13, 0.0  ;;  %v46_v18 = vmax.f32 %v42_v14, 0.0 }
   0x9   :  { %v47_v19 = vmax.f32 %v43_v15, 0.0 }
   0xa   :  { %v48_v20 = vpack.c.bf16 %v45_v17, %v44_v16 }
   0xb   :  { %v49_v21 = vpack.c.bf16 %v47_v19, %v46_v18 }
   0xc   :  { %125 = vmatmul.msk.bf16.vlgmr.msra.gmra.mxu0 %vm66_vm0, %v48_v20 }
   0xd   :  { %126 = vmatmul.msk.bf16.vlgmr.msra.gmra.mxu1 %vm66_vm0, %v49_v21 }
  0x89   :  { %v82_v24 = vpop.f32.mrf.mxu0 }
  0x8a   :  { %v96_v25 = vmul.f32 %v133_v22, %v82_v24  ;;  %v87_v26 = vpop.f32.mrf.mxu1 }
  0x8b   :  { %v98_v27 = vmul.f32 %v133_v22, %v87_v26 }
  0x8c   :  { %v104_v28 = vadd.f32 %v134_v23, %v96_v25 }
  0x8d   :  { %v106_v29 = vadd.f32 %v134_v23, %v98_v27 }
  0x8e   :  { %109 = vst.msk [vmem:[%s218_s6] sm:$0xff] %vm108_vm1, %v104_v28 }
  0x8f   :  { %111 = vst.msk [vmem:[%s218_s6 + $0x10] sm:$0xff] %vm108_vm1, %v106_v29 }
  0x91   :  { %v84_v30 = vpop.f32.mrf.mxu0 }
  0x92   :  { %v97_v31 = vmul.f32 %v133_v22, %v84_v30  ;;  %v89_v32 = vpop.f32.mrf.mxu1 }
  0x93   :  { %v99_v33 = vmul.f32 %v133_v22, %v89_v32 }
  0x94   :  { %v105_v34 = vadd.f32 %v134_v23, %v97_v31 }
  0x95   :  { %v107_v35 = vadd.f32 %v134_v23, %v99_v33 }
  0x96   :  { %110 = vst.msk [vmem:[%s218_s6 + $0x8] sm:$0xff] %vm108_vm1, %v105_v34 }
  0x97   :  { %112 = vst.msk [vmem:[%s218_s6 + $0x18] sm:$0xff] %vm108_vm1, %v107_v35 }

// kernel: densenet_forward.38
= control target key start
LH: loop header
LB: loop body
LE: loop exit
PB: predicated region body
PF: predicated region fallthrough
CT: control target
= control target key end

     0   :  { %vm25_vm0 = vcmask 130048   ;;  %s71_s0 = inlined_call_operand.vmem [shape: f32[8,16], index: 0, kind: input, shape index: {}]   ;;  %s72_s1 = inlined_call_operand.vmem [shape: f32[8,16], index: 1, kind: input, shape index: {}]   ;;  %s73_s2 = inlined_call_operand.vmem [shape: f32[8,16], index: 2, kind: input, shape index: {}]   ;;  %s74_s3 = inlined_call_operand.vmem [shape: f32[8,16], index: 3, kind: input, shape index: {}]   ;;  %s75_s4 = inlined_call_operand.vmem [shape: f32[8,16], index: 4, kind: output, shape index: {}]  }
   0x1   :  { %v17_v0 = vld [vmem:[%s71_s0] sm:$0xff] }
   0x2   :  { %v18_v1 = vld [vmem:[%s72_s1] sm:$0xff] }
   0x3   :  { %v20_v2 = vld [vmem:[%s73_s2] sm:$0xff]  ;;  %v19_v3 = vadd.f32 %v18_v1, %v17_v0 }
   0x4   :  { %v22_v4 = vld [vmem:[%s74_s3] sm:$0xff] }
   0x5   :  { %v21_v5 = vadd.f32 %v20_v2, %v19_v3 }
   0x7   :  { %v23_v6 = vadd.f32 %v22_v4, %v21_v5 }
   0x9   :  { %v24_v7 = vmul.f32 0.25, %v23_v6 }
   0xb   :  { %26 = vst.msk [vmem:[%s75_s4] sm:$0xff] %vm25_vm0, %v24_v7 }

// kernel: densenet_forward.39
= control target key start
LH: loop header
LB: loop body
LE: loop exit
PB: predicated region body
PF: predicated region fallthrough
CT: control target
= control target key end

     0   :  { %vm45_vm0 = vcmask 130048   ;;  %vm74_vm1 = vcmask 257024   ;;  %s146_s3 = inlined_call_operand.vmem [shape: bf16[16,32], index: 3, kind: input, shape index: {}]   ;;  %s147_s0 = inlined_call_operand.vmem [shape: f32[8,16], index: 0, kind: input, shape index: {}]   ;;  %s148_s1 = inlined_call_operand.vmem [shape: f32[1,16], index: 1, kind: input, shape index: {}]   ;;  %s149_s2 = inlined_call_operand.vmem [shape: f32[1,16], index: 2, kind: input, shape index: {}]   ;;  %s150_s4 = inlined_call_operand.vmem [shape: f32[1,32], index: 4, kind: input, shape index: {}]   ;;  %s151_s5 = inlined_call_operand.vmem [shape: f32[1,32], index: 5, kind: input, shape index: {}]   ;;  %s152_s6 = inlined_call_operand.vmem [shape: bf16[8,32], index: 6, kind: output, shape index: {}]  }
   0x1   :  { %v85_v0 = vld [vmem:[%s146_s3] sm:$0xff] }
   0x2   :  { %v24_v1 = vld [vmem:[%s147_s0] sm:$0xff]  ;;  %56 = vmatpush.bf16.msra.mxu0 %v85_v0 }
   0x3   :  { %v86_v2 = vld [vmem:[%s148_s1] ss:$0 sm:$0xff] }
   0x4   :  { %v87_v3 = vld [vmem:[%s149_s2] ss:$0 sm:$0xff]  ;;  %v29_v4 = vmul.f32 %v86_v2, %v24_v1 }
   0x5   :  { %v88_v8 = vld [vmem:[%s150_s4] ss:$0 sm:$0xff] }
   0x6   :  { %v34_v5 = vadd.f32 %v87_v3, %v29_v4  ;;  %v89_v9 = vld [vmem:[%s151_s5] ss:$0 sm:$0xff] }
   0x8   :  { %v35_v6 = vmax.f32 %v34_v5, 0.0 }
   0xa   :  { %v36_v7 = vpack.c.bf16 %v35_v6, %v35_v6 }
   0xc   :  { %84 = vmatmul.msk.bf16.vlgmr.msra.gmra.mxu0 %vm45_vm0, %v36_v7 }
  0x89   :  { %v58_v10 = vpop.f32.mrf.mxu0 }
  0x8a   :  { %v66_v11 = vmul.f32 %v88_v8, %v58_v10 }
  0x8c   :  { %v71_v12 = vadd.f32 %v89_v9, %v66_v11 }
  0x8e   :  { %v72_v13 = vmax.f32 %v71_v12, 0.0 }
  0x90   :  { %v73_v14 = vpack.c.bf16 %v72_v13, %v72_v13 }
  0x91   :  { %v60_v15 = vpop.f32.mrf.mxu0 }
  0x92   :  { %75 = vst.msk [vmem:[%s152_s6] sm:$0xf] %vm74_vm1, %v73_v14 }

// kernel: densenet_forward.41
= control target key start
LH: loop header
LB: loop body
LE: loop exit
PB: predicated region body
PF: predicated region fallthrough
CT: control target
= control target key end

     0   :  { %11 = vsyncpa [#allocation3], 0  ;;  %s325_s0 = inlined_call_operand.vmem [shape: f32[8,24], index: 0, kind: input, shape index: {}]   ;;  %s326_s1 = inlined_call_operand.hbm [shape: f32[1,24], index: 1, kind: input, shape index: {}]   ;;  %s327_s2 = inlined_call_operand.hbm [shape: f32[1,24], index: 2, kind: input, shape index: {}]   ;;  %s328_s3 = inlined_call_operand.vmem [shape: bf16[24,32], index: 3, kind: input, shape index: {}]   ;;  %s329_s4 = inlined_call_operand.hbm [shape: f32[1,32], index: 4, kind: input, shape index: {}]   ;;  %s330_s5 = inlined_call_operand.hbm [shape: f32[1,32], index: 5, kind: input, shape index: {}]   ;;  %s331_s6 = inlined_call_operand.vmem [shape: bf16[8,32], index: 6, kind: output, shape index: {}]  }
   0x1   :  { %12 = vsyncpa [#allocation5], 0  ;;  %s32_s23 = sshll.u32 %s327_s2, 4  ;;  %s33_s23 = int_to_ptr.hbm [resolvable:$true] %s32_s23 }
   0x2   :  { %13 = vsyncpa [#allocation8], 0  ;;  %s262_s24 = smov [#allocation4]   ;;  %s21_s28 = sshll.u32 %s326_s1, 4  ;;  %s22_s28 = int_to_ptr.hbm [resolvable:$true] %s21_s28 }
   0x3   :  { %s34_s25 = sshll.u32 %s262_s24, 4  ;;  %s263_s29 = smov [#allocation2]   ;;  %s35_s25 = int_to_ptr.vmem [resolvable:$true] %s34_s25 }
   0x4   :  { %37 = dma.hbm_to_vmem [thread:$0]  %s33_s23, 16, %s35_s25, [#allocation5]  }
   0x5   :  { %s23_s30 = sshll.u32 %s263_s29, 4  ;;  %s45_s9 = sshll.u32 %s329_s4, 4  ;;  %s24_s30 = int_to_ptr.vmem [resolvable:$true] %s23_s30  ;;  %s46_s9 = int_to_ptr.hbm [resolvable:$true] %s45_s9 }
   0x6   :  { %26 = dma.hbm_to_vmem [thread:$0]  %s22_s28, 16, %s24_s30, [#allocation3]  }
   0x7   :  { %s56_s11 = sshll.u32 %s330_s5, 4  ;;  %s264_s12 = smov [#allocation6]   ;;  %s57_s11 = int_to_ptr.hbm [resolvable:$true] %s56_s11 }
   0x8   :  { %s47_s13 = sshll.u32 %s264_s12, 4  ;;  %s265_s1 = smov [#allocation7]   ;;  %s48_s13 = int_to_ptr.vmem [resolvable:$true] %s47_s13 }
   0x9   :  { %50 = dma.hbm_to_vmem [thread:$0]  %s46_s9, 16, %s48_s13, [#allocation5]  }
   0xa   :  { %s58_s14 = sshll.u32 %s265_s1, 4  ;;  %s59_s14 = int_to_ptr.vmem [resolvable:$true] %s58_s14 }
   0xb   :  { %61 = dma.hbm_to_vmem [thread:$0]  %s57_s11, 16, %s59_s14, [#allocation8]  }
   0xc   :  { %256 = dma.done.wait [#allocation3], 16  }
   0xd   :  { %257 = vsyncadd [#allocation3], 4294967280 }
   0xe   :  { %258 = dma.done.wait [#allocation5], 32  }
   0xf   :  { %259 = vsyncadd [#allocation5], 4294967264 }
  0x10   :  { %260 = dma.done.wait [#allocation8], 16  }
  0x11   :  { %261 = vsyncadd [#allocation8], 4294967280  ;;  %v94_v0 = vld [vmem:[%s328_s3 + $0x8] sm:$0xf]  ;;  %vm108_vm0 = vcmask 1043456   ;;  %v79_v1 = vld [vmem:[%s325_s0] sm:$0xff] }
  0x12   :  { %v100_v2 = vunpack.c.l.b16 %v94_v0  ;;  %v156_v3 = vld [vmem:[#allocation2] ss:$0 sm:$0xff]  ;;  %v157_v4 = vld [vmem:[#allocation4] ss:$0 sm:$0xff]  ;;  %vm104_vm1 = vcmask 195584   ;;  %vm137_vm2 = vcmask 257024  }
  0x13   :  { %v84_v6 = vmul.f32 %v156_v3, %v79_v1  ;;  %v151_v9 = vld [vmem:[%s328_s3] sm:$0xff] }
  0x14   :  { %v102_v5 = vpack.c.b16 %v100_v2, %v100_v2  ;;  %v158_v12 = vld [vmem:[#allocation6] ss:$0 sm:$0xff]  ;;  %v159_v13 = vld [vmem:[#allocation7] ss:$0 sm:$0xff] }
  0x15   :  { %v89_v8 = vadd.f32 %v157_v4, %v84_v6 }
  0x16   :  { %v110_v7 = vsel %vm108_vm0, %v102_v5, 0 }
  0x17   :  { %118 = vmatpush.bf16.msra.mxu0 %v110_v7  ;;  %v90_v10 = vmax.f32 %v89_v8, 0.0 }
  0x19   :  { %v91_v11 = vpack.c.bf16 %v90_v10, %v90_v10 }
  0x1b   :  { %119 = vmatpush.bf16.msra.mxu0 %v151_v9 }
  0x1e   :  { %150 = vmatmul.msk.bf16.vlgmr.msra.gmra.mxu0 %vm104_vm1, %v91_v11 }
  0x9b   :  { %v121_v14 = vpop.f32.mrf.mxu0 }
  0x9c   :  { %v129_v15 = vmul.f32 %v158_v12, %v121_v14 }
  0x9e   :  { %v134_v16 = vadd.f32 %v159_v13, %v129_v15 }
  0xa0   :  { %v135_v17 = vmax.f32 %v134_v16, 0.0 }
  0xa2   :  { %v136_v18 = vpack.c.bf16 %v135_v17, %v135_v17 }
  0xa3   :  { %v123_v19 = vpop.f32.mrf.mxu0 }
  0xa4   :  { %138 = vst.msk [vmem:[%s331_s6] sm:$0xf] %vm137_vm2, %v136_v18 }
  0xa5   :  { %143 = vsyncpa [#allocation3], 1 }
  0xa6   :  { %144 = vsyncpa [#allocation5], 1 }
  0xa7   :  { %145 = vsyncpa [#allocation8], 1 }

// kernel: densenet_forward.40
= control target key start
LH: loop header
LB: loop body
LE: loop exit
PB: predicated region body
PF: predicated region fallthrough
CT: control target
= control target key end

     0   :  { %s814_s15 = smov 0   ;;  %s917_s0 = inlined_call_operand.vmem [shape: bf16[2,20,32], index: 0, kind: input, shape index: {}]   ;;  %s918_s1 = inlined_call_operand.vmem [shape: bf16[9,32,8], index: 1, kind: input, shape index: {}]   ;;  %s919_s2 = inlined_call_operand.vmem [shape: f32[1,8], index: 2, kind: input, shape index: {}]   ;;  %s920_s3 = inlined_call_operand.vmem [shape: f32[1,8], index: 3, kind: input, shape index: {}]   ;;  %s921_s4 = inlined_call_operand.vmem [shape: f32[2,8,8], index: 4, kind: output, shape index: {}]  }
   0x1 LB: > { %s630_s16 = sadd.s32 4294967295, %s787_s15   ;;  %p634_p0 = scmp.ge.s32.totalorder %s787_s15, 1  ;;  %s787_s15 = sphi %s814_s15, %s14_s15  }
   0x2   : > { %p162_p1 = scmp.lt.s32.totalorder %s787_s15, 3 }
   0x4   : > { %p163_p2 = pnand %p634_p0, %p162_p1 }
   0x5   : > { %p187_p3 = scmp.lt.s32.totalorder (!%p163_p2), %s630_s16, 1 }
   0x6   : > { %166 = sbr.rel (%p163_p2) target bundleno = 195 (0xc3), region = 36 }
   0xb   : > { %v757_v0 = vld [vmem:[%s918_s1 + $0x28] sm:$0xff]  ;;  %v759_v1 = vld [vmem:[%s918_s1 + $0x38] sm:$0xff]  ;;  %v756_v4 = vld [vmem:[%s918_s1 + $0x20] sm:$0xff]  ;;  %s923_s16 = smov (!%p187_p3, %s630_s16), 1  ;;  %vm232_vm0 = vcmask 261120   ;;  %vm575_vm1 = vcmask 64512  }
   0xc   : > { %v755_v2 = vld [vmem:[%s918_s1 + $0x18] sm:$0xff]  ;;  %v753_v3 = vld [vmem:[%s918_s1 + $0x8] sm:$0xff]  ;;  %308 = vmatpush.bf16.msra.mxu2 %v757_v0  ;;  %350 = vmatpush.bf16.msra.mxu3 %v759_v1  ;;  %v758_v5 = vld [vmem:[%s918_s1 + $0x30] sm:$0xff]  ;;  %s770_s7 = smul.u32 12, %s923_s16  ;;  %s636_s9 = sshll.u32 %s923_s16, 3 }
   0xd   : > { %242 = vmatpush.bf16.msra.mxu0 %v755_v2  ;;  %270 = vmatpush.bf16.msra.mxu1 %v753_v3  ;;  %v754_v6 = vld [vmem:[%s918_s1 + $0x10] sm:$0xff]  ;;  %v752_v7 = vld [vmem:[%s918_s1] sm:$0xff]  ;;  %v761_v8 = vld [vmem:[%s918_s1 + $0x48] sm:$0xff]  ;;  %s195_s14 = scalar_lea.vmem %s921_s4, %s636_s9 }
   0xe   : > { %v765_v9 = vld [vmem:[%s918_s1 + $0x68] sm:$0xff]  ;;  %v767_v10 = vld [vmem:[%s918_s1 + $0x78] sm:$0xff]  ;;  %s864_s20 = scalar_lea.vmem %s917_s0, %s770_s7  ;;  %v760_v12 = vld [vmem:[%s918_s1 + $0x40] sm:$0xff] }
   0xf   : > { %v763_v11 = vld [vmem:[%s918_s1 + $0x58] sm:$0xff]  ;;  %v764_v13 = vld [vmem:[%s918_s1 + $0x60] sm:$0xff]  ;;  %v766_v22 = vld [vmem:[%s918_s1 + $0x70] sm:$0xff] }
  0x10   : > { %309 = vmatpush.bf16.msra.mxu2 %v756_v4  ;;  %351 = vmatpush.bf16.msra.mxu3 %v758_v5  ;;  %v202_v14 = vld [vmem:[%s864_s20 + $0x4] sm:$0x1]  ;;  %v277_v15 = vld [vmem:[%s864_s20] sm:$0xe]  ;;  %v762_v25 = vld [vmem:[%s918_s1 + $0x50] sm:$0xff] }
  0x11   : > { %243 = vmatpush.bf16.msra.mxu0 %v754_v6  ;;  %271 = vmatpush.bf16.msra.mxu1 %v752_v7  ;;  %v316_v16 = vld [vmem:[%s864_s20] sm:$0xc]  ;;  %v211_v17 = vunpack.c.l.b16 %v202_v14  ;;  %v284_v18 = vunpack.c.l.b16 %v277_v15  ;;  %v317_v19 = vld [vmem:[%s864_s20 + $0x4] sm:$0x3]  ;;  %v479_v27 = vld [vmem:[%s864_s20 + $0x8] sm:$0x1] }
  0x12   : > { %v325_v20 = vunpack.c.l.b16 %v316_v16  ;;  %v197_v21 = vld [vmem:[%s864_s20] sm:$0xf]  ;;  %v326_v23 = vunpack.c.l.b16 %v317_v19  ;;  %v478_v26 = vld [vmem:[%s864_s20 + $0x4] sm:$0xf]  ;;  %v488_v32 = vunpack.c.l.b16 %v479_v27  ;;  %v769_v43 = vld [vmem:[%s918_s1 + $0x88] sm:$0xff] }
  0x13   : > { %v210_v24 = vunpack.c.l.b16 %v197_v21  ;;  %v285_v28 = vpack.c.b16 %v211_v17, %v284_v18  ;;  %v487_v31 = vunpack.c.l.b16 %v478_v26  ;;  %v404_v33 = vld [vmem:[%s864_s20] sm:$0x8]  ;;  %v358_v35 = vld [vmem:[%s864_s20 + $0x4] sm:$0x7] }
  0x14   : > { %470 = vmatpush.bf16.msrb.mxu2 %v765_v9  ;;  %518 = vmatpush.bf16.msrb.mxu3 %v767_v10  ;;  %v327_v29 = vpack.c.b16 %v326_v23, %v325_v20  ;;  %v411_v39 = vunpack.c.l.b16 %v404_v33  ;;  %v365_v40 = vunpack.c.l.b16 %v358_v35  ;;  %v768_v48 = vld [vmem:[%s918_s1 + $0x80] sm:$0xff] }
  0x15   : > { %396 = vmatpush.bf16.msrb.mxu0 %v761_v8  ;;  %435 = vmatpush.bf16.msrb.mxu1 %v763_v11  ;;  %v212_v30 = vpack.c.b16 %v211_v17, %v210_v24  ;;  %v286_v34 = vrot.slane %v285_v28, 1  ;;  %v489_v42 = vpack.c.b16 %v488_v32, %v487_v31  ;;  %v443_v54 = vld [vmem:[%s864_s20 + $0x4] sm:$0xf] }
  0x16   : > { %658 = vmatmul.msk.bf16.vlgmr.msra.gmra.mxu1 %vm232_vm0, %v197_v21  ;;  %v328_v36 = vrot.slane %v327_v29, 2  ;;  %v412_v45 = vpack.c.b16 %v365_v40, %v411_v39  ;;  %v366_v46 = vpack.c.b16 %v365_v40, %v325_v20  ;;  %v526_v59 = vld [vmem:[%s864_s20 + $0x4] sm:$0xe] }
  0x17   : > { %v214_v37 = vshrl.u32 %v212_v30, 16  ;;  %v216_v38 = vshll.u32 %v212_v30, 16  ;;  %671 = vmatmul.msk.bf16.vlgmr.msra.gmra.mxu2 %vm232_vm0, %v286_v34  ;;  %v493_v47 = vshll.u32 %v489_v42, 16  ;;  %v491_v52 = vshrl.u32 %v489_v42, 16 }
  0x18   : > { %471 = vmatpush.bf16.msrb.mxu2 %v764_v13  ;;  %519 = vmatpush.bf16.msrb.mxu3 %v766_v22  ;;  %v413_v49 = vrot.slane %v412_v45, 3  ;;  %v368_v50 = vshrl.u32 %v366_v46, 16  ;;  %v371_v51 = vshll.u32 %v366_v46, 16  ;;  %v533_v60 = vunpack.c.l.b16 %v526_v59  ;;  %v779_v22 = vld [vmem:[%s919_s2] ss:$0 sm:$0xff] }
  0x19   : > { %397 = vmatpush.bf16.msrb.mxu0 %v760_v12  ;;  %436 = vmatpush.bf16.msrb.mxu1 %v762_v25  ;;  %v218_v41 = vrot.slane %v216_v38, 1  ;;  %v495_v53 = vrot.slane %v493_v47, 1  ;;  %v780_v25 = vld [vmem:[%s920_s3] ss:$0 sm:$0xff] }
  0x1a   : > { %684 = vmatmul.msk.bf16.vlgmr.msra.gmra.mxu3 %vm232_vm0, %v328_v36  ;;  %v370_v55 = vrot.slane %v368_v50, 2  ;;  %v373_v56 = vrot.slane %v371_v51, 3  ;;  %v534_v61 = vpack.c.b16 %v488_v32, %v533_v60 }
  0x1b   : > { %v219_v44 = vor.u32 %v218_v41, %v214_v37  ;;  %v496_v57 = vor.u32 %v495_v53, %v491_v52 }
  0x1c   : > { %v374_v58 = vor.u32 %v373_v56, %v370_v55  ;;  %v535_v62 = vrot.slane %v534_v61, 1 }
  0x1d   : > { %649 = vmatmul.msk.bf16.vlgmr.msra.gmra.mxu0 %vm232_vm0, %v219_v44 }
  0x1e   : > { %557 = vmatpush.bf16.msra.mxu0 %v769_v43 }
  0x22   : > { %558 = vmatpush.bf16.msra.mxu0 %v768_v48 }
  0x26   : > { %710 = vmatmul.msk.bf16.vlgmr.msrb.gmra.mxu1 %vm232_vm0, %v413_v49 }
  0x27   : > { %723 = vmatmul.msk.bf16.vlgmr.msrb.gmra.mxu2 %vm232_vm0, %v443_v54 }
  0x2a   : > { %736 = vmatmul.msk.bf16.vlgmr.msrb.gmra.mxu3 %vm232_vm0, %v496_v57 }
  0x2d   : > { %697 = vmatmul.msk.bf16.vlgmr.msrb.gmra.mxu0 %vm232_vm0, %v374_v58 }
  0x3d   : > { %749 = vmatmul.msk.bf16.vlgmr.msra.gmra.mxu0 %vm232_vm0, %v535_v62 }
  0x93   : > { %v273_v63 = vpop.f32.mrf.mxu1 }
  0x9a   : > { %v245_v1 = vpop.f32.mrf.mxu0  ;;  %v311_v2 = vpop.f32.mrf.mxu2 }
  0x9b   : > { %v275_v0 = vpop.f32.mrf.mxu1  ;;  %v274_v6 = vadd.f32 %v273_v63, %v245_v1 }
  0x9d   : > { %v353_v3 = vpop.f32.mrf.mxu3  ;;  %v315_v9 = vadd.f32 %v311_v2, %v274_v6 }
  0x9f   : > { %v357_v12 = vadd.f32 %v353_v3, %v315_v9 }
  0xa2   : > { %v247_v5 = vpop.f32.mrf.mxu0  ;;  %v313_v7 = vpop.f32.mrf.mxu2 }
  0xa3   : > { %v438_v4 = vpop.f32.mrf.mxu1 }
  0xa5   : > { %v355_v8 = vpop.f32.mrf.mxu3 }
  0xaa   : > { %v399_v11 = vpop.f32.mrf.mxu0  ;;  %v473_v13 = vpop.f32.mrf.mxu2 }
  0xab   : > { %v440_v10 = vpop.f32.mrf.mxu1  ;;  %v403_v15 = vadd.f32 %v399_v11, %v357_v12 }
  0xad   : > { %v521_v14 = vpop.f32.mrf.mxu3  ;;  %v442_v16 = vadd.f32 %v438_v4, %v403_v15 }
  0xaf   : > { %v477_v20 = vadd.f32 %v473_v13, %v442_v16 }
  0xb1   : > { %v525_v21 = vadd.f32 %v521_v14, %v477_v20 }
  0xb2   : > { %v401_v17 = vpop.f32.mrf.mxu0  ;;  %v475_v18 = vpop.f32.mrf.mxu2 }
  0xb5   : > { %v523_v19 = vpop.f32.mrf.mxu3 }
  0xba   : > { %v560_v23 = vpop.f32.mrf.mxu0 }
  0xbb   : > { %v564_v24 = vadd.f32 %v560_v23, %v525_v21 }
  0xbd   : > { %v569_v26 = vmul.f32 %v779_v22, %v564_v24 }
  0xbf   : > { %v574_v27 = vadd.f32 %v780_v25, %v569_v26 }
  0xc1   : > { %576 = vst.msk [vmem:[%s195_s14] sm:$0xff] %vm575_vm1, %v574_v27 }
  0xc2   : > { %v562_v28 = vpop.f32.mrf.mxu0 }
  0xc3 PF: > { %s14_s15 = sadd.s32 1, %s787_s15  }
  0xc4   : > { %p11_p4 = scmp.ge.s32.totalorder %s14_s15, 4  }
  0xc6   :  { %13 = sbr.rel (!%p11_p4) target bundleno = 1 (0x1), region = 74 }

// kernel: densenet_forward.43
= control target key start
LH: loop header
LB: loop body
LE: loop exit
PB: predicated region body
PF: predicated region fallthrough
CT: control target
= control target key end

     0   :  { %vm53_vm0 = vcmask 261120   ;;  %vm80_vm1 = vcmask 130048   ;;  %s160_s3 = inlined_call_operand.vmem [shape: bf16[32,16], index: 3, kind: input, shape index: {}]   ;;  %s161_s0 = inlined_call_operand.vmem [shape: f32[8,32], index: 0, kind: input, shape index: {}]   ;;  %s162_s1 = inlined_call_operand.vmem [shape: f32[1,32], index: 1, kind: input, shape index: {}]   ;;  %s163_s2 = inlined_call_operand.vmem [shape: f32[1,32], index: 2, kind: input, shape index: {}]   ;;  %s164_s4 = inlined_call_operand.vmem [shape: f32[1,16], index: 4, kind: input, shape index: {}]   ;;  %s165_s5 = inlined_call_operand.vmem [shape: f32[1,16], index: 5, kind: input, shape index: {}]   ;;  %s166_s6 = inlined_call_operand.vmem [shape: f32[8,16], index: 6, kind: output, shape index: {}]  }
   0x1   :  { %v96_v0 = vld [vmem:[%s160_s3 + $0x8] sm:$0xff]  ;;  %v95_v1 = vld [vmem:[%s160_s3] sm:$0xff] }
   0x2   :  { %v24_v2 = vld [vmem:[%s161_s0] sm:$0xff]  ;;  %63 = vmatpush.bf16.msra.mxu0 %v96_v0 }
   0x3   :  { %v97_v3 = vld [vmem:[%s162_s1] ss:$0 sm:$0xff] }
   0x4   :  { %v98_v4 = vld [vmem:[%s163_s2] ss:$0 sm:$0xff]  ;;  %v29_v5 = vmul.f32 %v97_v3, %v24_v2 }
   0x5   :  { %v99_v9 = vld [vmem:[%s164_s4] ss:$0 sm:$0xff] }
   0x6   :  { %v34_v6 = vadd.f32 %v98_v4, %v29_v5  ;;  %64 = vmatpush.bf16.msra.mxu0 %v95_v1  ;;  %v100_v10 = vld [vmem:[%s165_s5] ss:$0 sm:$0xff] }
   0x8   :  { %v35_v7 = vmax.f32 %v34_v6, 0.0 }
   0xa   :  { %v36_v8 = vpack.c.bf16 %v35_v7, %v35_v7 }
   0xc   :  { %94 = vmatmul.msk.bf16.vlgmr.msra.gmra.mxu0 %vm53_vm0, %v36_v8 }
  0x89   :  { %v66_v11 = vpop.f32.mrf.mxu0 }
  0x8a   :  { %v74_v12 = vmul.f32 %v99_v9, %v66_v11 }
  0x8c   :  { %v79_v13 = vadd.f32 %v100_v10, %v74_v12 }
  0x8e   :  { %81 = vst.msk [vmem:[%s166_s6] sm:$0xff] %vm80_vm1, %v79_v13 }
  0x91   :  { %v68_v14 = vpop.f32.mrf.mxu0 }

// kernel: densenet_forward.44
= control target key start
LH: loop header
LB: loop body
LE: loop exit
PB: predicated region body
PF: predicated region fallthrough
CT: control target
= control target key end

     0   :  { %vm25_vm0 = vcmask 123904   ;;  %s71_s0 = inlined_call_operand.vmem [shape: f32[2,16], index: 0, kind: input, shape index: {}]   ;;  %s72_s1 = inlined_call_operand.vmem [shape: f32[2,16], index: 1, kind: input, shape index: {}]   ;;  %s73_s2 = inlined_call_operand.vmem [shape: f32[2,16], index: 2, kind: input, shape index: {}]   ;;  %s74_s3 = inlined_call_operand.vmem [shape: f32[2,16], index: 3, kind: input, shape index: {}]   ;;  %s75_s4 = inlined_call_operand.vmem [shape: f32[2,16], index: 4, kind: output, shape index: {}]  }
   0x1   :  { %v17_v0 = vld [vmem:[%s71_s0] sm:$0x3] }
   0x2   :  { %v18_v1 = vld [vmem:[%s72_s1] sm:$0x3] }
   0x3   :  { %v20_v2 = vld [vmem:[%s73_s2] sm:$0x3]  ;;  %v19_v3 = vadd.f32 %v18_v1, %v17_v0 }
   0x4   :  { %v22_v4 = vld [vmem:[%s74_s3] sm:$0x3] }
   0x5   :  { %v21_v5 = vadd.f32 %v20_v2, %v19_v3 }
   0x7   :  { %v23_v6 = vadd.f32 %v22_v4, %v21_v5 }
   0x9   :  { %v24_v7 = vmul.f32 0.25, %v23_v6 }
   0xb   :  { %26 = vst.msk [vmem:[%s75_s4] sm:$0x3] %vm25_vm0, %v24_v7 }

// kernel: densenet_forward.45
= control target key start
LH: loop header
LB: loop body
LE: loop exit
PB: predicated region body
PF: predicated region fallthrough
CT: control target
= control target key end

     0   :  { %vm45_vm0 = vcmask 130048   ;;  %vm74_vm1 = vcmask 253952   ;;  %s146_s3 = inlined_call_operand.vmem [shape: bf16[16,32], index: 3, kind: input, shape index: {}]   ;;  %s147_s0 = inlined_call_operand.vmem [shape: f32[2,16], index: 0, kind: input, shape index: {}]   ;;  %s148_s1 = inlined_call_operand.vmem [shape: f32[1,16], index: 1, kind: input, shape index: {}]   ;;  %s149_s2 = inlined_call_operand.vmem [shape: f32[1,16], index: 2, kind: input, shape index: {}]   ;;  %s150_s4 = inlined_call_operand.vmem [shape: f32[1,32], index: 4, kind: input, shape index: {}]   ;;  %s151_s5 = inlined_call_operand.vmem [shape: f32[1,32], index: 5, kind: input, shape index: {}]   ;;  %s152_s6 = inlined_call_operand.vmem [shape: bf16[2,32], index: 6, kind: output, shape index: {}]  }
   0x1   :  { %v85_v0 = vld [vmem:[%s146_s3] sm:$0xff] }
   0x2   :  { %v24_v1 = vld [vmem:[%s147_s0] sm:$0x3]  ;;  %56 = vmatpush.bf16.msra.mxu0 %v85_v0 }
   0x3   :  { %v86_v2 = vld [vmem:[%s148_s1] ss:$0 sm:$0xff] }
   0x4   :  { %v87_v3 = vld [vmem:[%s149_s2] ss:$0 sm:$0xff]  ;;  %v29_v4 = vmul.f32 %v86_v2, %v24_v1 }
   0x5   :  { %v88_v8 = vld [vmem:[%s150_s4] ss:$0 sm:$0xff] }
   0x6   :  { %v34_v5 = vadd.f32 %v87_v3, %v29_v4  ;;  %v89_v9 = vld [vmem:[%s151_s5] ss:$0 sm:$0xff] }
   0x8   :  { %v35_v6 = vmax.f32 %v34_v5, 0.0 }
   0xa   :  { %v36_v7 = vpack.c.bf16 %v35_v6, %v35_v6 }
   0xc   :  { %84 = vmatmul.msk.bf16.vlgmr.msra.gmra.mxu0 %vm45_vm0, %v36_v7 }
  0x89   :  { %v58_v10 = vpop.f32.mrf.mxu0 }
  0x8a   :  { %v66_v11 = vmul.f32 %v88_v8, %v58_v10 }
  0x8c   :  { %v71_v12 = vadd.f32 %v89_v9, %v66_v11 }
  0x8e   :  { %v72_v13 = vmax.f32 %v71_v12, 0.0 }
  0x90   :  { %v73_v14 = vpack.c.bf16 %v72_v13, %v72_v13 }
  0x91   :  { %v60_v15 = vpop.f32.mrf.mxu0 }
  0x92   :  { %75 = vst.msk [vmem:[%s152_s6] sm:$0x1] %vm74_vm1, %v73_v14 }

// kernel: densenet_forward.47
= control target key start
LH: loop header
LB: loop body
LE: loop exit
PB: predicated region body
PF: predicated region fallthrough
CT: control target
= control target key end

     0   :  { %vm53_vm0 = vcmask 1043456   ;;  %vm49_vm1 = vcmask 195584   ;;  %vm82_vm2 = vcmask 253952   ;;  %s157_s3 = inlined_call_operand.vmem [shape: bf16[24,32], index: 3, kind: input, shape index: {}]   ;;  %s158_s0 = inlined_call_operand.vmem [shape: f32[2,24], index: 0, kind: input, shape index: {}]   ;;  %s159_s1 = inlined_call_operand.vmem [shape: f32[1,24], index: 1, kind: input, shape index: {}]   ;;  %s160_s2 = inlined_call_operand.vmem [shape: f32[1,24], index: 2, kind: input, shape index: {}]   ;;  %s161_s4 = inlined_call_operand.vmem [shape: f32[1,32], index: 4, kind: input, shape index: {}]   ;;  %s162_s5 = inlined_call_operand.vmem [shape: f32[1,32], index: 5, kind: input, shape index: {}]   ;;  %s163_s6 = inlined_call_operand.vmem [shape: bf16[2,32], index: 6, kind: output, shape index: {}]  }
   0x1   :  { %v39_v0 = vld [vmem:[%s157_s3 + $0x8] sm:$0xf]  ;;  %v24_v1 = vld [vmem:[%s158_s0] sm:$0x3] }
   0x2   :  { %v45_v2 = vunpack.c.l.b16 %v39_v0  ;;  %v94_v3 = vld [vmem:[%s159_s1] ss:$0 sm:$0xff] }
   0x3   :  { %v95_v4 = vld [vmem:[%s160_s2] ss:$0 sm:$0xff]  ;;  %v29_v6 = vmul.f32 %v94_v3, %v24_v1 }
   0x4   :  { %v47_v5 = vpack.c.b16 %v45_v2, %v45_v2  ;;  %v93_v9 = vld [vmem:[%s157_s3] sm:$0xff] }
   0x5   :  { %v34_v8 = vadd.f32 %v95_v4, %v29_v6  ;;  %v96_v12 = vld [vmem:[%s161_s4] ss:$0 sm:$0xff] }
   0x6   :  { %v55_v7 = vsel %vm53_vm0, %v47_v5, 0  ;;  %v97_v13 = vld [vmem:[%s162_s5] ss:$0 sm:$0xff] }
   0x7   :  { %63 = vmatpush.bf16.msra.mxu0 %v55_v7  ;;  %v35_v10 = vmax.f32 %v34_v8, 0.0 }
   0x9   :  { %v36_v11 = vpack.c.bf16 %v35_v10, %v35_v10 }
   0xb   :  { %64 = vmatpush.bf16.msra.mxu0 %v93_v9 }
   0xe   :  { %92 = vmatmul.msk.bf16.vlgmr.msra.gmra.mxu0 %vm49_vm1, %v36_v11 }
  0x8b   :  { %v66_v14 = vpop.f32.mrf.mxu0 }
  0x8c   :  { %v74_v15 = vmul.f32 %v96_v12, %v66_v14 }
  0x8e   :  { %v79_v16 = vadd.f32 %v97_v13, %v74_v15 }
  0x90   :  { %v80_v17 = vmax.f32 %v79_v16, 0.0 }
  0x92   :  { %v81_v18 = vpack.c.bf16 %v80_v17, %v80_v17 }
  0x93   :  { %v68_v19 = vpop.f32.mrf.mxu0 }
  0x94   :  { %83 = vst.msk [vmem:[%s163_s6] sm:$0x1] %vm82_vm2, %v81_v18 }

// kernel: densenet_forward.46
= control target key start
LH: loop header
LB: loop body
LE: loop exit
PB: predicated region body
PF: predicated region fallthrough
CT: control target
= control target key end

     0   :  { %s810_s15 = smov 0   ;;  %s908_s0 = inlined_call_operand.vmem [shape: bf16[2,12,32], index: 0, kind: input, shape index: {}]   ;;  %s909_s1 = inlined_call_operand.vmem [shape: bf16[9,32,8], index: 1, kind: input, shape index: {}]   ;;  %s910_s2 = inlined_call_operand.vmem [shape: f32[1,8], index: 2, kind: input, shape index: {}]   ;;  %s911_s3 = inlined_call_operand.vmem [shape: f32[1,8], index: 3, kind: input, shape index: {}]   ;;  %s912_s4 = inlined_call_operand.vmem [shape: f32[2,3,8], index: 4, kind: output, shape index: {}]  }
   0x1 LB: > { %s620_s16 = sadd.s32 4294967295, %s783_s15   ;;  %p624_p0 = scmp.ge.s32.totalorder %s783_s15, 1  ;;  %s783_s15 = sphi %s810_s15, %s14_s15  }
   0x2   : > { %p162_p1 = scmp.lt.s32.totalorder %s783_s15, 3 }
   0x4   : > { %p163_p2 = pnand %p624_p0, %p162_p1 }
   0x5   : > { %p187_p3 = scmp.lt.s32.totalorder (!%p163_p2), %s620_s16, 1 }
   0x6   : > { %166 = sbr.rel (%p163_p2) target bundleno = 192 (0xc0), region = 36 }
   0xb   : > { %v753_v0 = vld [vmem:[%s909_s1 + $0x28] sm:$0xff]  ;;  %v751_v1 = vld [vmem:[%s909_s1 + $0x18] sm:$0xff]  ;;  %v752_v4 = vld [vmem:[%s909_s1 + $0x20] sm:$0xff]  ;;  %s914_s16 = smov (!%p187_p3, %s620_s16), 1  ;;  %vm229_vm0 = vcmask 261120   ;;  %vm565_vm1 = vcmask 59392  }
   0xc   : > { %v749_v2 = vld [vmem:[%s909_s1 + $0x8] sm:$0xff]  ;;  %v755_v3 = vld [vmem:[%s909_s1 + $0x38] sm:$0xff]  ;;  %305 = vmatpush.bf16.msra.mxu2 %v753_v0  ;;  %239 = vmatpush.bf16.msra.mxu0 %v751_v1  ;;  %v750_v5 = vld [vmem:[%s909_s1 + $0x10] sm:$0xff]  ;;  %s747_s7 = sshll.u32 %s914_s16, 3  ;;  %s627_s9 = sshll.u32 %s914_s16, 2 }
   0xd   : > { %267 = vmatpush.bf16.msra.mxu1 %v749_v2  ;;  %347 = vmatpush.bf16.msra.mxu3 %v755_v3  ;;  %v748_v6 = vld [vmem:[%s909_s1] sm:$0xff]  ;;  %v754_v7 = vld [vmem:[%s909_s1 + $0x30] sm:$0xff]  ;;  %v757_v8 = vld [vmem:[%s909_s1 + $0x48] sm:$0xff]  ;;  %s854_s14 = scalar_lea.vmem %s908_s0, %s747_s7 }
   0xe   : > { %v762_v9 = vld [vmem:[%s909_s1 + $0x68] sm:$0xff]  ;;  %v764_v10 = vld [vmem:[%s909_s1 + $0x78] sm:$0xff]  ;;  %v274_v12 = vld [vmem:[%s854_s14] sm:$0x6] }
   0xf   : > { %v759_v11 = vld [vmem:[%s909_s1 + $0x58] sm:$0xff]  ;;  %v197_v13 = vld [vmem:[%s854_s14] sm:$0x3]  ;;  %v281_v14 = vunpack.c.l.b16 %v274_v12  ;;  %v355_v17 = vld [vmem:[%s854_s14] sm:$0xc] }
  0x10   : > { %306 = vmatpush.bf16.msra.mxu2 %v752_v4  ;;  %240 = vmatpush.bf16.msra.mxu0 %v750_v5  ;;  %v208_v15 = vunpack.c.l.b16 %v197_v13  ;;  %v756_v16 = vld [vmem:[%s909_s1 + $0x40] sm:$0xff]  ;;  %v362_v19 = vunpack.c.l.b16 %v355_v17  ;;  %v763_v22 = vld [vmem:[%s909_s1 + $0x70] sm:$0xff]  ;;  %v766_v33 = vld [vmem:[%s909_s1 + $0x88] sm:$0xff] }
  0x11   : > { %268 = vmatpush.bf16.msra.mxu1 %v748_v6  ;;  %348 = vmatpush.bf16.msra.mxu3 %v754_v7  ;;  %v761_v18 = vld [vmem:[%s909_s1 + $0x60] sm:$0xff]  ;;  %v282_v20 = vpack.c.b16 %v281_v14, %v281_v14  ;;  %v758_v23 = vld [vmem:[%s909_s1 + $0x50] sm:$0xff] }
  0x12   : > { %v209_v21 = vpack.c.b16 %v208_v15, %v208_v15  ;;  %v363_v24 = vpack.c.b16 %v362_v19, %v362_v19  ;;  %v708_v37 = vld [vmem:[%s854_s14] sm:$0x8]  ;;  %v760_v38 = vld [vmem:[%s854_s14] sm:$0x10]  ;;  %v775_v12 = vld [vmem:[%s910_s2] ss:$0 sm:$0xff] }
  0x13   : > { %v283_v25 = vrot.slane %v282_v20, 1  ;;  %v319_v28 = vshrl.u32 %v282_v20, 16  ;;  %v322_v29 = vshll.u32 %v282_v20, 16  ;;  %v709_v40 = vor.u32 %v760_v38, %v708_v37  ;;  %v765_v43 = vld [vmem:[%s909_s1 + $0x80] sm:$0xff] }
  0x14   : > { %386 = vmatpush.bf16.msrb.mxu0 %v757_v8  ;;  %470 = vmatpush.bf16.msrb.mxu2 %v762_v9  ;;  %v211_v26 = vshrl.u32 %v209_v21, 16  ;;  %v213_v27 = vshll.u32 %v209_v21, 16  ;;  %v400_v34 = vshrl.u32 %v363_v24, 16  ;;  %v403_v35 = vshll.u32 %v363_v24, 16  ;;  %v520_v52 = vld [vmem:[%s854_s14 + $0x4] sm:$0x3]  ;;  %s195_s14 = scalar_lea.vmem %s912_s4, %s627_s9 }
  0x15   : > { %512 = vmatpush.bf16.msrb.mxu3 %v764_v10  ;;  %428 = vmatpush.bf16.msrb.mxu1 %v759_v11  ;;  %v321_v31 = vrot.slane %v319_v28, 1  ;;  %v324_v32 = vrot.slane %v322_v29, 2  ;;  %v484_v44 = vshrl.u32 %v709_v40, 16  ;;  %v487_v45 = vshll.u32 %v709_v40, 16  ;;  %v776_v15 = vld [vmem:[%s911_s3] ss:$0 sm:$0xff] }
  0x16   : > { %649 = vmatmul.msk.bf16.vlgmr.msra.gmra.mxu1 %vm229_vm0, %v197_v13  ;;  %662 = vmatmul.msk.bf16.vlgmr.msra.gmra.mxu2 %vm229_vm0, %v283_v25  ;;  %v215_v30 = vrot.slane %v213_v27, 1  ;;  %v402_v41 = vrot.slane %v400_v34, 2  ;;  %v405_v42 = vrot.slane %v403_v35, 3  ;;  %v448_v47 = vrot.slane %v709_v40, 3 }
  0x17   : > { %v325_v39 = vor.u32 %v324_v32, %v321_v31  ;;  %v486_v48 = vrot.slane %v484_v44, 3  ;;  %v489_v49 = vrot.slane %v487_v45, 4  ;;  %v364_v50 = vrot.slane %v363_v24, 2 }
  0x18   : > { %387 = vmatpush.bf16.msrb.mxu0 %v756_v16  ;;  %471 = vmatpush.bf16.msrb.mxu2 %v761_v18  ;;  %v216_v36 = vor.u32 %v215_v30, %v211_v26  ;;  %v406_v46 = vor.u32 %v405_v42, %v402_v41 }
  0x19   : > { %513 = vmatpush.bf16.msrb.mxu3 %v763_v22  ;;  %429 = vmatpush.bf16.msrb.mxu1 %v758_v23  ;;  %v490_v51 = vor.u32 %v489_v49, %v486_v48 }
  0x1a   : > { %640 = vmatmul.msk.bf16.vlgmr.msra.gmra.mxu0 %vm229_vm0, %v216_v36  ;;  %675 = vmatmul.msk.bf16.vlgmr.msra.gmra.mxu3 %vm229_vm0, %v325_v39 }
  0x1c   : > { %547 = vmatpush.bf16.msra.mxu0 %v766_v33 }
  0x20   : > { %548 = vmatpush.bf16.msra.mxu0 %v765_v43 }
  0x26   : > { %701 = vmatmul.msk.bf16.vlgmr.msrb.gmra.mxu1 %vm229_vm0, %v406_v46  ;;  %718 = vmatmul.msk.bf16.vlgmr.msrb.gmra.mxu2 %vm229_vm0, %v448_v47 }
  0x2a   : > { %688 = vmatmul.msk.bf16.vlgmr.msrb.gmra.mxu0 %vm229_vm0, %v364_v50  ;;  %731 = vmatmul.msk.bf16.vlgmr.msrb.gmra.mxu3 %vm229_vm0, %v490_v51 }
  0x3a   : > { %744 = vmatmul.msk.bf16.vlgmr.msra.gmra.mxu0 %vm229_vm0, %v520_v52 }
  0x93   : > { %v270_v53 = vpop.f32.mrf.mxu1 }
  0x97   : > { %v242_v54 = vpop.f32.mrf.mxu0 }
  0x98   : > { %v271_v61 = vadd.f32 %v270_v53, %v242_v54 }
  0x99   : > { %v308_v56 = vpop.f32.mrf.mxu2 }
  0x9a   : > { %v312_v62 = vadd.f32 %v308_v56, %v271_v61 }
  0x9b   : > { %v272_v55 = vpop.f32.mrf.mxu1 }
  0x9d   : > { %v350_v57 = vpop.f32.mrf.mxu3 }
  0x9e   : > { %v354_v1 = vadd.f32 %v350_v57, %v312_v62 }
  0x9f   : > { %v244_v58 = vpop.f32.mrf.mxu0 }
  0xa1   : > { %v310_v60 = vpop.f32.mrf.mxu2 }
  0xa3   : > { %v431_v59 = vpop.f32.mrf.mxu1 }
  0xa5   : > { %v352_v63 = vpop.f32.mrf.mxu3 }
  0xa7   : > { %v389_v0 = vpop.f32.mrf.mxu0 }
  0xa8   : > { %v393_v4 = vadd.f32 %v389_v0, %v354_v1 }
  0xa9   : > { %v473_v3 = vpop.f32.mrf.mxu2 }
  0xaa   : > { %v435_v5 = vadd.f32 %v431_v59, %v393_v4 }
  0xab   : > { %v433_v2 = vpop.f32.mrf.mxu1 }
  0xac   : > { %v477_v9 = vadd.f32 %v473_v3, %v435_v5 }
  0xad   : > { %v515_v6 = vpop.f32.mrf.mxu3 }
  0xae   : > { %v519_v10 = vadd.f32 %v515_v6, %v477_v9 }
  0xaf   : > { %v391_v7 = vpop.f32.mrf.mxu0 }
  0xb1   : > { %v475_v8 = vpop.f32.mrf.mxu2 }
  0xb5   : > { %v517_v11 = vpop.f32.mrf.mxu3 }
  0xb7   : > { %v550_v13 = vpop.f32.mrf.mxu0 }
  0xb8   : > { %v554_v14 = vadd.f32 %v550_v13, %v519_v10 }
  0xba   : > { %v559_v16 = vmul.f32 %v775_v12, %v554_v14 }
  0xbc   : > { %v564_v17 = vadd.f32 %v776_v15, %v559_v16 }
  0xbe   : > { %566 = vst.msk [vmem:[%s195_s14] sm:$0x7] %vm565_vm1, %v564_v17 }
  0xbf   : > { %v552_v18 = vpop.f32.mrf.mxu0 }
  0xc0 PF: > { %s14_s15 = sadd.s32 1, %s783_s15  }
  0xc1   : > { %p11_p4 = scmp.ge.s32.totalorder %s14_s15, 4  }
  0xc3   :  { %13 = sbr.rel (!%p11_p4) target bundleno = 1 (0x1), region = 74 }

// kernel: densenet_forward.49
= control target key start
LH: loop header
LB: loop body
LE: loop exit
PB: predicated region body
PF: predicated region fallthrough
CT: control target
= control target key end

     0   :  { %10 = vsyncpa [#allocation3], 0  ;;  %s279_s0 = inlined_call_operand.vmem [shape: f32[2,1,32], index: 0, kind: input, shape index: {}]   ;;  %s280_s1 = inlined_call_operand.vmem [shape: f32[1,1,32], index: 1, kind: input, shape index: {}]   ;;  %s281_s2 = inlined_call_operand.hbm [shape: f32[1,1,32], index: 2, kind: input, shape index: {}]   ;;  %s282_s3 = inlined_call_operand.vmem [shape: bf16[32,4], index: 3, kind: input, shape index: {}]   ;;  %s283_s4 = inlined_call_operand.hbm [shape: f32[1,4], index: 4, kind: input, shape index: {}]   ;;  %s284_s5 = inlined_call_operand.hbm [shape: f32[2,4], index: 5, kind: output, shape index: {}]  }
   0x1   :  { %11 = vsyncpa [#allocation6], 0 }
   0x2   :  { %12 = vsyncpa [#allocation4], 0  ;;  %s22_s20 = sshll.u32 %s281_s2, 4  ;;  %s222_s21 = smov [#allocation2]   ;;  %s23_s20 = int_to_ptr.hbm [resolvable:$true] %s22_s20 }
   0x3   :  { %s24_s22 = sshll.u32 %s222_s21, 4  ;;  %s35_s25 = sshll.u32 %s283_s4, 4  ;;  %s25_s22 = int_to_ptr.vmem [resolvable:$true] %s24_s22  ;;  %s36_s25 = int_to_ptr.hbm [resolvable:$true] %s35_s25 }
   0x4   :  { %27 = dma.hbm_to_vmem [thread:$0]  %s23_s20, 16, %s25_s22, [#allocation3]  }
   0x5   :  { %s223_s26 = smov [#allocation5]  }
   0x6   :  { %s37_s27 = sshll.u32 %s223_s26, 4  ;;  %s38_s27 = int_to_ptr.vmem [resolvable:$true] %s37_s27 }
   0x7   :  { %40 = dma.hbm_to_vmem [thread:$0]  %s36_s25, 16, %s38_s27, [#allocation6]  }
   0x8   :  { %216 = dma.done.wait [#allocation3], 16  }
   0x9   :  { %217 = vsyncadd [#allocation3], 4294967280 }
   0xa   :  { %218 = dma.done.wait [#allocation6], 16  }
   0xb   :  { %219 = vsyncadd [#allocation6], 4294967280  ;;  %v139_v0 = vld [vmem:[%s282_s3 + $0x8] sm:$0xff]  ;;  %v50_v1 = vld [vmem:[%s279_s0] sm:$0x1]  ;;  %vm77_vm0 = vcmask 1041409  }
   0xc   :  { %v51_v2 = vld [vmem:[%s279_s0 + $0x1] sm:$0x1]  ;;  %v52_v3 = vld [vmem:[%s280_s1] sm:$0x1]  ;;  %102 = vmatpush.bf16.msra.mxu0 %v139_v0  ;;  %vm92_vm1 = vcmask 261120   ;;  %s224_s0 = smov [#allocation7]  }
   0xd   :  { %v55_v4 = vld [vmem:[#allocation2] sm:$0x1]  ;;  %v53_v6 = vmul.f32 %v52_v3, %v50_v1  ;;  %v54_v7 = vmul.f32 %v52_v3, %v51_v2  ;;  %v143_v19 = vld [vmem:[#allocation5] ss:$0 sm:$0xff]  ;;  %s116_s1 = sshll.u32 %s224_s0, 4  ;;  %s118_s12 = sshll.u32 %s284_s5, 4  ;;  %s117_s1 = int_to_ptr.vmem [resolvable:$true] %s116_s1  ;;  %s119_s12 = int_to_ptr.hbm [resolvable:$true] %s118_s12 }
   0xe   :  { %v138_v5 = vld [vmem:[%s282_s3] sm:$0xff]  ;;  %vm109_vm2 = vcmask 25600  }
   0xf   :  { %v56_v8 = vadd.f32 %v55_v4, %v53_v6  ;;  %v57_v9 = vadd.f32 %v55_v4, %v54_v7 }
  0x10   :  { %103 = vmatpush.bf16.msra.mxu0 %v138_v5 }
  0x11   :  { %v58_v10 = vmax.f32 %v56_v8, 0.0  ;;  %v59_v11 = vmax.f32 %v57_v9, 0.0 }
  0x13   :  { %v62_v12 = vpack.c.bf16 %v58_v10, %v58_v10  ;;  %v63_v13 = vpack.c.bf16 %v59_v11, %v59_v11 }
  0x15   :  { %v74_v14 = vunpack.c.l.b16 %v62_v12  ;;  %v75_v15 = vunpack.c.l.b16 %v63_v13 }
  0x17   :  { %v76_v16 = vrot.slane %v75_v15, 7 }
  0x19   :  { %v78_v17 = vsel %vm77_vm0, %v76_v16, %v74_v14 }
  0x1a   :  { %v79_v18 = vpack.c.b16 %v78_v17, %v78_v17 }
  0x1c   :  { %137 = vmatmul.msk.bf16.vlgmr.msra.gmra.mxu0 %vm92_vm1, %v79_v18 }
  0x99   :  { %v105_v20 = vpop.f32.mrf.mxu0 }
  0x9a   :  { %v106_v21 = vadd.f32 %v143_v19, %v105_v20 }
  0x9c   :  { %110 = vst.msk [vmem:[#allocation7] sm:$0x3] %vm109_vm2, %v106_v21 }
  0x9d   :  { %121 = dma.vmem_to_hbm [thread:$0]  %s117_s1, 32, %s119_s12, [#allocation4]  }
  0xa1   :  { %v107_v22 = vpop.f32.mrf.mxu0 }
  0xa2   :  { %220 = dma.done.wait [#allocation4], 32  }
  0xa3   :  { %221 = vsyncadd [#allocation4], 4294967264 }
  0xa4   :  { %126 = vsyncpa [#allocation3], 1 }
  0xa5   :  { %127 = vsyncpa [#allocation6], 1 }
  0xa6   :  { %128 = vsyncpa [#allocation4], 1 }

</bundles_post_ra>
